<compile_context>
chip_gen: v7x
topology: tpu7x:2x2x1
jax: 0.10.0
libtpu: 0.0.40
codegen_flags: <defaults>
</compile_context>

<pallas_src>
import math

import jax
import jax.numpy as jnp
from jax.experimental import pallas as pl
from jax.experimental.pallas import tpu as pltpu

INPUT_DIM = 28 * 28   # 784
HIDDEN1 = 1500
HIDDEN2 = 1000
OUTPUT_DIM = 10

LANE = 128
SUBLANE = 8

# Lane-aligned, zero-padded sizes (exact math, no masked edge tiles).
INPUT_PAD = 896       # 7 * 128
HIDDEN1_PAD = 1536    # 12 * 128 (6 x 256 MXU tiles on v6e/v7x)
HIDDEN2_PAD = 1024    # 8 * 128
OUTPUT_PAD = 128      # lane-dense output store, sliced back to 10 outside

TILE_B = 128          # batch rows per grid step (weights stay resident across steps)


def _round_up(x, m):
    return ((x + m - 1) // m) * m


def mlp_kernel(x_ref, w1_ref, b1_ref, w2_ref, b2_ref, w3_ref, b3_ref, o_ref):
    # x/weights are bf16; all matmuls accumulate in f32 on the MXU; biases are f32.
    x = x_ref[...]
    h1 = jnp.dot(x, w1_ref[...], preferred_element_type=jnp.float32) + b1_ref[...]
    h1 = jnp.maximum(h1, 0.0).astype(jnp.bfloat16)                 # ReLU
    h2 = jnp.dot(h1, w2_ref[...], preferred_element_type=jnp.float32) + b2_ref[...]
    h2 = jnp.maximum(h2, 0.0).astype(jnp.bfloat16)                 # ReLU
    out = jnp.dot(h2, w3_ref[...], preferred_element_type=jnp.float32) + b3_ref[...]
    o_ref[...] = out.astype(o_ref.dtype)


def _pad2(a, rows, cols):
    r, c = a.shape
    return jnp.pad(a, ((0, rows - r), (0, cols - c)))


def prepare_padded_params(params):
    """Zero-pad to lane-aligned shapes; weights -> bf16, biases stay f32."""
    w1 = _pad2(params["w1"], INPUT_PAD, HIDDEN1_PAD).astype(jnp.bfloat16)
    b1 = _pad2(params["b1"], 1, HIDDEN1_PAD)
    w2 = _pad2(params["w2"], HIDDEN1_PAD, HIDDEN2_PAD).astype(jnp.bfloat16)
    b2 = _pad2(params["b2"], 1, HIDDEN2_PAD)
    w3 = _pad2(params["w3"], HIDDEN2_PAD, OUTPUT_PAD).astype(jnp.bfloat16)
    b3 = _pad2(params["b3"], 1, OUTPUT_PAD)
    return w1, b1, w2, b2, w3, b3


def logistic_regression_forward(x, params):
    """x: (B, 784) float32.  params: dict of f32 w1,b1,w2,b2,w3,b3 (unpadded)."""
    B = x.shape[0]
    tile_b = min(TILE_B, _round_up(B, SUBLANE))
    b_pad = _round_up(B, tile_b)

    x_p = jnp.pad(x, ((0, b_pad - B), (0, INPUT_PAD - INPUT_DIM))).astype(jnp.bfloat16)
    w1, b1, w2, b2, w3, b3 = prepare_padded_params(params)

    def resident(shape):
        # Constant block index: fetched once, stays resident in VMEM across batch tiles.
        return pl.BlockSpec(shape, lambda i: (0, 0))

    out_padded = pl.pallas_call(
        mlp_kernel,
        out_shape=jax.ShapeDtypeStruct((b_pad, OUTPUT_PAD), jnp.float32),
        grid_spec=pltpu.PrefetchScalarGridSpec(
            num_scalar_prefetch=0,
            grid=(b_pad // tile_b,),
            in_specs=[
                pl.BlockSpec((tile_b, INPUT_PAD), lambda i: (i, 0)),   # x tile
                resident((INPUT_PAD, HIDDEN1_PAD)),                    # w1
                resident((1, HIDDEN1_PAD)),                            # b1
                resident((HIDDEN1_PAD, HIDDEN2_PAD)),                  # w2
                resident((1, HIDDEN2_PAD)),                            # b2
                resident((HIDDEN2_PAD, OUTPUT_PAD)),                   # w3
                resident((1, OUTPUT_PAD)),                             # b3
            ],
            out_specs=pl.BlockSpec((tile_b, OUTPUT_PAD), lambda i: (i, 0)),
        ),
        compiler_params=pltpu.CompilerParams(
            dimension_semantics=("parallel",),       # v7x: both TCs split batch tiles
            vmem_limit_bytes=32 << 20,               # ~15 MB actually needed; fits v7x 64 MiB/TC
        ),
    )(x_p, w1, b1, w2, b2, w3, b3)

    return out_padded[:B, :OUTPUT_DIM]


def init_params(key):
    """Deterministic init matching torch nn.Linear default (U[-1/sqrt(fan_in), 1/sqrt(fan_in)]).

    Weights stored as (in_features, out_features) so the kernel computes x @ W (== torch x @ W.T).
    """
    def linear_init(k, fan_in, fan_out):
        kw, kb = jax.random.split(k)
        bound = 1.0 / math.sqrt(fan_in)
        w = jax.random.uniform(kw, (fan_in, fan_out), jnp.float32, -bound, bound)
        b = jax.random.uniform(kb, (1, fan_out), jnp.float32, -bound, bound)
        return w, b

    k1, k2, k3 = jax.random.split(key, 3)
    w1, b1 = linear_init(k1, INPUT_DIM, HIDDEN1)
    w2, b2 = linear_init(k2, HIDDEN1, HIDDEN2)
    w3, b3 = linear_init(k3, HIDDEN2, OUTPUT_DIM)
    return dict(w1=w1, b1=b1, w2=w2, b2=b2, w3=w3, b3=b3)


def reference_forward(x, p):
    h1 = jnp.maximum(x @ p["w1"] + p["b1"], 0.0)
    h2 = jnp.maximum(h1 @ p["w2"] + p["b2"], 0.0)
    return h2 @ p["w3"] + p["b3"]


if __name__ == "__main__":
    key = jax.random.PRNGKey(0)
    kx, kp = jax.random.split(key)

    batch = 8  # feature dim is fixed at 28*28 = 784 by the module
    x = jax.random.normal(kx, (batch, INPUT_DIM), dtype=jnp.float32)
    params = init_params(kp)

    out = jax.block_until_ready(logistic_regression_forward(x, params))

    # sanity check against pure-JAX f32 reference (tolerance relaxed for bf16 weights)
    ref = jax.block_until_ready(reference_forward(x, params))
    assert out.shape == (batch, OUTPUT_DIM)
    assert jnp.allclose(out, ref, atol=5e-2, rtol=5e-2), "mismatch vs reference"

    print("KERNEL_OK")
</pallas_src>

<mosaic_0001>
module attributes {stable_mosaic.version = 11 : i64} {
  func.func @mlp_kernel(%arg0: i32, %arg1: memref<8x896xbf16, #tpu.memory_space<vmem>>, %arg2: memref<896x1536xbf16, #tpu.memory_space<vmem>>, %arg3: memref<1x1536xf32, #tpu.memory_space<vmem>>, %arg4: memref<1536x1024xbf16, #tpu.memory_space<vmem>>, %arg5: memref<1x1024xf32, #tpu.memory_space<vmem>>, %arg6: memref<1024x128xbf16, #tpu.memory_space<vmem>>, %arg7: memref<1x128xf32, #tpu.memory_space<vmem>>, %arg8: memref<8x128xf32, #tpu.memory_space<vmem>>) attributes {dimension_semantics = [#tpu.dimension_semantics<parallel>], iteration_bounds = array<i64: 1>, scalar_prefetch = 0 : i64, scratch_operands = 0 : i64, tpu.core_type = #tpu.core_type<tc>, window_params = [{transform_indices = @transform_0, window_bounds = array<i64: 8, 896>}, {pipeline_mode = #tpu.pipeline_mode<synchronous>, transform_indices = @transform_1, window_bounds = array<i64: 896, 1536>}, {pipeline_mode = #tpu.pipeline_mode<synchronous>, transform_indices = @transform_2, window_bounds = array<i64: 1, 1536>}, {pipeline_mode = #tpu.pipeline_mode<synchronous>, transform_indices = @transform_3, window_bounds = array<i64: 1536, 1024>}, {pipeline_mode = #tpu.pipeline_mode<synchronous>, transform_indices = @transform_4, window_bounds = array<i64: 1, 1024>}, {pipeline_mode = #tpu.pipeline_mode<synchronous>, transform_indices = @transform_5, window_bounds = array<i64: 1024, 128>}, {pipeline_mode = #tpu.pipeline_mode<synchronous>, transform_indices = @transform_6, window_bounds = array<i64: 1, 128>}, {transform_indices = @transform_7, window_bounds = array<i64: 8, 128>}]} {
    %c0 = arith.constant 0 : index
    %c0_0 = arith.constant 0 : index
    %0 = vector.load %arg1[%c0, %c0_0] : memref<8x896xbf16, #tpu.memory_space<vmem>>, vector<8x896xbf16>
    %c0_1 = arith.constant 0 : index
    %c0_2 = arith.constant 0 : index
    %1 = vector.load %arg2[%c0_1, %c0_2] : memref<896x1536xbf16, #tpu.memory_space<vmem>>, vector<896x1536xbf16>
    %cst = arith.constant dense<0.000000e+00> : vector<8x1536xf32>
    %2 = tpu.matmul %0, %1, %cst {dimension_numbers = #tpu.dot_dimension_numbers<[1], [0], [0], [1], [0, 0, 1, 1], [], []>} : vector<8x896xbf16>, vector<896x1536xbf16>, vector<8x1536xf32> -> vector<8x1536xf32>
    %c0_3 = arith.constant 0 : index
    %c0_4 = arith.constant 0 : index
    %3 = vector.load %arg3[%c0_3, %c0_4] : memref<1x1536xf32, #tpu.memory_space<vmem>>, vector<1x1536xf32>
    %4 = vector.broadcast %3 : vector<1x1536xf32> to vector<8x1536xf32>
    %5 = arith.addf %2, %4 : vector<8x1536xf32>
    %cst_5 = arith.constant 0.000000e+00 : f32
    %6 = vector.broadcast %cst_5 : f32 to vector<8x1536xf32>
    %7 = arith.maximumf %5, %6 : vector<8x1536xf32>
    %8 = arith.truncf %7 : vector<8x1536xf32> to vector<8x1536xbf16>
    %c0_6 = arith.constant 0 : index
    %c0_7 = arith.constant 0 : index
    %9 = vector.load %arg4[%c0_6, %c0_7] : memref<1536x1024xbf16, #tpu.memory_space<vmem>>, vector<1536x1024xbf16>
    %cst_8 = arith.constant dense<0.000000e+00> : vector<8x1024xf32>
    %10 = tpu.matmul %8, %9, %cst_8 {dimension_numbers = #tpu.dot_dimension_numbers<[1], [0], [0], [1], [0, 0, 1, 1], [], []>} : vector<8x1536xbf16>, vector<1536x1024xbf16>, vector<8x1024xf32> -> vector<8x1024xf32>
    %c0_9 = arith.constant 0 : index
    %c0_10 = arith.constant 0 : index
    %11 = vector.load %arg5[%c0_9, %c0_10] : memref<1x1024xf32, #tpu.memory_space<vmem>>, vector<1x1024xf32>
    %12 = vector.broadcast %11 : vector<1x1024xf32> to vector<8x1024xf32>
    %13 = arith.addf %10, %12 : vector<8x1024xf32>
    %cst_11 = arith.constant 0.000000e+00 : f32
    %14 = vector.broadcast %cst_11 : f32 to vector<8x1024xf32>
    %15 = arith.maximumf %13, %14 : vector<8x1024xf32>
    %16 = arith.truncf %15 : vector<8x1024xf32> to vector<8x1024xbf16>
    %c0_12 = arith.constant 0 : index
    %c0_13 = arith.constant 0 : index
    %17 = vector.load %arg6[%c0_12, %c0_13] : memref<1024x128xbf16, #tpu.memory_space<vmem>>, vector<1024x128xbf16>
    %cst_14 = arith.constant dense<0.000000e+00> : vector<8x128xf32>
    %18 = tpu.matmul %16, %17, %cst_14 {dimension_numbers = #tpu.dot_dimension_numbers<[1], [0], [0], [1], [0, 0, 1, 1], [], []>} : vector<8x1024xbf16>, vector<1024x128xbf16>, vector<8x128xf32> -> vector<8x128xf32>
    %c0_15 = arith.constant 0 : index
    %c0_16 = arith.constant 0 : index
    %19 = vector.load %arg7[%c0_15, %c0_16] : memref<1x128xf32, #tpu.memory_space<vmem>>, vector<1x128xf32>
    %20 = vector.broadcast %19 : vector<1x128xf32> to vector<8x128xf32>
    %21 = arith.addf %18, %20 : vector<8x128xf32>
    %c0_17 = arith.constant 0 : index
    %c0_18 = arith.constant 0 : index
    %22 = vector.load %arg8[%c0_17, %c0_18] : memref<8x128xf32, #tpu.memory_space<vmem>>, vector<8x128xf32>
    tpu.vector_store %arg8[%c0_17, %c0_18], %21 {strides = array<i32>} : memref<8x128xf32, #tpu.memory_space<vmem>>, vector<8x128xf32>,
    return
  }
  func.func @transform_0(%arg0: i32) -> (i32, i32) {
    %c0_i32 = arith.constant 0 : i32
    %c0_i32_0 = arith.constant 0 : i32
    return %arg0, %c0_i32 : i32, i32
  }
  func.func @transform_1(%arg0: i32) -> (i32, i32) {
    %c0_i32 = arith.constant 0 : i32
    %c0_i32_0 = arith.constant 0 : i32
    %c0_i32_1 = arith.constant 0 : i32
    return %c0_i32, %c0_i32_0 : i32, i32
  }
  func.func @transform_2(%arg0: i32) -> (i32, i32) {
    %c0_i32 = arith.constant 0 : i32
    %c0_i32_0 = arith.constant 0 : i32
    %c0_i32_1 = arith.constant 0 : i32
    return %c0_i32, %c0_i32_0 : i32, i32
  }
  func.func @transform_3(%arg0: i32) -> (i32, i32) {
    %c0_i32 = arith.constant 0 : i32
    %c0_i32_0 = arith.constant 0 : i32
    %c0_i32_1 = arith.constant 0 : i32
    return %c0_i32, %c0_i32_0 : i32, i32
  }
  func.func @transform_4(%arg0: i32) -> (i32, i32) {
    %c0_i32 = arith.constant 0 : i32
    %c0_i32_0 = arith.constant 0 : i32
    %c0_i32_1 = arith.constant 0 : i32
    return %c0_i32, %c0_i32_0 : i32, i32
  }
  func.func @transform_5(%arg0: i32) -> (i32, i32) {
    %c0_i32 = arith.constant 0 : i32
    %c0_i32_0 = arith.constant 0 : i32
    %c0_i32_1 = arith.constant 0 : i32
    return %c0_i32, %c0_i32_0 : i32, i32
  }
  func.func @transform_6(%arg0: i32) -> (i32, i32) {
    %c0_i32 = arith.constant 0 : i32
    %c0_i32_0 = arith.constant 0 : i32
    %c0_i32_1 = arith.constant 0 : i32
    return %c0_i32, %c0_i32_0 : i32, i32
  }
  func.func @transform_7(%arg0: i32) -> (i32, i32) {
    %c0_i32 = arith.constant 0 : i32
    %c0_i32_0 = arith.constant 0 : i32
    return %arg0, %c0_i32 : i32, i32
  }
}

</mosaic_0001>

<bundles_post_ra>
// kernel: tpu_custom_call.1
= control target key start
LH: loop header
LB: loop body
LE: loop exit
PB: predicated region body
PF: predicated region fallthrough
CT: control target
= control target key end

     0   :  { %12 = vsyncpa [#allocation3], 0  ;;  %s15062_s0 = inlined_call_operand.hbm [shape: bf16[8,896], index: 0, kind: input, shape index: {}]   ;;  %s15063_s1 = inlined_call_operand.hbm [shape: bf16[896,1536], index: 1, kind: input, shape index: {}]   ;;  %s15064_s2 = inlined_call_operand.hbm [shape: f32[1,1536], index: 2, kind: input, shape index: {}]   ;;  %s15065_s3 = inlined_call_operand.hbm [shape: bf16[1536,1024], index: 3, kind: input, shape index: {}]   ;;  %s15066_s4 = inlined_call_operand.hbm [shape: f32[1,1024], index: 4, kind: input, shape index: {}]   ;;  %s15067_s5 = inlined_call_operand.hbm [shape: bf16[1024,128], index: 5, kind: input, shape index: {}]   ;;  %s15068_s6 = inlined_call_operand.hbm [shape: f32[1,128], index: 6, kind: input, shape index: {}]   ;;  %s15069_s7 = inlined_call_operand.hbm [shape: f32[8,128], index: 7, kind: output, shape index: {}]  }
   0x1   :  { %13 = vsyncpa [#allocation6], 0 }
   0x2   :  { %14 = vsyncpa [#allocation9], 0 }
   0x3   :  { %15 = vsyncpa [#allocation12], 0 }
   0x4   :  { %16 = vsyncpa [#allocation4], 0  ;;  %s14651_s24 = smov [#allocation5]   ;;  %s14465_s28 = scalar_lea.hbm %s15063_s1, 86016 }
   0x5   :  { %s32_s25 = sshll.u32 %s14651_s24, 4  ;;  %p14466_p0 = scmp.ne.s32.totalorder %s15063_s1, %s14465_s28  ;;  %s33_s25 = int_to_ptr.vmem [resolvable:$true] %s32_s25 }
   0x6   :  { %p14469_p1 = scmp.lt.u32.totalorder %s14465_s28, %s15063_s1 }
   0x8   :  { %p14471_p2 = pnand %p14469_p1, %p14466_p0 }
   0xa   :  { %14474 = shalt.err (!%p14471_p2)
}
   0xb   :  { %s14475_s10 = scalar_lea.vmem %s33_s25, 86016  ;;  %p14480_p4 = scmp.lt.s32.totalorder %s33_s25, %s33_s25 }
   0xc   :  { %p14476_p3 = scmp.ne.s32.totalorder %s33_s25, %s14475_s10  ;;  %p14481_p5 = scmp.lt.s32.totalorder %s14475_s10, %s14475_s10 }
   0xe   :  { %p14482_p6 = por %p14481_p5, %p14480_p4 }
  0x10   :  { %p14483_p7 = pnand %p14482_p6, %p14476_p3 }
  0x12   :  { %14486 = shalt.err (!%p14483_p7)
}
  0x13   :  { %s14652_s11 = smov 768   ;;  %s14653_s12 = smov 48  }
  0x14   :  { %38 = dma.hbm_to_vmem [thread:$0]  %s15063_s1, 86016, %s33_s25, [#allocation6], %s14652_s11, %s14652_s11, %s14653_s12  }
  0x15   :  { %s14654_s15 = smov [#allocation8]   ;;  %s14487_s19 = scalar_lea.hbm %s15065_s3, 98304 }
  0x16   :  { %s54_s16 = sshll.u32 %s14654_s15, 4  ;;  %p14488_p8 = scmp.ne.s32.totalorder %s15065_s3, %s14487_s19  ;;  %s55_s16 = int_to_ptr.vmem [resolvable:$true] %s54_s16 }
  0x17   :  { %p14491_p9 = scmp.lt.u32.totalorder %s14487_s19, %s15065_s3 }
  0x19   :  { %p14493_p10 = pnand %p14491_p9, %p14488_p8 }
  0x1b   :  { %14496 = shalt.err (!%p14493_p10)
}
  0x1c   :  { %s14497_s24 = scalar_lea.vmem %s55_s16, 98304  ;;  %p14502_p12 = scmp.lt.s32.totalorder %s55_s16, %s55_s16 }
  0x1d   :  { %p14498_p11 = scmp.ne.s32.totalorder %s55_s16, %s14497_s24  ;;  %p14503_p13 = scmp.lt.s32.totalorder %s14497_s24, %s14497_s24 }
  0x1f   :  { %p14504_p0 = por %p14503_p13, %p14502_p12 }
  0x21   :  { %p14505_p1 = pnand %p14504_p0, %p14498_p11 }
  0x23   :  { %14508 = shalt.err (!%p14505_p1)
}
  0x24   :  { %s14655_s1 = smov 512   ;;  %s14656_s25 = smov 32  }
  0x25   :  { %60 = dma.hbm_to_vmem [thread:$0]  %s15065_s3, 98304, %s55_s16, [#allocation9], %s14655_s1, %s14655_s1, %s14656_s25  }
  0x26   :  { %s14657_s28 = smov [#allocation11]   ;;  %s14509_s9 = scalar_lea.hbm %s15067_s5, 8192 }
  0x27   :  { %s76_s29 = sshll.u32 %s14657_s28, 4  ;;  %p14510_p2 = scmp.ne.s32.totalorder %s15067_s5, %s14509_s9  ;;  %s77_s29 = int_to_ptr.vmem [resolvable:$true] %s76_s29 }
  0x28   :  { %p14513_p3 = scmp.lt.u32.totalorder %s14509_s9, %s15067_s5 }
  0x2a   :  { %p14515_p4 = pnand %p14513_p3, %p14510_p2 }
  0x2c   :  { %14518 = shalt.err (!%p14515_p4)
}
  0x2d   :  { %s14519_s14 = scalar_lea.vmem %s77_s29, 8192  ;;  %p14524_p6 = scmp.lt.s32.totalorder %s77_s29, %s77_s29 }
  0x2e   :  { %p14520_p5 = scmp.ne.s32.totalorder %s77_s29, %s14519_s14  ;;  %p14525_p7 = scmp.lt.s32.totalorder %s14519_s14, %s14519_s14 }
  0x30   :  { %p14526_p8 = por %p14525_p7, %p14524_p6 }
  0x32   :  { %p14527_p9 = pnand %p14526_p8, %p14520_p5 }
  0x34   :  { %14530 = shalt.err (!%p14527_p9)
}
  0x35   :  { %s14658_s3 = smov 64   ;;  %s14659_s15 = smov 4  }
  0x36   :  { %82 = dma.hbm_to_vmem [thread:$0]  %s15067_s5, 8192, %s77_s29, [#allocation12], %s14658_s3, %s14658_s3, %s14659_s15  }
  0x37   :  { %s14660_s18 = smov [#allocation2]   ;;  %s14661_s20 = smov [#allocation7]  }
  0x38   :  { %s23_s19 = sshll.u32 %s14660_s18, 4  ;;  %s45_s21 = sshll.u32 %s14661_s20, 4  ;;  %s24_s19 = int_to_ptr.vmem [resolvable:$true] %s23_s19  ;;  %s46_s21 = int_to_ptr.vmem [resolvable:$true] %s45_s21 }
  0x39   :  { %s14531_s24 = scalar_lea.hbm %s15062_s0, 448 }
  0x3a   :  { %p14532_p10 = scmp.ne.s32.totalorder %s15062_s0, %s14531_s24  ;;  %p14535_p11 = scmp.lt.u32.totalorder %s14531_s24, %s15062_s0 }
  0x3c   :  { %p14537_p12 = pnand %p14535_p11, %p14532_p10 }
  0x3e   :  { %14540 = shalt.err (!%p14537_p12)
}
  0x3f   :  { %s14541_s5 = scalar_lea.vmem %s24_s19, 448  ;;  %p14546_p0 = scmp.lt.s32.totalorder %s24_s19, %s24_s19 }
  0x40   :  { %p14542_p13 = scmp.ne.s32.totalorder %s24_s19, %s14541_s5  ;;  %p14547_p1 = scmp.lt.s32.totalorder %s14541_s5, %s14541_s5 }
  0x42   :  { %p14548_p2 = por %p14547_p1, %p14546_p0 }
  0x44   :  { %p14549_p3 = pnand %p14548_p2, %p14542_p13 }
  0x46   :  { %14552 = shalt.err (!%p14549_p3)
}
  0x47   :  { %26 = dma.hbm_to_vmem [thread:$0]  %s15062_s0, 448, %s24_s19, [#allocation3]  }
  0x48   :  { %s14553_s9 = scalar_lea.hbm %s15064_s2, 192 }
  0x49   :  { %p14554_p4 = scmp.ne.s32.totalorder %s15064_s2, %s14553_s9  ;;  %p14557_p5 = scmp.lt.u32.totalorder %s14553_s9, %s15064_s2 }
  0x4b   :  { %p14559_p6 = pnand %p14557_p5, %p14554_p4 }
  0x4d   :  { %14562 = shalt.err (!%p14559_p6)
}
  0x4e   :  { %s14563_s14 = scalar_lea.vmem %s46_s21, 192  ;;  %p14568_p8 = scmp.lt.s32.totalorder %s46_s21, %s46_s21 }
  0x4f   :  { %p14564_p7 = scmp.ne.s32.totalorder %s46_s21, %s14563_s14  ;;  %p14569_p9 = scmp.lt.s32.totalorder %s14563_s14, %s14563_s14 }
  0x51   :  { %p14570_p10 = por %p14569_p9, %p14568_p8 }
  0x53   :  { %p14571_p11 = pnand %p14570_p10, %p14564_p7 }
  0x55   :  { %14574 = shalt.err (!%p14571_p11)
}
  0x56   :  { %48 = dma.hbm_to_vmem [thread:$0]  %s15064_s2, 192, %s46_s21, [#allocation6]  }
  0x57   :  { %s14662_s15 = smov [#allocation10]   ;;  %s14663_s17 = smov [#allocation13]  }
  0x58   :  { %s67_s16 = sshll.u32 %s14662_s15, 4  ;;  %s89_s18 = sshll.u32 %s14663_s17, 4  ;;  %s68_s16 = int_to_ptr.vmem [resolvable:$true] %s67_s16  ;;  %s90_s18 = int_to_ptr.vmem [resolvable:$true] %s89_s18 }
  0x59   :  { %s14575_s22 = scalar_lea.hbm %s15066_s4, 128 }
  0x5a   :  { %p14576_p12 = scmp.ne.s32.totalorder %s15066_s4, %s14575_s22  ;;  %p14579_p13 = scmp.lt.u32.totalorder %s14575_s22, %s15066_s4 }
  0x5c   :  { %p14581_p0 = pnand %p14579_p13, %p14576_p12 }
  0x5e   :  { %14584 = shalt.err (!%p14581_p0)
}
  0x5f   :  { %s14585_s2 = scalar_lea.vmem %s68_s16, 128  ;;  %p14590_p2 = scmp.lt.s32.totalorder %s68_s16, %s68_s16 }
  0x60   :  { %p14586_p1 = scmp.ne.s32.totalorder %s68_s16, %s14585_s2  ;;  %p14591_p3 = scmp.lt.s32.totalorder %s14585_s2, %s14585_s2 }
  0x62   :  { %p14592_p4 = por %p14591_p3, %p14590_p2 }
  0x64   :  { %p14593_p5 = pnand %p14592_p4, %p14586_p1 }
  0x66   :  { %14596 = shalt.err (!%p14593_p5)
}
  0x67   :  { %70 = dma.hbm_to_vmem [thread:$0]  %s15066_s4, 128, %s68_s16, [#allocation9]  }
  0x68   :  { %s14597_s28 = scalar_lea.hbm %s15068_s6, 16 }
  0x69   :  { %p14598_p6 = scmp.ne.s32.totalorder %s15068_s6, %s14597_s28  ;;  %p14601_p7 = scmp.lt.u32.totalorder %s14597_s28, %s15068_s6 }
  0x6b   :  { %p14603_p8 = pnand %p14601_p7, %p14598_p6 }
  0x6d   :  { %14606 = shalt.err (!%p14603_p8)
}
  0x6e   :  { %s14607_s10 = scalar_lea.vmem %s90_s18, 16  ;;  %s14611_s11 = scalar_lea.vmem %s90_s18, 32 }
  0x6f   :  { %p14608_p9 = scmp.ne.s32.totalorder %s90_s18, %s14607_s10  ;;  %p14612_p10 = scmp.lt.s32.totalorder %s90_s18, %s90_s18 }
  0x70   :  { %p14613_p11 = scmp.lt.s32.totalorder %s14611_s11, %s14607_s10 }
  0x72   :  { %p14614_p12 = por %p14613_p11, %p14612_p10 }
  0x74   :  { %p14615_p13 = pnand %p14614_p12, %p14608_p9 }
  0x76   :  { %14618 = shalt.err (!%p14615_p13)
}
  0x77   :  { %92 = dma.hbm_to_vmem [thread:$0]  %s15068_s6, 16, %s90_s18, [#allocation12]  }
  0x78   :  { %14641 = dma.done.wait [#allocation3], 448  }
  0x79   :  { %14642 = vsyncadd [#allocation3], 4294966848 }
  0x7a   :  { %14643 = dma.done.wait [#allocation6], 86208  }
  0x7b   :  { %14644 = vsyncadd [#allocation6], 4294881088 }
  0x7c   :  { %14645 = dma.done.wait [#allocation9], 98432  }
  0x7d   :  { %14646 = vsyncadd [#allocation9], 4294868864 }
  0x7e   :  { %14647 = dma.done.wait [#allocation12], 8208  }
  0x7f   :  { %14648 = vsyncadd [#allocation12], 4294959088  ;;  %v13383_v0 = vld [vmem:[#allocation5 + $0x4] ss:$48 sps:$4 sm:$0xff]   ;;  %v13385_v1 = vld [vmem:[#allocation5 + $0xc] ss:$48 sps:$4 sm:$0xff]  }
  0x80   :  { %4240 = vmatprep.subr.bf16.mxu0 %v13383_v0  ;;  %v13387_v2 = vld [vmem:[#allocation5] ss:$48 sps:$4 sm:$0xff]   ;;  %v13388_v3 = vld [vmem:[#allocation5 + $0x8] ss:$48 sps:$4 sm:$0xff]   ;;  %4404 = vmatprep.subr.bf16.mxu1 %v13385_v1  ;;  %v13389_v4 = vld [vmem:[#allocation5 + $0x64] ss:$48 sps:$4 sm:$0xff]  }
  0x81   :  { %4241 = vmatpush1.bf16.msra.mxu0 %v13387_v2  ;;  %4405 = vmatpush1.bf16.msra.mxu1 %v13388_v3  ;;  %v13391_v5 = vld [vmem:[#allocation5 + $0x6c] ss:$48 sps:$4 sm:$0xff]   ;;  %v13393_v6 = vld [vmem:[#allocation5 + $0x60] ss:$48 sps:$4 sm:$0xff]   ;;  %v13394_v7 = vld [vmem:[#allocation5 + $0x68] ss:$48 sps:$4 sm:$0xff]  }
  0x82   :  { %4242 = vmatprep.subr.bf16.mxu0 %v13389_v4  ;;  %4406 = vmatprep.subr.bf16.mxu1 %v13391_v5  ;;  %v13395_v8 = vld [vmem:[#allocation5 + $0xc4] ss:$48 sps:$4 sm:$0xff]   ;;  %v13397_v9 = vld [vmem:[#allocation5 + $0xcc] ss:$48 sps:$4 sm:$0xff]   ;;  %v13399_v10 = vld [vmem:[#allocation5 + $0xc0] ss:$48 sps:$4 sm:$0xff]  }
  0x83   :  { %v13400_v11 = vld [vmem:[#allocation5 + $0xc8] ss:$48 sps:$4 sm:$0xff]   ;;  %v13401_v12 = vld [vmem:[#allocation5 + $0x124] ss:$48 sps:$4 sm:$0xff]   ;;  %v13403_v13 = vld [vmem:[#allocation5 + $0x12c] ss:$48 sps:$4 sm:$0xff]  }
  0x84   :  { %v13405_v14 = vld [vmem:[#allocation5 + $0x120] ss:$48 sps:$4 sm:$0xff]   ;;  %v13406_v15 = vld [vmem:[#allocation5 + $0x128] ss:$48 sps:$4 sm:$0xff]   ;;  %v13407_v16 = vld [vmem:[#allocation5 + $0x184] ss:$48 sps:$4 sm:$0xff]  }
  0x85   :  { %4243 = vmatpush1.bf16.msra.mxu0 %v13393_v6  ;;  %4407 = vmatpush1.bf16.msra.mxu1 %v13394_v7  ;;  %v13409_v17 = vld [vmem:[#allocation5 + $0x18c] ss:$48 sps:$4 sm:$0xff]   ;;  %v13411_v18 = vld [vmem:[#allocation5 + $0x180] ss:$48 sps:$4 sm:$0xff]   ;;  %v13412_v19 = vld [vmem:[#allocation5 + $0x188] ss:$48 sps:$4 sm:$0xff]  }
  0x86   :  { %4244 = vmatprep.subr.bf16.mxu0 %v13395_v8  ;;  %4408 = vmatprep.subr.bf16.mxu1 %v13397_v9  ;;  %v13413_v20 = vld [vmem:[#allocation5 + $0x1e4] ss:$48 sps:$4 sm:$0xff]   ;;  %v13415_v21 = vld [vmem:[#allocation5 + $0x1ec] ss:$48 sps:$4 sm:$0xff]   ;;  %v13417_v22 = vld [vmem:[#allocation5 + $0x1e0] ss:$48 sps:$4 sm:$0xff]  }
  0x87   :  { %v13418_v23 = vld [vmem:[#allocation5 + $0x1e8] ss:$48 sps:$4 sm:$0xff]   ;;  %v13419_v24 = vld [vmem:[#allocation5 + $0x244] ss:$48 sps:$4 sm:$0xff]   ;;  %v13421_v25 = vld [vmem:[#allocation5 + $0x24c] ss:$48 sps:$4 sm:$0xff]  }
  0x88   :  { %v13423_v26 = vld [vmem:[#allocation5 + $0x240] ss:$48 sps:$4 sm:$0xff]   ;;  %v13424_v27 = vld [vmem:[#allocation5 + $0x248] ss:$48 sps:$4 sm:$0xff]   ;;  %v13425_v28 = vld [vmem:[#allocation5 + $0x2a4] ss:$48 sps:$4 sm:$0xff]  }
  0x89   :  { %4245 = vmatpush1.bf16.msra.mxu0 %v13399_v10  ;;  %4409 = vmatpush1.bf16.msra.mxu1 %v13400_v11  ;;  %v13427_v29 = vld [vmem:[#allocation5 + $0x2ac] ss:$48 sps:$4 sm:$0xff]   ;;  %v13429_v30 = vld [vmem:[#allocation5 + $0x2a0] ss:$48 sps:$4 sm:$0xff]   ;;  %v13430_v31 = vld [vmem:[#allocation5 + $0x2a8] ss:$48 sps:$4 sm:$0xff]  }
  0x8a   :  { %4246 = vmatprep.subr.bf16.mxu0 %v13401_v12  ;;  %4410 = vmatprep.subr.bf16.mxu1 %v13403_v13  ;;  %v13431_v32 = vld [vmem:[#allocation5 + $0x304] ss:$48 sps:$4 sm:$0xff]   ;;  %v13433_v33 = vld [vmem:[#allocation5 + $0x30c] ss:$48 sps:$4 sm:$0xff]   ;;  %v13435_v34 = vld [vmem:[#allocation5 + $0x300] ss:$48 sps:$4 sm:$0xff]  }
  0x8b   :  { %v13436_v35 = vld [vmem:[#allocation5 + $0x308] ss:$48 sps:$4 sm:$0xff]   ;;  %v13437_v36 = vld [vmem:[#allocation5 + $0x364] ss:$48 sps:$4 sm:$0xff]   ;;  %v13439_v37 = vld [vmem:[#allocation5 + $0x36c] ss:$48 sps:$4 sm:$0xff]  }
  0x8c   :  { %v13441_v38 = vld [vmem:[#allocation5 + $0x360] ss:$48 sps:$4 sm:$0xff]   ;;  %v13442_v39 = vld [vmem:[#allocation5 + $0x368] ss:$48 sps:$4 sm:$0xff]   ;;  %v13443_v40 = vld [vmem:[#allocation5 + $0x3c4] ss:$48 sps:$4 sm:$0xff]  }
  0x8d   :  { %4247 = vmatpush1.bf16.msra.mxu0 %v13405_v14  ;;  %4411 = vmatpush1.bf16.msra.mxu1 %v13406_v15  ;;  %v13445_v41 = vld [vmem:[#allocation5 + $0x3cc] ss:$48 sps:$4 sm:$0xff]   ;;  %v13447_v42 = vld [vmem:[#allocation5 + $0x3c0] ss:$48 sps:$4 sm:$0xff]   ;;  %v13448_v43 = vld [vmem:[#allocation5 + $0x3c8] ss:$48 sps:$4 sm:$0xff]  }
  0x8e   :  { %4248 = vmatprep.subr.bf16.mxu0 %v13407_v16  ;;  %4412 = vmatprep.subr.bf16.mxu1 %v13409_v17  ;;  %v13449_v44 = vld [vmem:[#allocation5 + $0x424] ss:$48 sps:$4 sm:$0xff]   ;;  %v13451_v45 = vld [vmem:[#allocation5 + $0x42c] ss:$48 sps:$4 sm:$0xff]   ;;  %v13453_v47 = vld [vmem:[#allocation5 + $0x420] ss:$48 sps:$4 sm:$0xff]  }
  0x8f   :  { %v115_v46 = vld [vmem:[#allocation2] sm:$0xff]  ;;  %v13457_v51 = vld [vmem:[#allocation5 + $0x48c] ss:$48 sps:$4 sm:$0xff]   ;;  %v13459_v52 = vld [vmem:[#allocation5 + $0x480] ss:$48 sps:$4 sm:$0xff]   ;;  %s14665_s6 = smov [#allocation14]  }
  0x90   :  { %v14790_v48 = vcombine.high %v115_v46, %v115_v46  ;;  %v13454_v49 = vld [vmem:[#allocation5 + $0x428] ss:$48 sps:$4 sm:$0xff]   ;;  %v13455_v50 = vld [vmem:[#allocation5 + $0x484] ss:$48 sps:$4 sm:$0xff]   ;;  %v13463_v55 = vld [vmem:[#allocation5 + $0x4ec] ss:$48 sps:$4 sm:$0xff]   ;;  %v14794_v5 = vcombine.low %v115_v46, %v115_v46 }
  0x91   :  { %4249 = vmatpush1.bf16.msra.mxu0 %v13411_v18  ;;  %4413 = vmatpush1.bf16.msra.mxu1 %v13412_v19  ;;  %v13460_v53 = vld [vmem:[#allocation5 + $0x488] ss:$48 sps:$4 sm:$0xff]   ;;  %v13461_v54 = vld [vmem:[#allocation5 + $0x4e4] ss:$48 sps:$4 sm:$0xff]   ;;  %v13465_v56 = vld [vmem:[#allocation5 + $0x4e0] ss:$48 sps:$4 sm:$0xff]  }
  0x92   :  { %4250 = vmatprep.subr.bf16.mxu0 %v13413_v20  ;;  %4414 = vmatprep.subr.bf16.mxu1 %v13415_v21  ;;  %v13466_v57 = vld [vmem:[#allocation5 + $0x4e8] ss:$48 sps:$4 sm:$0xff]   ;;  %v13467_v58 = vld [vmem:[#allocation5 + $0x544] ss:$48 sps:$4 sm:$0xff]   ;;  %v13469_v59 = vld [vmem:[#allocation5 + $0x54c] ss:$48 sps:$4 sm:$0xff]  }
  0x93   :  { %4272 = vmatprep.mubr.bf16.mxu0 %v14790_v48  ;;  %4436 = vmatprep.mubr.bf16.mxu1 %v14790_v48  ;;  %v13471_v60 = vld [vmem:[#allocation5 + $0x540] ss:$48 sps:$4 sm:$0xff]   ;;  %v13472_v61 = vld [vmem:[#allocation5 + $0x548] ss:$48 sps:$4 sm:$0xff]   ;;  %v13473_v62 = vld [vmem:[#allocation5 + $0x5a4] ss:$48 sps:$4 sm:$0xff]  }
  0x94   :  { %v13475_v63 = vld [vmem:[#allocation5 + $0x5ac] ss:$48 sps:$4 sm:$0xff]   ;;  %v13477_v0 = vld [vmem:[#allocation5 + $0x5a0] ss:$48 sps:$4 sm:$0xff]   ;;  %v13478_v1 = vld [vmem:[#allocation5 + $0x5a8] ss:$48 sps:$4 sm:$0xff]  }
  0x95   :  { %4251 = vmatpush1.bf16.msra.mxu0 %v13417_v22  ;;  %4415 = vmatpush1.bf16.msra.mxu1 %v13418_v23  ;;  %v13482_v2 = vld [vmem:[#allocation5 + $0x604] ss:$48 sps:$4 sm:$0xff]   ;;  %v13485_v3 = vld [vmem:[#allocation5 + $0x60c] ss:$48 sps:$4 sm:$0xff]   ;;  %v13480_v4 = vld [vmem:[#allocation5 + $0x600] ss:$48 sps:$4 sm:$0xff]  }
  0x96   :  { %4252 = vmatprep.subr.bf16.mxu0 %v13419_v24  ;;  %4416 = vmatprep.subr.bf16.mxu1 %v13421_v25  ;;  %v13483_v6 = vld [vmem:[#allocation5 + $0x608] ss:$48 sps:$4 sm:$0xff]   ;;  %v13489_v7 = vld [vmem:[#allocation5 + $0x664] ss:$48 sps:$4 sm:$0xff]   ;;  %v13492_v8 = vld [vmem:[#allocation5 + $0x66c] ss:$48 sps:$4 sm:$0xff]  }
  0x97   :  { %v13487_v9 = vld [vmem:[#allocation5 + $0x660] ss:$48 sps:$4 sm:$0xff]   ;;  %v13490_v10 = vld [vmem:[#allocation5 + $0x668] ss:$48 sps:$4 sm:$0xff]   ;;  %v13495_v11 = vld [vmem:[#allocation5 + $0x6c4] ss:$48 sps:$4 sm:$0xff]  }
  0x98   :  { %v13498_v12 = vld [vmem:[#allocation5 + $0x6cc] ss:$48 sps:$4 sm:$0xff]   ;;  %v13493_v13 = vld [vmem:[#allocation5 + $0x6c0] ss:$48 sps:$4 sm:$0xff]   ;;  %v13496_v14 = vld [vmem:[#allocation5 + $0x6c8] ss:$48 sps:$4 sm:$0xff]  }
  0x99   :  { %4253 = vmatpush1.bf16.msra.mxu0 %v13423_v26  ;;  %4417 = vmatpush1.bf16.msra.mxu1 %v13424_v27  ;;  %v13501_v15 = vld [vmem:[#allocation5 + $0x724] ss:$48 sps:$4 sm:$0xff]   ;;  %v13504_v16 = vld [vmem:[#allocation5 + $0x72c] ss:$48 sps:$4 sm:$0xff]   ;;  %v13499_v17 = vld [vmem:[#allocation5 + $0x720] ss:$48 sps:$4 sm:$0xff]  }
  0x9a   :  { %4254 = vmatprep.subr.bf16.mxu0 %v13425_v28  ;;  %4418 = vmatprep.subr.bf16.mxu1 %v13427_v29  ;;  %v13502_v18 = vld [vmem:[#allocation5 + $0x728] ss:$48 sps:$4 sm:$0xff]   ;;  %v13507_v19 = vld [vmem:[#allocation5 + $0x784] ss:$48 sps:$4 sm:$0xff]   ;;  %v13510_v20 = vld [vmem:[#allocation5 + $0x78c] ss:$48 sps:$4 sm:$0xff]  }
  0x9b   :  { %v13505_v21 = vld [vmem:[#allocation5 + $0x780] ss:$48 sps:$4 sm:$0xff]   ;;  %v13508_v22 = vld [vmem:[#allocation5 + $0x788] ss:$48 sps:$4 sm:$0xff]   ;;  %v13513_v23 = vld [vmem:[#allocation5 + $0x7e4] ss:$48 sps:$4 sm:$0xff]  }
  0x9c   :  { %v13516_v24 = vld [vmem:[#allocation5 + $0x7ec] ss:$48 sps:$4 sm:$0xff]   ;;  %v13511_v25 = vld [vmem:[#allocation5 + $0x7e0] ss:$48 sps:$4 sm:$0xff]   ;;  %v13514_v26 = vld [vmem:[#allocation5 + $0x7e8] ss:$48 sps:$4 sm:$0xff]  }
  0x9d   :  { %4255 = vmatpush1.bf16.msra.mxu0 %v13429_v30  ;;  %4419 = vmatpush1.bf16.msra.mxu1 %v13430_v31  ;;  %v13519_v27 = vld [vmem:[#allocation5 + $0x844] ss:$48 sps:$4 sm:$0xff]   ;;  %v13522_v28 = vld [vmem:[#allocation5 + $0x84c] ss:$48 sps:$4 sm:$0xff]   ;;  %v13517_v31 = vld [vmem:[#allocation5 + $0x840] ss:$48 sps:$4 sm:$0xff]  }
  0x9e   :  { %4256 = vmatprep.subr.bf16.mxu0 %v13431_v32  ;;  %4420 = vmatprep.subr.bf16.mxu1 %v13433_v33  ;;  %v14798_v29 = vld [vmem:[#allocation2 + $0x8] sm:$0xff]  ;;  %v13520_v32 = vld [vmem:[#allocation5 + $0x848] ss:$48 sps:$4 sm:$0xff]   ;;  %v13525_v33 = vld [vmem:[#allocation5 + $0x8a4] ss:$48 sps:$4 sm:$0xff]   ;;  %s11584_s13 = sshll.u32 %s14665_s6, 4  ;;  %s11585_s13 = int_to_ptr.vmem [resolvable:$true] %s11584_s13 }
  0x9f   :  { %v14802_v30 = vcombine.high %v14798_v29, %v14798_v29  ;;  %v13546_v46 = vld [vmem:[#allocation5 + $0x9cc] ss:$48 sps:$4 sm:$0xff]   ;;  %s14619_s14 = scalar_lea.vmem %s11585_s13, 128  ;;  %p14624_p1 = scmp.lt.s32.totalorder %s11585_s13, %s11585_s13 }
  0xa0   :  { %p14620_p0 = scmp.ne.s32.totalorder %s11585_s13, %s14619_s14  ;;  %p14625_p2 = scmp.lt.s32.totalorder %s14619_s14, %s14619_s14 }
  0xa1   :  { %4257 = vmatpush1.bf16.msra.mxu0 %v13435_v34  ;;  %4421 = vmatpush1.bf16.msra.mxu1 %v13436_v35  ;;  %v13528_v34 = vld [vmem:[#allocation5 + $0x8ac] ss:$48 sps:$4 sm:$0xff]   ;;  %v13523_v35 = vld [vmem:[#allocation5 + $0x8a0] ss:$48 sps:$4 sm:$0xff]  }
  0xa2   :  { %4258 = vmatprep.subr.bf16.mxu0 %v13437_v36  ;;  %4422 = vmatprep.subr.bf16.mxu1 %v13439_v37  ;;  %v13526_v36 = vld [vmem:[#allocation5 + $0x8a8] ss:$48 sps:$4 sm:$0xff]   ;;  %v13531_v37 = vld [vmem:[#allocation5 + $0x904] ss:$48 sps:$4 sm:$0xff]   ;;  %p14626_p3 = por %p14625_p2, %p14624_p1 }
  0xa4   :  { %p14627_p4 = pnand %p14626_p3, %p14620_p0 }
  0xa5   :  { %4259 = vmatpush1.bf16.msra.mxu0 %v13441_v38  ;;  %4423 = vmatpush1.bf16.msra.mxu1 %v13442_v39  ;;  %v13534_v38 = vld [vmem:[#allocation5 + $0x90c] ss:$48 sps:$4 sm:$0xff]   ;;  %v13529_v39 = vld [vmem:[#allocation5 + $0x900] ss:$48 sps:$4 sm:$0xff]  }
  0xa6   :  { %4260 = vmatprep.subr.bf16.mxu0 %v13443_v40  ;;  %4424 = vmatprep.subr.bf16.mxu1 %v13445_v41  ;;  %v13532_v40 = vld [vmem:[#allocation5 + $0x908] ss:$48 sps:$4 sm:$0xff]   ;;  %v13537_v41 = vld [vmem:[#allocation5 + $0x964] ss:$48 sps:$4 sm:$0xff]  }
  0xa9   :  { %4261 = vmatpush1.bf16.msra.mxu0 %v13447_v42  ;;  %4425 = vmatpush1.bf16.msra.mxu1 %v13448_v43  ;;  %v13540_v42 = vld [vmem:[#allocation5 + $0x96c] ss:$48 sps:$4 sm:$0xff]   ;;  %v13535_v43 = vld [vmem:[#allocation5 + $0x960] ss:$48 sps:$4 sm:$0xff]  }
  0xaa   :  { %4262 = vmatprep.subr.bf16.mxu0 %v13449_v44  ;;  %4426 = vmatprep.subr.bf16.mxu1 %v13451_v45  ;;  %v13538_v44 = vld [vmem:[#allocation5 + $0x968] ss:$48 sps:$4 sm:$0xff]   ;;  %v13543_v45 = vld [vmem:[#allocation5 + $0x9c4] ss:$48 sps:$4 sm:$0xff]  }
  0xad   :  { %4263 = vmatpush1.bf16.msra.mxu0 %v13453_v47  ;;  %4427 = vmatpush1.bf16.msra.mxu1 %v13454_v49  ;;  %v13541_v47 = vld [vmem:[#allocation5 + $0x9c0] ss:$48 sps:$4 sm:$0xff]   ;;  %v13544_v49 = vld [vmem:[#allocation5 + $0x9c8] ss:$48 sps:$4 sm:$0xff]  }
  0xae   :  { %4264 = vmatprep.subr.bf16.mxu0 %v13455_v50  ;;  %4428 = vmatprep.subr.bf16.mxu1 %v13457_v51  ;;  %v13549_v50 = vld [vmem:[#allocation5 + $0xa24] ss:$48 sps:$4 sm:$0xff]   ;;  %v13552_v51 = vld [vmem:[#allocation5 + $0xa2c] ss:$48 sps:$4 sm:$0xff]  }
  0xb1   :  { %4265 = vmatpush1.bf16.msra.mxu0 %v13459_v52  ;;  %4429 = vmatpush1.bf16.msra.mxu1 %v13460_v53  ;;  %v13547_v52 = vld [vmem:[#allocation5 + $0xa20] ss:$48 sps:$4 sm:$0xff]   ;;  %v13550_v53 = vld [vmem:[#allocation5 + $0xa28] ss:$48 sps:$4 sm:$0xff]  }
  0xb2   :  { %4266 = vmatprep.subr.bf16.mxu0 %v13461_v54  ;;  %4430 = vmatprep.subr.bf16.mxu1 %v13463_v55  ;;  %v13555_v54 = vld [vmem:[#allocation5 + $0xa84] ss:$48 sps:$4 sm:$0xff]   ;;  %v13558_v55 = vld [vmem:[#allocation5 + $0xa8c] ss:$48 sps:$4 sm:$0xff]  }
  0xb5   :  { %4267 = vmatpush1.bf16.msra.mxu0 %v13465_v56  ;;  %4431 = vmatpush1.bf16.msra.mxu1 %v13466_v57  ;;  %v13553_v56 = vld [vmem:[#allocation5 + $0xa80] ss:$48 sps:$4 sm:$0xff]   ;;  %v13556_v57 = vld [vmem:[#allocation5 + $0xa88] ss:$48 sps:$4 sm:$0xff]  }
  0xb6   :  { %4268 = vmatprep.subr.bf16.mxu0 %v13467_v58  ;;  %4432 = vmatprep.subr.bf16.mxu1 %v13469_v59  ;;  %v13561_v58 = vld [vmem:[#allocation5 + $0xae4] ss:$48 sps:$4 sm:$0xff]   ;;  %v13564_v59 = vld [vmem:[#allocation5 + $0xaec] ss:$48 sps:$4 sm:$0xff]  }
  0xb9   :  { %4269 = vmatpush1.bf16.msra.mxu0 %v13471_v60  ;;  %4433 = vmatpush1.bf16.msra.mxu1 %v13472_v61  ;;  %v13559_v60 = vld [vmem:[#allocation5 + $0xae0] ss:$48 sps:$4 sm:$0xff]   ;;  %v13562_v61 = vld [vmem:[#allocation5 + $0xae8] ss:$48 sps:$4 sm:$0xff]  }
  0xba   :  { %4270 = vmatprep.subr.bf16.mxu0 %v13473_v62  ;;  %4434 = vmatprep.subr.bf16.mxu1 %v13475_v63  ;;  %v13567_v62 = vld [vmem:[#allocation5 + $0xb44] ss:$48 sps:$4 sm:$0xff]   ;;  %v13570_v63 = vld [vmem:[#allocation5 + $0xb4c] ss:$48 sps:$4 sm:$0xff]  }
  0xbd   :  { %4271 = vmatpush1.bf16.msra.mxu0 %v13477_v0  ;;  %4435 = vmatpush1.bf16.msra.mxu1 %v13478_v1  ;;  %v13565_v0 = vld [vmem:[#allocation5 + $0xb40] ss:$48 sps:$4 sm:$0xff]   ;;  %v13568_v1 = vld [vmem:[#allocation5 + $0xb48] ss:$48 sps:$4 sm:$0xff]  }
  0xbe   :  { %4281 = vmatprep.subr.bf16.mxu0 %v13482_v2  ;;  %4445 = vmatprep.subr.bf16.mxu1 %v13485_v3  ;;  %v13573_v2 = vld [vmem:[#allocation5 + $0xba4] ss:$48 sps:$4 sm:$0xff]   ;;  %v13576_v3 = vld [vmem:[#allocation5 + $0xbac] ss:$48 sps:$4 sm:$0xff]  }
  0xc0   :  { %4273 = vmatmul.mubr.bf16.vlgmr.msra.gmra.mrb[0].mxu0 %v14794_v5  ;;  %4437 = vmatmul.mubr.bf16.vlgmr.msra.gmra.mrb[0].mxu1 %v14794_v5 }
  0xc1   :  { %4282 = vmatpush1.bf16.msra.mxu0 %v13480_v4  ;;  %4446 = vmatpush1.bf16.msra.mxu1 %v13483_v6  ;;  %v13571_v4 = vld [vmem:[#allocation5 + $0xba0] ss:$48 sps:$4 sm:$0xff]   ;;  %v13574_v6 = vld [vmem:[#allocation5 + $0xba8] ss:$48 sps:$4 sm:$0xff]  }
  0xc2   :  { %4283 = vmatprep.subr.bf16.mxu0 %v13489_v7  ;;  %4447 = vmatprep.subr.bf16.mxu1 %v13492_v8  ;;  %v13580_v7 = vld [vmem:[#allocation5 + $0xc04] ss:$48 sps:$4 sm:$0xff]   ;;  %v13583_v8 = vld [vmem:[#allocation5 + $0xc0c] ss:$48 sps:$4 sm:$0xff]  }
  0xc3   :  { %4313 = vmatprep.mubr.bf16.mxu0 %v14802_v30  ;;  %4477 = vmatprep.mubr.bf16.mxu1 %v14802_v30 }
  0xc5   :  { %4284 = vmatpush1.bf16.msra.mxu0 %v13487_v9  ;;  %4448 = vmatpush1.bf16.msra.mxu1 %v13490_v10  ;;  %v13578_v9 = vld [vmem:[#allocation5 + $0xc00] ss:$48 sps:$4 sm:$0xff]   ;;  %v14808_v10 = vcombine.low %v14798_v29, %v14798_v29  ;;  %v13606_v29 = vld [vmem:[#allocation5 + $0xd88] ss:$48 sps:$4 sm:$0xff]  }
  0xc6   :  { %4285 = vmatprep.subr.bf16.mxu0 %v13495_v11  ;;  %4449 = vmatprep.subr.bf16.mxu1 %v13498_v12  ;;  %v13581_v11 = vld [vmem:[#allocation5 + $0xc08] ss:$48 sps:$4 sm:$0xff]   ;;  %v13587_v12 = vld [vmem:[#allocation5 + $0xc64] ss:$48 sps:$4 sm:$0xff]  }
  0xc9   :  { %4286 = vmatpush1.bf16.msra.mxu0 %v13493_v13  ;;  %4450 = vmatpush1.bf16.msra.mxu1 %v13496_v14  ;;  %v14810_v13 = vld [vmem:[#allocation2 + $0x10] sm:$0xff]  ;;  %v13590_v14 = vld [vmem:[#allocation5 + $0xc6c] ss:$48 sps:$4 sm:$0xff]  }
  0xca   :  { %4287 = vmatprep.subr.bf16.mxu0 %v13501_v15  ;;  %4451 = vmatprep.subr.bf16.mxu1 %v13504_v16  ;;  %v14814_v15 = vcombine.high %v14810_v13, %v14810_v13  ;;  %v13585_v16 = vld [vmem:[#allocation5 + $0xc60] ss:$48 sps:$4 sm:$0xff]  }
  0xcd   :  { %4288 = vmatpush1.bf16.msra.mxu0 %v13499_v17  ;;  %4452 = vmatpush1.bf16.msra.mxu1 %v13502_v18  ;;  %v13588_v17 = vld [vmem:[#allocation5 + $0xc68] ss:$48 sps:$4 sm:$0xff]   ;;  %v13593_v18 = vld [vmem:[#allocation5 + $0xcc4] ss:$48 sps:$4 sm:$0xff]  }
  0xce   :  { %4289 = vmatprep.subr.bf16.mxu0 %v13507_v19  ;;  %4453 = vmatprep.subr.bf16.mxu1 %v13510_v20  ;;  %v13596_v19 = vld [vmem:[#allocation5 + $0xccc] ss:$48 sps:$4 sm:$0xff]   ;;  %v13591_v20 = vld [vmem:[#allocation5 + $0xcc0] ss:$48 sps:$4 sm:$0xff]  }
  0xd1   :  { %4290 = vmatpush1.bf16.msra.mxu0 %v13505_v21  ;;  %4454 = vmatpush1.bf16.msra.mxu1 %v13508_v22  ;;  %v13594_v21 = vld [vmem:[#allocation5 + $0xcc8] ss:$48 sps:$4 sm:$0xff]   ;;  %v13599_v22 = vld [vmem:[#allocation5 + $0xd24] ss:$48 sps:$4 sm:$0xff]  }
  0xd2   :  { %4291 = vmatprep.subr.bf16.mxu0 %v13513_v23  ;;  %4455 = vmatprep.subr.bf16.mxu1 %v13516_v24  ;;  %v13602_v23 = vld [vmem:[#allocation5 + $0xd2c] ss:$48 sps:$4 sm:$0xff]   ;;  %v13597_v24 = vld [vmem:[#allocation5 + $0xd20] ss:$48 sps:$4 sm:$0xff]  }
  0xd5   :  { %4292 = vmatpush1.bf16.msra.mxu0 %v13511_v25  ;;  %4456 = vmatpush1.bf16.msra.mxu1 %v13514_v26  ;;  %v13600_v25 = vld [vmem:[#allocation5 + $0xd28] ss:$48 sps:$4 sm:$0xff]   ;;  %v13605_v26 = vld [vmem:[#allocation5 + $0xd84] ss:$48 sps:$4 sm:$0xff]  }
  0xd6   :  { %4293 = vmatprep.subr.bf16.mxu0 %v13519_v27  ;;  %4457 = vmatprep.subr.bf16.mxu1 %v13522_v28  ;;  %v13608_v27 = vld [vmem:[#allocation5 + $0xd8c] ss:$48 sps:$4 sm:$0xff]   ;;  %v13603_v28 = vld [vmem:[#allocation5 + $0xd80] ss:$48 sps:$4 sm:$0xff]  }
  0xd9   :  { %4294 = vmatpush1.bf16.msra.mxu0 %v13517_v31  ;;  %4458 = vmatpush1.bf16.msra.mxu1 %v13520_v32  ;;  %v13611_v31 = vld [vmem:[#allocation5 + $0xde4] ss:$48 sps:$4 sm:$0xff]   ;;  %v13614_v32 = vld [vmem:[#allocation5 + $0xdec] ss:$48 sps:$4 sm:$0xff]  }
  0xda   :  { %4295 = vmatprep.subr.bf16.mxu0 %v13525_v33  ;;  %4459 = vmatprep.subr.bf16.mxu1 %v13528_v34  ;;  %v13609_v33 = vld [vmem:[#allocation5 + $0xde0] ss:$48 sps:$4 sm:$0xff]   ;;  %v13612_v34 = vld [vmem:[#allocation5 + $0xde8] ss:$48 sps:$4 sm:$0xff]  }
  0xdd   :  { %4296 = vmatpush1.bf16.msra.mxu0 %v13523_v35  ;;  %4460 = vmatpush1.bf16.msra.mxu1 %v13526_v36  ;;  %v13617_v35 = vld [vmem:[#allocation5 + $0xe44] ss:$48 sps:$4 sm:$0xff]   ;;  %v13620_v36 = vld [vmem:[#allocation5 + $0xe4c] ss:$48 sps:$4 sm:$0xff]  }
  0xde   :  { %4297 = vmatprep.subr.bf16.mxu0 %v13531_v37  ;;  %4461 = vmatprep.subr.bf16.mxu1 %v13534_v38  ;;  %v13615_v37 = vld [vmem:[#allocation5 + $0xe40] ss:$48 sps:$4 sm:$0xff]   ;;  %v13618_v38 = vld [vmem:[#allocation5 + $0xe48] ss:$48 sps:$4 sm:$0xff]  }
  0xe1   :  { %4298 = vmatpush1.bf16.msra.mxu0 %v13529_v39  ;;  %4462 = vmatpush1.bf16.msra.mxu1 %v13532_v40  ;;  %v13623_v39 = vld [vmem:[#allocation5 + $0xea4] ss:$48 sps:$4 sm:$0xff]   ;;  %v13626_v40 = vld [vmem:[#allocation5 + $0xeac] ss:$48 sps:$4 sm:$0xff]  }
  0xe2   :  { %4299 = vmatprep.subr.bf16.mxu0 %v13537_v41  ;;  %4463 = vmatprep.subr.bf16.mxu1 %v13540_v42  ;;  %v13621_v41 = vld [vmem:[#allocation5 + $0xea0] ss:$48 sps:$4 sm:$0xff]   ;;  %v13624_v42 = vld [vmem:[#allocation5 + $0xea8] ss:$48 sps:$4 sm:$0xff]  }
  0xe5   :  { %4300 = vmatpush1.bf16.msra.mxu0 %v13535_v43  ;;  %4464 = vmatpush1.bf16.msra.mxu1 %v13538_v44  ;;  %v13629_v43 = vld [vmem:[#allocation5 + $0xf04] ss:$48 sps:$4 sm:$0xff]   ;;  %v13632_v44 = vld [vmem:[#allocation5 + $0xf0c] ss:$48 sps:$4 sm:$0xff]  }
  0xe6   :  { %4301 = vmatprep.subr.bf16.mxu0 %v13543_v45  ;;  %4465 = vmatprep.subr.bf16.mxu1 %v13546_v46  ;;  %v13627_v45 = vld [vmem:[#allocation5 + $0xf00] ss:$48 sps:$4 sm:$0xff]   ;;  %v13630_v46 = vld [vmem:[#allocation5 + $0xf08] ss:$48 sps:$4 sm:$0xff]  }
  0xe9   :  { %4302 = vmatpush1.bf16.msra.mxu0 %v13541_v47  ;;  %4466 = vmatpush1.bf16.msra.mxu1 %v13544_v49  ;;  %v13635_v47 = vld [vmem:[#allocation5 + $0xf64] ss:$48 sps:$4 sm:$0xff]   ;;  %v13638_v49 = vld [vmem:[#allocation5 + $0xf6c] ss:$48 sps:$4 sm:$0xff]  }
  0xea   :  { %4303 = vmatprep.subr.bf16.mxu0 %v13549_v50  ;;  %4467 = vmatprep.subr.bf16.mxu1 %v13552_v51  ;;  %v13633_v50 = vld [vmem:[#allocation5 + $0xf60] ss:$48 sps:$4 sm:$0xff]   ;;  %v13636_v51 = vld [vmem:[#allocation5 + $0xf68] ss:$48 sps:$4 sm:$0xff]  }
  0xed   :  { %4304 = vmatpush1.bf16.msra.mxu0 %v13547_v52  ;;  %4468 = vmatpush1.bf16.msra.mxu1 %v13550_v53  ;;  %v13641_v52 = vld [vmem:[#allocation5 + $0xfc4] ss:$48 sps:$4 sm:$0xff]   ;;  %v13644_v53 = vld [vmem:[#allocation5 + $0xfcc] ss:$48 sps:$4 sm:$0xff]  }
  0xee   :  { %4305 = vmatprep.subr.bf16.mxu0 %v13555_v54  ;;  %4469 = vmatprep.subr.bf16.mxu1 %v13558_v55  ;;  %v13639_v54 = vld [vmem:[#allocation5 + $0xfc0] ss:$48 sps:$4 sm:$0xff]   ;;  %v13642_v55 = vld [vmem:[#allocation5 + $0xfc8] ss:$48 sps:$4 sm:$0xff]  }
  0xf1   :  { %4306 = vmatpush1.bf16.msra.mxu0 %v13553_v56  ;;  %4470 = vmatpush1.bf16.msra.mxu1 %v13556_v57  ;;  %v13647_v56 = vld [vmem:[#allocation5 + $0x1024] ss:$48 sps:$4 sm:$0xff]   ;;  %v13650_v57 = vld [vmem:[#allocation5 + $0x102c] ss:$48 sps:$4 sm:$0xff]  }
  0xf2   :  { %4307 = vmatprep.subr.bf16.mxu0 %v13561_v58  ;;  %4471 = vmatprep.subr.bf16.mxu1 %v13564_v59  ;;  %v13645_v58 = vld [vmem:[#allocation5 + $0x1020] ss:$48 sps:$4 sm:$0xff]   ;;  %v13648_v59 = vld [vmem:[#allocation5 + $0x1028] ss:$48 sps:$4 sm:$0xff]  }
  0xf5   :  { %4308 = vmatpush1.bf16.msra.mxu0 %v13559_v60  ;;  %4472 = vmatpush1.bf16.msra.mxu1 %v13562_v61  ;;  %v13653_v60 = vld [vmem:[#allocation5 + $0x1084] ss:$48 sps:$4 sm:$0xff]   ;;  %v13656_v61 = vld [vmem:[#allocation5 + $0x108c] ss:$48 sps:$4 sm:$0xff]  }
  0xf6   :  { %4309 = vmatprep.subr.bf16.mxu0 %v13567_v62  ;;  %4473 = vmatprep.subr.bf16.mxu1 %v13570_v63  ;;  %v13651_v62 = vld [vmem:[#allocation5 + $0x1080] ss:$48 sps:$4 sm:$0xff]   ;;  %v13654_v63 = vld [vmem:[#allocation5 + $0x1088] ss:$48 sps:$4 sm:$0xff]  }
  0xf9   :  { %4310 = vmatpush1.bf16.msra.mxu0 %v13565_v0  ;;  %4474 = vmatpush1.bf16.msra.mxu1 %v13568_v1  ;;  %v13659_v0 = vld [vmem:[#allocation5 + $0x10e4] ss:$48 sps:$4 sm:$0xff]   ;;  %v13662_v1 = vld [vmem:[#allocation5 + $0x10ec] ss:$48 sps:$4 sm:$0xff]  }
  0xfa   :  { %4311 = vmatprep.subr.bf16.mxu0 %v13573_v2  ;;  %4475 = vmatprep.subr.bf16.mxu1 %v13576_v3  ;;  %v13657_v2 = vld [vmem:[#allocation5 + $0x10e0] ss:$48 sps:$4 sm:$0xff]   ;;  %v13660_v3 = vld [vmem:[#allocation5 + $0x10e8] ss:$48 sps:$4 sm:$0xff]  }
  0xfd   :  { %4312 = vmatpush1.bf16.msra.mxu0 %v13571_v4  ;;  %4476 = vmatpush1.bf16.msra.mxu1 %v13574_v6  ;;  %v13665_v4 = vld [vmem:[#allocation5 + $0x1144] ss:$48 sps:$4 sm:$0xff]   ;;  %v13668_v6 = vld [vmem:[#allocation5 + $0x114c] ss:$48 sps:$4 sm:$0xff]  }
  0xfe   :  { %4322 = vmatprep.subr.bf16.mxu0 %v13580_v7  ;;  %4486 = vmatprep.subr.bf16.mxu1 %v13583_v8  ;;  %v13663_v7 = vld [vmem:[#allocation5 + $0x1140] ss:$48 sps:$4 sm:$0xff]   ;;  %v13666_v8 = vld [vmem:[#allocation5 + $0x1148] ss:$48 sps:$4 sm:$0xff]  }
 0x100   :  { %4314 = vmatmul.mubr.bf16.vlgmr.msra.gmra.mrb[0].mxu0 %v14808_v10  ;;  %4478 = vmatmul.mubr.bf16.vlgmr.msra.gmra.mrb[0].mxu1 %v14808_v10 }
 0x101   :  { %4323 = vmatpush1.bf16.msra.mxu0 %v13578_v9  ;;  %4487 = vmatpush1.bf16.msra.mxu1 %v13581_v11  ;;  %v13671_v9 = vld [vmem:[#allocation5 + $0x11a4] ss:$48 sps:$4 sm:$0xff]   ;;  %v13674_v11 = vld [vmem:[#allocation5 + $0x11ac] ss:$48 sps:$4 sm:$0xff]  }
 0x102   :  { %4324 = vmatprep.subr.bf16.mxu0 %v13587_v12  ;;  %4488 = vmatprep.subr.bf16.mxu1 %v13590_v14  ;;  %v13669_v12 = vld [vmem:[#allocation5 + $0x11a0] ss:$48 sps:$4 sm:$0xff]   ;;  %v13672_v14 = vld [vmem:[#allocation5 + $0x11a8] ss:$48 sps:$4 sm:$0xff]  }
 0x103   :  { %4354 = vmatprep.mubr.bf16.mxu0 %v14814_v15  ;;  %4518 = vmatprep.mubr.bf16.mxu1 %v14814_v15 }
 0x105   :  { %4325 = vmatpush1.bf16.msra.mxu0 %v13585_v16  ;;  %4489 = vmatpush1.bf16.msra.mxu1 %v13588_v17  ;;  %v13678_v16 = vld [vmem:[#allocation5 + $0x1204] ss:$48 sps:$4 sm:$0xff]   ;;  %v13681_v17 = vld [vmem:[#allocation5 + $0x120c] ss:$48 sps:$4 sm:$0xff]  }
 0x106   :  { %4326 = vmatprep.subr.bf16.mxu0 %v13593_v18  ;;  %4490 = vmatprep.subr.bf16.mxu1 %v13596_v19  ;;  %v13676_v18 = vld [vmem:[#allocation5 + $0x1200] ss:$48 sps:$4 sm:$0xff]   ;;  %v14822_v19 = vcombine.low %v14810_v13, %v14810_v13  ;;  %v13694_v13 = vld [vmem:[#allocation5 + $0x12cc] ss:$48 sps:$4 sm:$0xff]  }
 0x109   :  { %4327 = vmatpush1.bf16.msra.mxu0 %v13591_v20  ;;  %4491 = vmatpush1.bf16.msra.mxu1 %v13594_v21  ;;  %v13679_v20 = vld [vmem:[#allocation5 + $0x1208] ss:$48 sps:$4 sm:$0xff]   ;;  %v13685_v21 = vld [vmem:[#allocation5 + $0x1264] ss:$48 sps:$4 sm:$0xff]  }
 0x10a   :  { %4328 = vmatprep.subr.bf16.mxu0 %v13599_v22  ;;  %4492 = vmatprep.subr.bf16.mxu1 %v13602_v23  ;;  %v13688_v22 = vld [vmem:[#allocation5 + $0x126c] ss:$48 sps:$4 sm:$0xff]   ;;  %v13683_v23 = vld [vmem:[#allocation5 + $0x1260] ss:$48 sps:$4 sm:$0xff]  }
 0x10d   :  { %4329 = vmatpush1.bf16.msra.mxu0 %v13597_v24  ;;  %4493 = vmatpush1.bf16.msra.mxu1 %v13600_v25  ;;  %v13686_v24 = vld [vmem:[#allocation5 + $0x1268] ss:$48 sps:$4 sm:$0xff]   ;;  %v13691_v25 = vld [vmem:[#allocation5 + $0x12c4] ss:$48 sps:$4 sm:$0xff]  }
 0x10e   :  { %4330 = vmatprep.subr.bf16.mxu0 %v13605_v26  ;;  %4494 = vmatprep.subr.bf16.mxu1 %v13608_v27  ;;  %v14664_v26 = vmov 0   ;;  %v13689_v27 = vld [vmem:[#allocation5 + $0x12c0] ss:$48 sps:$4 sm:$0xff]  }
 0x111   :  { %4331 = vmatpush1.bf16.msra.mxu0 %v13603_v28  ;;  %4495 = vmatpush1.bf16.msra.mxu1 %v13606_v29  ;;  %v13692_v28 = vld [vmem:[#allocation5 + $0x12c8] ss:$48 sps:$4 sm:$0xff]   ;;  %v13697_v29 = vld [vmem:[#allocation5 + $0x1324] ss:$48 sps:$4 sm:$0xff]  }
 0x112   :  { %4332 = vmatprep.subr.bf16.mxu0 %v13611_v31  ;;  %4496 = vmatprep.subr.bf16.mxu1 %v13614_v32  ;;  %v13700_v31 = vld [vmem:[#allocation5 + $0x132c] ss:$48 sps:$4 sm:$0xff]   ;;  %v13695_v32 = vld [vmem:[#allocation5 + $0x1320] ss:$48 sps:$4 sm:$0xff]  }
 0x115   :  { %4333 = vmatpush1.bf16.msra.mxu0 %v13609_v33  ;;  %4497 = vmatpush1.bf16.msra.mxu1 %v13612_v34  ;;  %v13698_v33 = vld [vmem:[#allocation5 + $0x1328] ss:$48 sps:$4 sm:$0xff]   ;;  %v13703_v34 = vld [vmem:[#allocation5 + $0x1384] ss:$48 sps:$4 sm:$0xff]  }
 0x116   :  { %4334 = vmatprep.subr.bf16.mxu0 %v13617_v35  ;;  %4498 = vmatprep.subr.bf16.mxu1 %v13620_v36  ;;  %v13706_v35 = vld [vmem:[#allocation5 + $0x138c] ss:$48 sps:$4 sm:$0xff]   ;;  %v13701_v36 = vld [vmem:[#allocation5 + $0x1380] ss:$48 sps:$4 sm:$0xff]  }
 0x119   :  { %4335 = vmatpush1.bf16.msra.mxu0 %v13615_v37  ;;  %4499 = vmatpush1.bf16.msra.mxu1 %v13618_v38  ;;  %v13704_v37 = vld [vmem:[#allocation5 + $0x1388] ss:$48 sps:$4 sm:$0xff]   ;;  %v13709_v38 = vld [vmem:[#allocation5 + $0x13e4] ss:$48 sps:$4 sm:$0xff]  }
 0x11a   :  { %4336 = vmatprep.subr.bf16.mxu0 %v13623_v39  ;;  %4500 = vmatprep.subr.bf16.mxu1 %v13626_v40  ;;  %v13712_v39 = vld [vmem:[#allocation5 + $0x13ec] ss:$48 sps:$4 sm:$0xff]   ;;  %v13707_v40 = vld [vmem:[#allocation5 + $0x13e0] ss:$48 sps:$4 sm:$0xff]  }
 0x11d   :  { %4337 = vmatpush1.bf16.msra.mxu0 %v13621_v41  ;;  %4501 = vmatpush1.bf16.msra.mxu1 %v13624_v42  ;;  %v13710_v41 = vld [vmem:[#allocation5 + $0x13e8] ss:$48 sps:$4 sm:$0xff]   ;;  %v13715_v42 = vld [vmem:[#allocation5 + $0x1444] ss:$48 sps:$4 sm:$0xff]  }
 0x11e   :  { %4338 = vmatprep.subr.bf16.mxu0 %v13629_v43  ;;  %4502 = vmatprep.subr.bf16.mxu1 %v13632_v44  ;;  %v13718_v43 = vld [vmem:[#allocation5 + $0x144c] ss:$48 sps:$4 sm:$0xff]   ;;  %v13713_v44 = vld [vmem:[#allocation5 + $0x1440] ss:$48 sps:$4 sm:$0xff]  }
 0x121   :  { %4339 = vmatpush1.bf16.msra.mxu0 %v13627_v45  ;;  %4503 = vmatpush1.bf16.msra.mxu1 %v13630_v46  ;;  %v13716_v45 = vld [vmem:[#allocation5 + $0x1448] ss:$48 sps:$4 sm:$0xff]   ;;  %v13721_v46 = vld [vmem:[#allocation5 + $0x14a4] ss:$48 sps:$4 sm:$0xff]  }
 0x122   :  { %4340 = vmatprep.subr.bf16.mxu0 %v13635_v47  ;;  %4504 = vmatprep.subr.bf16.mxu1 %v13638_v49  ;;  %v13724_v47 = vld [vmem:[#allocation5 + $0x14ac] ss:$48 sps:$4 sm:$0xff]   ;;  %v13719_v49 = vld [vmem:[#allocation5 + $0x14a0] ss:$48 sps:$4 sm:$0xff]  }
 0x125   :  { %4341 = vmatpush1.bf16.msra.mxu0 %v13633_v50  ;;  %4505 = vmatpush1.bf16.msra.mxu1 %v13636_v51  ;;  %v13722_v50 = vld [vmem:[#allocation5 + $0x14a8] ss:$48 sps:$4 sm:$0xff]   ;;  %v13728_v51 = vld [vmem:[#allocation5 + $0x14] ss:$48 sps:$4 sm:$0xff]  }
 0x126   :  { %4342 = vmatprep.subr.bf16.mxu0 %v13641_v52  ;;  %4506 = vmatprep.subr.bf16.mxu1 %v13644_v53  ;;  %v13731_v52 = vld [vmem:[#allocation5 + $0x1c] ss:$48 sps:$4 sm:$0xff]  }
 0x127   :  { %v13725_v53 = vld [vmem:[#allocation2 + $0x18] ss:$0 sps:$4 sm:$0xff]  }
 0x129   :  { %4343 = vmatpush1.bf16.msra.mxu0 %v13639_v54  ;;  %4507 = vmatpush1.bf16.msra.mxu1 %v13642_v55  ;;  %v13726_v54 = vld [vmem:[#allocation5 + $0x10] ss:$48 sps:$4 sm:$0xff]   ;;  %v13729_v55 = vld [vmem:[#allocation5 + $0x18] ss:$48 sps:$4 sm:$0xff]  }
 0x12a   :  { %4344 = vmatprep.subr.bf16.mxu0 %v13647_v56  ;;  %4508 = vmatprep.subr.bf16.mxu1 %v13650_v57  ;;  %v13734_v56 = vld [vmem:[#allocation5 + $0x74] ss:$48 sps:$4 sm:$0xff]   ;;  %v13737_v57 = vld [vmem:[#allocation5 + $0x7c] ss:$48 sps:$4 sm:$0xff]  }
 0x12d   :  { %4345 = vmatpush1.bf16.msra.mxu0 %v13645_v58  ;;  %4509 = vmatpush1.bf16.msra.mxu1 %v13648_v59  ;;  %v13732_v58 = vld [vmem:[#allocation5 + $0x70] ss:$48 sps:$4 sm:$0xff]   ;;  %v13735_v59 = vld [vmem:[#allocation5 + $0x78] ss:$48 sps:$4 sm:$0xff]  }
 0x12e   :  { %4346 = vmatprep.subr.bf16.mxu0 %v13653_v60  ;;  %4510 = vmatprep.subr.bf16.mxu1 %v13656_v61  ;;  %v13740_v60 = vld [vmem:[#allocation5 + $0xd4] ss:$48 sps:$4 sm:$0xff]   ;;  %v13743_v61 = vld [vmem:[#allocation5 + $0xdc] ss:$48 sps:$4 sm:$0xff]  }
 0x131   :  { %4347 = vmatpush1.bf16.msra.mxu0 %v13651_v62  ;;  %4511 = vmatpush1.bf16.msra.mxu1 %v13654_v63  ;;  %v13738_v62 = vld [vmem:[#allocation5 + $0xd0] ss:$48 sps:$4 sm:$0xff]   ;;  %v13741_v63 = vld [vmem:[#allocation5 + $0xd8] ss:$48 sps:$4 sm:$0xff]  }
 0x132   :  { %4348 = vmatprep.subr.bf16.mxu0 %v13659_v0  ;;  %4512 = vmatprep.subr.bf16.mxu1 %v13662_v1  ;;  %v13746_v0 = vld [vmem:[#allocation5 + $0x134] ss:$48 sps:$4 sm:$0xff]   ;;  %v13749_v1 = vld [vmem:[#allocation5 + $0x13c] ss:$48 sps:$4 sm:$0xff]  }
 0x135   :  { %4349 = vmatpush1.bf16.msra.mxu0 %v13657_v2  ;;  %4513 = vmatpush1.bf16.msra.mxu1 %v13660_v3  ;;  %v13744_v2 = vld [vmem:[#allocation5 + $0x130] ss:$48 sps:$4 sm:$0xff]   ;;  %v13747_v3 = vld [vmem:[#allocation5 + $0x138] ss:$48 sps:$4 sm:$0xff]  }
 0x136   :  { %4350 = vmatprep.subr.bf16.mxu0 %v13665_v4  ;;  %4514 = vmatprep.subr.bf16.mxu1 %v13668_v6  ;;  %v13752_v4 = vld [vmem:[#allocation5 + $0x194] ss:$48 sps:$4 sm:$0xff]   ;;  %v13755_v6 = vld [vmem:[#allocation5 + $0x19c] ss:$48 sps:$4 sm:$0xff]  }
 0x139   :  { %4351 = vmatpush1.bf16.msra.mxu0 %v13663_v7  ;;  %4515 = vmatpush1.bf16.msra.mxu1 %v13666_v8  ;;  %v13750_v7 = vld [vmem:[#allocation5 + $0x190] ss:$48 sps:$4 sm:$0xff]   ;;  %v13753_v8 = vld [vmem:[#allocation5 + $0x198] ss:$48 sps:$4 sm:$0xff]  }
 0x13a   :  { %4352 = vmatprep.subr.bf16.mxu0 %v13671_v9  ;;  %4516 = vmatprep.subr.bf16.mxu1 %v13674_v11  ;;  %v13758_v9 = vld [vmem:[#allocation5 + $0x1f4] ss:$48 sps:$4 sm:$0xff]   ;;  %v13761_v11 = vld [vmem:[#allocation5 + $0x1fc] ss:$48 sps:$4 sm:$0xff]  }
 0x13d   :  { %4353 = vmatpush1.bf16.msra.mxu0 %v13669_v12  ;;  %4517 = vmatpush1.bf16.msra.mxu1 %v13672_v14  ;;  %v13756_v12 = vld [vmem:[#allocation5 + $0x1f0] ss:$48 sps:$4 sm:$0xff]   ;;  %v13759_v14 = vld [vmem:[#allocation5 + $0x1f8] ss:$48 sps:$4 sm:$0xff]  }
 0x13e   :  { %4363 = vmatprep.subr.bf16.mxu0 %v13678_v16  ;;  %4527 = vmatprep.subr.bf16.mxu1 %v13681_v17  ;;  %v13764_v16 = vld [vmem:[#allocation5 + $0x254] ss:$48 sps:$4 sm:$0xff]   ;;  %v13767_v17 = vld [vmem:[#allocation5 + $0x25c] ss:$48 sps:$4 sm:$0xff]  }
 0x140   :  { %4355 = vmatmul.mubr.bf16.vlgmr.msra.gmra.mrb[0].mxu0 %v14822_v19  ;;  %4519 = vmatmul.mubr.bf16.vlgmr.msra.gmra.mrb[0].mxu1 %v14822_v19 }
 0x141   :  { %4364 = vmatpush1.bf16.msra.mxu0 %v13676_v18  ;;  %4528 = vmatpush1.bf16.msra.mxu1 %v13679_v20  ;;  %v13762_v18 = vld [vmem:[#allocation5 + $0x250] ss:$48 sps:$4 sm:$0xff]   ;;  %v13765_v20 = vld [vmem:[#allocation5 + $0x258] ss:$48 sps:$4 sm:$0xff]  }
 0x142   :  { %4365 = vmatprep.subr.bf16.mxu0 %v13685_v21  ;;  %4529 = vmatprep.subr.bf16.mxu1 %v13688_v22  ;;  %v13770_v21 = vld [vmem:[#allocation5 + $0x2b4] ss:$48 sps:$4 sm:$0xff]   ;;  %v13773_v22 = vld [vmem:[#allocation5 + $0x2bc] ss:$48 sps:$4 sm:$0xff]  }
 0x143   :  { %4395 = vmatprep.mubr.bf16.mxu0 %v14664_v26  ;;  %4559 = vmatprep.mubr.bf16.mxu1 %v14664_v26 }
 0x145   :  { %4366 = vmatpush1.bf16.msra.mxu0 %v13683_v23  ;;  %4530 = vmatpush1.bf16.msra.mxu1 %v13686_v24  ;;  %v13768_v23 = vld [vmem:[#allocation5 + $0x2b0] ss:$48 sps:$4 sm:$0xff]   ;;  %v13771_v24 = vld [vmem:[#allocation5 + $0x2b8] ss:$48 sps:$4 sm:$0xff]  }
 0x146   :  { %4367 = vmatprep.subr.bf16.mxu0 %v13691_v25  ;;  %4531 = vmatprep.subr.bf16.mxu1 %v13694_v13  ;;  %v13776_v25 = vld [vmem:[#allocation5 + $0x314] ss:$48 sps:$4 sm:$0xff]   ;;  %v13779_v13 = vld [vmem:[#allocation5 + $0x31c] ss:$48 sps:$4 sm:$0xff]  }
 0x149   :  { %4368 = vmatpush1.bf16.msra.mxu0 %v13689_v27  ;;  %4532 = vmatpush1.bf16.msra.mxu1 %v13692_v28  ;;  %v13774_v27 = vld [vmem:[#allocation5 + $0x310] ss:$48 sps:$4 sm:$0xff]   ;;  %v13777_v28 = vld [vmem:[#allocation5 + $0x318] ss:$48 sps:$4 sm:$0xff]  }
 0x14a   :  { %4369 = vmatprep.subr.bf16.mxu0 %v13697_v29  ;;  %4533 = vmatprep.subr.bf16.mxu1 %v13700_v31  ;;  %v13782_v29 = vld [vmem:[#allocation5 + $0x374] ss:$48 sps:$4 sm:$0xff]   ;;  %v13785_v31 = vld [vmem:[#allocation5 + $0x37c] ss:$48 sps:$4 sm:$0xff]  }
 0x14d   :  { %4370 = vmatpush1.bf16.msra.mxu0 %v13695_v32  ;;  %4534 = vmatpush1.bf16.msra.mxu1 %v13698_v33  ;;  %v13780_v32 = vld [vmem:[#allocation5 + $0x370] ss:$48 sps:$4 sm:$0xff]   ;;  %v13783_v33 = vld [vmem:[#allocation5 + $0x378] ss:$48 sps:$4 sm:$0xff]  }
 0x14e   :  { %4371 = vmatprep.subr.bf16.mxu0 %v13703_v34  ;;  %4535 = vmatprep.subr.bf16.mxu1 %v13706_v35  ;;  %v13788_v34 = vld [vmem:[#allocation5 + $0x3d4] ss:$48 sps:$4 sm:$0xff]   ;;  %v13791_v35 = vld [vmem:[#allocation5 + $0x3dc] ss:$48 sps:$4 sm:$0xff]  }
 0x151   :  { %4372 = vmatpush1.bf16.msra.mxu0 %v13701_v36  ;;  %4536 = vmatpush1.bf16.msra.mxu1 %v13704_v37  ;;  %v13786_v36 = vld [vmem:[#allocation5 + $0x3d0] ss:$48 sps:$4 sm:$0xff]   ;;  %v13789_v37 = vld [vmem:[#allocation5 + $0x3d8] ss:$48 sps:$4 sm:$0xff]  }
 0x152   :  { %4373 = vmatprep.subr.bf16.mxu0 %v13709_v38  ;;  %4537 = vmatprep.subr.bf16.mxu1 %v13712_v39  ;;  %v13794_v38 = vld [vmem:[#allocation5 + $0x434] ss:$48 sps:$4 sm:$0xff]   ;;  %v13797_v39 = vld [vmem:[#allocation5 + $0x43c] ss:$48 sps:$4 sm:$0xff]  }
 0x155   :  { %4374 = vmatpush1.bf16.msra.mxu0 %v13707_v40  ;;  %4538 = vmatpush1.bf16.msra.mxu1 %v13710_v41  ;;  %v13792_v40 = vld [vmem:[#allocation5 + $0x430] ss:$48 sps:$4 sm:$0xff]   ;;  %v13795_v41 = vld [vmem:[#allocation5 + $0x438] ss:$48 sps:$4 sm:$0xff]  }
 0x156   :  { %4375 = vmatprep.subr.bf16.mxu0 %v13715_v42  ;;  %4539 = vmatprep.subr.bf16.mxu1 %v13718_v43  ;;  %v13800_v42 = vld [vmem:[#allocation5 + $0x494] ss:$48 sps:$4 sm:$0xff]   ;;  %v13803_v43 = vld [vmem:[#allocation5 + $0x49c] ss:$48 sps:$4 sm:$0xff]  }
 0x159   :  { %4376 = vmatpush1.bf16.msra.mxu0 %v13713_v44  ;;  %4540 = vmatpush1.bf16.msra.mxu1 %v13716_v45  ;;  %v13798_v44 = vld [vmem:[#allocation5 + $0x490] ss:$48 sps:$4 sm:$0xff]   ;;  %v13801_v45 = vld [vmem:[#allocation5 + $0x498] ss:$48 sps:$4 sm:$0xff]  }
 0x15a   :  { %4377 = vmatprep.subr.bf16.mxu0 %v13721_v46  ;;  %4541 = vmatprep.subr.bf16.mxu1 %v13724_v47  ;;  %v13806_v46 = vld [vmem:[#allocation5 + $0x4f4] ss:$48 sps:$4 sm:$0xff]   ;;  %v13809_v47 = vld [vmem:[#allocation5 + $0x4fc] ss:$48 sps:$4 sm:$0xff]  }
 0x15d   :  { %4378 = vmatpush1.bf16.msra.mxu0 %v13719_v49  ;;  %4542 = vmatpush1.bf16.msra.mxu1 %v13722_v50  ;;  %v13804_v49 = vld [vmem:[#allocation5 + $0x4f0] ss:$48 sps:$4 sm:$0xff]   ;;  %v13807_v50 = vld [vmem:[#allocation5 + $0x4f8] ss:$48 sps:$4 sm:$0xff]  }
 0x15e   :  { %4568 = vmatprep.subr.bf16.mxu0 %v13728_v51  ;;  %4732 = vmatprep.subr.bf16.mxu1 %v13731_v52  ;;  %v13812_v51 = vld [vmem:[#allocation5 + $0x554] ss:$48 sps:$4 sm:$0xff]   ;;  %v13815_v52 = vld [vmem:[#allocation5 + $0x55c] ss:$48 sps:$4 sm:$0xff]  }
 0x160   :  { %4396 = vmatmul.mubr.bf16.vlgmr.msra.gmra.mrb[0].mxu0 %v13725_v53  ;;  %4560 = vmatmul.mubr.bf16.vlgmr.msra.gmra.mrb[0].mxu1 %v13725_v53  ;;  %v13810_v53 = vld [vmem:[#allocation5 + $0x550] ss:$48 sps:$4 sm:$0xff]  }
 0x161   :  { %4569 = vmatpush1.bf16.msra.mxu0 %v13726_v54  ;;  %4733 = vmatpush1.bf16.msra.mxu1 %v13729_v55  ;;  %v13813_v54 = vld [vmem:[#allocation5 + $0x558] ss:$48 sps:$4 sm:$0xff]   ;;  %v13818_v55 = vld [vmem:[#allocation5 + $0x5b4] ss:$48 sps:$4 sm:$0xff]  }
 0x162   :  { %4570 = vmatprep.subr.bf16.mxu0 %v13734_v56  ;;  %4734 = vmatprep.subr.bf16.mxu1 %v13737_v57  ;;  %v13821_v56 = vld [vmem:[#allocation5 + $0x5bc] ss:$48 sps:$4 sm:$0xff]   ;;  %v13816_v57 = vld [vmem:[#allocation5 + $0x5b0] ss:$48 sps:$4 sm:$0xff]  }
 0x163   :  { %4600 = vmatprep.mubr.bf16.mxu0 %v14790_v48  ;;  %4764 = vmatprep.mubr.bf16.mxu1 %v14790_v48 }
 0x165   :  { %4571 = vmatpush1.bf16.msra.mxu0 %v13732_v58  ;;  %4735 = vmatpush1.bf16.msra.mxu1 %v13735_v59  ;;  %v13819_v58 = vld [vmem:[#allocation5 + $0x5b8] ss:$48 sps:$4 sm:$0xff]   ;;  %v13824_v59 = vld [vmem:[#allocation5 + $0x614] ss:$48 sps:$4 sm:$0xff]  }
 0x166   :  { %4572 = vmatprep.subr.bf16.mxu0 %v13740_v60  ;;  %4736 = vmatprep.subr.bf16.mxu1 %v13743_v61  ;;  %v13827_v60 = vld [vmem:[#allocation5 + $0x61c] ss:$48 sps:$4 sm:$0xff]   ;;  %v13822_v61 = vld [vmem:[#allocation5 + $0x610] ss:$48 sps:$4 sm:$0xff]  }
 0x169   :  { %4573 = vmatpush1.bf16.msra.mxu0 %v13738_v62  ;;  %4737 = vmatpush1.bf16.msra.mxu1 %v13741_v63  ;;  %v13825_v62 = vld [vmem:[#allocation5 + $0x618] ss:$48 sps:$4 sm:$0xff]   ;;  %v13830_v63 = vld [vmem:[#allocation5 + $0x674] ss:$48 sps:$4 sm:$0xff]  }
 0x16a   :  { %4574 = vmatprep.subr.bf16.mxu0 %v13746_v0  ;;  %4738 = vmatprep.subr.bf16.mxu1 %v13749_v1  ;;  %v13833_v0 = vld [vmem:[#allocation5 + $0x67c] ss:$48 sps:$4 sm:$0xff]   ;;  %v13828_v1 = vld [vmem:[#allocation5 + $0x670] ss:$48 sps:$4 sm:$0xff]  }
 0x16d   :  { %4575 = vmatpush1.bf16.msra.mxu0 %v13744_v2  ;;  %4739 = vmatpush1.bf16.msra.mxu1 %v13747_v3  ;;  %v13831_v2 = vld [vmem:[#allocation5 + $0x678] ss:$48 sps:$4 sm:$0xff]   ;;  %v13836_v3 = vld [vmem:[#allocation5 + $0x6d4] ss:$48 sps:$4 sm:$0xff]  }
 0x16e   :  { %4576 = vmatprep.subr.bf16.mxu0 %v13752_v4  ;;  %4740 = vmatprep.subr.bf16.mxu1 %v13755_v6  ;;  %v13839_v4 = vld [vmem:[#allocation5 + $0x6dc] ss:$48 sps:$4 sm:$0xff]   ;;  %v13834_v6 = vld [vmem:[#allocation5 + $0x6d0] ss:$48 sps:$4 sm:$0xff]  }
 0x171   :  { %4577 = vmatpush1.bf16.msra.mxu0 %v13750_v7  ;;  %4741 = vmatpush1.bf16.msra.mxu1 %v13753_v8  ;;  %v13837_v7 = vld [vmem:[#allocation5 + $0x6d8] ss:$48 sps:$4 sm:$0xff]   ;;  %v13842_v8 = vld [vmem:[#allocation5 + $0x734] ss:$48 sps:$4 sm:$0xff]  }
 0x172   :  { %4578 = vmatprep.subr.bf16.mxu0 %v13758_v9  ;;  %4742 = vmatprep.subr.bf16.mxu1 %v13761_v11  ;;  %v13845_v9 = vld [vmem:[#allocation5 + $0x73c] ss:$48 sps:$4 sm:$0xff]   ;;  %v13840_v11 = vld [vmem:[#allocation5 + $0x730] ss:$48 sps:$4 sm:$0xff]  }
 0x175   :  { %4579 = vmatpush1.bf16.msra.mxu0 %v13756_v12  ;;  %4743 = vmatpush1.bf16.msra.mxu1 %v13759_v14  ;;  %v13843_v12 = vld [vmem:[#allocation5 + $0x738] ss:$48 sps:$4 sm:$0xff]   ;;  %v13848_v14 = vld [vmem:[#allocation5 + $0x794] ss:$48 sps:$4 sm:$0xff]  }
 0x176   :  { %4580 = vmatprep.subr.bf16.mxu0 %v13764_v16  ;;  %4744 = vmatprep.subr.bf16.mxu1 %v13767_v17  ;;  %v13851_v16 = vld [vmem:[#allocation5 + $0x79c] ss:$48 sps:$4 sm:$0xff]   ;;  %v13846_v17 = vld [vmem:[#allocation5 + $0x790] ss:$48 sps:$4 sm:$0xff]  }
 0x179   :  { %4581 = vmatpush1.bf16.msra.mxu0 %v13762_v18  ;;  %4745 = vmatpush1.bf16.msra.mxu1 %v13765_v20  ;;  %v13849_v18 = vld [vmem:[#allocation5 + $0x798] ss:$48 sps:$4 sm:$0xff]   ;;  %v13854_v20 = vld [vmem:[#allocation5 + $0x7f4] ss:$48 sps:$4 sm:$0xff]  }
 0x17a   :  { %4582 = vmatprep.subr.bf16.mxu0 %v13770_v21  ;;  %4746 = vmatprep.subr.bf16.mxu1 %v13773_v22  ;;  %v13857_v21 = vld [vmem:[#allocation5 + $0x7fc] ss:$48 sps:$4 sm:$0xff]   ;;  %v13852_v22 = vld [vmem:[#allocation5 + $0x7f0] ss:$48 sps:$4 sm:$0xff]  }
 0x17d   :  { %4583 = vmatpush1.bf16.msra.mxu0 %v13768_v23  ;;  %4747 = vmatpush1.bf16.msra.mxu1 %v13771_v24  ;;  %v13855_v23 = vld [vmem:[#allocation5 + $0x7f8] ss:$48 sps:$4 sm:$0xff]   ;;  %v13860_v24 = vld [vmem:[#allocation5 + $0x854] ss:$48 sps:$4 sm:$0xff]  }
 0x17e   :  { %4584 = vmatprep.subr.bf16.mxu0 %v13776_v25  ;;  %4748 = vmatprep.subr.bf16.mxu1 %v13779_v13  ;;  %v13863_v25 = vld [vmem:[#allocation5 + $0x85c] ss:$48 sps:$4 sm:$0xff]   ;;  %v13858_v13 = vld [vmem:[#allocation5 + $0x850] ss:$48 sps:$4 sm:$0xff]  }
 0x181   :  { %4585 = vmatpush1.bf16.msra.mxu0 %v13774_v27  ;;  %4749 = vmatpush1.bf16.msra.mxu1 %v13777_v28  ;;  %v13861_v27 = vld [vmem:[#allocation5 + $0x858] ss:$48 sps:$4 sm:$0xff]   ;;  %v13866_v28 = vld [vmem:[#allocation5 + $0x8b4] ss:$48 sps:$4 sm:$0xff]  }
 0x182   :  { %4586 = vmatprep.subr.bf16.mxu0 %v13782_v29  ;;  %4750 = vmatprep.subr.bf16.mxu1 %v13785_v31  ;;  %v13869_v29 = vld [vmem:[#allocation5 + $0x8bc] ss:$48 sps:$4 sm:$0xff]   ;;  %v13864_v31 = vld [vmem:[#allocation5 + $0x8b0] ss:$48 sps:$4 sm:$0xff]  }
 0x185   :  { %4587 = vmatpush1.bf16.msra.mxu0 %v13780_v32  ;;  %4751 = vmatpush1.bf16.msra.mxu1 %v13783_v33  ;;  %v13867_v32 = vld [vmem:[#allocation5 + $0x8b8] ss:$48 sps:$4 sm:$0xff]   ;;  %v13872_v33 = vld [vmem:[#allocation5 + $0x914] ss:$48 sps:$4 sm:$0xff]  }
 0x186   :  { %4588 = vmatprep.subr.bf16.mxu0 %v13788_v34  ;;  %4752 = vmatprep.subr.bf16.mxu1 %v13791_v35  ;;  %v13875_v34 = vld [vmem:[#allocation5 + $0x91c] ss:$48 sps:$4 sm:$0xff]   ;;  %v13870_v35 = vld [vmem:[#allocation5 + $0x910] ss:$48 sps:$4 sm:$0xff]  }
 0x189   :  { %4589 = vmatpush1.bf16.msra.mxu0 %v13786_v36  ;;  %4753 = vmatpush1.bf16.msra.mxu1 %v13789_v37  ;;  %v13873_v36 = vld [vmem:[#allocation5 + $0x918] ss:$48 sps:$4 sm:$0xff]   ;;  %v13878_v37 = vld [vmem:[#allocation5 + $0x974] ss:$48 sps:$4 sm:$0xff]  }
 0x18a   :  { %4590 = vmatprep.subr.bf16.mxu0 %v13794_v38  ;;  %4754 = vmatprep.subr.bf16.mxu1 %v13797_v39  ;;  %v13881_v38 = vld [vmem:[#allocation5 + $0x97c] ss:$48 sps:$4 sm:$0xff]   ;;  %v13876_v39 = vld [vmem:[#allocation5 + $0x970] ss:$48 sps:$4 sm:$0xff]  }
 0x18d   :  { %4591 = vmatpush1.bf16.msra.mxu0 %v13792_v40  ;;  %4755 = vmatpush1.bf16.msra.mxu1 %v13795_v41  ;;  %v13879_v40 = vld [vmem:[#allocation5 + $0x978] ss:$48 sps:$4 sm:$0xff]   ;;  %v13884_v41 = vld [vmem:[#allocation5 + $0x9d4] ss:$48 sps:$4 sm:$0xff]  }
 0x18e   :  { %4592 = vmatprep.subr.bf16.mxu0 %v13800_v42  ;;  %4756 = vmatprep.subr.bf16.mxu1 %v13803_v43  ;;  %v13887_v42 = vld [vmem:[#allocation5 + $0x9dc] ss:$48 sps:$4 sm:$0xff]   ;;  %v13882_v43 = vld [vmem:[#allocation5 + $0x9d0] ss:$48 sps:$4 sm:$0xff]  }
 0x191   :  { %4593 = vmatpush1.bf16.msra.mxu0 %v13798_v44  ;;  %4757 = vmatpush1.bf16.msra.mxu1 %v13801_v45  ;;  %v13885_v44 = vld [vmem:[#allocation5 + $0x9d8] ss:$48 sps:$4 sm:$0xff]   ;;  %v13890_v45 = vld [vmem:[#allocation5 + $0xa34] ss:$48 sps:$4 sm:$0xff]  }
 0x192   :  { %4594 = vmatprep.subr.bf16.mxu0 %v13806_v46  ;;  %4758 = vmatprep.subr.bf16.mxu1 %v13809_v47  ;;  %v13893_v46 = vld [vmem:[#allocation5 + $0xa3c] ss:$48 sps:$4 sm:$0xff]   ;;  %v13888_v47 = vld [vmem:[#allocation5 + $0xa30] ss:$48 sps:$4 sm:$0xff]  }
 0x195   :  { %4595 = vmatpush1.bf16.msra.mxu0 %v13804_v49  ;;  %4759 = vmatpush1.bf16.msra.mxu1 %v13807_v50  ;;  %v13891_v49 = vld [vmem:[#allocation5 + $0xa38] ss:$48 sps:$4 sm:$0xff]   ;;  %v13896_v50 = vld [vmem:[#allocation5 + $0xa94] ss:$48 sps:$4 sm:$0xff]  }
 0x196   :  { %4596 = vmatprep.subr.bf16.mxu0 %v13812_v51  ;;  %4760 = vmatprep.subr.bf16.mxu1 %v13815_v52  ;;  %v13899_v51 = vld [vmem:[#allocation5 + $0xa9c] ss:$48 sps:$4 sm:$0xff]   ;;  %v13894_v52 = vld [vmem:[#allocation5 + $0xa90] ss:$48 sps:$4 sm:$0xff]  }
 0x199   :  { %4597 = vmatpush1.bf16.msra.mxu0 %v13810_v53  ;;  %4761 = vmatpush1.bf16.msra.mxu1 %v13813_v54  ;;  %v13897_v53 = vld [vmem:[#allocation5 + $0xa98] ss:$48 sps:$4 sm:$0xff]   ;;  %v13902_v54 = vld [vmem:[#allocation5 + $0xaf4] ss:$48 sps:$4 sm:$0xff]  }
 0x19a   :  { %4598 = vmatprep.subr.bf16.mxu0 %v13818_v55  ;;  %4762 = vmatprep.subr.bf16.mxu1 %v13821_v56  ;;  %v13905_v55 = vld [vmem:[#allocation5 + $0xafc] ss:$48 sps:$4 sm:$0xff]   ;;  %v13900_v56 = vld [vmem:[#allocation5 + $0xaf0] ss:$48 sps:$4 sm:$0xff]  }
 0x19d   :  { %4599 = vmatpush1.bf16.msra.mxu0 %v13816_v57  ;;  %4763 = vmatpush1.bf16.msra.mxu1 %v13819_v58  ;;  %v13903_v57 = vld [vmem:[#allocation5 + $0xaf8] ss:$48 sps:$4 sm:$0xff]   ;;  %v13908_v58 = vld [vmem:[#allocation5 + $0xb54] ss:$48 sps:$4 sm:$0xff]  }
 0x19e   :  { %4609 = vmatprep.subr.bf16.mxu0 %v13824_v59  ;;  %4773 = vmatprep.subr.bf16.mxu1 %v13827_v60  ;;  %v13911_v59 = vld [vmem:[#allocation5 + $0xb5c] ss:$48 sps:$4 sm:$0xff]   ;;  %v13906_v60 = vld [vmem:[#allocation5 + $0xb50] ss:$48 sps:$4 sm:$0xff]  }
 0x1a0   :  { %4601 = vmatmul.mubr.bf16.vlgmr.msra.gmra.mrb[4].mxu0 %v14794_v5  ;;  %4765 = vmatmul.mubr.bf16.vlgmr.msra.gmra.mrb[4].mxu1 %v14794_v5 }
 0x1a1   :  { %4610 = vmatpush1.bf16.msra.mxu0 %v13822_v61  ;;  %4774 = vmatpush1.bf16.msra.mxu1 %v13825_v62  ;;  %v13909_v61 = vld [vmem:[#allocation5 + $0xb58] ss:$48 sps:$4 sm:$0xff]   ;;  %v13914_v62 = vld [vmem:[#allocation5 + $0xbb4] ss:$48 sps:$4 sm:$0xff]  }
 0x1a2   :  { %4611 = vmatprep.subr.bf16.mxu0 %v13830_v63  ;;  %4775 = vmatprep.subr.bf16.mxu1 %v13833_v0  ;;  %v13917_v63 = vld [vmem:[#allocation5 + $0xbbc] ss:$48 sps:$4 sm:$0xff]   ;;  %v13912_v0 = vld [vmem:[#allocation5 + $0xbb0] ss:$48 sps:$4 sm:$0xff]  }
 0x1a3   :  { %4641 = vmatprep.mubr.bf16.mxu0 %v14802_v30  ;;  %4805 = vmatprep.mubr.bf16.mxu1 %v14802_v30 }
 0x1a5   :  { %4612 = vmatpush1.bf16.msra.mxu0 %v13828_v1  ;;  %4776 = vmatpush1.bf16.msra.mxu1 %v13831_v2  ;;  %v13915_v1 = vld [vmem:[#allocation5 + $0xbb8] ss:$48 sps:$4 sm:$0xff]   ;;  %v13920_v2 = vld [vmem:[#allocation5 + $0xc14] ss:$48 sps:$4 sm:$0xff]  }
 0x1a6   :  { %4613 = vmatprep.subr.bf16.mxu0 %v13836_v3  ;;  %4777 = vmatprep.subr.bf16.mxu1 %v13839_v4  ;;  %v13923_v3 = vld [vmem:[#allocation5 + $0xc1c] ss:$48 sps:$4 sm:$0xff]   ;;  %v13918_v4 = vld [vmem:[#allocation5 + $0xc10] ss:$48 sps:$4 sm:$0xff]  }
 0x1a9   :  { %4614 = vmatpush1.bf16.msra.mxu0 %v13834_v6  ;;  %4778 = vmatpush1.bf16.msra.mxu1 %v13837_v7  ;;  %v13921_v6 = vld [vmem:[#allocation5 + $0xc18] ss:$48 sps:$4 sm:$0xff]   ;;  %v13926_v7 = vld [vmem:[#allocation5 + $0xc74] ss:$48 sps:$4 sm:$0xff]  }
 0x1aa   :  { %4615 = vmatprep.subr.bf16.mxu0 %v13842_v8  ;;  %4779 = vmatprep.subr.bf16.mxu1 %v13845_v9  ;;  %v13929_v8 = vld [vmem:[#allocation5 + $0xc7c] ss:$48 sps:$4 sm:$0xff]   ;;  %v13924_v9 = vld [vmem:[#allocation5 + $0xc70] ss:$48 sps:$4 sm:$0xff]  }
 0x1ad   :  { %4616 = vmatpush1.bf16.msra.mxu0 %v13840_v11  ;;  %4780 = vmatpush1.bf16.msra.mxu1 %v13843_v12  ;;  %v13927_v11 = vld [vmem:[#allocation5 + $0xc78] ss:$48 sps:$4 sm:$0xff]   ;;  %v13932_v12 = vld [vmem:[#allocation5 + $0xcd4] ss:$48 sps:$4 sm:$0xff]  }
 0x1ae   :  { %4617 = vmatprep.subr.bf16.mxu0 %v13848_v14  ;;  %4781 = vmatprep.subr.bf16.mxu1 %v13851_v16  ;;  %v13935_v14 = vld [vmem:[#allocation5 + $0xcdc] ss:$48 sps:$4 sm:$0xff]   ;;  %v13930_v16 = vld [vmem:[#allocation5 + $0xcd0] ss:$48 sps:$4 sm:$0xff]  }
 0x1b1   :  { %4618 = vmatpush1.bf16.msra.mxu0 %v13846_v17  ;;  %4782 = vmatpush1.bf16.msra.mxu1 %v13849_v18  ;;  %v13933_v17 = vld [vmem:[#allocation5 + $0xcd8] ss:$48 sps:$4 sm:$0xff]   ;;  %v13938_v18 = vld [vmem:[#allocation5 + $0xd34] ss:$48 sps:$4 sm:$0xff]  }
 0x1b2   :  { %4619 = vmatprep.subr.bf16.mxu0 %v13854_v20  ;;  %4783 = vmatprep.subr.bf16.mxu1 %v13857_v21  ;;  %v13941_v20 = vld [vmem:[#allocation5 + $0xd3c] ss:$48 sps:$4 sm:$0xff]   ;;  %v13936_v21 = vld [vmem:[#allocation5 + $0xd30] ss:$48 sps:$4 sm:$0xff]  }
 0x1b5   :  { %4620 = vmatpush1.bf16.msra.mxu0 %v13852_v22  ;;  %4784 = vmatpush1.bf16.msra.mxu1 %v13855_v23  ;;  %v13939_v22 = vld [vmem:[#allocation5 + $0xd38] ss:$48 sps:$4 sm:$0xff]   ;;  %v13944_v23 = vld [vmem:[#allocation5 + $0xd94] ss:$48 sps:$4 sm:$0xff]  }
 0x1b6   :  { %4621 = vmatprep.subr.bf16.mxu0 %v13860_v24  ;;  %4785 = vmatprep.subr.bf16.mxu1 %v13863_v25  ;;  %v13947_v24 = vld [vmem:[#allocation5 + $0xd9c] ss:$48 sps:$4 sm:$0xff]   ;;  %v13942_v25 = vld [vmem:[#allocation5 + $0xd90] ss:$48 sps:$4 sm:$0xff]  }
 0x1b9   :  { %4622 = vmatpush1.bf16.msra.mxu0 %v13858_v13  ;;  %4786 = vmatpush1.bf16.msra.mxu1 %v13861_v27  ;;  %v13945_v13 = vld [vmem:[#allocation5 + $0xd98] ss:$48 sps:$4 sm:$0xff]   ;;  %v13950_v27 = vld [vmem:[#allocation5 + $0xdf4] ss:$48 sps:$4 sm:$0xff]  }
 0x1ba   :  { %4623 = vmatprep.subr.bf16.mxu0 %v13866_v28  ;;  %4787 = vmatprep.subr.bf16.mxu1 %v13869_v29  ;;  %v13953_v28 = vld [vmem:[#allocation5 + $0xdfc] ss:$48 sps:$4 sm:$0xff]   ;;  %v13948_v29 = vld [vmem:[#allocation5 + $0xdf0] ss:$48 sps:$4 sm:$0xff]  }
 0x1bd   :  { %4624 = vmatpush1.bf16.msra.mxu0 %v13864_v31  ;;  %4788 = vmatpush1.bf16.msra.mxu1 %v13867_v32  ;;  %v13951_v31 = vld [vmem:[#allocation5 + $0xdf8] ss:$48 sps:$4 sm:$0xff]   ;;  %v13956_v32 = vld [vmem:[#allocation5 + $0xe54] ss:$48 sps:$4 sm:$0xff]  }
 0x1be   :  { %4625 = vmatprep.subr.bf16.mxu0 %v13872_v33  ;;  %4789 = vmatprep.subr.bf16.mxu1 %v13875_v34  ;;  %v13959_v33 = vld [vmem:[#allocation5 + $0xe5c] ss:$48 sps:$4 sm:$0xff]   ;;  %v13954_v34 = vld [vmem:[#allocation5 + $0xe50] ss:$48 sps:$4 sm:$0xff]  }
 0x1c1   :  { %4626 = vmatpush1.bf16.msra.mxu0 %v13870_v35  ;;  %4790 = vmatpush1.bf16.msra.mxu1 %v13873_v36  ;;  %v13957_v35 = vld [vmem:[#allocation5 + $0xe58] ss:$48 sps:$4 sm:$0xff]   ;;  %v13962_v36 = vld [vmem:[#allocation5 + $0xeb4] ss:$48 sps:$4 sm:$0xff]  }
 0x1c2   :  { %4627 = vmatprep.subr.bf16.mxu0 %v13878_v37  ;;  %4791 = vmatprep.subr.bf16.mxu1 %v13881_v38  ;;  %v13965_v37 = vld [vmem:[#allocation5 + $0xebc] ss:$48 sps:$4 sm:$0xff]   ;;  %v13960_v38 = vld [vmem:[#allocation5 + $0xeb0] ss:$48 sps:$4 sm:$0xff]  }
 0x1c5   :  { %4628 = vmatpush1.bf16.msra.mxu0 %v13876_v39  ;;  %4792 = vmatpush1.bf16.msra.mxu1 %v13879_v40  ;;  %v13963_v39 = vld [vmem:[#allocation5 + $0xeb8] ss:$48 sps:$4 sm:$0xff]   ;;  %v13968_v40 = vld [vmem:[#allocation5 + $0xf14] ss:$48 sps:$4 sm:$0xff]  }
 0x1c6   :  { %4629 = vmatprep.subr.bf16.mxu0 %v13884_v41  ;;  %4793 = vmatprep.subr.bf16.mxu1 %v13887_v42  ;;  %v13971_v41 = vld [vmem:[#allocation5 + $0xf1c] ss:$48 sps:$4 sm:$0xff]   ;;  %v13966_v42 = vld [vmem:[#allocation5 + $0xf10] ss:$48 sps:$4 sm:$0xff]  }
 0x1c9   :  { %4630 = vmatpush1.bf16.msra.mxu0 %v13882_v43  ;;  %4794 = vmatpush1.bf16.msra.mxu1 %v13885_v44  ;;  %v13969_v43 = vld [vmem:[#allocation5 + $0xf18] ss:$48 sps:$4 sm:$0xff]   ;;  %v13974_v44 = vld [vmem:[#allocation5 + $0xf74] ss:$48 sps:$4 sm:$0xff]  }
 0x1ca   :  { %4631 = vmatprep.subr.bf16.mxu0 %v13890_v45  ;;  %4795 = vmatprep.subr.bf16.mxu1 %v13893_v46  ;;  %v13977_v45 = vld [vmem:[#allocation5 + $0xf7c] ss:$48 sps:$4 sm:$0xff]   ;;  %v13972_v46 = vld [vmem:[#allocation5 + $0xf70] ss:$48 sps:$4 sm:$0xff]  }
 0x1cd   :  { %4632 = vmatpush1.bf16.msra.mxu0 %v13888_v47  ;;  %4796 = vmatpush1.bf16.msra.mxu1 %v13891_v49  ;;  %v13975_v47 = vld [vmem:[#allocation5 + $0xf78] ss:$48 sps:$4 sm:$0xff]   ;;  %v13980_v49 = vld [vmem:[#allocation5 + $0xfd4] ss:$48 sps:$4 sm:$0xff]  }
 0x1ce   :  { %4633 = vmatprep.subr.bf16.mxu0 %v13896_v50  ;;  %4797 = vmatprep.subr.bf16.mxu1 %v13899_v51  ;;  %v13983_v50 = vld [vmem:[#allocation5 + $0xfdc] ss:$48 sps:$4 sm:$0xff]   ;;  %v13978_v51 = vld [vmem:[#allocation5 + $0xfd0] ss:$48 sps:$4 sm:$0xff]  }
 0x1d1   :  { %4634 = vmatpush1.bf16.msra.mxu0 %v13894_v52  ;;  %4798 = vmatpush1.bf16.msra.mxu1 %v13897_v53  ;;  %v13981_v52 = vld [vmem:[#allocation5 + $0xfd8] ss:$48 sps:$4 sm:$0xff]   ;;  %v13986_v53 = vld [vmem:[#allocation5 + $0x1034] ss:$48 sps:$4 sm:$0xff]  }
 0x1d2   :  { %4635 = vmatprep.subr.bf16.mxu0 %v13902_v54  ;;  %4799 = vmatprep.subr.bf16.mxu1 %v13905_v55  ;;  %v13989_v54 = vld [vmem:[#allocation5 + $0x103c] ss:$48 sps:$4 sm:$0xff]   ;;  %v13984_v55 = vld [vmem:[#allocation5 + $0x1030] ss:$48 sps:$4 sm:$0xff]  }
 0x1d5   :  { %4636 = vmatpush1.bf16.msra.mxu0 %v13900_v56  ;;  %4800 = vmatpush1.bf16.msra.mxu1 %v13903_v57  ;;  %v13987_v56 = vld [vmem:[#allocation5 + $0x1038] ss:$48 sps:$4 sm:$0xff]   ;;  %v13992_v57 = vld [vmem:[#allocation5 + $0x1094] ss:$48 sps:$4 sm:$0xff]  }
 0x1d6   :  { %4637 = vmatprep.subr.bf16.mxu0 %v13908_v58  ;;  %4801 = vmatprep.subr.bf16.mxu1 %v13911_v59  ;;  %v13995_v58 = vld [vmem:[#allocation5 + $0x109c] ss:$48 sps:$4 sm:$0xff]   ;;  %v13990_v59 = vld [vmem:[#allocation5 + $0x1090] ss:$48 sps:$4 sm:$0xff]  }
 0x1d9   :  { %4638 = vmatpush1.bf16.msra.mxu0 %v13906_v60  ;;  %4802 = vmatpush1.bf16.msra.mxu1 %v13909_v61  ;;  %v13993_v60 = vld [vmem:[#allocation5 + $0x1098] ss:$48 sps:$4 sm:$0xff]   ;;  %v13998_v61 = vld [vmem:[#allocation5 + $0x10f4] ss:$48 sps:$4 sm:$0xff]  }
 0x1da   :  { %4639 = vmatprep.subr.bf16.mxu0 %v13914_v62  ;;  %4803 = vmatprep.subr.bf16.mxu1 %v13917_v63  ;;  %v14001_v62 = vld [vmem:[#allocation5 + $0x10fc] ss:$48 sps:$4 sm:$0xff]   ;;  %v13996_v63 = vld [vmem:[#allocation5 + $0x10f0] ss:$48 sps:$4 sm:$0xff]  }
 0x1dd   :  { %4640 = vmatpush1.bf16.msra.mxu0 %v13912_v0  ;;  %4804 = vmatpush1.bf16.msra.mxu1 %v13915_v1  ;;  %v13999_v0 = vld [vmem:[#allocation5 + $0x10f8] ss:$48 sps:$4 sm:$0xff]   ;;  %v14004_v1 = vld [vmem:[#allocation5 + $0x1154] ss:$48 sps:$4 sm:$0xff]  }
 0x1de   :  { %4650 = vmatprep.subr.bf16.mxu0 %v13920_v2  ;;  %4814 = vmatprep.subr.bf16.mxu1 %v13923_v3  ;;  %v14007_v2 = vld [vmem:[#allocation5 + $0x115c] ss:$48 sps:$4 sm:$0xff]   ;;  %v14002_v3 = vld [vmem:[#allocation5 + $0x1150] ss:$48 sps:$4 sm:$0xff]  }
 0x1e0   :  { %4642 = vmatmul.mubr.bf16.vlgmr.msra.gmra.mrb[4].mxu0 %v14808_v10  ;;  %4806 = vmatmul.mubr.bf16.vlgmr.msra.gmra.mrb[4].mxu1 %v14808_v10 }
 0x1e1   :  { %4651 = vmatpush1.bf16.msra.mxu0 %v13918_v4  ;;  %4815 = vmatpush1.bf16.msra.mxu1 %v13921_v6  ;;  %v14005_v4 = vld [vmem:[#allocation5 + $0x1158] ss:$48 sps:$4 sm:$0xff]   ;;  %v14010_v6 = vld [vmem:[#allocation5 + $0x11b4] ss:$48 sps:$4 sm:$0xff]  }
 0x1e2   :  { %4652 = vmatprep.subr.bf16.mxu0 %v13926_v7  ;;  %4816 = vmatprep.subr.bf16.mxu1 %v13929_v8  ;;  %v14013_v7 = vld [vmem:[#allocation5 + $0x11bc] ss:$48 sps:$4 sm:$0xff]   ;;  %v14008_v8 = vld [vmem:[#allocation5 + $0x11b0] ss:$48 sps:$4 sm:$0xff]  }
 0x1e3   :  { %4682 = vmatprep.mubr.bf16.mxu0 %v14814_v15  ;;  %4846 = vmatprep.mubr.bf16.mxu1 %v14814_v15 }
 0x1e5   :  { %4653 = vmatpush1.bf16.msra.mxu0 %v13924_v9  ;;  %4817 = vmatpush1.bf16.msra.mxu1 %v13927_v11  ;;  %v14011_v9 = vld [vmem:[#allocation5 + $0x11b8] ss:$48 sps:$4 sm:$0xff]   ;;  %v14016_v11 = vld [vmem:[#allocation5 + $0x1214] ss:$48 sps:$4 sm:$0xff]  }
 0x1e6   :  { %4654 = vmatprep.subr.bf16.mxu0 %v13932_v12  ;;  %4818 = vmatprep.subr.bf16.mxu1 %v13935_v14  ;;  %v14019_v12 = vld [vmem:[#allocation5 + $0x121c] ss:$48 sps:$4 sm:$0xff]   ;;  %v14014_v14 = vld [vmem:[#allocation5 + $0x1210] ss:$48 sps:$4 sm:$0xff]  }
 0x1e9   :  { %4655 = vmatpush1.bf16.msra.mxu0 %v13930_v16  ;;  %4819 = vmatpush1.bf16.msra.mxu1 %v13933_v17  ;;  %v14017_v16 = vld [vmem:[#allocation5 + $0x1218] ss:$48 sps:$4 sm:$0xff]   ;;  %v14022_v17 = vld [vmem:[#allocation5 + $0x1274] ss:$48 sps:$4 sm:$0xff]  }
 0x1ea   :  { %4656 = vmatprep.subr.bf16.mxu0 %v13938_v18  ;;  %4820 = vmatprep.subr.bf16.mxu1 %v13941_v20  ;;  %v14025_v18 = vld [vmem:[#allocation5 + $0x127c] ss:$48 sps:$4 sm:$0xff]   ;;  %v14020_v20 = vld [vmem:[#allocation5 + $0x1270] ss:$48 sps:$4 sm:$0xff]  }
 0x1ed   :  { %4657 = vmatpush1.bf16.msra.mxu0 %v13936_v21  ;;  %4821 = vmatpush1.bf16.msra.mxu1 %v13939_v22  ;;  %v14023_v21 = vld [vmem:[#allocation5 + $0x1278] ss:$48 sps:$4 sm:$0xff]   ;;  %v14028_v22 = vld [vmem:[#allocation5 + $0x12d4] ss:$48 sps:$4 sm:$0xff]  }
 0x1ee   :  { %4658 = vmatprep.subr.bf16.mxu0 %v13944_v23  ;;  %4822 = vmatprep.subr.bf16.mxu1 %v13947_v24  ;;  %v14031_v23 = vld [vmem:[#allocation5 + $0x12dc] ss:$48 sps:$4 sm:$0xff]   ;;  %v14026_v24 = vld [vmem:[#allocation5 + $0x12d0] ss:$48 sps:$4 sm:$0xff]  }
 0x1f1   :  { %4659 = vmatpush1.bf16.msra.mxu0 %v13942_v25  ;;  %4823 = vmatpush1.bf16.msra.mxu1 %v13945_v13  ;;  %v14029_v25 = vld [vmem:[#allocation5 + $0x12d8] ss:$48 sps:$4 sm:$0xff]   ;;  %v14034_v13 = vld [vmem:[#allocation5 + $0x1334] ss:$48 sps:$4 sm:$0xff]  }
 0x1f2   :  { %4660 = vmatprep.subr.bf16.mxu0 %v13950_v27  ;;  %4824 = vmatprep.subr.bf16.mxu1 %v13953_v28  ;;  %v14037_v27 = vld [vmem:[#allocation5 + $0x133c] ss:$48 sps:$4 sm:$0xff]   ;;  %v14032_v28 = vld [vmem:[#allocation5 + $0x1330] ss:$48 sps:$4 sm:$0xff]  }
 0x1f5   :  { %4661 = vmatpush1.bf16.msra.mxu0 %v13948_v29  ;;  %4825 = vmatpush1.bf16.msra.mxu1 %v13951_v31  ;;  %v14035_v29 = vld [vmem:[#allocation5 + $0x1338] ss:$48 sps:$4 sm:$0xff]   ;;  %v14040_v31 = vld [vmem:[#allocation5 + $0x1394] ss:$48 sps:$4 sm:$0xff]  }
 0x1f6   :  { %4662 = vmatprep.subr.bf16.mxu0 %v13956_v32  ;;  %4826 = vmatprep.subr.bf16.mxu1 %v13959_v33  ;;  %v14043_v32 = vld [vmem:[#allocation5 + $0x139c] ss:$48 sps:$4 sm:$0xff]   ;;  %v14038_v33 = vld [vmem:[#allocation5 + $0x1390] ss:$48 sps:$4 sm:$0xff]  }
 0x1f9   :  { %4663 = vmatpush1.bf16.msra.mxu0 %v13954_v34  ;;  %4827 = vmatpush1.bf16.msra.mxu1 %v13957_v35  ;;  %v14041_v34 = vld [vmem:[#allocation5 + $0x1398] ss:$48 sps:$4 sm:$0xff]   ;;  %v14046_v35 = vld [vmem:[#allocation5 + $0x13f4] ss:$48 sps:$4 sm:$0xff]  }
 0x1fa   :  { %4664 = vmatprep.subr.bf16.mxu0 %v13962_v36  ;;  %4828 = vmatprep.subr.bf16.mxu1 %v13965_v37  ;;  %v14049_v36 = vld [vmem:[#allocation5 + $0x13fc] ss:$48 sps:$4 sm:$0xff]   ;;  %v14044_v37 = vld [vmem:[#allocation5 + $0x13f0] ss:$48 sps:$4 sm:$0xff]  }
 0x1fd   :  { %4665 = vmatpush1.bf16.msra.mxu0 %v13960_v38  ;;  %4829 = vmatpush1.bf16.msra.mxu1 %v13963_v39  ;;  %v14047_v38 = vld [vmem:[#allocation5 + $0x13f8] ss:$48 sps:$4 sm:$0xff]   ;;  %v14052_v39 = vld [vmem:[#allocation5 + $0x1454] ss:$48 sps:$4 sm:$0xff]  }
 0x1fe   :  { %4666 = vmatprep.subr.bf16.mxu0 %v13968_v40  ;;  %4830 = vmatprep.subr.bf16.mxu1 %v13971_v41  ;;  %v14055_v40 = vld [vmem:[#allocation5 + $0x145c] ss:$48 sps:$4 sm:$0xff]  }
 0x201   :  { %4667 = vmatpush1.bf16.msra.mxu0 %v13966_v42  ;;  %4831 = vmatpush1.bf16.msra.mxu1 %v13969_v43 }
 0x202   :  { %4668 = vmatprep.subr.bf16.mxu0 %v13974_v44  ;;  %4832 = vmatprep.subr.bf16.mxu1 %v13977_v45 }
 0x205   :  { %4669 = vmatpush1.bf16.msra.mxu0 %v13972_v46  ;;  %4833 = vmatpush1.bf16.msra.mxu1 %v13975_v47  ;;  %v14050_v47 = vld [vmem:[#allocation5 + $0x1450] ss:$48 sps:$4 sm:$0xff]  }
 0x206   :  { %4670 = vmatprep.subr.bf16.mxu0 %v13980_v49  ;;  %4834 = vmatprep.subr.bf16.mxu1 %v13983_v50  ;;  %v14053_v49 = vld [vmem:[#allocation5 + $0x1458] ss:$48 sps:$4 sm:$0xff]  }
 0x209   :  { %4671 = vmatpush1.bf16.msra.mxu0 %v13978_v51  ;;  %4835 = vmatpush1.bf16.msra.mxu1 %v13981_v52  ;;  %v14058_v52 = vld [vmem:[#allocation5 + $0x14b4] ss:$48 sps:$4 sm:$0xff]  }
 0x20a   :  { %4672 = vmatprep.subr.bf16.mxu0 %v13986_v53  ;;  %4836 = vmatprep.subr.bf16.mxu1 %v13989_v54  ;;  %v14061_v53 = vld [vmem:[#allocation5 + $0x14bc] ss:$48 sps:$4 sm:$0xff]   ;;  %v14056_v54 = vld [vmem:[#allocation5 + $0x14b0] ss:$48 sps:$4 sm:$0xff]  }
 0x20d   :  { %4673 = vmatpush1.bf16.msra.mxu0 %v13984_v55  ;;  %4837 = vmatpush1.bf16.msra.mxu1 %v13987_v56  ;;  %v14059_v55 = vld [vmem:[#allocation5 + $0x14b8] ss:$48 sps:$4 sm:$0xff]   ;;  %v14064_v56 = vld [vmem:[#allocation5 + $0x24] ss:$48 sps:$4 sm:$0xff]  }
 0x20e   :  { %4674 = vmatprep.subr.bf16.mxu0 %v13992_v57  ;;  %4838 = vmatprep.subr.bf16.mxu1 %v13995_v58  ;;  %v14067_v57 = vld [vmem:[#allocation5 + $0x2c] ss:$48 sps:$4 sm:$0xff]   ;;  %v14062_v58 = vld [vmem:[#allocation5 + $0x20] ss:$48 sps:$4 sm:$0xff]  }
 0x211   :  { %4675 = vmatpush1.bf16.msra.mxu0 %v13990_v59  ;;  %4839 = vmatpush1.bf16.msra.mxu1 %v13993_v60  ;;  %v14065_v59 = vld [vmem:[#allocation5 + $0x28] ss:$48 sps:$4 sm:$0xff]   ;;  %v14070_v60 = vld [vmem:[#allocation5 + $0x84] ss:$48 sps:$4 sm:$0xff]  }
 0x212   :  { %4676 = vmatprep.subr.bf16.mxu0 %v13998_v61  ;;  %4840 = vmatprep.subr.bf16.mxu1 %v14001_v62  ;;  %v14073_v61 = vld [vmem:[#allocation5 + $0x8c] ss:$48 sps:$4 sm:$0xff]  }
 0x213   :  { %v14462_v62 = vld [vmem:[#allocation2 + $0x18] ss:$0 sps:$4 sm:$0xff]  }
 0x215   :  { %4677 = vmatpush1.bf16.msra.mxu0 %v13996_v63  ;;  %4841 = vmatpush1.bf16.msra.mxu1 %v13999_v0  ;;  %v14068_v63 = vld [vmem:[#allocation5 + $0x80] ss:$48 sps:$4 sm:$0xff]   ;;  %v14071_v0 = vld [vmem:[#allocation5 + $0x88] ss:$48 sps:$4 sm:$0xff]  }
 0x216   :  { %4678 = vmatprep.subr.bf16.mxu0 %v14004_v1  ;;  %4842 = vmatprep.subr.bf16.mxu1 %v14007_v2  ;;  %v14076_v1 = vld [vmem:[#allocation5 + $0xe4] ss:$48 sps:$4 sm:$0xff]   ;;  %v14079_v2 = vld [vmem:[#allocation5 + $0xec] ss:$48 sps:$4 sm:$0xff]  }
 0x219   :  { %4679 = vmatpush1.bf16.msra.mxu0 %v14002_v3  ;;  %4843 = vmatpush1.bf16.msra.mxu1 %v14005_v4  ;;  %v14074_v3 = vld [vmem:[#allocation5 + $0xe0] ss:$48 sps:$4 sm:$0xff]   ;;  %v14077_v4 = vld [vmem:[#allocation5 + $0xe8] ss:$48 sps:$4 sm:$0xff]  }
 0x21a   :  { %4680 = vmatprep.subr.bf16.mxu0 %v14010_v6  ;;  %4844 = vmatprep.subr.bf16.mxu1 %v14013_v7  ;;  %v14082_v6 = vld [vmem:[#allocation5 + $0x144] ss:$48 sps:$4 sm:$0xff]   ;;  %v14085_v7 = vld [vmem:[#allocation5 + $0x14c] ss:$48 sps:$4 sm:$0xff]  }
 0x21d   :  { %4681 = vmatpush1.bf16.msra.mxu0 %v14008_v8  ;;  %4845 = vmatpush1.bf16.msra.mxu1 %v14011_v9  ;;  %v14080_v8 = vld [vmem:[#allocation5 + $0x140] ss:$48 sps:$4 sm:$0xff]   ;;  %v14083_v9 = vld [vmem:[#allocation5 + $0x148] ss:$48 sps:$4 sm:$0xff]  }
 0x21e   :  { %4691 = vmatprep.subr.bf16.mxu0 %v14016_v11  ;;  %4855 = vmatprep.subr.bf16.mxu1 %v14019_v12  ;;  %v14088_v11 = vld [vmem:[#allocation5 + $0x1a4] ss:$48 sps:$4 sm:$0xff]   ;;  %v14091_v12 = vld [vmem:[#allocation5 + $0x1ac] ss:$48 sps:$4 sm:$0xff]  }
 0x220   :  { %4683 = vmatmul.mubr.bf16.vlgmr.msra.gmra.mrb[4].mxu0 %v14822_v19  ;;  %4847 = vmatmul.mubr.bf16.vlgmr.msra.gmra.mrb[4].mxu1 %v14822_v19 }
 0x221   :  { %4692 = vmatpush1.bf16.msra.mxu0 %v14014_v14  ;;  %4856 = vmatpush1.bf16.msra.mxu1 %v14017_v16  ;;  %v14086_v14 = vld [vmem:[#allocation5 + $0x1a0] ss:$48 sps:$4 sm:$0xff]   ;;  %v14094_v16 = vld [vmem:[#allocation5 + $0x204] ss:$48 sps:$4 sm:$0xff]  }
 0x222   :  { %4693 = vmatprep.subr.bf16.mxu0 %v14022_v17  ;;  %4857 = vmatprep.subr.bf16.mxu1 %v14025_v18  ;;  %v14097_v17 = vld [vmem:[#allocation5 + $0x20c] ss:$48 sps:$4 sm:$0xff]   ;;  %v14092_v18 = vld [vmem:[#allocation5 + $0x200] ss:$48 sps:$4 sm:$0xff]  }
 0x223   :  { %4723 = vmatprep.mubr.bf16.mxu0 %v14664_v26  ;;  %4887 = vmatprep.mubr.bf16.mxu1 %v14664_v26 }
 0x225   :  { %4694 = vmatpush1.bf16.msra.mxu0 %v14020_v20  ;;  %4858 = vmatpush1.bf16.msra.mxu1 %v14023_v21  ;;  %v14095_v20 = vld [vmem:[#allocation5 + $0x208] ss:$48 sps:$4 sm:$0xff]   ;;  %v14100_v21 = vld [vmem:[#allocation5 + $0x264] ss:$48 sps:$4 sm:$0xff]  }
 0x226   :  { %4695 = vmatprep.subr.bf16.mxu0 %v14028_v22  ;;  %4859 = vmatprep.subr.bf16.mxu1 %v14031_v23  ;;  %v14103_v22 = vld [vmem:[#allocation5 + $0x26c] ss:$48 sps:$4 sm:$0xff]   ;;  %v14098_v23 = vld [vmem:[#allocation5 + $0x260] ss:$48 sps:$4 sm:$0xff]  }
 0x229   :  { %4696 = vmatpush1.bf16.msra.mxu0 %v14026_v24  ;;  %4860 = vmatpush1.bf16.msra.mxu1 %v14029_v25  ;;  %v14101_v24 = vld [vmem:[#allocation5 + $0x268] ss:$48 sps:$4 sm:$0xff]   ;;  %v14106_v25 = vld [vmem:[#allocation5 + $0x2c4] ss:$48 sps:$4 sm:$0xff]  }
 0x22a   :  { %4697 = vmatprep.subr.bf16.mxu0 %v14034_v13  ;;  %4861 = vmatprep.subr.bf16.mxu1 %v14037_v27  ;;  %v14109_v13 = vld [vmem:[#allocation5 + $0x2cc] ss:$48 sps:$4 sm:$0xff]   ;;  %v14104_v27 = vld [vmem:[#allocation5 + $0x2c0] ss:$48 sps:$4 sm:$0xff]  }
 0x22d   :  { %4698 = vmatpush1.bf16.msra.mxu0 %v14032_v28  ;;  %4862 = vmatpush1.bf16.msra.mxu1 %v14035_v29  ;;  %v14107_v28 = vld [vmem:[#allocation5 + $0x2c8] ss:$48 sps:$4 sm:$0xff]   ;;  %v14112_v29 = vld [vmem:[#allocation5 + $0x324] ss:$48 sps:$4 sm:$0xff]  }
 0x22e   :  { %4699 = vmatprep.subr.bf16.mxu0 %v14040_v31  ;;  %4863 = vmatprep.subr.bf16.mxu1 %v14043_v32  ;;  %v14115_v31 = vld [vmem:[#allocation5 + $0x32c] ss:$48 sps:$4 sm:$0xff]   ;;  %v14110_v32 = vld [vmem:[#allocation5 + $0x320] ss:$48 sps:$4 sm:$0xff]  }
 0x231   :  { %4700 = vmatpush1.bf16.msra.mxu0 %v14038_v33  ;;  %4864 = vmatpush1.bf16.msra.mxu1 %v14041_v34  ;;  %v14113_v33 = vld [vmem:[#allocation5 + $0x328] ss:$48 sps:$4 sm:$0xff]   ;;  %v14118_v34 = vld [vmem:[#allocation5 + $0x384] ss:$48 sps:$4 sm:$0xff]  }
 0x232   :  { %4701 = vmatprep.subr.bf16.mxu0 %v14046_v35  ;;  %4865 = vmatprep.subr.bf16.mxu1 %v14049_v36  ;;  %v14121_v35 = vld [vmem:[#allocation5 + $0x38c] ss:$48 sps:$4 sm:$0xff]   ;;  %v14116_v36 = vld [vmem:[#allocation5 + $0x380] ss:$48 sps:$4 sm:$0xff]  }
 0x233   :  { %v14842_v41 = vpop.f32.mrb[0].mxu0  ;;  %v14844_v42 = vpop.f32.mrb[0].mxu1 }
 0x234   :  { %v14846_v43 = vpop.f32.mrb[1].mxu0  ;;  %v14848_v44 = vpop.f32.mrb[1].mxu1 }
 0x235   :  { %v4401_v45 = vpop.f32.mrb[2].mxu0  ;;  %v4565_v46 = vpop.f32.mrb[2].mxu1  ;;  %4702 = vmatpush1.bf16.msra.mxu0 %v14044_v37  ;;  %4866 = vmatpush1.bf16.msra.mxu1 %v14047_v38  ;;  %v14119_v37 = vld [vmem:[#allocation5 + $0x388] ss:$48 sps:$4 sm:$0xff]   ;;  %v14124_v38 = vld [vmem:[#allocation5 + $0x3e4] ss:$48 sps:$4 sm:$0xff]  }
 0x236   :  { %v4402_v50 = vpop.f32.mrb[3].mxu0  ;;  %v4566_v51 = vpop.f32.mrb[3].mxu1  ;;  %4703 = vmatprep.subr.bf16.mxu0 %v14052_v39  ;;  %4867 = vmatprep.subr.bf16.mxu1 %v14055_v40  ;;  %v14127_v39 = vld [vmem:[#allocation5 + $0x3ec] ss:$48 sps:$4 sm:$0xff]   ;;  %v14122_v40 = vld [vmem:[#allocation5 + $0x3e0] ss:$48 sps:$4 sm:$0xff]  }
 0x237   :  { %v14125_v45 = vld [vmem:[#allocation5 + $0x3e8] ss:$48 sps:$4 sm:$0xff]   ;;  %v14130_v46 = vld [vmem:[#allocation5 + $0x444] ss:$48 sps:$4 sm:$0xff]  }
 0x238   :  { %v14131_v50 = vld [vmem:[#allocation5 + $0x448] ss:$48 sps:$4 sm:$0xff]   ;;  %v14136_v51 = vld [vmem:[#allocation5 + $0x4a4] ss:$48 sps:$4 sm:$0xff]  }
 0x239   :  { %4704 = vmatpush1.bf16.msra.mxu0 %v14050_v47  ;;  %4868 = vmatpush1.bf16.msra.mxu1 %v14053_v49  ;;  %v14133_v47 = vld [vmem:[#allocation5 + $0x44c] ss:$48 sps:$4 sm:$0xff]   ;;  %v14128_v49 = vld [vmem:[#allocation5 + $0x440] ss:$48 sps:$4 sm:$0xff]  }
 0x23a   :  { %4705 = vmatprep.subr.bf16.mxu0 %v14058_v52  ;;  %4869 = vmatprep.subr.bf16.mxu1 %v14061_v53  ;;  %v14139_v52 = vld [vmem:[#allocation5 + $0x4ac] ss:$48 sps:$4 sm:$0xff]   ;;  %v14134_v53 = vld [vmem:[#allocation5 + $0x4a0] ss:$48 sps:$4 sm:$0xff]  }
 0x23d   :  { %4706 = vmatpush1.bf16.msra.mxu0 %v14056_v54  ;;  %4870 = vmatpush1.bf16.msra.mxu1 %v14059_v55  ;;  %v14137_v54 = vld [vmem:[#allocation5 + $0x4a8] ss:$48 sps:$4 sm:$0xff]   ;;  %v14142_v55 = vld [vmem:[#allocation5 + $0x504] ss:$48 sps:$4 sm:$0xff]  }
 0x23e   :  { %4896 = vmatprep.subr.bf16.mxu0 %v14064_v56  ;;  %5060 = vmatprep.subr.bf16.mxu1 %v14067_v57  ;;  %v14145_v56 = vld [vmem:[#allocation5 + $0x50c] ss:$48 sps:$4 sm:$0xff]   ;;  %v14140_v57 = vld [vmem:[#allocation5 + $0x500] ss:$48 sps:$4 sm:$0xff]  }
 0x240   :  { %4724 = vmatmul.mubr.bf16.vlgmr.msra.gmra.mrb[4].mxu0 %v14462_v62  ;;  %4888 = vmatmul.mubr.bf16.vlgmr.msra.gmra.mrb[4].mxu1 %v14462_v62  ;;  %v14149_v62 = vld [vmem:[#allocation5 + $0x568] ss:$48 sps:$4 sm:$0xff]  }
 0x241   :  { %4897 = vmatpush1.bf16.msra.mxu0 %v14062_v58  ;;  %5061 = vmatpush1.bf16.msra.mxu1 %v14065_v59  ;;  %v14143_v58 = vld [vmem:[#allocation5 + $0x508] ss:$48 sps:$4 sm:$0xff]   ;;  %v14148_v59 = vld [vmem:[#allocation5 + $0x564] ss:$48 sps:$4 sm:$0xff]  }
 0x242   :  { %4898 = vmatprep.subr.bf16.mxu0 %v14070_v60  ;;  %5062 = vmatprep.subr.bf16.mxu1 %v14073_v61  ;;  %v14151_v60 = vld [vmem:[#allocation5 + $0x56c] ss:$48 sps:$4 sm:$0xff]   ;;  %v14146_v61 = vld [vmem:[#allocation5 + $0x560] ss:$48 sps:$4 sm:$0xff]  }
 0x243   :  { %4928 = vmatprep.mubr.bf16.mxu0 %v14790_v48  ;;  %5092 = vmatprep.mubr.bf16.mxu1 %v14790_v48  ;;  %v14089_v48 = vld [vmem:[#allocation5 + $0x1a8] ss:$48 sps:$4 sm:$0xff]  }
 0x245   :  { %4899 = vmatpush1.bf16.msra.mxu0 %v14068_v63  ;;  %5063 = vmatpush1.bf16.msra.mxu1 %v14071_v0  ;;  %v14154_v63 = vld [vmem:[#allocation5 + $0x5c4] ss:$48 sps:$4 sm:$0xff]   ;;  %v14157_v0 = vld [vmem:[#allocation5 + $0x5cc] ss:$48 sps:$4 sm:$0xff]  }
 0x246   :  { %4900 = vmatprep.subr.bf16.mxu0 %v14076_v1  ;;  %5064 = vmatprep.subr.bf16.mxu1 %v14079_v2  ;;  %v14152_v1 = vld [vmem:[#allocation5 + $0x5c0] ss:$48 sps:$4 sm:$0xff]   ;;  %v14155_v2 = vld [vmem:[#allocation5 + $0x5c8] ss:$48 sps:$4 sm:$0xff]  }
 0x249   :  { %4901 = vmatpush1.bf16.msra.mxu0 %v14074_v3  ;;  %5065 = vmatpush1.bf16.msra.mxu1 %v14077_v4  ;;  %v14160_v3 = vld [vmem:[#allocation5 + $0x624] ss:$48 sps:$4 sm:$0xff]   ;;  %v14163_v4 = vld [vmem:[#allocation5 + $0x62c] ss:$48 sps:$4 sm:$0xff]  }
 0x24a   :  { %4902 = vmatprep.subr.bf16.mxu0 %v14082_v6  ;;  %5066 = vmatprep.subr.bf16.mxu1 %v14085_v7  ;;  %v14158_v6 = vld [vmem:[#allocation5 + $0x620] ss:$48 sps:$4 sm:$0xff]   ;;  %v14161_v7 = vld [vmem:[#allocation5 + $0x628] ss:$48 sps:$4 sm:$0xff]  }
 0x24d   :  { %4903 = vmatpush1.bf16.msra.mxu0 %v14080_v8  ;;  %5067 = vmatpush1.bf16.msra.mxu1 %v14083_v9  ;;  %v14166_v8 = vld [vmem:[#allocation5 + $0x684] ss:$48 sps:$4 sm:$0xff]   ;;  %v14169_v9 = vld [vmem:[#allocation5 + $0x68c] ss:$48 sps:$4 sm:$0xff]  }
 0x24e   :  { %4904 = vmatprep.subr.bf16.mxu0 %v14088_v11  ;;  %5068 = vmatprep.subr.bf16.mxu1 %v14091_v12  ;;  %v14164_v11 = vld [vmem:[#allocation5 + $0x680] ss:$48 sps:$4 sm:$0xff]   ;;  %v14167_v12 = vld [vmem:[#allocation5 + $0x688] ss:$48 sps:$4 sm:$0xff]  }
 0x251   :  { %4905 = vmatpush1.bf16.msra.mxu0 %v14086_v14  ;;  %5069 = vmatpush1.bf16.msra.mxu1 %v14089_v48  ;;  %v14172_v14 = vld [vmem:[#allocation5 + $0x6e4] ss:$48 sps:$4 sm:$0xff]   ;;  %v14175_v48 = vld [vmem:[#allocation5 + $0x6ec] ss:$48 sps:$4 sm:$0xff]  }
 0x252   :  { %4906 = vmatprep.subr.bf16.mxu0 %v14094_v16  ;;  %5070 = vmatprep.subr.bf16.mxu1 %v14097_v17  ;;  %v14170_v16 = vld [vmem:[#allocation5 + $0x6e0] ss:$48 sps:$4 sm:$0xff]   ;;  %v14173_v17 = vld [vmem:[#allocation5 + $0x6e8] ss:$48 sps:$4 sm:$0xff]  }
 0x255   :  { %4907 = vmatpush1.bf16.msra.mxu0 %v14092_v18  ;;  %5071 = vmatpush1.bf16.msra.mxu1 %v14095_v20  ;;  %v14178_v18 = vld [vmem:[#allocation5 + $0x744] ss:$48 sps:$4 sm:$0xff]   ;;  %v14176_v20 = vld [vmem:[#allocation5 + $0x740] ss:$48 sps:$4 sm:$0xff]  }
 0x256   :  { %4908 = vmatprep.subr.bf16.mxu0 %v14100_v21  ;;  %5072 = vmatprep.subr.bf16.mxu1 %v14103_v22  ;;  %v14179_v21 = vld [vmem:[#allocation5 + $0x748] ss:$48 sps:$4 sm:$0xff]   ;;  %v14184_v22 = vld [vmem:[#allocation5 + $0x7a4] ss:$48 sps:$4 sm:$0xff]  }
 0x259   :  { %4909 = vmatpush1.bf16.msra.mxu0 %v14098_v23  ;;  %5073 = vmatpush1.bf16.msra.mxu1 %v14101_v24  ;;  %v14187_v23 = vld [vmem:[#allocation5 + $0x7ac] ss:$48 sps:$4 sm:$0xff]   ;;  %v14182_v24 = vld [vmem:[#allocation5 + $0x7a0] ss:$48 sps:$4 sm:$0xff]  }
 0x25a   :  { %4910 = vmatprep.subr.bf16.mxu0 %v14106_v25  ;;  %5074 = vmatprep.subr.bf16.mxu1 %v14109_v13  ;;  %v14190_v25 = vld [vmem:[#allocation5 + $0x804] ss:$48 sps:$4 sm:$0xff]   ;;  %v14193_v13 = vld [vmem:[#allocation5 + $0x80c] ss:$48 sps:$4 sm:$0xff]  }
 0x25d   :  { %4911 = vmatpush1.bf16.msra.mxu0 %v14104_v27  ;;  %5075 = vmatpush1.bf16.msra.mxu1 %v14107_v28  ;;  %v14188_v27 = vld [vmem:[#allocation5 + $0x800] ss:$48 sps:$4 sm:$0xff]   ;;  %v14191_v28 = vld [vmem:[#allocation5 + $0x808] ss:$48 sps:$4 sm:$0xff]  }
 0x25e   :  { %4912 = vmatprep.subr.bf16.mxu0 %v14112_v29  ;;  %5076 = vmatprep.subr.bf16.mxu1 %v14115_v31  ;;  %v14196_v29 = vld [vmem:[#allocation5 + $0x864] ss:$48 sps:$4 sm:$0xff]   ;;  %v14199_v31 = vld [vmem:[#allocation5 + $0x86c] ss:$48 sps:$4 sm:$0xff]  }
 0x261   :  { %4913 = vmatpush1.bf16.msra.mxu0 %v14110_v32  ;;  %5077 = vmatpush1.bf16.msra.mxu1 %v14113_v33  ;;  %v14194_v32 = vld [vmem:[#allocation5 + $0x860] ss:$48 sps:$4 sm:$0xff]   ;;  %v14197_v33 = vld [vmem:[#allocation5 + $0x868] ss:$48 sps:$4 sm:$0xff]  }
 0x262   :  { %4914 = vmatprep.subr.bf16.mxu0 %v14118_v34  ;;  %5078 = vmatprep.subr.bf16.mxu1 %v14121_v35  ;;  %v14202_v34 = vld [vmem:[#allocation5 + $0x8c4] ss:$48 sps:$4 sm:$0xff]   ;;  %v14205_v35 = vld [vmem:[#allocation5 + $0x8cc] ss:$48 sps:$4 sm:$0xff]  }
 0x265   :  { %4915 = vmatpush1.bf16.msra.mxu0 %v14116_v36  ;;  %5079 = vmatpush1.bf16.msra.mxu1 %v14119_v37  ;;  %v14200_v36 = vld [vmem:[#allocation5 + $0x8c0] ss:$48 sps:$4 sm:$0xff]   ;;  %v14203_v37 = vld [vmem:[#allocation5 + $0x8c8] ss:$48 sps:$4 sm:$0xff]  }
 0x266   :  { %4916 = vmatprep.subr.bf16.mxu0 %v14124_v38  ;;  %5080 = vmatprep.subr.bf16.mxu1 %v14127_v39  ;;  %v14208_v38 = vld [vmem:[#allocation5 + $0x924] ss:$48 sps:$4 sm:$0xff]   ;;  %v14211_v39 = vld [vmem:[#allocation5 + $0x92c] ss:$48 sps:$4 sm:$0xff]  }
 0x269   :  { %4917 = vmatpush1.bf16.msra.mxu0 %v14122_v40  ;;  %5081 = vmatpush1.bf16.msra.mxu1 %v14125_v45  ;;  %v14206_v40 = vld [vmem:[#allocation5 + $0x920] ss:$48 sps:$4 sm:$0xff]   ;;  %v14209_v45 = vld [vmem:[#allocation5 + $0x928] ss:$48 sps:$4 sm:$0xff]  }
 0x26a   :  { %4918 = vmatprep.subr.bf16.mxu0 %v14130_v46  ;;  %5082 = vmatprep.subr.bf16.mxu1 %v14133_v47  ;;  %v14214_v46 = vld [vmem:[#allocation5 + $0x984] ss:$48 sps:$4 sm:$0xff]   ;;  %v14217_v47 = vld [vmem:[#allocation5 + $0x98c] ss:$48 sps:$4 sm:$0xff]  }
 0x26d   :  { %4919 = vmatpush1.bf16.msra.mxu0 %v14128_v49  ;;  %5083 = vmatpush1.bf16.msra.mxu1 %v14131_v50  ;;  %v14212_v49 = vld [vmem:[#allocation5 + $0x980] ss:$48 sps:$4 sm:$0xff]   ;;  %v14215_v50 = vld [vmem:[#allocation5 + $0x988] ss:$48 sps:$4 sm:$0xff]  }
 0x26e   :  { %4920 = vmatprep.subr.bf16.mxu0 %v14136_v51  ;;  %5084 = vmatprep.subr.bf16.mxu1 %v14139_v52  ;;  %v14220_v51 = vld [vmem:[#allocation5 + $0x9e4] ss:$48 sps:$4 sm:$0xff]   ;;  %v14223_v52 = vld [vmem:[#allocation5 + $0x9ec] ss:$48 sps:$4 sm:$0xff]  }
 0x271   :  { %4921 = vmatpush1.bf16.msra.mxu0 %v14134_v53  ;;  %5085 = vmatpush1.bf16.msra.mxu1 %v14137_v54  ;;  %v14218_v53 = vld [vmem:[#allocation5 + $0x9e0] ss:$48 sps:$4 sm:$0xff]   ;;  %v14221_v54 = vld [vmem:[#allocation5 + $0x9e8] ss:$48 sps:$4 sm:$0xff]  }
 0x272   :  { %4922 = vmatprep.subr.bf16.mxu0 %v14142_v55  ;;  %5086 = vmatprep.subr.bf16.mxu1 %v14145_v56  ;;  %v14226_v55 = vld [vmem:[#allocation5 + $0xa44] ss:$48 sps:$4 sm:$0xff]   ;;  %v14229_v56 = vld [vmem:[#allocation5 + $0xa4c] ss:$48 sps:$4 sm:$0xff]  }
 0x275   :  { %4923 = vmatpush1.bf16.msra.mxu0 %v14140_v57  ;;  %5087 = vmatpush1.bf16.msra.mxu1 %v14143_v58  ;;  %v14224_v57 = vld [vmem:[#allocation5 + $0xa40] ss:$48 sps:$4 sm:$0xff]   ;;  %v14227_v58 = vld [vmem:[#allocation5 + $0xa48] ss:$48 sps:$4 sm:$0xff]  }
 0x276   :  { %4924 = vmatprep.subr.bf16.mxu0 %v14148_v59  ;;  %5088 = vmatprep.subr.bf16.mxu1 %v14151_v60  ;;  %v14232_v59 = vld [vmem:[#allocation5 + $0xaa4] ss:$48 sps:$4 sm:$0xff]   ;;  %v14235_v60 = vld [vmem:[#allocation5 + $0xaac] ss:$48 sps:$4 sm:$0xff]  }
 0x279   :  { %4925 = vmatpush1.bf16.msra.mxu0 %v14146_v61  ;;  %5089 = vmatpush1.bf16.msra.mxu1 %v14149_v62  ;;  %v14230_v61 = vld [vmem:[#allocation5 + $0xaa0] ss:$48 sps:$4 sm:$0xff]   ;;  %v14233_v62 = vld [vmem:[#allocation5 + $0xaa8] ss:$48 sps:$4 sm:$0xff]  }
 0x27a   :  { %4926 = vmatprep.subr.bf16.mxu0 %v14154_v63  ;;  %5090 = vmatprep.subr.bf16.mxu1 %v14157_v0  ;;  %v14238_v63 = vld [vmem:[#allocation5 + $0xb04] ss:$48 sps:$4 sm:$0xff]   ;;  %v14241_v0 = vld [vmem:[#allocation5 + $0xb0c] ss:$48 sps:$4 sm:$0xff]  }
 0x27d   :  { %4927 = vmatpush1.bf16.msra.mxu0 %v14152_v1  ;;  %5091 = vmatpush1.bf16.msra.mxu1 %v14155_v2  ;;  %v14236_v1 = vld [vmem:[#allocation5 + $0xb00] ss:$48 sps:$4 sm:$0xff]   ;;  %v14239_v2 = vld [vmem:[#allocation5 + $0xb08] ss:$48 sps:$4 sm:$0xff]  }
 0x27e   :  { %4937 = vmatprep.subr.bf16.mxu0 %v14160_v3  ;;  %5101 = vmatprep.subr.bf16.mxu1 %v14163_v4  ;;  %v14244_v3 = vld [vmem:[#allocation5 + $0xb64] ss:$48 sps:$4 sm:$0xff]   ;;  %v14247_v4 = vld [vmem:[#allocation5 + $0xb6c] ss:$48 sps:$4 sm:$0xff]  }
 0x280   :  { %4929 = vmatmul.mubr.bf16.vlgmr.msra.gmra.mrb[8].mxu0 %v14794_v5  ;;  %5093 = vmatmul.mubr.bf16.vlgmr.msra.gmra.mrb[8].mxu1 %v14794_v5  ;;  %v14181_v5 = vld [vmem:[#allocation5 + $0x74c] ss:$48 sps:$4 sm:$0xff]  }
 0x281   :  { %4938 = vmatpush1.bf16.msra.mxu0 %v14158_v6  ;;  %5102 = vmatpush1.bf16.msra.mxu1 %v14161_v7  ;;  %v14242_v6 = vld [vmem:[#allocation5 + $0xb60] ss:$48 sps:$4 sm:$0xff]   ;;  %v14245_v7 = vld [vmem:[#allocation5 + $0xb68] ss:$48 sps:$4 sm:$0xff]  }
 0x282   :  { %4939 = vmatprep.subr.bf16.mxu0 %v14166_v8  ;;  %5103 = vmatprep.subr.bf16.mxu1 %v14169_v9  ;;  %v14250_v8 = vld [vmem:[#allocation5 + $0xbc4] ss:$48 sps:$4 sm:$0xff]   ;;  %v14253_v9 = vld [vmem:[#allocation5 + $0xbcc] ss:$48 sps:$4 sm:$0xff]  }
 0x283   :  { %4969 = vmatprep.mubr.bf16.mxu0 %v14802_v30  ;;  %5133 = vmatprep.mubr.bf16.mxu1 %v14802_v30  ;;  %v14185_v30 = vld [vmem:[#allocation5 + $0x7a8] ss:$48 sps:$4 sm:$0xff]  }
 0x285   :  { %4940 = vmatpush1.bf16.msra.mxu0 %v14164_v11  ;;  %5104 = vmatpush1.bf16.msra.mxu1 %v14167_v12  ;;  %v14248_v11 = vld [vmem:[#allocation5 + $0xbc0] ss:$48 sps:$4 sm:$0xff]   ;;  %v14251_v12 = vld [vmem:[#allocation5 + $0xbc8] ss:$48 sps:$4 sm:$0xff]  }
 0x286   :  { %4941 = vmatprep.subr.bf16.mxu0 %v14172_v14  ;;  %5105 = vmatprep.subr.bf16.mxu1 %v14175_v48  ;;  %v14256_v14 = vld [vmem:[#allocation5 + $0xc24] ss:$48 sps:$4 sm:$0xff]   ;;  %v14259_v48 = vld [vmem:[#allocation5 + $0xc2c] ss:$48 sps:$4 sm:$0xff]  }
 0x289   :  { %4942 = vmatpush1.bf16.msra.mxu0 %v14170_v16  ;;  %5106 = vmatpush1.bf16.msra.mxu1 %v14173_v17  ;;  %v14254_v16 = vld [vmem:[#allocation5 + $0xc20] ss:$48 sps:$4 sm:$0xff]   ;;  %v14257_v17 = vld [vmem:[#allocation5 + $0xc28] ss:$48 sps:$4 sm:$0xff]  }
 0x28a   :  { %4943 = vmatprep.subr.bf16.mxu0 %v14178_v18  ;;  %5107 = vmatprep.subr.bf16.mxu1 %v14181_v5  ;;  %v14262_v18 = vld [vmem:[#allocation5 + $0xc84] ss:$48 sps:$4 sm:$0xff]   ;;  %v14265_v5 = vld [vmem:[#allocation5 + $0xc8c] ss:$48 sps:$4 sm:$0xff]  }
 0x28d   :  { %4944 = vmatpush1.bf16.msra.mxu0 %v14176_v20  ;;  %5108 = vmatpush1.bf16.msra.mxu1 %v14179_v21  ;;  %v14260_v20 = vld [vmem:[#allocation5 + $0xc80] ss:$48 sps:$4 sm:$0xff]   ;;  %v14263_v21 = vld [vmem:[#allocation5 + $0xc88] ss:$48 sps:$4 sm:$0xff]  }
 0x28e   :  { %4945 = vmatprep.subr.bf16.mxu0 %v14184_v22  ;;  %5109 = vmatprep.subr.bf16.mxu1 %v14187_v23  ;;  %v14268_v22 = vld [vmem:[#allocation5 + $0xce4] ss:$48 sps:$4 sm:$0xff]   ;;  %v14271_v23 = vld [vmem:[#allocation5 + $0xcec] ss:$48 sps:$4 sm:$0xff]  }
 0x291   :  { %4946 = vmatpush1.bf16.msra.mxu0 %v14182_v24  ;;  %5110 = vmatpush1.bf16.msra.mxu1 %v14185_v30  ;;  %v14266_v24 = vld [vmem:[#allocation5 + $0xce0] ss:$48 sps:$4 sm:$0xff]   ;;  %v14269_v30 = vld [vmem:[#allocation5 + $0xce8] ss:$48 sps:$4 sm:$0xff]  }
 0x292   :  { %4947 = vmatprep.subr.bf16.mxu0 %v14190_v25  ;;  %5111 = vmatprep.subr.bf16.mxu1 %v14193_v13  ;;  %v14274_v25 = vld [vmem:[#allocation5 + $0xd44] ss:$48 sps:$4 sm:$0xff]   ;;  %v14272_v13 = vld [vmem:[#allocation5 + $0xd40] ss:$48 sps:$4 sm:$0xff]  }
 0x295   :  { %4948 = vmatpush1.bf16.msra.mxu0 %v14188_v27  ;;  %5112 = vmatpush1.bf16.msra.mxu1 %v14191_v28  ;;  %v14275_v27 = vld [vmem:[#allocation5 + $0xd48] ss:$48 sps:$4 sm:$0xff]   ;;  %v14280_v28 = vld [vmem:[#allocation5 + $0xda4] ss:$48 sps:$4 sm:$0xff]  }
 0x296   :  { %4949 = vmatprep.subr.bf16.mxu0 %v14196_v29  ;;  %5113 = vmatprep.subr.bf16.mxu1 %v14199_v31  ;;  %v14283_v29 = vld [vmem:[#allocation5 + $0xdac] ss:$48 sps:$4 sm:$0xff]   ;;  %v14278_v31 = vld [vmem:[#allocation5 + $0xda0] ss:$48 sps:$4 sm:$0xff]  }
 0x299   :  { %4950 = vmatpush1.bf16.msra.mxu0 %v14194_v32  ;;  %5114 = vmatpush1.bf16.msra.mxu1 %v14197_v33  ;;  %v14286_v32 = vld [vmem:[#allocation5 + $0xe04] ss:$48 sps:$4 sm:$0xff]   ;;  %v14289_v33 = vld [vmem:[#allocation5 + $0xe0c] ss:$48 sps:$4 sm:$0xff]  }
 0x29a   :  { %4951 = vmatprep.subr.bf16.mxu0 %v14202_v34  ;;  %5115 = vmatprep.subr.bf16.mxu1 %v14205_v35  ;;  %v14284_v34 = vld [vmem:[#allocation5 + $0xe00] ss:$48 sps:$4 sm:$0xff]   ;;  %v14287_v35 = vld [vmem:[#allocation5 + $0xe08] ss:$48 sps:$4 sm:$0xff]  }
 0x29d   :  { %4952 = vmatpush1.bf16.msra.mxu0 %v14200_v36  ;;  %5116 = vmatpush1.bf16.msra.mxu1 %v14203_v37  ;;  %v14292_v36 = vld [vmem:[#allocation5 + $0xe64] ss:$48 sps:$4 sm:$0xff]   ;;  %v14295_v37 = vld [vmem:[#allocation5 + $0xe6c] ss:$48 sps:$4 sm:$0xff]  }
 0x29e   :  { %4953 = vmatprep.subr.bf16.mxu0 %v14208_v38  ;;  %5117 = vmatprep.subr.bf16.mxu1 %v14211_v39  ;;  %v14290_v38 = vld [vmem:[#allocation5 + $0xe60] ss:$48 sps:$4 sm:$0xff]   ;;  %v14293_v39 = vld [vmem:[#allocation5 + $0xe68] ss:$48 sps:$4 sm:$0xff]  }
 0x2a1   :  { %4954 = vmatpush1.bf16.msra.mxu0 %v14206_v40  ;;  %5118 = vmatpush1.bf16.msra.mxu1 %v14209_v45  ;;  %v14298_v40 = vld [vmem:[#allocation5 + $0xec4] ss:$48 sps:$4 sm:$0xff]   ;;  %v14301_v45 = vld [vmem:[#allocation5 + $0xecc] ss:$48 sps:$4 sm:$0xff]  }
 0x2a2   :  { %4955 = vmatprep.subr.bf16.mxu0 %v14214_v46  ;;  %5119 = vmatprep.subr.bf16.mxu1 %v14217_v47  ;;  %v14296_v46 = vld [vmem:[#allocation5 + $0xec0] ss:$48 sps:$4 sm:$0xff]   ;;  %v14299_v47 = vld [vmem:[#allocation5 + $0xec8] ss:$48 sps:$4 sm:$0xff]  }
 0x2a5   :  { %4956 = vmatpush1.bf16.msra.mxu0 %v14212_v49  ;;  %5120 = vmatpush1.bf16.msra.mxu1 %v14215_v50  ;;  %v14304_v49 = vld [vmem:[#allocation5 + $0xf24] ss:$48 sps:$4 sm:$0xff]   ;;  %v14307_v50 = vld [vmem:[#allocation5 + $0xf2c] ss:$48 sps:$4 sm:$0xff]  }
 0x2a6   :  { %4957 = vmatprep.subr.bf16.mxu0 %v14220_v51  ;;  %5121 = vmatprep.subr.bf16.mxu1 %v14223_v52  ;;  %v14302_v51 = vld [vmem:[#allocation5 + $0xf20] ss:$48 sps:$4 sm:$0xff]   ;;  %v14305_v52 = vld [vmem:[#allocation5 + $0xf28] ss:$48 sps:$4 sm:$0xff]  }
 0x2a9   :  { %4958 = vmatpush1.bf16.msra.mxu0 %v14218_v53  ;;  %5122 = vmatpush1.bf16.msra.mxu1 %v14221_v54  ;;  %v14310_v53 = vld [vmem:[#allocation5 + $0xf84] ss:$48 sps:$4 sm:$0xff]   ;;  %v14313_v54 = vld [vmem:[#allocation5 + $0xf8c] ss:$48 sps:$4 sm:$0xff]  }
 0x2aa   :  { %4959 = vmatprep.subr.bf16.mxu0 %v14226_v55  ;;  %5123 = vmatprep.subr.bf16.mxu1 %v14229_v56  ;;  %v14308_v55 = vld [vmem:[#allocation5 + $0xf80] ss:$48 sps:$4 sm:$0xff]   ;;  %v14311_v56 = vld [vmem:[#allocation5 + $0xf88] ss:$48 sps:$4 sm:$0xff]  }
 0x2ad   :  { %4960 = vmatpush1.bf16.msra.mxu0 %v14224_v57  ;;  %5124 = vmatpush1.bf16.msra.mxu1 %v14227_v58  ;;  %v14316_v57 = vld [vmem:[#allocation5 + $0xfe4] ss:$48 sps:$4 sm:$0xff]   ;;  %v14319_v58 = vld [vmem:[#allocation5 + $0xfec] ss:$48 sps:$4 sm:$0xff]  }
 0x2ae   :  { %4961 = vmatprep.subr.bf16.mxu0 %v14232_v59  ;;  %5125 = vmatprep.subr.bf16.mxu1 %v14235_v60  ;;  %v14314_v59 = vld [vmem:[#allocation5 + $0xfe0] ss:$48 sps:$4 sm:$0xff]   ;;  %v14317_v60 = vld [vmem:[#allocation5 + $0xfe8] ss:$48 sps:$4 sm:$0xff]  }
 0x2b1   :  { %4962 = vmatpush1.bf16.msra.mxu0 %v14230_v61  ;;  %5126 = vmatpush1.bf16.msra.mxu1 %v14233_v62  ;;  %v14322_v61 = vld [vmem:[#allocation5 + $0x1044] ss:$48 sps:$4 sm:$0xff]   ;;  %v14325_v62 = vld [vmem:[#allocation5 + $0x104c] ss:$48 sps:$4 sm:$0xff]  }
 0x2b2   :  { %4963 = vmatprep.subr.bf16.mxu0 %v14238_v63  ;;  %5127 = vmatprep.subr.bf16.mxu1 %v14241_v0  ;;  %v14320_v63 = vld [vmem:[#allocation5 + $0x1040] ss:$48 sps:$4 sm:$0xff]   ;;  %v14323_v0 = vld [vmem:[#allocation5 + $0x1048] ss:$48 sps:$4 sm:$0xff]  }
 0x2b5   :  { %4964 = vmatpush1.bf16.msra.mxu0 %v14236_v1  ;;  %5128 = vmatpush1.bf16.msra.mxu1 %v14239_v2  ;;  %v14328_v1 = vld [vmem:[#allocation5 + $0x10a4] ss:$48 sps:$4 sm:$0xff]   ;;  %v14331_v2 = vld [vmem:[#allocation5 + $0x10ac] ss:$48 sps:$4 sm:$0xff]  }
 0x2b6   :  { %4965 = vmatprep.subr.bf16.mxu0 %v14244_v3  ;;  %5129 = vmatprep.subr.bf16.mxu1 %v14247_v4  ;;  %v14326_v3 = vld [vmem:[#allocation5 + $0x10a0] ss:$48 sps:$4 sm:$0xff]   ;;  %v14329_v4 = vld [vmem:[#allocation5 + $0x10a8] ss:$48 sps:$4 sm:$0xff]  }
 0x2b9   :  { %4966 = vmatpush1.bf16.msra.mxu0 %v14242_v6  ;;  %5130 = vmatpush1.bf16.msra.mxu1 %v14245_v7  ;;  %v14334_v6 = vld [vmem:[#allocation5 + $0x1104] ss:$48 sps:$4 sm:$0xff]   ;;  %v14337_v7 = vld [vmem:[#allocation5 + $0x110c] ss:$48 sps:$4 sm:$0xff]  }
 0x2ba   :  { %4967 = vmatprep.subr.bf16.mxu0 %v14250_v8  ;;  %5131 = vmatprep.subr.bf16.mxu1 %v14253_v9  ;;  %v14332_v8 = vld [vmem:[#allocation5 + $0x1100] ss:$48 sps:$4 sm:$0xff]   ;;  %v14335_v9 = vld [vmem:[#allocation5 + $0x1108] ss:$48 sps:$4 sm:$0xff]  }
 0x2bd   :  { %4968 = vmatpush1.bf16.msra.mxu0 %v14248_v11  ;;  %5132 = vmatpush1.bf16.msra.mxu1 %v14251_v12  ;;  %v14340_v11 = vld [vmem:[#allocation5 + $0x1164] ss:$48 sps:$4 sm:$0xff]   ;;  %v14343_v12 = vld [vmem:[#allocation5 + $0x116c] ss:$48 sps:$4 sm:$0xff]  }
 0x2be   :  { %4978 = vmatprep.subr.bf16.mxu0 %v14256_v14  ;;  %5142 = vmatprep.subr.bf16.mxu1 %v14259_v48  ;;  %v14338_v14 = vld [vmem:[#allocation5 + $0x1160] ss:$48 sps:$4 sm:$0xff]   ;;  %v14341_v48 = vld [vmem:[#allocation5 + $0x1168] ss:$48 sps:$4 sm:$0xff]  }
 0x2c0   :  { %4970 = vmatmul.mubr.bf16.vlgmr.msra.gmra.mrb[8].mxu0 %v14808_v10  ;;  %5134 = vmatmul.mubr.bf16.vlgmr.msra.gmra.mrb[8].mxu1 %v14808_v10  ;;  %v14277_v10 = vld [vmem:[#allocation5 + $0xd4c] ss:$48 sps:$4 sm:$0xff]  }
 0x2c1   :  { %4979 = vmatpush1.bf16.msra.mxu0 %v14254_v16  ;;  %5143 = vmatpush1.bf16.msra.mxu1 %v14257_v17  ;;  %v14346_v16 = vld [vmem:[#allocation5 + $0x11c4] ss:$48 sps:$4 sm:$0xff]   ;;  %v14349_v17 = vld [vmem:[#allocation5 + $0x11cc] ss:$48 sps:$4 sm:$0xff]  }
 0x2c2   :  { %4980 = vmatprep.subr.bf16.mxu0 %v14262_v18  ;;  %5144 = vmatprep.subr.bf16.mxu1 %v14265_v5  ;;  %v14344_v18 = vld [vmem:[#allocation5 + $0x11c0] ss:$48 sps:$4 sm:$0xff]   ;;  %v14347_v5 = vld [vmem:[#allocation5 + $0x11c8] ss:$48 sps:$4 sm:$0xff]  }
 0x2c3   :  { %5010 = vmatprep.mubr.bf16.mxu0 %v14814_v15  ;;  %5174 = vmatprep.mubr.bf16.mxu1 %v14814_v15  ;;  %v14281_v15 = vld [vmem:[#allocation5 + $0xda8] ss:$48 sps:$4 sm:$0xff]  }
 0x2c5   :  { %4981 = vmatpush1.bf16.msra.mxu0 %v14260_v20  ;;  %5145 = vmatpush1.bf16.msra.mxu1 %v14263_v21  ;;  %v14352_v20 = vld [vmem:[#allocation5 + $0x1224] ss:$48 sps:$4 sm:$0xff]   ;;  %v14355_v21 = vld [vmem:[#allocation5 + $0x122c] ss:$48 sps:$4 sm:$0xff]  }
 0x2c6   :  { %4982 = vmatprep.subr.bf16.mxu0 %v14268_v22  ;;  %5146 = vmatprep.subr.bf16.mxu1 %v14271_v23  ;;  %v14350_v22 = vld [vmem:[#allocation5 + $0x1220] ss:$48 sps:$4 sm:$0xff]   ;;  %v14353_v23 = vld [vmem:[#allocation5 + $0x1228] ss:$48 sps:$4 sm:$0xff]  }
 0x2c9   :  { %4983 = vmatpush1.bf16.msra.mxu0 %v14266_v24  ;;  %5147 = vmatpush1.bf16.msra.mxu1 %v14269_v30  ;;  %v14358_v24 = vld [vmem:[#allocation5 + $0x1284] ss:$48 sps:$4 sm:$0xff]   ;;  %v14361_v30 = vld [vmem:[#allocation5 + $0x128c] ss:$48 sps:$4 sm:$0xff]  }
 0x2ca   :  { %4984 = vmatprep.subr.bf16.mxu0 %v14274_v25  ;;  %5148 = vmatprep.subr.bf16.mxu1 %v14277_v10  ;;  %v14356_v25 = vld [vmem:[#allocation5 + $0x1280] ss:$48 sps:$4 sm:$0xff]   ;;  %v14359_v10 = vld [vmem:[#allocation5 + $0x1288] ss:$48 sps:$4 sm:$0xff]  }
 0x2cd   :  { %4985 = vmatpush1.bf16.msra.mxu0 %v14272_v13  ;;  %5149 = vmatpush1.bf16.msra.mxu1 %v14275_v27  ;;  %v14364_v13 = vld [vmem:[#allocation5 + $0x12e4] ss:$48 sps:$4 sm:$0xff]   ;;  %v14367_v27 = vld [vmem:[#allocation5 + $0x12ec] ss:$48 sps:$4 sm:$0xff]  }
 0x2ce   :  { %4986 = vmatprep.subr.bf16.mxu0 %v14280_v28  ;;  %5150 = vmatprep.subr.bf16.mxu1 %v14283_v29  ;;  %v14362_v28 = vld [vmem:[#allocation5 + $0x12e0] ss:$48 sps:$4 sm:$0xff]   ;;  %v14365_v29 = vld [vmem:[#allocation5 + $0x12e8] ss:$48 sps:$4 sm:$0xff]  }
 0x2d1   :  { %4987 = vmatpush1.bf16.msra.mxu0 %v14278_v31  ;;  %5151 = vmatpush1.bf16.msra.mxu1 %v14281_v15  ;;  %v14370_v31 = vld [vmem:[#allocation5 + $0x1344] ss:$48 sps:$4 sm:$0xff]   ;;  %v795_v15 = vlaneseq }
 0x2d2   :  { %4988 = vmatprep.subr.bf16.mxu0 %v14286_v32  ;;  %5152 = vmatprep.subr.bf16.mxu1 %v14289_v33  ;;  %v14368_v32 = vld [vmem:[#allocation5 + $0x1340] ss:$48 sps:$4 sm:$0xff]   ;;  %v14371_v33 = vld [vmem:[#allocation5 + $0x1348] ss:$48 sps:$4 sm:$0xff]  }
 0x2d5   :  { %4989 = vmatpush1.bf16.msra.mxu0 %v14284_v34  ;;  %5153 = vmatpush1.bf16.msra.mxu1 %v14287_v35  ;;  %v14376_v34 = vld [vmem:[#allocation5 + $0x13a4] ss:$48 sps:$4 sm:$0xff]   ;;  %v14379_v35 = vld [vmem:[#allocation5 + $0x13ac] ss:$48 sps:$4 sm:$0xff]  }
 0x2d6   :  { %4990 = vmatprep.subr.bf16.mxu0 %v14292_v36  ;;  %5154 = vmatprep.subr.bf16.mxu1 %v14295_v37  ;;  %v14864_v36 = vshrl.u32 %v795_v15, 7  ;;  %v14377_v37 = vld [vmem:[#allocation5 + $0x13a8] ss:$48 sps:$4 sm:$0xff]  }
 0x2d9   :  { %4991 = vmatpush1.bf16.msra.mxu0 %v14290_v38  ;;  %5155 = vmatpush1.bf16.msra.mxu1 %v14293_v39  ;;  %v14382_v38 = vld [vmem:[#allocation5 + $0x1404] ss:$48 sps:$4 sm:$0xff]   ;;  %v14385_v39 = vld [vmem:[#allocation5 + $0x140c] ss:$48 sps:$4 sm:$0xff]  }
 0x2da   :  { %4992 = vmatprep.subr.bf16.mxu0 %v14298_v40  ;;  %5156 = vmatprep.subr.bf16.mxu1 %v14301_v45  ;;  %v14867_v40 = vsub.s32 1, %v14864_v36  ;;  %v14869_v45 = vld [vmem:[#allocation7] sm:$0xff] }
 0x2dd   :  { %4993 = vmatpush1.bf16.msra.mxu0 %v14296_v46  ;;  %5157 = vmatpush1.bf16.msra.mxu1 %v14299_v47  ;;  %v14380_v46 = vld [vmem:[#allocation5 + $0x1400] ss:$48 sps:$4 sm:$0xff]   ;;  %v14383_v47 = vld [vmem:[#allocation5 + $0x1408] ss:$48 sps:$4 sm:$0xff]  }
 0x2de   :  { %4994 = vmatprep.subr.bf16.mxu0 %v14304_v49  ;;  %5158 = vmatprep.subr.bf16.mxu1 %v14307_v50  ;;  %v14388_v49 = vld [vmem:[#allocation5 + $0x1464] ss:$48 sps:$4 sm:$0xff]   ;;  %v14391_v50 = vld [vmem:[#allocation5 + $0x146c] ss:$48 sps:$4 sm:$0xff]  }
 0x2e1   :  { %4995 = vmatpush1.bf16.msra.mxu0 %v14302_v51  ;;  %5159 = vmatpush1.bf16.msra.mxu1 %v14305_v52  ;;  %v802_v51 = vrot.slane %v14869_v45, %v14867_v40 }
 0x2e2   :  { %4996 = vmatprep.subr.bf16.mxu0 %v14310_v53  ;;  %5160 = vmatprep.subr.bf16.mxu1 %v14313_v54 }
 0x2e5   :  { %4997 = vmatpush1.bf16.msra.mxu0 %v14308_v55  ;;  %5161 = vmatpush1.bf16.msra.mxu1 %v14311_v56  ;;  %v14386_v56 = vld [vmem:[#allocation5 + $0x1460] ss:$48 sps:$4 sm:$0xff]  }
 0x2e6   :  { %4998 = vmatprep.subr.bf16.mxu0 %v14316_v57  ;;  %5162 = vmatprep.subr.bf16.mxu1 %v14319_v58 }
 0x2e9   :  { %4999 = vmatpush1.bf16.msra.mxu0 %v14314_v59  ;;  %5163 = vmatpush1.bf16.msra.mxu1 %v14317_v60  ;;  %v14389_v59 = vld [vmem:[#allocation5 + $0x1468] ss:$48 sps:$4 sm:$0xff]   ;;  %v14394_v60 = vld [vmem:[#allocation5 + $0x14c4] ss:$48 sps:$4 sm:$0xff]  }
 0x2ea   :  { %5000 = vmatprep.subr.bf16.mxu0 %v14322_v61  ;;  %5164 = vmatprep.subr.bf16.mxu1 %v14325_v62 }
 0x2ed   :  { %5001 = vmatpush1.bf16.msra.mxu0 %v14320_v63  ;;  %5165 = vmatpush1.bf16.msra.mxu1 %v14323_v0  ;;  %v14397_v63 = vld [vmem:[#allocation5 + $0x14cc] ss:$48 sps:$4 sm:$0xff]  }
 0x2ee   :  { %5002 = vmatprep.subr.bf16.mxu0 %v14328_v1  ;;  %5166 = vmatprep.subr.bf16.mxu1 %v14331_v2  ;;  %v5248_v0 = vld [vmem:[#allocation8] sm:$0xff]  ;;  %v13197_v1 = vadd.f32 %v14846_v43, %v802_v51 }
 0x2ef   :  { %v5252_v2 = vld [vmem:[#allocation8 + $0x20] sm:$0xff] }
 0x2f0   :  { %v5292_v51 = vld [vmem:[#allocation8 + $0x160] sm:$0xff] }
 0x2f1   :  { %5003 = vmatpush1.bf16.msra.mxu0 %v14326_v3  ;;  %5167 = vmatpush1.bf16.msra.mxu1 %v14329_v4  ;;  %v5249_v3 = vld [vmem:[#allocation8 + $0x8] sm:$0xff] }
 0x2f2   :  { %5004 = vmatprep.subr.bf16.mxu0 %v14334_v6  ;;  %5168 = vmatprep.subr.bf16.mxu1 %v14337_v7  ;;  %v5253_v4 = vld [vmem:[#allocation8 + $0x28] sm:$0xff]  ;;  %v14392_v6 = vld [vmem:[#allocation5 + $0x14c0] ss:$48 sps:$4 sm:$0xff]  }
 0x2f3   :  { %v14395_v7 = vld [vmem:[#allocation5 + $0x14c8] ss:$48 sps:$4 sm:$0xff]   ;;  %v12277_v43 = vcombine.low %v5249_v3, %v5253_v4 }
 0x2f5   :  { %5005 = vmatpush1.bf16.msra.mxu0 %v14332_v8  ;;  %5169 = vmatpush1.bf16.msra.mxu1 %v14335_v9  ;;  %v12276_v8 = vcombine.high %v5248_v0, %v5252_v2  ;;  %v12278_v9 = vcombine.high %v5249_v3, %v5253_v4 }
 0x2f6   :  { %5006 = vmatprep.subr.bf16.mxu0 %v14340_v11  ;;  %5170 = vmatprep.subr.bf16.mxu1 %v14343_v12  ;;  %v5225_v11 = vmax.f32 %v13197_v1, 0.0  ;;  %v5256_v12 = vld [vmem:[#allocation8 + $0x40] sm:$0xff]  ;;  %v5301_v1 = vld [vmem:[#allocation8 + $0x1a8] sm:$0xff] }
 0x2f9   :  { %5007 = vmatpush1.bf16.msra.mxu0 %v14338_v14  ;;  %5171 = vmatpush1.bf16.msra.mxu1 %v14341_v48  ;;  %v5260_v14 = vld [vmem:[#allocation8 + $0x60] sm:$0xff]  ;;  %v5257_v48 = vld [vmem:[#allocation8 + $0x48] sm:$0xff] }
 0x2fa   :  { %5008 = vmatprep.subr.bf16.mxu0 %v14346_v16  ;;  %5172 = vmatprep.subr.bf16.mxu1 %v14349_v17  ;;  %v5261_v16 = vld [vmem:[#allocation8 + $0x68] sm:$0xff]  ;;  %v12275_v17 = vcombine.low %v5248_v0, %v5252_v2 }
 0x2fb   :  { %v5297_v0 = vld [vmem:[#allocation8 + $0x188] sm:$0xff] }
 0x2fd   :  { %5009 = vmatpush1.bf16.msra.mxu0 %v14344_v18  ;;  %5173 = vmatpush1.bf16.msra.mxu1 %v14347_v5  ;;  %v14882_v18 = vpack.c.bf16 %v5225_v11, %v5225_v11  ;;  %v12284_v5 = vcombine.high %v5256_v12, %v5260_v14  ;;  %v5309_v11 = vld [vmem:[#allocation8 + $0x1e8] sm:$0xff] }
 0x2fe   :  { %5019 = vmatprep.subr.bf16.mxu0 %v14352_v20  ;;  %5183 = vmatprep.subr.bf16.mxu1 %v14355_v21  ;;  %v12286_v20 = vcombine.high %v5257_v48, %v5261_v16  ;;  %v5264_v21 = vld [vmem:[#allocation8 + $0x80] sm:$0xff] }
 0x300   :  { %5011 = vmatmul.mubr.bf16.vlgmr.msra.gmra.mrb[8].mxu0 %v14822_v19  ;;  %5175 = vmatmul.mubr.bf16.vlgmr.msra.gmra.mrb[8].mxu1 %v14822_v19  ;;  %v14373_v19 = vld [vmem:[#allocation5 + $0x134c] ss:$48 sps:$4 sm:$0xff]  }
 0x301   :  { %5020 = vmatpush1.bf16.msra.mxu0 %v14350_v22  ;;  %5184 = vmatpush1.bf16.msra.mxu1 %v14353_v23  ;;  %v5268_v22 = vld [vmem:[#allocation8 + $0xa0] sm:$0xff]  ;;  %v14463_v23 = vld [vmem:[#allocation2 + $0x18] ss:$0 sps:$4 sm:$0xff]  }
 0x302   :  { %5021 = vmatprep.subr.bf16.mxu0 %v14358_v24  ;;  %5185 = vmatprep.subr.bf16.mxu1 %v14361_v30  ;;  %v5265_v24 = vld [vmem:[#allocation8 + $0x88] sm:$0xff]  ;;  %v12291_v15 = vcombine.low %v5264_v21, %v5268_v22 }
 0x303   :  { %5051 = vmatprep.mubr.bf16.mxu0 %v14664_v26  ;;  %5215 = vmatprep.mubr.bf16.mxu1 %v14664_v26  ;;  %v14374_v26 = vld [vmem:[#allocation5 + $0x13a0] ss:$48 sps:$4 sm:$0xff]   ;;  %v5269_v30 = vld [vmem:[#allocation8 + $0xa8] sm:$0xff] }
 0x305   :  { %5022 = vmatpush1.bf16.msra.mxu0 %v14356_v25  ;;  %5186 = vmatpush1.bf16.msra.mxu1 %v14359_v10  ;;  %v12283_v25 = vcombine.low %v5256_v12, %v5260_v14  ;;  %v12285_v10 = vcombine.low %v5257_v48, %v5261_v16  ;;  %v12325_v14 = vcombine.low %v5297_v0, %v5301_v1 }
 0x306   :  { %5023 = vmatprep.subr.bf16.mxu0 %v14364_v13  ;;  %5187 = vmatprep.subr.bf16.mxu1 %v14367_v27  ;;  %v12292_v13 = vcombine.high %v5264_v21, %v5268_v22  ;;  %v12294_v27 = vcombine.high %v5265_v24, %v5269_v30 }
 0x309   :  { %5024 = vmatpush1.bf16.msra.mxu0 %v14362_v28  ;;  %5188 = vmatpush1.bf16.msra.mxu1 %v14365_v29  ;;  %v5272_v28 = vld [vmem:[#allocation8 + $0xc0] sm:$0xff] }
 0x30a   :  { %5025 = vmatprep.subr.bf16.mxu0 %v14370_v31  ;;  %5189 = vmatprep.subr.bf16.mxu1 %v14373_v19  ;;  %v5276_v29 = vld [vmem:[#allocation8 + $0xe0] sm:$0xff]  ;;  %v5273_v31 = vld [vmem:[#allocation8 + $0xc8] sm:$0xff] }
 0x30b   :  { %v5277_v19 = vld [vmem:[#allocation8 + $0xe8] sm:$0xff] }
 0x30d   :  { %5026 = vmatpush1.bf16.msra.mxu0 %v14368_v32  ;;  %5190 = vmatpush1.bf16.msra.mxu1 %v14371_v33  ;;  %v12293_v32 = vcombine.low %v5265_v24, %v5269_v30  ;;  %v12300_v33 = vcombine.high %v5272_v28, %v5276_v29  ;;  %v5320_v30 = vld [vmem:[#allocation8 + $0x240] sm:$0xff] }
 0x30e   :  { %5027 = vmatprep.subr.bf16.mxu0 %v14376_v34  ;;  %5191 = vmatprep.subr.bf16.mxu1 %v14379_v35  ;;  %v12302_v34 = vcombine.high %v5273_v31, %v5277_v19  ;;  %v5280_v35 = vld [vmem:[#allocation8 + $0x100] sm:$0xff] }
 0x311   :  { %5028 = vmatpush1.bf16.msra.mxu0 %v14374_v26  ;;  %5192 = vmatpush1.bf16.msra.mxu1 %v14377_v37  ;;  %v5284_v26 = vld [vmem:[#allocation8 + $0x120] sm:$0xff]  ;;  %v5281_v37 = vld [vmem:[#allocation8 + $0x108] sm:$0xff] }
 0x312   :  { %5029 = vmatprep.subr.bf16.mxu0 %v14382_v38  ;;  %5193 = vmatprep.subr.bf16.mxu1 %v14385_v39  ;;  %v5285_v38 = vld [vmem:[#allocation8 + $0x128] sm:$0xff]  ;;  %v12299_v39 = vcombine.low %v5272_v28, %v5276_v29 }
 0x313   :  { %v14873_v52 = vpop.f32.mrb[4].mxu0  ;;  %v14875_v53 = vpop.f32.mrb[4].mxu1 }
 0x314   :  { %v14877_v54 = vpop.f32.mrb[5].mxu0  ;;  %v14879_v55 = vpop.f32.mrb[5].mxu1 }
 0x315   :  { %v4729_v57 = vpop.f32.mrb[6].mxu0  ;;  %v4893_v58 = vpop.f32.mrb[6].mxu1  ;;  %5030 = vmatpush1.bf16.msra.mxu0 %v14380_v46  ;;  %5194 = vmatpush1.bf16.msra.mxu1 %v14383_v47  ;;  %v12301_v46 = vcombine.low %v5273_v31, %v5277_v19  ;;  %v12308_v47 = vcombine.high %v5280_v35, %v5284_v26  ;;  %v5328_v19 = vld [vmem:[#allocation8 + $0x280] sm:$0xff] }
 0x316   :  { %v4730_v61 = vpop.f32.mrb[7].mxu0  ;;  %v4894_v62 = vpop.f32.mrb[7].mxu1  ;;  %5031 = vmatprep.subr.bf16.mxu0 %v14388_v49  ;;  %5195 = vmatprep.subr.bf16.mxu1 %v14391_v50  ;;  %v12310_v49 = vcombine.high %v5281_v37, %v5285_v38  ;;  %v5288_v50 = vld [vmem:[#allocation8 + $0x140] sm:$0xff]  ;;  %v5293_v57 = vld [vmem:[#allocation8 + $0x168] sm:$0xff]  ;;  %v12307_v58 = vcombine.low %v5280_v35, %v5284_v26 }
 0x317   :  { %v5296_v62 = vld [vmem:[#allocation8 + $0x180] sm:$0xff]  ;;  %v12315_v2 = vcombine.low %v5288_v50, %v5292_v51 }
 0x319   :  { %5032 = vmatpush1.bf16.msra.mxu0 %v14386_v56  ;;  %5196 = vmatpush1.bf16.msra.mxu1 %v14389_v59  ;;  %v5289_v56 = vld [vmem:[#allocation8 + $0x148] sm:$0xff]  ;;  %v12309_v59 = vcombine.low %v5281_v37, %v5285_v38  ;;  %v5336_v38 = vld [vmem:[#allocation8 + $0x2c0] sm:$0xff] }
 0x31a   :  { %5033 = vmatprep.subr.bf16.mxu0 %v14394_v60  ;;  %5197 = vmatprep.subr.bf16.mxu1 %v14397_v63  ;;  %v12316_v60 = vcombine.high %v5288_v50, %v5292_v51  ;;  %v12318_v61 = vcombine.high %v5289_v56, %v5293_v57  ;;  %v5300_v63 = vld [vmem:[#allocation8 + $0x1a0] sm:$0xff]  ;;  %v12317_v3 = vcombine.low %v5289_v56, %v5293_v57 }
 0x31b   :  { %v12324_v4 = vcombine.high %v5296_v62, %v5300_v63  ;;  %v12323_v12 = vcombine.low %v5296_v62, %v5300_v63  ;;  %v5344_v57 = vld [vmem:[#allocation8 + $0x300] sm:$0xff] }
 0x31d   :  { %5034 = vmatpush1.bf16.msra.mxu0 %v14392_v6  ;;  %5198 = vmatpush1.bf16.msra.mxu1 %v14395_v7  ;;  %v12326_v6 = vcombine.high %v5297_v0, %v5301_v1  ;;  %v5304_v7 = vld [vmem:[#allocation8 + $0x1c0] sm:$0xff] }
 0x31e   :  { %9898 = vmatprep.subr.bf16.mxu0 %v12276_v8  ;;  %10144 = vmatprep.subr.bf16.mxu1 %v12278_v9  ;;  %v5308_v8 = vld [vmem:[#allocation8 + $0x1e0] sm:$0xff]  ;;  %v5305_v9 = vld [vmem:[#allocation8 + $0x1c8] sm:$0xff] }
 0x31f   :  { %v12332_v48 = vcombine.high %v5304_v7, %v5308_v8  ;;  %v12334_v16 = vcombine.high %v5305_v9, %v5309_v11  ;;  %v12331_v21 = vcombine.low %v5304_v7, %v5308_v8  ;;  %v12333_v22 = vcombine.low %v5305_v9, %v5309_v11  ;;  %v5352_v1 = vld [vmem:[#allocation8 + $0x340] sm:$0xff] }
 0x320   :  { %5052 = vmatmul.mubr.bf16.vlgmr.msra.gmra.mrb[8].mxu0 %v14463_v23  ;;  %5216 = vmatmul.mubr.bf16.vlgmr.msra.gmra.mrb[8].mxu1 %v14463_v23  ;;  %v14887_v7 = vsub.s32 0, %v14864_v36 }
 0x321   :  { %9899 = vmatpush1.bf16.msra.mxu0 %v12275_v17  ;;  %9930 = vmatprep.mubr.bf16.mxu0 %v14882_v18  ;;  %v5312_v17 = vld [vmem:[#allocation8 + $0x200] sm:$0xff] }
 0x322   :  { %10145 = vmatpush1.bf16.msra.mxu1 %v12277_v43  ;;  %10176 = vmatprep.mubr.bf16.mxu1 %v14882_v18  ;;  %v5316_v43 = vld [vmem:[#allocation8 + $0x220] sm:$0xff] }
 0x323   :  { %9900 = vmatprep.subr.bf16.mxu0 %v12284_v5  ;;  %10146 = vmatprep.subr.bf16.mxu1 %v12286_v20  ;;  %v5313_v5 = vld [vmem:[#allocation8 + $0x208] sm:$0xff]  ;;  %v12340_v23 = vcombine.high %v5312_v17, %v5316_v43 }
 0x324   :  { %v5317_v20 = vld [vmem:[#allocation8 + $0x228] sm:$0xff] }
 0x325   :  { %9901 = vmatpush1.bf16.msra.mxu0 %v12283_v25  ;;  %v12342_v24 = vcombine.high %v5313_v5, %v5317_v20  ;;  %v5324_v25 = vld [vmem:[#allocation8 + $0x260] sm:$0xff]  ;;  %v12341_v28 = vcombine.low %v5313_v5, %v5317_v20  ;;  %v798_v5 = vrot.slane %v14869_v45, %v14887_v7 }
 0x326   :  { %10147 = vmatpush1.bf16.msra.mxu1 %v12285_v10  ;;  %9902 = vmatprep.subr.bf16.mxu0 %v12292_v13  ;;  %v5321_v10 = vld [vmem:[#allocation8 + $0x248] sm:$0xff]  ;;  %v12348_v29 = vcombine.high %v5320_v30, %v5324_v25 }
 0x327   :  { %10148 = vmatprep.subr.bf16.mxu1 %v12294_v27  ;;  %v5325_v13 = vld [vmem:[#allocation8 + $0x268] sm:$0xff]  ;;  %v12339_v27 = vcombine.low %v5312_v17, %v5316_v43 }
 0x328   :  { %v12350_v31 = vcombine.high %v5321_v10, %v5325_v13  ;;  %v12349_v35 = vcombine.low %v5321_v10, %v5325_v13  ;;  %v5365_v17 = vld [vmem:[#allocation8 + $0x3a8] sm:$0xff] }
 0x329   :  { %9903 = vmatpush1.bf16.msra.mxu0 %v12291_v15  ;;  %v5332_v15 = vld [vmem:[#allocation8 + $0x2a0] sm:$0xff]  ;;  %v5373_v10 = vld [vmem:[#allocation8 + $0x3e8] sm:$0xff] }
 0x32a   :  { %10149 = vmatpush1.bf16.msra.mxu1 %v12293_v32  ;;  %9904 = vmatprep.subr.bf16.mxu0 %v12300_v33  ;;  %v5329_v32 = vld [vmem:[#allocation8 + $0x288] sm:$0xff]  ;;  %v12356_v26 = vcombine.high %v5328_v19, %v5332_v15 }
 0x32b   :  { %10150 = vmatprep.subr.bf16.mxu1 %v12302_v34  ;;  %v5333_v33 = vld [vmem:[#allocation8 + $0x2a8] sm:$0xff]  ;;  %v12347_v34 = vcombine.low %v5320_v30, %v5324_v25 }
 0x32c   :  { %v12358_v37 = vcombine.high %v5329_v32, %v5333_v33  ;;  %v12357_v50 = vcombine.low %v5329_v32, %v5333_v33  ;;  %v5369_v25 = vld [vmem:[#allocation8 + $0x3c8] sm:$0xff] }
 0x32d   :  { %9905 = vmatpush1.bf16.msra.mxu0 %v12299_v39  ;;  %v5340_v39 = vld [vmem:[#allocation8 + $0x2e0] sm:$0xff]  ;;  %v5377_v33 = vld [vmem:[#allocation8 + $0x408] sm:$0xff] }
 0x32e   :  { %10151 = vmatpush1.bf16.msra.mxu1 %v12301_v46  ;;  %9906 = vmatprep.subr.bf16.mxu0 %v12308_v47  ;;  %v5337_v46 = vld [vmem:[#allocation8 + $0x2c8] sm:$0xff]  ;;  %v12364_v51 = vcombine.high %v5336_v38, %v5340_v39 }
 0x32f   :  { %10152 = vmatprep.subr.bf16.mxu1 %v12310_v49  ;;  %v5341_v47 = vld [vmem:[#allocation8 + $0x2e8] sm:$0xff]  ;;  %v12355_v49 = vcombine.low %v5328_v19, %v5332_v15  ;;  %v5376_v19 = vld [vmem:[#allocation8 + $0x400] sm:$0xff] }
 0x330   :  { %v12366_v56 = vcombine.high %v5337_v46, %v5341_v47  ;;  %v12365_v62 = vcombine.low %v5337_v46, %v5341_v47  ;;  %v5380_v15 = vld [vmem:[#allocation8 + $0x420] sm:$0xff] }
 0x331   :  { %9907 = vmatpush1.bf16.msra.mxu0 %v12307_v58  ;;  %v5348_v58 = vld [vmem:[#allocation8 + $0x320] sm:$0xff] }
 0x332   :  { %10153 = vmatpush1.bf16.msra.mxu1 %v12309_v59  ;;  %9908 = vmatprep.subr.bf16.mxu0 %v12316_v60  ;;  %v5345_v59 = vld [vmem:[#allocation8 + $0x308] sm:$0xff]  ;;  %v12372_v63 = vcombine.high %v5344_v57, %v5348_v58  ;;  %v5384_v46 = vld [vmem:[#allocation8 + $0x440] sm:$0xff] }
 0x333   :  { %10154 = vmatprep.subr.bf16.mxu1 %v12318_v61  ;;  %v5349_v60 = vld [vmem:[#allocation8 + $0x328] sm:$0xff]  ;;  %v12363_v61 = vcombine.low %v5336_v38, %v5340_v39  ;;  %v12404_v38 = vcombine.high %v5376_v19, %v5380_v15  ;;  %v5388_v47 = vld [vmem:[#allocation8 + $0x460] sm:$0xff] }
 0x334   :  { %v12374_v0 = vcombine.high %v5345_v59, %v5349_v60  ;;  %v12373_v8 = vcombine.low %v5345_v59, %v5349_v60  ;;  %v5396_v59 = vld [vmem:[#allocation8 + $0x4a0] sm:$0xff] }
 0x335   :  { %9909 = vmatpush1.bf16.msra.mxu0 %v12315_v2  ;;  %v5356_v2 = vld [vmem:[#allocation8 + $0x360] sm:$0xff] }
 0x336   :  { %10155 = vmatpush1.bf16.msra.mxu1 %v12317_v3  ;;  %9910 = vmatprep.subr.bf16.mxu0 %v12324_v4  ;;  %v5353_v3 = vld [vmem:[#allocation8 + $0x348] sm:$0xff]  ;;  %v12380_v9 = vcombine.high %v5352_v1, %v5356_v2  ;;  %v12379_v43 = vcombine.low %v5352_v1, %v5356_v2 }
 0x337   :  { %10156 = vmatprep.subr.bf16.mxu1 %v12326_v6  ;;  %v5357_v4 = vld [vmem:[#allocation8 + $0x368] sm:$0xff]  ;;  %v12371_v6 = vcombine.low %v5344_v57, %v5348_v58  ;;  %v12412_v57 = vcombine.high %v5384_v46, %v5388_v47  ;;  %v5392_v58 = vld [vmem:[#allocation8 + $0x480] sm:$0xff] }
 0x338   :  { %v12382_v11 = vcombine.high %v5353_v3, %v5357_v4  ;;  %v12381_v20 = vcombine.low %v5353_v3, %v5357_v4  ;;  %v12420_v2 = vcombine.high %v5392_v58, %v5396_v59  ;;  %v5400_v4 = vld [vmem:[#allocation8 + $0x4c0] sm:$0xff] }
 0x339   :  { %9911 = vmatpush1.bf16.msra.mxu0 %v12323_v12  ;;  %v5360_v12 = vld [vmem:[#allocation8 + $0x380] sm:$0xff] }
 0x33a   :  { %10157 = vmatpush1.bf16.msra.mxu1 %v12325_v14  ;;  %9912 = vmatprep.subr.bf16.mxu0 %v12332_v48  ;;  %v5364_v14 = vld [vmem:[#allocation8 + $0x3a0] sm:$0xff]  ;;  %v14890_v48 = vsub.s32 3, %v14864_v36 }
 0x33b   :  { %10158 = vmatprep.subr.bf16.mxu1 %v12334_v16  ;;  %v5361_v16 = vld [vmem:[#allocation8 + $0x388] sm:$0xff]  ;;  %v12387_v13 = vcombine.low %v5360_v12, %v5364_v14 }
 0x33c   :  { %v810_v30 = vrot.slane %v14869_v45, %v14890_v48 }
 0x33d   :  { %9913 = vmatpush1.bf16.msra.mxu0 %v12331_v21  ;;  %v12388_v21 = vcombine.high %v5360_v12, %v5364_v14 }
 0x33e   :  { %10159 = vmatpush1.bf16.msra.mxu1 %v12333_v22  ;;  %9914 = vmatprep.subr.bf16.mxu0 %v12340_v23  ;;  %v12390_v22 = vcombine.high %v5361_v16, %v5365_v17  ;;  %v5368_v23 = vld [vmem:[#allocation8 + $0x3c0] sm:$0xff]  ;;  %v13199_v32 = vadd.f32 %v14848_v44, %v810_v30 }
 0x33f   :  { %10160 = vmatprep.subr.bf16.mxu1 %v12342_v24  ;;  %v5372_v24 = vld [vmem:[#allocation8 + $0x3e0] sm:$0xff] }
 0x340   :  { %v5227_v39 = vmax.f32 %v13199_v32, 0.0  ;;  %v5416_v30 = vld [vmem:[#allocation8 + $0x540] sm:$0xff]  ;;  %v5425_v32 = vld [vmem:[#allocation8 + $0x588] sm:$0xff] }
 0x341   :  { %9915 = vmatpush1.bf16.msra.mxu0 %v12339_v27  ;;  %v13196_v27 = vadd.f32 %v14842_v41, %v798_v5  ;;  %v5409_v5 = vld [vmem:[#allocation8 + $0x508] sm:$0xff] }
 0x342   :  { %10161 = vmatpush1.bf16.msra.mxu1 %v12341_v28  ;;  %9916 = vmatprep.subr.bf16.mxu0 %v12348_v29  ;;  %v12389_v28 = vcombine.low %v5361_v16, %v5365_v17  ;;  %v12396_v29 = vcombine.high %v5368_v23, %v5372_v24  ;;  %v14900_v60 = vpack.c.bf16 %v5227_v39, %v5227_v39  ;;  %v5408_v17 = vld [vmem:[#allocation8 + $0x500] sm:$0xff]  ;;  %v5433_v39 = vld [vmem:[#allocation8 + $0x5c8] sm:$0xff] }
 0x343   :  { %10162 = vmatprep.subr.bf16.mxu1 %v12350_v31  ;;  %v12398_v31 = vcombine.high %v5369_v25, %v5373_v10 }
 0x345   :  { %9917 = vmatpush1.bf16.msra.mxu0 %v12347_v34  ;;  %v5381_v34 = vld [vmem:[#allocation8 + $0x428] sm:$0xff] }
 0x346   :  { %10163 = vmatpush1.bf16.msra.mxu1 %v12349_v35  ;;  %9918 = vmatprep.subr.bf16.mxu0 %v12356_v26  ;;  %v12395_v35 = vcombine.low %v5368_v23, %v5372_v24  ;;  %v5224_v26 = vmax.f32 %v13196_v27, 0.0  ;;  %v12406_v41 = vcombine.high %v5377_v33, %v5381_v34  ;;  %v12405_v44 = vcombine.low %v5377_v33, %v5381_v34  ;;  %v5429_v33 = vld [vmem:[#allocation8 + $0x5a8] sm:$0xff] }
 0x347   :  { %10164 = vmatprep.subr.bf16.mxu1 %v12358_v37  ;;  %v12397_v37 = vcombine.low %v5369_v25, %v5373_v10  ;;  %v5420_v25 = vld [vmem:[#allocation8 + $0x560] sm:$0xff]  ;;  %v5417_v10 = vld [vmem:[#allocation8 + $0x548] sm:$0xff] }
 0x348   :  { %v12443_v34 = vcombine.low %v5416_v30, %v5420_v25 }
 0x349   :  { %9919 = vmatpush1.bf16.msra.mxu0 %v12355_v49  ;;  %v12403_v49 = vcombine.low %v5376_v19, %v5380_v15  ;;  %v5424_v19 = vld [vmem:[#allocation8 + $0x580] sm:$0xff] }
 0x34a   :  { %10165 = vmatpush1.bf16.msra.mxu1 %v12357_v50  ;;  %9920 = vmatprep.subr.bf16.mxu0 %v12364_v51  ;;  %v5385_v50 = vld [vmem:[#allocation8 + $0x448] sm:$0xff]  ;;  %v5428_v15 = vld [vmem:[#allocation8 + $0x5a0] sm:$0xff] }
 0x34b   :  { %10166 = vmatprep.subr.bf16.mxu1 %v12366_v56  ;;  %v5389_v51 = vld [vmem:[#allocation8 + $0x468] sm:$0xff]  ;;  %v14898_v56 = vpack.c.bf16 %v5224_v26, %v5224_v26  ;;  %v12452_v26 = vcombine.high %v5424_v19, %v5428_v15 }
 0x34c   :  { %v12413_v1 = vcombine.low %v5385_v50, %v5389_v51 }
 0x34d   :  { %9921 = vmatpush1.bf16.msra.mxu0 %v12363_v61  ;;  %v12414_v61 = vcombine.high %v5385_v50, %v5389_v51 }
 0x34e   :  { %10167 = vmatpush1.bf16.msra.mxu1 %v12365_v62  ;;  %9922 = vmatprep.subr.bf16.mxu0 %v12372_v63  ;;  %v5393_v62 = vld [vmem:[#allocation8 + $0x488] sm:$0xff] }
 0x34f   :  { %10168 = vmatprep.subr.bf16.mxu1 %v12374_v0  ;;  %v5397_v63 = vld [vmem:[#allocation8 + $0x4a8] sm:$0xff]  ;;  %v12411_v0 = vcombine.low %v5384_v46, %v5388_v47  ;;  %v12451_v47 = vcombine.low %v5424_v19, %v5428_v15 }
 0x350   :  { %v12422_v3 = vcombine.high %v5393_v62, %v5397_v63  ;;  %v12421_v12 = vcombine.low %v5393_v62, %v5397_v63  ;;  %v5437_v46 = vld [vmem:[#allocation8 + $0x5e8] sm:$0xff] }
 0x351   :  { %9923 = vmatpush1.bf16.msra.mxu0 %v12371_v6  ;;  %v5404_v6 = vld [vmem:[#allocation8 + $0x4e0] sm:$0xff]  ;;  %v12462_v51 = vcombine.high %v5433_v39, %v5437_v46  ;;  %v12461_v62 = vcombine.low %v5433_v39, %v5437_v46  ;;  %v5477_v19 = vld [vmem:[#allocation8 + $0x728] sm:$0xff]  ;;  %v14907_v39 = vsub.s32 2, %v14864_v36 }
 0x352   :  { %10169 = vmatpush1.bf16.msra.mxu1 %v12373_v8  ;;  %9924 = vmatprep.subr.bf16.mxu0 %v12380_v9  ;;  %v5401_v8 = vld [vmem:[#allocation8 + $0x4c8] sm:$0xff]  ;;  %v12428_v14 = vcombine.high %v5400_v4, %v5404_v6 }
 0x353   :  { %10170 = vmatprep.subr.bf16.mxu1 %v12382_v11  ;;  %v5405_v9 = vld [vmem:[#allocation8 + $0x4e8] sm:$0xff]  ;;  %v12419_v11 = vcombine.low %v5392_v58, %v5396_v59 }
 0x354   :  { %v12430_v16 = vcombine.high %v5401_v8, %v5405_v9  ;;  %v5441_v58 = vld [vmem:[#allocation8 + $0x608] sm:$0xff] }
 0x355   :  { %9925 = vmatpush1.bf16.msra.mxu0 %v12379_v43  ;;  %v5412_v43 = vld [vmem:[#allocation8 + $0x520] sm:$0xff]  ;;  %v5445_v59 = vld [vmem:[#allocation8 + $0x628] sm:$0xff] }
 0x356   :  { %10171 = vmatpush1.bf16.msra.mxu1 %v12381_v20  ;;  %9926 = vmatprep.subr.bf16.mxu0 %v12388_v21  ;;  %v5413_v20 = vld [vmem:[#allocation8 + $0x528] sm:$0xff]  ;;  %v12427_v21 = vcombine.low %v5400_v4, %v5404_v6  ;;  %v12436_v23 = vcombine.high %v5408_v17, %v5412_v43  ;;  %v12435_v27 = vcombine.low %v5408_v17, %v5412_v43 }
 0x357   :  { %10172 = vmatprep.subr.bf16.mxu1 %v12390_v22  ;;  %v12429_v22 = vcombine.low %v5401_v8, %v5405_v9  ;;  %v12438_v24 = vcombine.high %v5409_v5, %v5413_v20  ;;  %v5453_v4 = vld [vmem:[#allocation8 + $0x668] sm:$0xff]  ;;  %v12469_v8 = vcombine.low %v5441_v58, %v5445_v59 }
 0x358   :  { %v5461_v17 = vld [vmem:[#allocation8 + $0x6a8] sm:$0xff] }
 0x359   :  { %9927 = vmatpush1.bf16.msra.mxu0 %v12387_v13  ;;  %v5421_v13 = vld [vmem:[#allocation8 + $0x568] sm:$0xff] }
 0x35a   :  { %10173 = vmatpush1.bf16.msra.mxu1 %v12389_v28  ;;  %9928 = vmatprep.subr.bf16.mxu0 %v12396_v29  ;;  %v12437_v28 = vcombine.low %v5409_v5, %v5413_v20  ;;  %v12444_v29 = vcombine.high %v5416_v30, %v5420_v25  ;;  %v5469_v30 = vld [vmem:[#allocation8 + $0x6e8] sm:$0xff] }
 0x35b   :  { %10174 = vmatprep.subr.bf16.mxu1 %v12398_v31  ;;  %v12446_v31 = vcombine.high %v5417_v10, %v5421_v13 }
 0x35d   :  { %9929 = vmatpush1.bf16.msra.mxu0 %v12395_v35  ;;  %v12445_v35 = vcombine.low %v5417_v10, %v5421_v13 }
 0x35e   :  { %10175 = vmatpush1.bf16.msra.mxu1 %v12397_v37  ;;  %9939 = vmatprep.subr.bf16.mxu0 %v12404_v38  ;;  %v12454_v37 = vcombine.high %v5425_v32, %v5429_v33  ;;  %v5432_v38 = vld [vmem:[#allocation8 + $0x5c0] sm:$0xff] }
 0x35f   :  { %10185 = vmatprep.subr.bf16.mxu1 %v12406_v41  ;;  %v5436_v41 = vld [vmem:[#allocation8 + $0x5e0] sm:$0xff] }
 0x360   :  { %9931 = vmatmul.mubr.bf16.vlgmr.msra.gmra.mrb[12].mxu0 %v14898_v56  ;;  %v12460_v50 = vcombine.high %v5432_v38, %v5436_v41 }
 0x361   :  { %10177 = vmatmul.mubr.bf16.vlgmr.msra.gmra.mrb[12].mxu1 %v14898_v56  ;;  %9940 = vmatpush1.bf16.msra.mxu0 %v12403_v49  ;;  %v12453_v49 = vcombine.low %v5425_v32, %v5429_v33 }
 0x362   :  { %9971 = vmatprep.mubr.bf16.mxu0 %v14900_v60  ;;  %10186 = vmatpush1.bf16.msra.mxu1 %v12405_v44  ;;  %v5440_v44 = vld [vmem:[#allocation8 + $0x600] sm:$0xff] }
 0x363   :  { %10217 = vmatprep.mubr.bf16.mxu1 %v14900_v60  ;;  %9941 = vmatprep.subr.bf16.mxu0 %v12412_v57  ;;  %v5444_v57 = vld [vmem:[#allocation8 + $0x620] sm:$0xff] }
 0x364   :  { %10187 = vmatprep.subr.bf16.mxu1 %v12414_v61  ;;  %v12459_v61 = vcombine.low %v5432_v38, %v5436_v41  ;;  %v12468_v63 = vcombine.high %v5440_v44, %v5444_v57  ;;  %v12467_v6 = vcombine.low %v5440_v44, %v5444_v57  ;;  %v5485_v38 = vld [vmem:[#allocation8 + $0x768] sm:$0xff]  ;;  %v817_v44 = vsub.s32 5, %v14864_v36 }
 0x365   :  { %9942 = vmatpush1.bf16.msra.mxu0 %v12411_v0  ;;  %v12470_v0 = vcombine.high %v5441_v58, %v5445_v59  ;;  %v5489_v57 = vld [vmem:[#allocation8 + $0x788] sm:$0xff] }
 0x366   :  { %10188 = vmatpush1.bf16.msra.mxu1 %v12413_v1  ;;  %9943 = vmatprep.subr.bf16.mxu0 %v12420_v2  ;;  %v5448_v1 = vld [vmem:[#allocation8 + $0x640] sm:$0xff]  ;;  %v5493_v58 = vld [vmem:[#allocation8 + $0x7a8] sm:$0xff] }
 0x367   :  { %10189 = vmatprep.subr.bf16.mxu1 %v12422_v3  ;;  %v5452_v2 = vld [vmem:[#allocation8 + $0x660] sm:$0xff]  ;;  %v5449_v3 = vld [vmem:[#allocation8 + $0x648] sm:$0xff] }
 0x368   :  { %v12476_v9 = vcombine.high %v5448_v1, %v5452_v2  ;;  %v12475_v43 = vcombine.low %v5448_v1, %v5452_v2  ;;  %v12477_v5 = vcombine.low %v5449_v3, %v5453_v4  ;;  %v5496_v1 = vld [vmem:[#allocation8 + $0x7c0] sm:$0xff] }
 0x369   :  { %9944 = vmatpush1.bf16.msra.mxu0 %v12419_v11  ;;  %v12478_v11 = vcombine.high %v5449_v3, %v5453_v4  ;;  %v5500_v2 = vld [vmem:[#allocation8 + $0x7e0] sm:$0xff]  ;;  %v818_v3 = vrot.slane %v14869_v45, %v817_v44  ;;  %v5497_v4 = vld [vmem:[#allocation8 + $0x7c8] sm:$0xff] }
 0x36a   :  { %10190 = vmatpush1.bf16.msra.mxu1 %v12421_v12  ;;  %9945 = vmatprep.subr.bf16.mxu0 %v12428_v14  ;;  %v5456_v12 = vld [vmem:[#allocation8 + $0x680] sm:$0xff] }
 0x36b   :  { %10191 = vmatprep.subr.bf16.mxu1 %v12430_v16  ;;  %v5460_v14 = vld [vmem:[#allocation8 + $0x6a0] sm:$0xff]  ;;  %v5457_v16 = vld [vmem:[#allocation8 + $0x688] sm:$0xff] }
 0x36c   :  { %v12484_v20 = vcombine.high %v5456_v12, %v5460_v14  ;;  %v12483_v25 = vcombine.low %v5456_v12, %v5460_v14  ;;  %v12485_v10 = vcombine.low %v5457_v16, %v5461_v17  ;;  %v12524_v12 = vcombine.high %v5496_v1, %v5500_v2 }
 0x36d   :  { %9946 = vmatpush1.bf16.msra.mxu0 %v12427_v21  ;;  %v12486_v21 = vcombine.high %v5457_v16, %v5461_v17  ;;  %v5504_v16 = vld [vmem:[#allocation8 + $0x800] sm:$0xff] }
 0x36e   :  { %10192 = vmatpush1.bf16.msra.mxu1 %v12429_v22  ;;  %9947 = vmatprep.subr.bf16.mxu0 %v12436_v23  ;;  %v5464_v22 = vld [vmem:[#allocation8 + $0x6c0] sm:$0xff] }
 0x36f   :  { %10193 = vmatprep.subr.bf16.mxu1 %v12438_v24  ;;  %v5468_v23 = vld [vmem:[#allocation8 + $0x6e0] sm:$0xff]  ;;  %v5465_v24 = vld [vmem:[#allocation8 + $0x6c8] sm:$0xff] }
 0x370   :  { %v12492_v13 = vcombine.high %v5464_v22, %v5468_v23  ;;  %v12491_v15 = vcombine.low %v5464_v22, %v5468_v23  ;;  %v12493_v32 = vcombine.low %v5465_v24, %v5469_v30  ;;  %v5508_v17 = vld [vmem:[#allocation8 + $0x820] sm:$0xff] }
 0x371   :  { %9948 = vmatpush1.bf16.msra.mxu0 %v12435_v27  ;;  %v12494_v27 = vcombine.high %v5465_v24, %v5469_v30  ;;  %v12532_v23 = vcombine.high %v5504_v16, %v5508_v17  ;;  %v5512_v30 = vld [vmem:[#allocation8 + $0x840] sm:$0xff] }
 0x372   :  { %10194 = vmatpush1.bf16.msra.mxu1 %v12437_v28  ;;  %9949 = vmatprep.subr.bf16.mxu0 %v12444_v29  ;;  %v5472_v28 = vld [vmem:[#allocation8 + $0x700] sm:$0xff] }
 0x373   :  { %10195 = vmatprep.subr.bf16.mxu1 %v12446_v31  ;;  %v5476_v29 = vld [vmem:[#allocation8 + $0x720] sm:$0xff]  ;;  %v5473_v31 = vld [vmem:[#allocation8 + $0x708] sm:$0xff] }
 0x374   :  { %v12500_v33 = vcombine.high %v5472_v28, %v5476_v29  ;;  %v12499_v41 = vcombine.low %v5472_v28, %v5476_v29  ;;  %v12501_v46 = vcombine.low %v5473_v31, %v5477_v19 }
 0x375   :  { %9950 = vmatpush1.bf16.msra.mxu0 %v12443_v34  ;;  %v12502_v34 = vcombine.high %v5473_v31, %v5477_v19  ;;  %v5520_v31 = vld [vmem:[#allocation8 + $0x880] sm:$0xff] }
 0x376   :  { %10196 = vmatpush1.bf16.msra.mxu1 %v12445_v35  ;;  %9951 = vmatprep.subr.bf16.mxu0 %v12452_v26  ;;  %v5480_v35 = vld [vmem:[#allocation8 + $0x740] sm:$0xff] }
 0x377   :  { %10197 = vmatprep.subr.bf16.mxu1 %v12454_v37  ;;  %v5484_v26 = vld [vmem:[#allocation8 + $0x760] sm:$0xff]  ;;  %v5481_v37 = vld [vmem:[#allocation8 + $0x748] sm:$0xff] }
 0x378   :  { %v12507_v59 = vcombine.low %v5480_v35, %v5484_v26  ;;  %v5524_v19 = vld [vmem:[#allocation8 + $0x8a0] sm:$0xff] }
 0x379   :  { %9952 = vmatpush1.bf16.msra.mxu0 %v12451_v47  ;;  %v12508_v47 = vcombine.high %v5480_v35, %v5484_v26 }
 0x37a   :  { %10198 = vmatpush1.bf16.msra.mxu1 %v12453_v49  ;;  %9953 = vmatprep.subr.bf16.mxu0 %v12460_v50  ;;  %v12510_v49 = vcombine.high %v5481_v37, %v5485_v38  ;;  %v5488_v50 = vld [vmem:[#allocation8 + $0x780] sm:$0xff] }
 0x37b   :  { %10199 = vmatprep.subr.bf16.mxu1 %v12462_v51  ;;  %v5492_v51 = vld [vmem:[#allocation8 + $0x7a0] sm:$0xff] }
 0x37d   :  { %9954 = vmatpush1.bf16.msra.mxu0 %v12459_v61  ;;  %v806_v61 = vrot.slane %v14869_v45, %v14907_v39  ;;  %v12523_v45 = vcombine.low %v5496_v1, %v5500_v2 }
 0x37e   :  { %10200 = vmatpush1.bf16.msra.mxu1 %v12461_v62  ;;  %9955 = vmatprep.subr.bf16.mxu0 %v12468_v63  ;;  %v12509_v62 = vcombine.low %v5481_v37, %v5485_v38  ;;  %v12516_v63 = vcombine.high %v5488_v50, %v5492_v51  ;;  %v12548_v37 = vcombine.high %v5520_v31, %v5524_v19 }
 0x37f   :  { %10201 = vmatprep.subr.bf16.mxu1 %v12470_v0  ;;  %v12518_v0 = vcombine.high %v5489_v57, %v5493_v58 }
 0x381   :  { %9956 = vmatpush1.bf16.msra.mxu0 %v12467_v6  ;;  %v5501_v6 = vld [vmem:[#allocation8 + $0x7e8] sm:$0xff] }
 0x382   :  { %10202 = vmatpush1.bf16.msra.mxu1 %v12469_v8  ;;  %9957 = vmatprep.subr.bf16.mxu0 %v12476_v9  ;;  %v12515_v8 = vcombine.low %v5488_v50, %v5492_v51  ;;  %v13198_v9 = vadd.f32 %v14844_v42, %v806_v61  ;;  %v12526_v14 = vcombine.high %v5497_v4, %v5501_v6  ;;  %v5540_v61 = vld [vmem:[#allocation8 + $0x920] sm:$0xff] }
 0x383   :  { %10203 = vmatprep.subr.bf16.mxu1 %v12478_v11  ;;  %v12517_v11 = vcombine.low %v5489_v57, %v5493_v58  ;;  %v12525_v22 = vcombine.low %v5497_v4, %v5501_v6  ;;  %v12547_v50 = vcombine.low %v5520_v31, %v5524_v19  ;;  %v5544_v4 = vld [vmem:[#allocation8 + $0x940] sm:$0xff]  ;;  %v5569_v19 = vld [vmem:[#allocation8 + $0xa08] sm:$0xff] }
 0x384   :  { %v5548_v6 = vld [vmem:[#allocation8 + $0x960] sm:$0xff] }
 0x385   :  { %9958 = vmatpush1.bf16.msra.mxu0 %v12475_v43  ;;  %v13201_v43 = vadd.f32 %v14877_v54, %v818_v3  ;;  %v5572_v31 = vld [vmem:[#allocation8 + $0xa20] sm:$0xff] }
 0x386   :  { %10204 = vmatpush1.bf16.msra.mxu1 %v12477_v5  ;;  %9959 = vmatprep.subr.bf16.mxu0 %v12484_v20  ;;  %v5505_v5 = vld [vmem:[#allocation8 + $0x808] sm:$0xff] }
 0x387   :  { %10205 = vmatprep.subr.bf16.mxu1 %v12486_v21  ;;  %v5509_v20 = vld [vmem:[#allocation8 + $0x828] sm:$0xff]  ;;  %v5226_v21 = vmax.f32 %v13198_v9, 0.0  ;;  %v5229_v24 = vmax.f32 %v13201_v43, 0.0  ;;  %v5556_v43 = vld [vmem:[#allocation8 + $0x9a0] sm:$0xff] }
 0x388   :  { %v12534_v42 = vcombine.high %v5505_v5, %v5509_v20  ;;  %v12533_v54 = vcombine.low %v5505_v5, %v5509_v20  ;;  %v5549_v9 = vld [vmem:[#allocation8 + $0x968] sm:$0xff] }
 0x389   :  { %9960 = vmatpush1.bf16.msra.mxu0 %v12483_v25  ;;  %v5516_v25 = vld [vmem:[#allocation8 + $0x860] sm:$0xff]  ;;  %v14917_v28 = vpack.c.bf16 %v5226_v21, %v5226_v21  ;;  %v5553_v5 = vld [vmem:[#allocation8 + $0x988] sm:$0xff] }
 0x38a   :  { %10206 = vmatpush1.bf16.msra.mxu1 %v12485_v10  ;;  %9961 = vmatprep.subr.bf16.mxu0 %v12492_v13  ;;  %v12531_v10 = vcombine.low %v5504_v16, %v5508_v17  ;;  %v5513_v13 = vld [vmem:[#allocation8 + $0x848] sm:$0xff]  ;;  %v12540_v29 = vcombine.high %v5512_v30, %v5516_v25  ;;  %v12539_v35 = vcombine.low %v5512_v30, %v5516_v25  ;;  %v5552_v17 = vld [vmem:[#allocation8 + $0x980] sm:$0xff] }
 0x38b   :  { %10207 = vmatprep.subr.bf16.mxu1 %v12494_v27  ;;  %v5517_v27 = vld [vmem:[#allocation8 + $0x868] sm:$0xff] }
 0x38c   :  { %v12541_v26 = vcombine.low %v5513_v13, %v5517_v27  ;;  %v5557_v20 = vld [vmem:[#allocation8 + $0x9a8] sm:$0xff] }
 0x38d   :  { %9962 = vmatpush1.bf16.msra.mxu0 %v12491_v15  ;;  %v14919_v15 = vpack.c.bf16 %v5229_v24, %v5229_v24  ;;  %v5564_v24 = vld [vmem:[#allocation8 + $0x9e0] sm:$0xff]  ;;  %v5561_v30 = vld [vmem:[#allocation8 + $0x9c8] sm:$0xff] }
 0x38e   :  { %10208 = vmatpush1.bf16.msra.mxu1 %v12493_v32  ;;  %9963 = vmatprep.subr.bf16.mxu0 %v12500_v33  ;;  %v12542_v32 = vcombine.high %v5513_v13, %v5517_v27  ;;  %v5521_v33 = vld [vmem:[#allocation8 + $0x888] sm:$0xff]  ;;  %v12581_v13 = vcombine.low %v5553_v5, %v5557_v20 }
 0x38f   :  { %10209 = vmatprep.subr.bf16.mxu1 %v12502_v34  ;;  %v5525_v34 = vld [vmem:[#allocation8 + $0x8a8] sm:$0xff] }
 0x390   :  { %v12550_v38 = vcombine.high %v5521_v33, %v5525_v34  ;;  %v12549_v51 = vcombine.low %v5521_v33, %v5525_v34  ;;  %v5565_v25 = vld [vmem:[#allocation8 + $0x9e8] sm:$0xff] }
 0x391   :  { %9964 = vmatpush1.bf16.msra.mxu0 %v12499_v41  ;;  %v5528_v41 = vld [vmem:[#allocation8 + $0x8c0] sm:$0xff]  ;;  %v12589_v34 = vcombine.low %v5561_v30, %v5565_v25 }
 0x392   :  { %10210 = vmatpush1.bf16.msra.mxu1 %v12501_v46  ;;  %9965 = vmatprep.subr.bf16.mxu0 %v12508_v47  ;;  %v5532_v46 = vld [vmem:[#allocation8 + $0x8e0] sm:$0xff]  ;;  %v5529_v47 = vld [vmem:[#allocation8 + $0x8c8] sm:$0xff] }
 0x393   :  { %10211 = vmatprep.subr.bf16.mxu1 %v12510_v49  ;;  %v5533_v49 = vld [vmem:[#allocation8 + $0x8e8] sm:$0xff]  ;;  %v12556_v57 = vcombine.high %v5528_v41, %v5532_v46 }
 0x394   :  { %v12558_v58 = vcombine.high %v5529_v47, %v5533_v49  ;;  %v12557_v1 = vcombine.low %v5529_v47, %v5533_v49 }
 0x395   :  { %9966 = vmatpush1.bf16.msra.mxu0 %v12507_v59  ;;  %v5536_v59 = vld [vmem:[#allocation8 + $0x900] sm:$0xff] }
 0x396   :  { %10212 = vmatpush1.bf16.msra.mxu1 %v12509_v62  ;;  %9967 = vmatprep.subr.bf16.mxu0 %v12516_v63  ;;  %v5537_v62 = vld [vmem:[#allocation8 + $0x908] sm:$0xff]  ;;  %v12564_v2 = vcombine.high %v5536_v59, %v5540_v61 }
 0x397   :  { %10213 = vmatprep.subr.bf16.mxu1 %v12518_v0  ;;  %v5541_v63 = vld [vmem:[#allocation8 + $0x928] sm:$0xff]  ;;  %v12555_v0 = vcombine.low %v5528_v41, %v5532_v46 }
 0x398   :  { %v12566_v3 = vcombine.high %v5537_v62, %v5541_v63  ;;  %v5577_v41 = vld [vmem:[#allocation8 + $0xa48] sm:$0xff] }
 0x399   :  { %9968 = vmatpush1.bf16.msra.mxu0 %v12515_v8  ;;  %v5545_v8 = vld [vmem:[#allocation8 + $0x948] sm:$0xff] }
 0x39a   :  { %10214 = vmatpush1.bf16.msra.mxu1 %v12517_v11  ;;  %9969 = vmatprep.subr.bf16.mxu0 %v12524_v12  ;;  %v12563_v11 = vcombine.low %v5536_v59, %v5540_v61  ;;  %v12565_v12 = vcombine.low %v5537_v62, %v5541_v63  ;;  %v12574_v16 = vcombine.high %v5545_v8, %v5549_v9  ;;  %v5581_v46 = vld [vmem:[#allocation8 + $0xa68] sm:$0xff] }
 0x39b   :  { %10215 = vmatprep.subr.bf16.mxu1 %v12526_v14  ;;  %v12572_v14 = vcombine.high %v5544_v4, %v5548_v6  ;;  %v12573_v21 = vcombine.low %v5545_v8, %v5549_v9  ;;  %v5585_v59 = vld [vmem:[#allocation8 + $0xa88] sm:$0xff]  ;;  %v12605_v63 = vcombine.low %v5577_v41, %v5581_v46 }
 0x39c   :  { %v5589_v61 = vld [vmem:[#allocation8 + $0xaa8] sm:$0xff] }
 0x39d   :  { %9970 = vmatpush1.bf16.msra.mxu0 %v12523_v45  ;;  %v12571_v45 = vcombine.low %v5544_v4, %v5548_v6  ;;  %v5593_v4 = vld [vmem:[#allocation8 + $0xac8] sm:$0xff]  ;;  %v12613_v9 = vcombine.low %v5585_v59, %v5589_v61 }
 0x39e   :  { %10216 = vmatpush1.bf16.msra.mxu1 %v12525_v22  ;;  %9980 = vmatprep.subr.bf16.mxu0 %v12532_v23  ;;  %v12580_v22 = vcombine.high %v5552_v17, %v5556_v43  ;;  %v12582_v23 = vcombine.high %v5553_v5, %v5557_v20  ;;  %v5597_v6 = vld [vmem:[#allocation8 + $0xae8] sm:$0xff] }
 0x39f   :  { %10226 = vmatprep.subr.bf16.mxu1 %v12534_v42  ;;  %v5560_v42 = vld [vmem:[#allocation8 + $0x9c0] sm:$0xff]  ;;  %v12621_v20 = vcombine.low %v5593_v4, %v5597_v6 }
 0x3a0   :  { %9972 = vmatmul.mubr.bf16.vlgmr.msra.gmra.mrb[12].mxu0 %v14917_v28  ;;  %v12588_v27 = vcombine.high %v5560_v42, %v5564_v24  ;;  %v12587_v33 = vcombine.low %v5560_v42, %v5564_v24  ;;  %v5609_v42 = vld [vmem:[#allocation8 + $0xb48] sm:$0xff] }
 0x3a1   :  { %10218 = vmatmul.mubr.bf16.vlgmr.msra.gmra.mrb[12].mxu1 %v14917_v28  ;;  %9981 = vmatpush1.bf16.msra.mxu0 %v12531_v10  ;;  %v12579_v10 = vcombine.low %v5552_v17, %v5556_v43  ;;  %v5601_v17 = vld [vmem:[#allocation8 + $0xb08] sm:$0xff] }
 0x3a2   :  { %10012 = vmatprep.mubr.bf16.mxu0 %v14919_v15  ;;  %10227 = vmatpush1.bf16.msra.mxu1 %v12533_v54  ;;  %v12590_v54 = vcombine.high %v5561_v30, %v5565_v25  ;;  %v5605_v43 = vld [vmem:[#allocation8 + $0xb28] sm:$0xff]  ;;  %v813_v25 = vsub.s32 4, %v14864_v36 }
 0x3a3   :  { %10258 = vmatprep.mubr.bf16.mxu1 %v14919_v15  ;;  %9982 = vmatprep.subr.bf16.mxu0 %v12540_v29  ;;  %v5568_v29 = vld [vmem:[#allocation8 + $0xa00] sm:$0xff]  ;;  %v5613_v24 = vld [vmem:[#allocation8 + $0xb68] sm:$0xff] }
 0x3a4   :  { %10228 = vmatprep.subr.bf16.mxu1 %v12542_v32  ;;  %v5573_v32 = vld [vmem:[#allocation8 + $0xa28] sm:$0xff]  ;;  %v12595_v47 = vcombine.low %v5568_v29, %v5572_v31 }
 0x3a5   :  { %9983 = vmatpush1.bf16.msra.mxu0 %v12539_v35  ;;  %v12596_v35 = vcombine.high %v5568_v29, %v5572_v31  ;;  %v12597_v49 = vcombine.low %v5569_v19, %v5573_v32  ;;  %v5620_v29 = vld [vmem:[#allocation8 + $0xba0] sm:$0xff]  ;;  %v825_v31 = vsub.s32 7, %v14864_v36 }
 0x3a6   :  { %10229 = vmatpush1.bf16.msra.mxu1 %v12541_v26  ;;  %9984 = vmatprep.subr.bf16.mxu0 %v12548_v37  ;;  %v12598_v26 = vcombine.high %v5569_v19, %v5573_v32  ;;  %v5576_v37 = vld [vmem:[#allocation8 + $0xa40] sm:$0xff]  ;;  %v5617_v19 = vld [vmem:[#allocation8 + $0xb88] sm:$0xff] }
 0x3a7   :  { %10230 = vmatprep.subr.bf16.mxu1 %v12550_v38  ;;  %v5580_v38 = vld [vmem:[#allocation8 + $0xa60] sm:$0xff]  ;;  %v5621_v32 = vld [vmem:[#allocation8 + $0xba8] sm:$0xff] }
 0x3a8   :  { %v12603_v62 = vcombine.low %v5576_v37, %v5580_v38 }
 0x3a9   :  { %9985 = vmatpush1.bf16.msra.mxu0 %v12547_v50  ;;  %v12604_v50 = vcombine.high %v5576_v37, %v5580_v38  ;;  %v12646_v38 = vcombine.high %v5617_v19, %v5621_v32 }
 0x3aa   :  { %10231 = vmatpush1.bf16.msra.mxu1 %v12549_v51  ;;  %9986 = vmatprep.subr.bf16.mxu0 %v12556_v57  ;;  %v12606_v51 = vcombine.high %v5577_v41, %v5581_v46  ;;  %v5584_v57 = vld [vmem:[#allocation8 + $0xa80] sm:$0xff] }
 0x3ab   :  { %10232 = vmatprep.subr.bf16.mxu1 %v12558_v58  ;;  %v5588_v58 = vld [vmem:[#allocation8 + $0xaa0] sm:$0xff] }
 0x3ac   :  { %v12611_v8 = vcombine.low %v5584_v57, %v5588_v58  ;;  %v5624_v41 = vld [vmem:[#allocation8 + $0xbc0] sm:$0xff] }
 0x3ad   :  { %9987 = vmatpush1.bf16.msra.mxu0 %v12555_v0  ;;  %v12612_v0 = vcombine.high %v5584_v57, %v5588_v58  ;;  %v5628_v46 = vld [vmem:[#allocation8 + $0xbe0] sm:$0xff]  ;;  %v12645_v58 = vcombine.low %v5617_v19, %v5621_v32  ;;  %v5661_v19 = vld [vmem:[#allocation8 + $0xce8] sm:$0xff] }
 0x3ae   :  { %10233 = vmatpush1.bf16.msra.mxu1 %v12557_v1  ;;  %9988 = vmatprep.subr.bf16.mxu0 %v12564_v2  ;;  %v12614_v1 = vcombine.high %v5585_v59, %v5589_v61  ;;  %v5592_v2 = vld [vmem:[#allocation8 + $0xac0] sm:$0xff]  ;;  %v12652_v59 = vcombine.high %v5624_v41, %v5628_v46 }
 0x3af   :  { %10234 = vmatprep.subr.bf16.mxu1 %v12566_v3  ;;  %v5596_v3 = vld [vmem:[#allocation8 + $0xae0] sm:$0xff] }
 0x3b0   :  { %v12619_v5 = vcombine.low %v5592_v2, %v5596_v3 }
 0x3b1   :  { %9989 = vmatpush1.bf16.msra.mxu0 %v12563_v11  ;;  %v12620_v11 = vcombine.high %v5592_v2, %v5596_v3  ;;  %v5637_v2 = vld [vmem:[#allocation8 + $0xc28] sm:$0xff]  ;;  %v12651_v3 = vcombine.low %v5624_v41, %v5628_v46 }
 0x3b2   :  { %10235 = vmatpush1.bf16.msra.mxu1 %v12565_v12  ;;  %9990 = vmatprep.subr.bf16.mxu0 %v12572_v14  ;;  %v12622_v12 = vcombine.high %v5593_v4, %v5597_v6  ;;  %v5600_v14 = vld [vmem:[#allocation8 + $0xb00] sm:$0xff]  ;;  %v5665_v41 = vld [vmem:[#allocation8 + $0xd08] sm:$0xff] }
 0x3b3   :  { %10236 = vmatprep.subr.bf16.mxu1 %v12574_v16  ;;  %v5604_v16 = vld [vmem:[#allocation8 + $0xb20] sm:$0xff]  ;;  %v5669_v46 = vld [vmem:[#allocation8 + $0xd28] sm:$0xff] }
 0x3b4   :  { %v12627_v30 = vcombine.low %v5600_v14, %v5604_v16 }
 0x3b5   :  { %9991 = vmatpush1.bf16.msra.mxu0 %v12571_v45  ;;  %v12628_v45 = vcombine.high %v5600_v14, %v5604_v16  ;;  %v5641_v16 = vld [vmem:[#allocation8 + $0xc48] sm:$0xff] }
 0x3b6   :  { %10237 = vmatpush1.bf16.msra.mxu1 %v12573_v21  ;;  %9992 = vmatprep.subr.bf16.mxu0 %v12580_v22  ;;  %v12630_v21 = vcombine.high %v5601_v17, %v5605_v43  ;;  %v5608_v22 = vld [vmem:[#allocation8 + $0xb40] sm:$0xff] }
 0x3b7   :  { %10238 = vmatprep.subr.bf16.mxu1 %v12582_v23  ;;  %v5612_v23 = vld [vmem:[#allocation8 + $0xb60] sm:$0xff] }
 0x3b9   :  { %9993 = vmatpush1.bf16.msra.mxu0 %v12579_v10  ;;  %v12629_v10 = vcombine.low %v5601_v17, %v5605_v43  ;;  %v5645_v17 = vld [vmem:[#allocation8 + $0xc68] sm:$0xff] }
 0x3ba   :  { %10239 = vmatpush1.bf16.msra.mxu1 %v12581_v13  ;;  %9994 = vmatprep.subr.bf16.mxu0 %v12588_v27  ;;  %v12636_v13 = vcombine.high %v5608_v22, %v5612_v23  ;;  %v12638_v27 = vcombine.high %v5609_v42, %v5613_v24 }
 0x3bb   :  { %10240 = vmatprep.subr.bf16.mxu1 %v12590_v54  ;;  %v5616_v54 = vld [vmem:[#allocation8 + $0xb80] sm:$0xff] }
 0x3bc   :  { %v12644_v37 = vcombine.high %v5616_v54, %v5620_v29 }
 0x3bd   :  { %9995 = vmatpush1.bf16.msra.mxu0 %v12587_v33  ;;  %v12635_v33 = vcombine.low %v5608_v22, %v5612_v23  ;;  %v12670_v22 = vcombine.high %v5641_v16, %v5645_v17  ;;  %v5649_v23 = vld [vmem:[#allocation8 + $0xc88] sm:$0xff] }
 0x3be   :  { %10241 = vmatpush1.bf16.msra.mxu1 %v12589_v34  ;;  %9996 = vmatprep.subr.bf16.mxu0 %v12596_v35  ;;  %v14927_v34 = vld [vmem:[#allocation7] sm:$0xff] }
 0x3bf   :  { %10242 = vmatprep.subr.bf16.mxu1 %v12598_v26  ;;  %v814_v35 = vrot.slane %v14927_v34, %v813_v25  ;;  %v12637_v26 = vcombine.low %v5609_v42, %v5613_v24  ;;  %v5653_v42 = vld [vmem:[#allocation8 + $0xca8] sm:$0xff] }
 0x3c1   :  { %9997 = vmatpush1.bf16.msra.mxu0 %v12595_v47  ;;  %v826_v47 = vrot.slane %v14927_v34, %v825_v31  ;;  %v13200_v57 = vadd.f32 %v14873_v52, %v814_v35 }
 0x3c2   :  { %10243 = vmatpush1.bf16.msra.mxu1 %v12597_v49  ;;  %9998 = vmatprep.subr.bf16.mxu0 %v12604_v50  ;;  %v5625_v49 = vld [vmem:[#allocation8 + $0xbc8] sm:$0xff] }
 0x3c3   :  { %10244 = vmatprep.subr.bf16.mxu1 %v12606_v51  ;;  %v5629_v50 = vld [vmem:[#allocation8 + $0xbe8] sm:$0xff]  ;;  %v12643_v51 = vcombine.low %v5616_v54, %v5620_v29  ;;  %v5228_v4 = vmax.f32 %v13200_v57, 0.0  ;;  %v5660_v54 = vld [vmem:[#allocation8 + $0xce0] sm:$0xff] }
 0x3c4   :  { %v12654_v61 = vcombine.high %v5625_v49, %v5629_v50  ;;  %v12653_v6 = vcombine.low %v5625_v49, %v5629_v50  ;;  %v5657_v29 = vld [vmem:[#allocation8 + $0xcc8] sm:$0xff]  ;;  %v5672_v57 = vld [vmem:[#allocation8 + $0xd40] sm:$0xff] }
 0x3c5   :  { %9999 = vmatpush1.bf16.msra.mxu0 %v12603_v62  ;;  %v5632_v62 = vld [vmem:[#allocation8 + $0xc00] sm:$0xff]  ;;  %v14937_v43 = vpack.c.bf16 %v5228_v4, %v5228_v4  ;;  %v12685_v49 = vcombine.low %v5657_v29, %v5661_v19 }
 0x3c6   :  { %10245 = vmatpush1.bf16.msra.mxu1 %v12605_v63  ;;  %10000 = vmatprep.subr.bf16.mxu0 %v12612_v0  ;;  %v5636_v63 = vld [vmem:[#allocation8 + $0xc20] sm:$0xff]  ;;  %v13203_v0 = vadd.f32 %v14879_v55, %v826_v47 }
 0x3c7   :  { %10246 = vmatprep.subr.bf16.mxu1 %v12614_v1  ;;  %v5633_v1 = vld [vmem:[#allocation8 + $0xc08] sm:$0xff]  ;;  %v12659_v14 = vcombine.low %v5632_v62, %v5636_v63  ;;  %v5684_v4 = vld [vmem:[#allocation8 + $0xda0] sm:$0xff] }
 0x3c8   :  { %v12662_v52 = vcombine.high %v5633_v1, %v5637_v2  ;;  %v12661_v55 = vcombine.low %v5633_v1, %v5637_v2 }
 0x3c9   :  { %10001 = vmatpush1.bf16.msra.mxu0 %v12611_v8  ;;  %v12660_v8 = vcombine.high %v5632_v62, %v5636_v63  ;;  %v14945_v63 = vld [vmem:[#allocation7 + $0x8] sm:$0xf] }
 0x3ca   :  { %10247 = vmatpush1.bf16.msra.mxu1 %v12613_v9  ;;  %10002 = vmatprep.subr.bf16.mxu0 %v12620_v11  ;;  %v5231_v9 = vmax.f32 %v13203_v0, 0.0  ;;  %v5640_v11 = vld [vmem:[#allocation8 + $0xc40] sm:$0xff]  ;;  %v12693_v0 = vcombine.low %v5665_v41, %v5669_v46 }
 0x3cb   :  { %10248 = vmatprep.subr.bf16.mxu1 %v12622_v12  ;;  %v5644_v12 = vld [vmem:[#allocation8 + $0xc60] sm:$0xff] }
 0x3cc   :  { %v12667_v24 = vcombine.low %v5640_v11, %v5644_v12 }
 0x3cd   :  { %10003 = vmatpush1.bf16.msra.mxu0 %v12619_v5  ;;  %v12668_v5 = vcombine.high %v5640_v11, %v5644_v12 }
 0x3ce   :  { %10249 = vmatpush1.bf16.msra.mxu1 %v12621_v20  ;;  %10004 = vmatprep.subr.bf16.mxu0 %v12628_v45  ;;  %v5648_v20 = vld [vmem:[#allocation8 + $0xc80] sm:$0xff] }
 0x3cf   :  { %10250 = vmatprep.subr.bf16.mxu1 %v12630_v21  ;;  %v5652_v45 = vld [vmem:[#allocation8 + $0xca0] sm:$0xff]  ;;  %v14939_v21 = vpack.c.bf16 %v5231_v9, %v5231_v9  ;;  %v842_v9 = vrot.slane %v14945_v63, %v14890_v48 }
 0x3d0   :  { %v12675_v32 = vcombine.low %v5648_v20, %v5652_v45 }
 0x3d1   :  { %10005 = vmatpush1.bf16.msra.mxu0 %v12627_v30  ;;  %v12669_v30 = vcombine.low %v5641_v16, %v5645_v17 }
 0x3d2   :  { %10251 = vmatpush1.bf16.msra.mxu1 %v12629_v10  ;;  %10006 = vmatprep.subr.bf16.mxu0 %v12636_v13  ;;  %v12676_v10 = vcombine.high %v5648_v20, %v5652_v45  ;;  %v12678_v13 = vcombine.high %v5649_v23, %v5653_v42  ;;  %v5692_v20 = vld [vmem:[#allocation8 + $0xde0] sm:$0xff] }
 0x3d3   :  { %10252 = vmatprep.subr.bf16.mxu1 %v12638_v27  ;;  %v5656_v27 = vld [vmem:[#allocation8 + $0xcc0] sm:$0xff] }
 0x3d4   :  { %v12684_v35 = vcombine.high %v5656_v27, %v5660_v54  ;;  %v12683_v47 = vcombine.low %v5656_v27, %v5660_v54 }
 0x3d5   :  { %10007 = vmatpush1.bf16.msra.mxu0 %v12635_v33  ;;  %v12677_v33 = vcombine.low %v5649_v23, %v5653_v42  ;;  %v5689_v42 = vld [vmem:[#allocation8 + $0xdc8] sm:$0xff] }
 0x3d6   :  { %10253 = vmatpush1.bf16.msra.mxu1 %v12637_v26  ;;  %10008 = vmatprep.subr.bf16.mxu0 %v12644_v37  ;;  %v12686_v26 = vcombine.high %v5657_v29, %v5661_v19  ;;  %v5664_v37 = vld [vmem:[#allocation8 + $0xd00] sm:$0xff] }
 0x3d7   :  { %10254 = vmatprep.subr.bf16.mxu1 %v12646_v38  ;;  %v5668_v38 = vld [vmem:[#allocation8 + $0xd20] sm:$0xff] }
 0x3d8   :  { %v12692_v50 = vcombine.high %v5664_v37, %v5668_v38  ;;  %v12691_v62 = vcombine.low %v5664_v37, %v5668_v38  ;;  %v5697_v37 = vld [vmem:[#allocation8 + $0xe08] sm:$0xff] }
 0x3d9   :  { %10009 = vmatpush1.bf16.msra.mxu0 %v12643_v51  ;;  %v12694_v51 = vcombine.high %v5665_v41, %v5669_v46  ;;  %v5701_v38 = vld [vmem:[#allocation8 + $0xe28] sm:$0xff] }
 0x3da   :  { %10255 = vmatpush1.bf16.msra.mxu1 %v12645_v58  ;;  %10010 = vmatprep.subr.bf16.mxu0 %v12652_v59  ;;  %v5676_v58 = vld [vmem:[#allocation8 + $0xd60] sm:$0xff]  ;;  %v5673_v59 = vld [vmem:[#allocation8 + $0xd48] sm:$0xff] }
 0x3db   :  { %10256 = vmatprep.subr.bf16.mxu1 %v12654_v61  ;;  %v5677_v61 = vld [vmem:[#allocation8 + $0xd68] sm:$0xff]  ;;  %v12700_v1 = vcombine.high %v5672_v57, %v5676_v58  ;;  %v12699_v11 = vcombine.low %v5672_v57, %v5676_v58 }
 0x3dc   :  { %v12702_v2 = vcombine.high %v5673_v59, %v5677_v61  ;;  %v12701_v12 = vcombine.low %v5673_v59, %v5677_v61  ;;  %v5705_v57 = vld [vmem:[#allocation8 + $0xe48] sm:$0xff]  ;;  %v12725_v61 = vcombine.low %v5697_v37, %v5701_v38 }
 0x3dd   :  { %10011 = vmatpush1.bf16.msra.mxu0 %v12651_v3  ;;  %v5680_v3 = vld [vmem:[#allocation8 + $0xd80] sm:$0xff]  ;;  %v5709_v58 = vld [vmem:[#allocation8 + $0xe68] sm:$0xff] }
 0x3de   :  { %10257 = vmatpush1.bf16.msra.mxu1 %v12653_v6  ;;  %10021 = vmatprep.subr.bf16.mxu0 %v12660_v8  ;;  %v838_v6 = vrot.slane %v14945_v63, %v14907_v39  ;;  %v5681_v8 = vld [vmem:[#allocation8 + $0xd88] sm:$0xff]  ;;  %v12707_v27 = vcombine.low %v5680_v3, %v5684_v4 }
 0x3df   :  { %10267 = vmatprep.subr.bf16.mxu1 %v12662_v52  ;;  %v5685_v52 = vld [vmem:[#allocation8 + $0xda8] sm:$0xff] }
 0x3e0   :  { %10013 = vmatmul.mubr.bf16.vlgmr.msra.gmra.mrb[12].mxu0 %v14937_v43  ;;  %v12709_v19 = vcombine.low %v5681_v8, %v5685_v52 }
 0x3e1   :  { %10259 = vmatmul.mubr.bf16.vlgmr.msra.gmra.mrb[12].mxu1 %v14937_v43  ;;  %10022 = vmatpush1.bf16.msra.mxu0 %v12659_v14  ;;  %v12708_v14 = vcombine.high %v5680_v3, %v5684_v4  ;;  %v5713_v3 = vld [vmem:[#allocation8 + $0xe88] sm:$0xff] }
 0x3e2   :  { %10053 = vmatprep.mubr.bf16.mxu0 %v14939_v21  ;;  %10268 = vmatpush1.bf16.msra.mxu1 %v12661_v55  ;;  %v12710_v55 = vcombine.high %v5681_v8, %v5685_v52  ;;  %v5717_v4 = vld [vmem:[#allocation8 + $0xea8] sm:$0xff]  ;;  %v12733_v8 = vcombine.low %v5705_v57, %v5709_v58 }
 0x3e3   :  { %10299 = vmatprep.mubr.bf16.mxu1 %v14939_v21  ;;  %10023 = vmatprep.subr.bf16.mxu0 %v12668_v5  ;;  %v5688_v5 = vld [vmem:[#allocation8 + $0xdc0] sm:$0xff] }
 0x3e4   :  { %10269 = vmatprep.subr.bf16.mxu1 %v12670_v22  ;;  %v12715_v41 = vcombine.low %v5688_v5, %v5692_v20 }
 0x3e5   :  { %10024 = vmatpush1.bf16.msra.mxu0 %v12667_v24  ;;  %v5693_v24 = vld [vmem:[#allocation8 + $0xde8] sm:$0xff] }
 0x3e6   :  { %10270 = vmatpush1.bf16.msra.mxu1 %v12669_v30  ;;  %10025 = vmatprep.subr.bf16.mxu0 %v12676_v10  ;;  %v12717_v46 = vcombine.low %v5689_v42, %v5693_v24 }
 0x3e7   :  { %10271 = vmatprep.subr.bf16.mxu1 %v12678_v13 }
 0x3e9   :  { %10026 = vmatpush1.bf16.msra.mxu0 %v12675_v32  ;;  %v12716_v32 = vcombine.high %v5688_v5, %v5692_v20  ;;  %v12741_v5 = vcombine.low %v5713_v3, %v5717_v4 }
 0x3ea   :  { %10272 = vmatpush1.bf16.msra.mxu1 %v12677_v33  ;;  %10027 = vmatprep.subr.bf16.mxu0 %v12684_v35  ;;  %v12718_v33 = vcombine.high %v5689_v42, %v5693_v24  ;;  %v5696_v35 = vld [vmem:[#allocation8 + $0xe00] sm:$0xff] }
 0x3eb   :  { %10273 = vmatprep.subr.bf16.mxu1 %v12686_v26  ;;  %v5700_v26 = vld [vmem:[#allocation8 + $0xe20] sm:$0xff] }
 0x3ec   :  { %v12723_v59 = vcombine.low %v5696_v35, %v5700_v26  ;;  %v5728_v42 = vld [vmem:[#allocation8 + $0xf00] sm:$0xff] }
 0x3ed   :  { %10028 = vmatpush1.bf16.msra.mxu0 %v12683_v47  ;;  %v12724_v47 = vcombine.high %v5696_v35, %v5700_v26  ;;  %v5732_v24 = vld [vmem:[#allocation8 + $0xf20] sm:$0xff]  ;;  %v5737_v35 = vld [vmem:[#allocation8 + $0xf48] sm:$0xff] }
 0x3ee   :  { %10274 = vmatpush1.bf16.msra.mxu1 %v12685_v49  ;;  %10029 = vmatprep.subr.bf16.mxu0 %v12692_v50  ;;  %v12726_v49 = vcombine.high %v5697_v37, %v5701_v38  ;;  %v5704_v50 = vld [vmem:[#allocation8 + $0xe40] sm:$0xff]  ;;  %v5741_v26 = vld [vmem:[#allocation8 + $0xf68] sm:$0xff]  ;;  %v12755_v37 = vcombine.low %v5728_v42, %v5732_v24  ;;  %v821_v38 = vsub.s32 6, %v14864_v36 }
 0x3ef   :  { %10275 = vmatprep.subr.bf16.mxu1 %v12694_v51  ;;  %v5708_v51 = vld [vmem:[#allocation8 + $0xe60] sm:$0xff] }
 0x3f1   :  { %10030 = vmatpush1.bf16.msra.mxu0 %v12691_v62  ;;  %v12732_v62 = vcombine.high %v5704_v50, %v5708_v51 }
 0x3f2   :  { %10276 = vmatpush1.bf16.msra.mxu1 %v12693_v0  ;;  %10031 = vmatprep.subr.bf16.mxu0 %v12700_v1  ;;  %v12734_v0 = vcombine.high %v5705_v57, %v5709_v58  ;;  %v5712_v1 = vld [vmem:[#allocation8 + $0xe80] sm:$0xff]  ;;  %v5749_v57 = vld [vmem:[#allocation8 + $0xfa8] sm:$0xff] }
 0x3f3   :  { %v14951_v16 = vpop.f32.mrb[8].mxu0  ;;  %v5217_v17 = vpop.f32.mrb[8].mxu1  ;;  %10277 = vmatprep.subr.bf16.mxu1 %v12702_v2  ;;  %v5716_v2 = vld [vmem:[#allocation8 + $0xea0] sm:$0xff] }
 0x3f4   :  { %v14953_v45 = vadd.f32 %v5217_v17, %v838_v6  ;;  %v14955_v22 = vpop.f32.mrb[9].mxu0  ;;  %v5219_v23 = vpop.f32.mrb[9].mxu1  ;;  %v12731_v6 = vcombine.low %v5704_v50, %v5708_v51  ;;  %v12740_v52 = vcombine.high %v5712_v1, %v5716_v2  ;;  %v5725_v17 = vld [vmem:[#allocation8 + $0xee8] sm:$0xff]  ;;  %v5748_v50 = vld [vmem:[#allocation8 + $0xfa0] sm:$0xff] }
 0x3f5   :  { %v14957_v30 = vadd.f32 %v5219_v23, %v842_v9  ;;  %v5057_v10 = vpop.f32.mrb[10].mxu0  ;;  %v5221_v13 = vpop.f32.mrb[10].mxu1  ;;  %10032 = vmatpush1.bf16.msra.mxu0 %v12699_v11  ;;  %v12742_v9 = vcombine.high %v5713_v3, %v5717_v4  ;;  %v5720_v11 = vld [vmem:[#allocation8 + $0xec0] sm:$0xff]  ;;  %v5745_v51 = vld [vmem:[#allocation8 + $0xf88] sm:$0xff]  ;;  %v834_v3 = vrot.slane %v14945_v63, %v14867_v40 }
 0x3f6   :  { %10278 = vmatpush1.bf16.msra.mxu1 %v12701_v12  ;;  %v5058_v54 = vpop.f32.mrb[11].mxu0  ;;  %v5222_v29 = vpop.f32.mrb[11].mxu1  ;;  %10033 = vmatprep.subr.bf16.mxu0 %v12708_v14  ;;  %v5724_v12 = vld [vmem:[#allocation8 + $0xee0] sm:$0xff]  ;;  %v5721_v14 = vld [vmem:[#allocation8 + $0xec8] sm:$0xff] }
 0x3f7   :  { %10279 = vmatprep.subr.bf16.mxu1 %v12710_v55  ;;  %v12739_v55 = vcombine.low %v5712_v1, %v5716_v2  ;;  %v12748_v20 = vcombine.high %v5720_v11, %v5724_v12  ;;  %v12750_v23 = vcombine.high %v5721_v14, %v5725_v17  ;;  %v5729_v10 = vld [vmem:[#allocation8 + $0xf08] sm:$0xff]  ;;  %v12749_v54 = vcombine.low %v5721_v14, %v5725_v17  ;;  %v5752_v1 = vld [vmem:[#allocation8 + $0xfc0] sm:$0xff] }
 0x3f8   :  { %v5733_v13 = vld [vmem:[#allocation8 + $0xf28] sm:$0xff]  ;;  %v12756_v29 = vcombine.high %v5728_v42, %v5732_v24  ;;  %v5756_v2 = vld [vmem:[#allocation8 + $0xfe0] sm:$0xff]  ;;  %v13205_v17 = vadd.f32 %v14955_v22, %v834_v3 }
 0x3f9   :  { %10034 = vmatpush1.bf16.msra.mxu0 %v12707_v27  ;;  %v12747_v27 = vcombine.low %v5720_v11, %v5724_v12  ;;  %v5753_v4 = vld [vmem:[#allocation8 + $0xfc8] sm:$0xff]  ;;  %v5760_v12 = vld [vmem:[#allocation8 + $0x1000] sm:$0xff] }
 0x3fa   :  { %10280 = vmatpush1.bf16.msra.mxu1 %v12709_v19  ;;  %10035 = vmatprep.subr.bf16.mxu0 %v12716_v32  ;;  %v12758_v19 = vcombine.high %v5729_v10, %v5733_v13  ;;  %v5736_v32 = vld [vmem:[#allocation8 + $0xf40] sm:$0xff] }
 0x3fb   :  { %10281 = vmatprep.subr.bf16.mxu1 %v12718_v33  ;;  %v5740_v33 = vld [vmem:[#allocation8 + $0xf60] sm:$0xff] }
 0x3fc   :  { %v12763_v58 = vcombine.low %v5736_v32, %v5740_v33  ;;  %v5764_v14 = vld [vmem:[#allocation8 + $0x1020] sm:$0xff] }
 0x3fd   :  { %10036 = vmatpush1.bf16.msra.mxu0 %v12715_v41  ;;  %v12757_v41 = vcombine.low %v5729_v10, %v5733_v13  ;;  %v12788_v24 = vcombine.high %v5760_v12, %v5764_v14  ;;  %v5233_v10 = vmax.f32 %v13205_v17, 0.0  ;;  %v5768_v13 = vld [vmem:[#allocation8 + $0x1040] sm:$0xff] }
 0x3fe   :  { %10282 = vmatpush1.bf16.msra.mxu1 %v12717_v46  ;;  %10037 = vmatprep.subr.bf16.mxu0 %v12724_v47  ;;  %v12764_v46 = vcombine.high %v5736_v32, %v5740_v33  ;;  %v12766_v47 = vcombine.high %v5737_v35, %v5741_v26  ;;  %v5804_v17 = vld [vmem:[#allocation8 + $0x1160] sm:$0xff] }
 0x3ff   :  { %10283 = vmatprep.subr.bf16.mxu1 %v12726_v49  ;;  %v5744_v49 = vld [vmem:[#allocation8 + $0xf80] sm:$0xff] }
 0x401   :  { %10038 = vmatpush1.bf16.msra.mxu0 %v12723_v59  ;;  %v822_v59 = vrot.slane %v14927_v34, %v821_v38  ;;  %v12773_v34 = vcombine.low %v5745_v51, %v5749_v57 }
 0x402   :  { %10284 = vmatpush1.bf16.msra.mxu1 %v12725_v61  ;;  %10039 = vmatprep.subr.bf16.mxu0 %v12732_v62  ;;  %v12765_v61 = vcombine.low %v5737_v35, %v5741_v26  ;;  %v12772_v62 = vcombine.high %v5744_v49, %v5748_v50  ;;  %v5776_v35 = vld [vmem:[#allocation8 + $0x1080] sm:$0xff] }
 0x403   :  { %10285 = vmatprep.subr.bf16.mxu1 %v12734_v0  ;;  %v12774_v0 = vcombine.high %v5745_v51, %v5749_v57  ;;  %v5780_v26 = vld [vmem:[#allocation8 + $0x10a0] sm:$0xff] }
 0x404   :  { %v12804_v51 = vcombine.high %v5776_v35, %v5780_v26 }
 0x405   :  { %10040 = vmatpush1.bf16.msra.mxu0 %v12731_v6  ;;  %v5757_v6 = vld [vmem:[#allocation8 + $0xfe8] sm:$0xff] }
 0x406   :  { %10286 = vmatpush1.bf16.msra.mxu1 %v12733_v8  ;;  %10041 = vmatprep.subr.bf16.mxu0 %v12740_v52  ;;  %v12771_v8 = vcombine.low %v5744_v49, %v5748_v50  ;;  %v13202_v52 = vadd.f32 %v14875_v53, %v822_v59  ;;  %v12782_v11 = vcombine.high %v5753_v4, %v5757_v6  ;;  %v5788_v59 = vld [vmem:[#allocation8 + $0x10e0] sm:$0xff] }
 0x407   :  { %10287 = vmatprep.subr.bf16.mxu1 %v12742_v9  ;;  %v12780_v9 = vcombine.high %v5752_v1, %v5756_v2  ;;  %v12781_v42 = vcombine.low %v5753_v4, %v5757_v6  ;;  %v5792_v4 = vld [vmem:[#allocation8 + $0x1100] sm:$0xff] }
 0x408   :  { %v5796_v6 = vld [vmem:[#allocation8 + $0x1120] sm:$0xff] }
 0x409   :  { %10042 = vmatpush1.bf16.msra.mxu0 %v12739_v55  ;;  %v5761_v55 = vld [vmem:[#allocation8 + $0x1008] sm:$0xff] }
 0x40a   :  { %10288 = vmatpush1.bf16.msra.mxu1 %v12741_v5  ;;  %10043 = vmatprep.subr.bf16.mxu0 %v12748_v20  ;;  %v5765_v5 = vld [vmem:[#allocation8 + $0x1028] sm:$0xff]  ;;  %v12779_v20 = vcombine.low %v5752_v1, %v5756_v2 }
 0x40b   :  { %10289 = vmatprep.subr.bf16.mxu1 %v12750_v23  ;;  %v5230_v23 = vmax.f32 %v13202_v52, 0.0  ;;  %v12790_v53 = vcombine.high %v5761_v55, %v5765_v5  ;;  %v12789_v22 = vcombine.low %v5761_v55, %v5765_v5  ;;  %v5797_v52 = vld [vmem:[#allocation8 + $0x1128] sm:$0xff] }
 0x40c   :  { %v5801_v55 = vld [vmem:[#allocation8 + $0x1148] sm:$0xff] }
 0x40d   :  { %10044 = vmatpush1.bf16.msra.mxu0 %v12747_v27  ;;  %v5772_v27 = vld [vmem:[#allocation8 + $0x1060] sm:$0xff]  ;;  %v14967_v32 = vpack.c.bf16 %v5230_v23, %v5230_v23  ;;  %v5805_v5 = vld [vmem:[#allocation8 + $0x1168] sm:$0xff] }
 0x40e   :  { %10290 = vmatpush1.bf16.msra.mxu1 %v12749_v54  ;;  %10045 = vmatprep.subr.bf16.mxu0 %v12756_v29  ;;  %v12787_v54 = vcombine.low %v5760_v12, %v5764_v14  ;;  %v5769_v29 = vld [vmem:[#allocation8 + $0x1048] sm:$0xff]  ;;  %v12796_v33 = vcombine.high %v5768_v13, %v5772_v27  ;;  %v12795_v49 = vcombine.low %v5768_v13, %v5772_v27  ;;  %v5800_v14 = vld [vmem:[#allocation8 + $0x1140] sm:$0xff] }
 0x40f   :  { %10291 = vmatprep.subr.bf16.mxu1 %v12758_v19  ;;  %v5773_v19 = vld [vmem:[#allocation8 + $0x1068] sm:$0xff] }
 0x410   :  { %v12797_v50 = vcombine.low %v5769_v29, %v5773_v19  ;;  %v5809_v13 = vld [vmem:[#allocation8 + $0x1188] sm:$0xff] }
 0x411   :  { %10046 = vmatpush1.bf16.msra.mxu0 %v12755_v37  ;;  %v14969_v37 = vpack.c.bf16 %v5233_v10, %v5233_v10  ;;  %v5812_v10 = vld [vmem:[#allocation8 + $0x11a0] sm:$0xff]  ;;  %v5813_v27 = vld [vmem:[#allocation8 + $0x11a8] sm:$0xff] }
 0x412   :  { %10292 = vmatpush1.bf16.msra.mxu1 %v12757_v41  ;;  %10047 = vmatprep.subr.bf16.mxu0 %v12764_v46  ;;  %v12798_v41 = vcombine.high %v5769_v29, %v5773_v19  ;;  %v5777_v46 = vld [vmem:[#allocation8 + $0x1088] sm:$0xff]  ;;  %v12829_v29 = vcombine.low %v5801_v55, %v5805_v5 }
 0x413   :  { %10293 = vmatprep.subr.bf16.mxu1 %v12766_v47  ;;  %v5781_v47 = vld [vmem:[#allocation8 + $0x10a8] sm:$0xff] }
 0x414   :  { %v12806_v57 = vcombine.high %v5777_v46, %v5781_v47  ;;  %v12805_v1 = vcombine.low %v5777_v46, %v5781_v47  ;;  %v12837_v47 = vcombine.low %v5809_v13, %v5813_v27 }
 0x415   :  { %10048 = vmatpush1.bf16.msra.mxu0 %v12763_v58  ;;  %v5784_v58 = vld [vmem:[#allocation8 + $0x10c0] sm:$0xff] }
 0x416   :  { %10294 = vmatpush1.bf16.msra.mxu1 %v12765_v61  ;;  %10049 = vmatprep.subr.bf16.mxu0 %v12772_v62  ;;  %v5785_v61 = vld [vmem:[#allocation8 + $0x10c8] sm:$0xff]  ;;  %v12812_v2 = vcombine.high %v5784_v58, %v5788_v59 }
 0x417   :  { %10295 = vmatprep.subr.bf16.mxu1 %v12774_v0  ;;  %v5789_v62 = vld [vmem:[#allocation8 + $0x10e8] sm:$0xff]  ;;  %v12803_v0 = vcombine.low %v5776_v35, %v5780_v26  ;;  %v5820_v35 = vld [vmem:[#allocation8 + $0x11e0] sm:$0xff] }
 0x418   :  { %v12814_v3 = vcombine.high %v5785_v61, %v5789_v62  ;;  %v5817_v26 = vld [vmem:[#allocation8 + $0x11c8] sm:$0xff] }
 0x419   :  { %10050 = vmatpush1.bf16.msra.mxu0 %v12771_v8  ;;  %v5793_v8 = vld [vmem:[#allocation8 + $0x1108] sm:$0xff] }
 0x41a   :  { %10296 = vmatpush1.bf16.msra.mxu1 %v12773_v34  ;;  %10051 = vmatprep.subr.bf16.mxu0 %v12780_v9  ;;  %v12811_v34 = vcombine.low %v5784_v58, %v5788_v59  ;;  %v12813_v9 = vcombine.low %v5785_v61, %v5789_v62  ;;  %v12822_v12 = vcombine.high %v5793_v8, %v5797_v52  ;;  %v5825_v58 = vld [vmem:[#allocation8 + $0x1208] sm:$0xff] }
 0x41b   :  { %10297 = vmatprep.subr.bf16.mxu1 %v12782_v11  ;;  %v12820_v11 = vcombine.high %v5792_v4, %v5796_v6  ;;  %v12821_v23 = vcombine.low %v5793_v8, %v5797_v52  ;;  %v5829_v59 = vld [vmem:[#allocation8 + $0x1228] sm:$0xff] }
 0x41c   :  { %v12853_v52 = vcombine.low %v5825_v58, %v5829_v59 }
 0x41d   :  { %10052 = vmatpush1.bf16.msra.mxu0 %v12779_v20  ;;  %v12819_v20 = vcombine.low %v5792_v4, %v5796_v6  ;;  %v5833_v4 = vld [vmem:[#allocation8 + $0x1248] sm:$0xff] }
 0x41e   :  { %10298 = vmatpush1.bf16.msra.mxu1 %v12781_v42  ;;  %10062 = vmatprep.subr.bf16.mxu0 %v12788_v24  ;;  %v12828_v42 = vcombine.high %v5800_v14, %v5804_v17  ;;  %v12830_v24 = vcombine.high %v5801_v55, %v5805_v5  ;;  %v5837_v6 = vld [vmem:[#allocation8 + $0x1268] sm:$0xff] }
 0x41f   :  { %10308 = vmatprep.subr.bf16.mxu1 %v12790_v53  ;;  %v5808_v53 = vld [vmem:[#allocation8 + $0x1180] sm:$0xff]  ;;  %v12861_v5 = vcombine.low %v5833_v4, %v5837_v6 }
 0x420   :  { %10054 = vmatmul.mubr.bf16.vlgmr.msra.gmra.mrb[12].mxu0 %v14967_v32  ;;  %v12836_v19 = vcombine.high %v5808_v53, %v5812_v10  ;;  %v12835_v46 = vcombine.low %v5808_v53, %v5812_v10  ;;  %v5849_v53 = vld [vmem:[#allocation8 + $0x12c8] sm:$0xff] }
 0x421   :  { %10300 = vmatmul.mubr.bf16.vlgmr.msra.gmra.mrb[12].mxu1 %v14967_v32  ;;  %10063 = vmatpush1.bf16.msra.mxu0 %v12787_v54  ;;  %v12827_v54 = vcombine.low %v5800_v14, %v5804_v17  ;;  %v5841_v14 = vld [vmem:[#allocation8 + $0x1288] sm:$0xff] }
 0x422   :  { %10094 = vmatprep.mubr.bf16.mxu0 %v14969_v37  ;;  %10309 = vmatpush1.bf16.msra.mxu1 %v12789_v22  ;;  %v12838_v22 = vcombine.high %v5809_v13, %v5813_v27  ;;  %v5845_v17 = vld [vmem:[#allocation8 + $0x12a8] sm:$0xff] }
 0x423   :  { %10340 = vmatprep.mubr.bf16.mxu1 %v14969_v37  ;;  %10064 = vmatprep.subr.bf16.mxu0 %v12796_v33  ;;  %v5816_v33 = vld [vmem:[#allocation8 + $0x11c0] sm:$0xff]  ;;  %v5853_v10 = vld [vmem:[#allocation8 + $0x12e8] sm:$0xff]  ;;  %v12869_v27 = vcombine.low %v5841_v14, %v5845_v17 }
 0x424   :  { %10310 = vmatprep.subr.bf16.mxu1 %v12798_v41  ;;  %v5821_v41 = vld [vmem:[#allocation8 + $0x11e8] sm:$0xff]  ;;  %v12843_v61 = vcombine.low %v5816_v33, %v5820_v35 }
 0x425   :  { %10065 = vmatpush1.bf16.msra.mxu0 %v12795_v49  ;;  %v12844_v49 = vcombine.high %v5816_v33, %v5820_v35  ;;  %v12845_v62 = vcombine.low %v5817_v26, %v5821_v41  ;;  %v5857_v33 = vld [vmem:[#allocation8 + $0x1308] sm:$0xff] }
 0x426   :  { %10311 = vmatpush1.bf16.msra.mxu1 %v12797_v50  ;;  %10066 = vmatprep.subr.bf16.mxu0 %v12804_v51  ;;  %v12846_v50 = vcombine.high %v5817_v26, %v5821_v41  ;;  %v5824_v51 = vld [vmem:[#allocation8 + $0x1200] sm:$0xff]  ;;  %v5861_v35 = vld [vmem:[#allocation8 + $0x1328] sm:$0xff]  ;;  %v12877_v41 = vcombine.low %v5849_v53, %v5853_v10 }
 0x427   :  { %10312 = vmatprep.subr.bf16.mxu1 %v12806_v57  ;;  %v5828_v57 = vld [vmem:[#allocation8 + $0x1220] sm:$0xff] }
 0x428   :  { %v12851_v8 = vcombine.low %v5824_v51, %v5828_v57 }
 0x429   :  { %10067 = vmatpush1.bf16.msra.mxu0 %v12803_v0  ;;  %v12852_v0 = vcombine.high %v5824_v51, %v5828_v57  ;;  %v5865_v51 = vld [vmem:[#allocation8 + $0x1348] sm:$0xff] }
 0x42a   :  { %10313 = vmatpush1.bf16.msra.mxu1 %v12805_v1  ;;  %10068 = vmatprep.subr.bf16.mxu0 %v12812_v2  ;;  %v12854_v1 = vcombine.high %v5825_v58, %v5829_v59  ;;  %v5832_v2 = vld [vmem:[#allocation8 + $0x1240] sm:$0xff]  ;;  %v5869_v57 = vld [vmem:[#allocation8 + $0x1368] sm:$0xff]  ;;  %v12885_v59 = vcombine.low %v5857_v33, %v5861_v35 }
 0x42b   :  { %10314 = vmatprep.subr.bf16.mxu1 %v12814_v3  ;;  %v5836_v3 = vld [vmem:[#allocation8 + $0x1260] sm:$0xff] }
 0x42c   :  { %v12859_v55 = vcombine.low %v5832_v2, %v5836_v3 }
 0x42d   :  { %10069 = vmatpush1.bf16.msra.mxu0 %v12811_v34  ;;  %v12860_v34 = vcombine.high %v5832_v2, %v5836_v3  ;;  %v5873_v2 = vld [vmem:[#allocation8 + $0x1388] sm:$0xff] }
 0x42e   :  { %10315 = vmatpush1.bf16.msra.mxu1 %v12813_v9  ;;  %10070 = vmatprep.subr.bf16.mxu0 %v12820_v11  ;;  %v12862_v9 = vcombine.high %v5833_v4, %v5837_v6  ;;  %v5840_v11 = vld [vmem:[#allocation8 + $0x1280] sm:$0xff]  ;;  %v5877_v3 = vld [vmem:[#allocation8 + $0x13a8] sm:$0xff]  ;;  %v830_v6 = vrot.slane %v14945_v63, %v14887_v7 }
 0x42f   :  { %10316 = vmatprep.subr.bf16.mxu1 %v12822_v12  ;;  %v5844_v12 = vld [vmem:[#allocation8 + $0x12a0] sm:$0xff] }
 0x430   :  { %v12867_v13 = vcombine.low %v5840_v11, %v5844_v12 }
 0x431   :  { %10071 = vmatpush1.bf16.msra.mxu0 %v12819_v20  ;;  %v12868_v20 = vcombine.high %v5840_v11, %v5844_v12  ;;  %v5884_v11 = vld [vmem:[#allocation8 + $0x13e0] sm:$0xff]  ;;  %v5881_v12 = vld [vmem:[#allocation8 + $0x13c8] sm:$0xff] }
 0x432   :  { %10317 = vmatpush1.bf16.msra.mxu1 %v12821_v23  ;;  %10072 = vmatprep.subr.bf16.mxu0 %v12828_v42  ;;  %v12870_v23 = vcombine.high %v5841_v14, %v5845_v17  ;;  %v5848_v42 = vld [vmem:[#allocation8 + $0x12c0] sm:$0xff]  ;;  %v5885_v14 = vld [vmem:[#allocation8 + $0x13e8] sm:$0xff] }
 0x433   :  { %10318 = vmatprep.subr.bf16.mxu1 %v12830_v24  ;;  %v5852_v24 = vld [vmem:[#allocation8 + $0x12e0] sm:$0xff]  ;;  %v12910_v63 = vcombine.high %v5881_v12, %v5885_v14 }
 0x434   :  { %v12875_v26 = vcombine.low %v5848_v42, %v5852_v24 }
 0x435   :  { %10073 = vmatpush1.bf16.msra.mxu0 %v12827_v54  ;;  %v12876_v54 = vcombine.high %v5848_v42, %v5852_v24  ;;  %v5892_v42 = vld [vmem:[#allocation8 + $0x1420] sm:$0xff]  ;;  %v5889_v24 = vld [vmem:[#allocation8 + $0x1408] sm:$0xff] }
 0x436   :  { %10319 = vmatpush1.bf16.msra.mxu1 %v12829_v29  ;;  %10074 = vmatprep.subr.bf16.mxu0 %v12836_v19  ;;  %v12878_v29 = vcombine.high %v5849_v53, %v5853_v10  ;;  %v5856_v19 = vld [vmem:[#allocation8 + $0x1300] sm:$0xff]  ;;  %v5893_v53 = vld [vmem:[#allocation8 + $0x1428] sm:$0xff] }
 0x437   :  { %10320 = vmatprep.subr.bf16.mxu1 %v12838_v22  ;;  %v5860_v22 = vld [vmem:[#allocation8 + $0x1320] sm:$0xff] }
 0x438   :  { %v12883_v58 = vcombine.low %v5856_v19, %v5860_v22 }
 0x439   :  { %10075 = vmatpush1.bf16.msra.mxu0 %v12835_v46  ;;  %v12884_v46 = vcombine.high %v5856_v19, %v5860_v22  ;;  %v5896_v19 = vld [vmem:[#allocation8 + $0x1440] sm:$0xff] }
 0x43a   :  { %10321 = vmatpush1.bf16.msra.mxu1 %v12837_v47  ;;  %10076 = vmatprep.subr.bf16.mxu0 %v12844_v49  ;;  %v12886_v47 = vcombine.high %v5857_v33, %v5861_v35  ;;  %v5864_v49 = vld [vmem:[#allocation8 + $0x1340] sm:$0xff]  ;;  %v5897_v35 = vld [vmem:[#allocation8 + $0x1448] sm:$0xff] }
 0x43b   :  { %10322 = vmatprep.subr.bf16.mxu1 %v12846_v50  ;;  %v5868_v50 = vld [vmem:[#allocation8 + $0x1360] sm:$0xff] }
 0x43c   :  { %v12891_v4 = vcombine.low %v5864_v49, %v5868_v50  ;;  %v5900_v22 = vld [vmem:[#allocation8 + $0x1460] sm:$0xff] }
 0x43d   :  { %10077 = vmatpush1.bf16.msra.mxu0 %v12843_v61  ;;  %v12892_v61 = vcombine.high %v5864_v49, %v5868_v50  ;;  %v5904_v49 = vld [vmem:[#allocation8 + $0x1480] sm:$0xff] }
 0x43e   :  { %10323 = vmatpush1.bf16.msra.mxu1 %v12845_v62  ;;  %10078 = vmatprep.subr.bf16.mxu0 %v12852_v0  ;;  %v12894_v62 = vcombine.high %v5865_v51, %v5869_v57  ;;  %v5872_v0 = vld [vmem:[#allocation8 + $0x1380] sm:$0xff] }
 0x43f   :  { %10324 = vmatprep.subr.bf16.mxu1 %v12854_v1  ;;  %v5876_v1 = vld [vmem:[#allocation8 + $0x13a0] sm:$0xff] }
 0x440   :  { %v12899_v17 = vcombine.low %v5872_v0, %v5876_v1  ;;  %v5908_v50 = vld [vmem:[#allocation8 + $0x14a0] sm:$0xff] }
 0x441   :  { %10079 = vmatpush1.bf16.msra.mxu0 %v12851_v8  ;;  %v12893_v8 = vcombine.low %v5865_v51, %v5869_v57  ;;  %v5905_v57 = vld [vmem:[#allocation8 + $0x1488] sm:$0xff] }
 0x442   :  { %10325 = vmatpush1.bf16.msra.mxu1 %v12853_v52  ;;  %10080 = vmatprep.subr.bf16.mxu0 %v12860_v34  ;;  %v12900_v52 = vcombine.high %v5872_v0, %v5876_v1  ;;  %v12902_v34 = vcombine.high %v5873_v2, %v5877_v3  ;;  %v5912_v1 = vld [vmem:[#allocation8 + $0x14c0] sm:$0xff] }
 0x443   :  { %10326 = vmatprep.subr.bf16.mxu1 %v12862_v9  ;;  %v5880_v9 = vld [vmem:[#allocation8 + $0x13c0] sm:$0xff] }
 0x444   :  { %v12907_v10 = vcombine.low %v5880_v9, %v5884_v11 }
 0x445   :  { %10081 = vmatpush1.bf16.msra.mxu0 %v12859_v55  ;;  %v13204_v55 = vadd.f32 %v14951_v16, %v830_v6  ;;  %v5235_v16 = vmax.f32 %v14957_v30, 0.0  ;;  %v12931_v6 = vcombine.low %v5904_v49, %v5908_v50 }
 0x446   :  { %10327 = vmatpush1.bf16.msra.mxu1 %v12861_v5  ;;  %10082 = vmatprep.subr.bf16.mxu0 %v12868_v20  ;;  %v12901_v5 = vcombine.low %v5873_v2, %v5877_v3  ;;  %v12908_v20 = vcombine.high %v5880_v9, %v5884_v11  ;;  %v5916_v2 = vld [vmem:[#allocation8 + $0x14e0] sm:$0xff]  ;;  %v5913_v3 = vld [vmem:[#allocation8 + $0x14c8] sm:$0xff] }
 0x447   :  { %10328 = vmatprep.subr.bf16.mxu1 %v12870_v23  ;;  %v5888_v23 = vld [vmem:[#allocation8 + $0x1400] sm:$0xff]  ;;  %v14981_v51 = vpack.c.bf16 %v5235_v16, %v5235_v16  ;;  %v5937_v16 = vld [vmem:[#allocation8 + $0x1588] sm:$0xff] }
 0x448   :  { %v12915_v33 = vcombine.low %v5888_v23, %v5892_v42  ;;  %v5920_v9 = vld [vmem:[#allocation8 + $0x1500] sm:$0xff] }
 0x449   :  { %10083 = vmatpush1.bf16.msra.mxu0 %v12867_v13  ;;  %v5232_v13 = vmax.f32 %v13204_v55, 0.0  ;;  %v5924_v11 = vld [vmem:[#allocation8 + $0x1520] sm:$0xff] }
 0x44a   :  { %10329 = vmatpush1.bf16.msra.mxu1 %v12869_v27  ;;  %10084 = vmatprep.subr.bf16.mxu0 %v12876_v54  ;;  %v12909_v27 = vcombine.low %v5881_v12, %v5885_v14  ;;  %v12916_v54 = vcombine.high %v5888_v23, %v5892_v42  ;;  %v5921_v12 = vld [vmem:[#allocation8 + $0x1508] sm:$0xff]  ;;  %v5932_v23 = vld [vmem:[#allocation8 + $0x1560] sm:$0xff] }
 0x44b   :  { %10330 = vmatprep.subr.bf16.mxu1 %v12878_v29  ;;  %v12918_v29 = vcombine.high %v5889_v24, %v5893_v53  ;;  %v5925_v14 = vld [vmem:[#allocation8 + $0x1528] sm:$0xff] }
 0x44c   :  { %v5929_v42 = vld [vmem:[#allocation8 + $0x1548] sm:$0xff] }
 0x44d   :  { %10085 = vmatpush1.bf16.msra.mxu0 %v12875_v26  ;;  %v5901_v26 = vld [vmem:[#allocation8 + $0x1468] sm:$0xff] }
 0x44e   :  { %10331 = vmatpush1.bf16.msra.mxu1 %v12877_v41  ;;  %10086 = vmatprep.subr.bf16.mxu0 %v12884_v46  ;;  %v14979_v41 = vpack.c.bf16 %v5232_v13, %v5232_v13  ;;  %v12917_v46 = vcombine.low %v5889_v24, %v5893_v53  ;;  %v12926_v30 = vcombine.high %v5897_v35, %v5901_v26  ;;  %v5933_v24 = vld [vmem:[#allocation8 + $0x1568] sm:$0xff] }
 0x44f   :  { %10332 = vmatprep.subr.bf16.mxu1 %v12886_v47  ;;  %v12924_v47 = vcombine.high %v5896_v19, %v5900_v22  ;;  %v12947_v53 = vcombine.low %v5920_v9, %v5924_v11 }
 0x451   :  { %10087 = vmatpush1.bf16.msra.mxu0 %v12883_v58  ;;  %v5909_v58 = vld [vmem:[#allocation8 + $0x14a8] sm:$0xff] }
 0x452   :  { %10333 = vmatpush1.bf16.msra.mxu1 %v12885_v59  ;;  %10088 = vmatprep.subr.bf16.mxu0 %v12892_v61  ;;  %v12923_v59 = vcombine.low %v5896_v19, %v5900_v22  ;;  %v12925_v61 = vcombine.low %v5897_v35, %v5901_v26  ;;  %v12934_v0 = vcombine.high %v5905_v57, %v5909_v58  ;;  %v5941_v19 = vld [vmem:[#allocation8 + $0x15a8] sm:$0xff] }
 0x453   :  { %10334 = vmatprep.subr.bf16.mxu1 %v12894_v62  ;;  %v12932_v62 = vcombine.high %v5904_v49, %v5908_v50  ;;  %v12966_v26 = vcombine.high %v5937_v16, %v5941_v19  ;;  %v5945_v49 = vld [vmem:[#allocation8 + $0x15c8] sm:$0xff] }
 0x454   :  { %v5949_v50 = vld [vmem:[#allocation8 + $0x15e8] sm:$0xff] }
 0x455   :  { %10089 = vmatpush1.bf16.msra.mxu0 %v12891_v4  ;;  %v5917_v4 = vld [vmem:[#allocation8 + $0x14e8] sm:$0xff] }
 0x456   :  { %10335 = vmatpush1.bf16.msra.mxu1 %v12893_v8  ;;  %10090 = vmatprep.subr.bf16.mxu0 %v12900_v52  ;;  %v12933_v8 = vcombine.low %v5905_v57, %v5909_v58  ;;  %v12940_v52 = vcombine.high %v5912_v1, %v5916_v2  ;;  %v12941_v55 = vcombine.low %v5913_v3, %v5917_v4 }
 0x457   :  { %10336 = vmatprep.subr.bf16.mxu1 %v12902_v34  ;;  %v12942_v34 = vcombine.high %v5913_v3, %v5917_v4  ;;  %v12965_v57 = vcombine.low %v5937_v16, %v5941_v19  ;;  %v12973_v3 = vcombine.low %v5945_v49, %v5949_v50 }
 0x459   :  { %10091 = vmatpush1.bf16.msra.mxu0 %v12899_v17  ;;  %v12939_v17 = vcombine.low %v5912_v1, %v5916_v2  ;;  %v5957_v1 = vld [vmem:[#allocation8 + $0x1628] sm:$0xff] }
 0x45a   :  { %10337 = vmatpush1.bf16.msra.mxu1 %v12901_v5  ;;  %10092 = vmatprep.subr.bf16.mxu0 %v12908_v20  ;;  %v12948_v5 = vcombine.high %v5920_v9, %v5924_v11  ;;  %v12950_v20 = vcombine.high %v5921_v12, %v5925_v14  ;;  %v5965_v9 = vld [vmem:[#allocation8 + $0x1668] sm:$0xff] }
 0x45b   :  { %10338 = vmatprep.subr.bf16.mxu1 %v12910_v63  ;;  %v5928_v63 = vld [vmem:[#allocation8 + $0x1540] sm:$0xff] }
 0x45c   :  { %v12956_v13 = vcombine.high %v5928_v63, %v5932_v23  ;;  %v12955_v22 = vcombine.low %v5928_v63, %v5932_v23  ;;  %v5973_v63 = vld [vmem:[#allocation8 + $0x16a8] sm:$0xff] }
 0x45d   :  { %10093 = vmatpush1.bf16.msra.mxu0 %v12907_v10  ;;  %v12949_v10 = vcombine.low %v5921_v12, %v5925_v14 }
 0x45e   :  { %10339 = vmatpush1.bf16.msra.mxu1 %v12909_v27  ;;  %10103 = vmatprep.subr.bf16.mxu0 %v12916_v54  ;;  %v12958_v27 = vcombine.high %v5929_v42, %v5933_v24  ;;  %v5936_v54 = vld [vmem:[#allocation8 + $0x1580] sm:$0xff] }
 0x45f   :  { %10349 = vmatprep.subr.bf16.mxu1 %v12918_v29  ;;  %v5940_v29 = vld [vmem:[#allocation8 + $0x15a0] sm:$0xff] }
 0x460   :  { %10095 = vmatmul.mubr.bf16.vlgmr.msra.gmra.mrb[12].mxu0 %v14979_v41  ;;  %v12964_v35 = vcombine.high %v5936_v54, %v5940_v29 }
 0x461   :  { %10341 = vmatmul.mubr.bf16.vlgmr.msra.gmra.mrb[12].mxu1 %v14979_v41  ;;  %10104 = vmatpush1.bf16.msra.mxu0 %v12915_v33  ;;  %v12957_v33 = vcombine.low %v5929_v42, %v5933_v24 }
 0x462   :  { %10135 = vmatprep.mubr.bf16.mxu0 %v14981_v51  ;;  %10350 = vmatpush1.bf16.msra.mxu1 %v12917_v46  ;;  %v5944_v46 = vld [vmem:[#allocation8 + $0x15c0] sm:$0xff] }
 0x463   :  { %10381 = vmatprep.mubr.bf16.mxu1 %v14981_v51  ;;  %10105 = vmatprep.subr.bf16.mxu0 %v12924_v47  ;;  %v5948_v47 = vld [vmem:[#allocation8 + $0x15e0] sm:$0xff] }
 0x464   :  { %10351 = vmatprep.subr.bf16.mxu1 %v12926_v30  ;;  %v12963_v30 = vcombine.low %v5936_v54, %v5940_v29  ;;  %v12972_v58 = vcombine.high %v5944_v46, %v5948_v47  ;;  %v12971_v2 = vcombine.low %v5944_v46, %v5948_v47  ;;  %v5981_v54 = vld [vmem:[#allocation8 + $0x16e8] sm:$0xff] }
 0x465   :  { %10106 = vmatpush1.bf16.msra.mxu0 %v12923_v59  ;;  %v12974_v59 = vcombine.high %v5945_v49, %v5949_v50  ;;  %v5989_v46 = vld [vmem:[#allocation8 + $0x1728] sm:$0xff] }
 0x466   :  { %10352 = vmatpush1.bf16.msra.mxu1 %v12925_v61  ;;  %10107 = vmatprep.subr.bf16.mxu0 %v12932_v62  ;;  %v5952_v61 = vld [vmem:[#allocation8 + $0x1600] sm:$0xff] }
 0x467   :  { %10353 = vmatprep.subr.bf16.mxu1 %v12934_v0  ;;  %v5956_v62 = vld [vmem:[#allocation8 + $0x1620] sm:$0xff]  ;;  %v5953_v0 = vld [vmem:[#allocation8 + $0x1608] sm:$0xff] }
 0x468   :  { %v12980_v4 = vcombine.high %v5952_v61, %v5956_v62  ;;  %v12979_v11 = vcombine.low %v5952_v61, %v5956_v62  ;;  %v12981_v12 = vcombine.low %v5953_v0, %v5957_v1  ;;  %v5997_v61 = vld [vmem:[#allocation8 + $0x1768] sm:$0xff] }
 0x469   :  { %10108 = vmatpush1.bf16.msra.mxu0 %v12931_v6  ;;  %v12982_v6 = vcombine.high %v5953_v0, %v5957_v1 }
 0x46a   :  { %10354 = vmatpush1.bf16.msra.mxu1 %v12933_v8  ;;  %10109 = vmatprep.subr.bf16.mxu0 %v12940_v52  ;;  %v5960_v8 = vld [vmem:[#allocation8 + $0x1640] sm:$0xff] }
 0x46b   :  { %10355 = vmatprep.subr.bf16.mxu1 %v12942_v34  ;;  %v5964_v52 = vld [vmem:[#allocation8 + $0x1660] sm:$0xff]  ;;  %v5961_v34 = vld [vmem:[#allocation8 + $0x1648] sm:$0xff] }
 0x46c   :  { %v12988_v14 = vcombine.high %v5960_v8, %v5964_v52  ;;  %v12987_v23 = vcombine.low %v5960_v8, %v5964_v52  ;;  %v12989_v42 = vcombine.low %v5961_v34, %v5965_v9  ;;  %v6005_v8 = vld [vmem:[#allocation8 + $0x17a8] sm:$0xff] }
 0x46d   :  { %10110 = vmatpush1.bf16.msra.mxu0 %v12939_v17  ;;  %v12990_v17 = vcombine.high %v5961_v34, %v5965_v9 }
 0x46e   :  { %10356 = vmatpush1.bf16.msra.mxu1 %v12941_v55  ;;  %10111 = vmatprep.subr.bf16.mxu0 %v12948_v5  ;;  %v5968_v55 = vld [vmem:[#allocation8 + $0x1680] sm:$0xff] }
 0x46f   :  { %10357 = vmatprep.subr.bf16.mxu1 %v12950_v20  ;;  %v5972_v5 = vld [vmem:[#allocation8 + $0x16a0] sm:$0xff]  ;;  %v5969_v20 = vld [vmem:[#allocation8 + $0x1688] sm:$0xff] }
 0x470   :  { %v12996_v24 = vcombine.high %v5968_v55, %v5972_v5  ;;  %v12995_v29 = vcombine.low %v5968_v55, %v5972_v5  ;;  %v12997_v16 = vcombine.low %v5969_v20, %v5973_v63  ;;  %v6013_v55 = vld [vmem:[#allocation8 + $0x17e8] sm:$0xff] }
 0x471   :  { %10112 = vmatpush1.bf16.msra.mxu0 %v12947_v53  ;;  %v12998_v53 = vcombine.high %v5969_v20, %v5973_v63 }
 0x472   :  { %10358 = vmatpush1.bf16.msra.mxu1 %v12949_v10  ;;  %10113 = vmatprep.subr.bf16.mxu0 %v12956_v13  ;;  %v5976_v10 = vld [vmem:[#allocation8 + $0x16c0] sm:$0xff] }
 0x473   :  { %10359 = vmatprep.subr.bf16.mxu1 %v12958_v27  ;;  %v5980_v13 = vld [vmem:[#allocation8 + $0x16e0] sm:$0xff]  ;;  %v5977_v27 = vld [vmem:[#allocation8 + $0x16c8] sm:$0xff] }
 0x474   :  { %v13004_v19 = vcombine.high %v5976_v10, %v5980_v13  ;;  %v13003_v47 = vcombine.low %v5976_v10, %v5980_v13  ;;  %v13005_v49 = vcombine.low %v5977_v27, %v5981_v54  ;;  %v5255_v10 = vld [vmem:[#allocation8 + $0x38] sm:$0xff] }
 0x475   :  { %10114 = vmatpush1.bf16.msra.mxu0 %v12955_v22  ;;  %v13006_v22 = vcombine.high %v5977_v27, %v5981_v54  ;;  %v5234_v27 = vmax.f32 %v14953_v45, 0.0  ;;  %v5266_v45 = vld [vmem:[#allocation8 + $0x90] sm:$0xff] }
 0x476   :  { %10360 = vmatpush1.bf16.msra.mxu1 %v12957_v33  ;;  %10115 = vmatprep.subr.bf16.mxu0 %v12964_v35  ;;  %v5984_v33 = vld [vmem:[#allocation8 + $0x1700] sm:$0xff] }
 0x477   :  { %10361 = vmatprep.subr.bf16.mxu1 %v12966_v26  ;;  %v5988_v35 = vld [vmem:[#allocation8 + $0x1720] sm:$0xff]  ;;  %v5985_v26 = vld [vmem:[#allocation8 + $0x1708] sm:$0xff] }
 0x478   :  { %v13012_v50 = vcombine.high %v5984_v33, %v5988_v35  ;;  %v13011_v62 = vcombine.low %v5984_v33, %v5988_v35  ;;  %v13013_v0 = vcombine.low %v5985_v26, %v5989_v46  ;;  %v5259_v35 = vld [vmem:[#allocation8 + $0x58] sm:$0xff] }
 0x479   :  { %10116 = vmatpush1.bf16.msra.mxu0 %v12963_v30  ;;  %v13014_v30 = vcombine.high %v5985_v26, %v5989_v46  ;;  %v5263_v26 = vld [vmem:[#allocation8 + $0x78] sm:$0xff]  ;;  %v14988_v46 = vpack.c.bf16 %v5234_v27, %v5234_v27  ;;  %v5298_v27 = vld [vmem:[#allocation8 + $0x190] sm:$0xff] }
 0x47a   :  { %10362 = vmatpush1.bf16.msra.mxu1 %v12965_v57  ;;  %10117 = vmatprep.subr.bf16.mxu0 %v12972_v58  ;;  %v5992_v57 = vld [vmem:[#allocation8 + $0x1740] sm:$0xff] }
 0x47b   :  { %10363 = vmatprep.subr.bf16.mxu1 %v12974_v59  ;;  %v5996_v58 = vld [vmem:[#allocation8 + $0x1760] sm:$0xff]  ;;  %v5993_v59 = vld [vmem:[#allocation8 + $0x1748] sm:$0xff] }
 0x47c   :  { %v13020_v1 = vcombine.high %v5992_v57, %v5996_v58  ;;  %v13019_v52 = vcombine.low %v5992_v57, %v5996_v58  ;;  %v13021_v34 = vcombine.low %v5993_v59, %v5997_v61  ;;  %v5267_v57 = vld [vmem:[#allocation8 + $0x98] sm:$0xff] }
 0x47d   :  { %10118 = vmatpush1.bf16.msra.mxu0 %v12971_v2  ;;  %v13022_v2 = vcombine.high %v5993_v59, %v5997_v61  ;;  %v5271_v58 = vld [vmem:[#allocation8 + $0xb8] sm:$0xff]  ;;  %v12289_v61 = vcombine.low %v5259_v35, %v5263_v26 }
 0x47e   :  { %10364 = vmatpush1.bf16.msra.mxu1 %v12973_v3  ;;  %10119 = vmatprep.subr.bf16.mxu0 %v12980_v4  ;;  %v6000_v3 = vld [vmem:[#allocation8 + $0x1780] sm:$0xff] }
 0x47f   :  { %10365 = vmatprep.subr.bf16.mxu1 %v12982_v6  ;;  %v6004_v4 = vld [vmem:[#allocation8 + $0x17a0] sm:$0xff]  ;;  %v6001_v6 = vld [vmem:[#allocation8 + $0x1788] sm:$0xff] }
 0x480   :  { %v13028_v9 = vcombine.high %v6000_v3, %v6004_v4  ;;  %v13027_v5 = vcombine.low %v6000_v3, %v6004_v4  ;;  %v13029_v20 = vcombine.low %v6001_v6, %v6005_v8  ;;  %v5275_v3 = vld [vmem:[#allocation8 + $0xd8] sm:$0xff] }
 0x481   :  { %10120 = vmatpush1.bf16.msra.mxu0 %v12979_v11  ;;  %v13030_v11 = vcombine.high %v6001_v6, %v6005_v8  ;;  %v5279_v4 = vld [vmem:[#allocation8 + $0xf8] sm:$0xff]  ;;  %v12297_v8 = vcombine.low %v5267_v57, %v5271_v58 }
 0x482   :  { %10366 = vmatpush1.bf16.msra.mxu1 %v12981_v12  ;;  %10121 = vmatprep.subr.bf16.mxu0 %v12988_v14  ;;  %v6008_v12 = vld [vmem:[#allocation8 + $0x17c0] sm:$0xff] }
 0x483   :  { %10367 = vmatprep.subr.bf16.mxu1 %v12990_v17  ;;  %v6012_v14 = vld [vmem:[#allocation8 + $0x17e0] sm:$0xff]  ;;  %v6009_v17 = vld [vmem:[#allocation8 + $0x17c8] sm:$0xff] }
 0x484   :  { %v13036_v63 = vcombine.high %v6008_v12, %v6012_v14  ;;  %v13035_v13 = vcombine.low %v6008_v12, %v6012_v14  ;;  %v13037_v54 = vcombine.low %v6009_v17, %v6013_v55  ;;  %v5283_v12 = vld [vmem:[#allocation8 + $0x118] sm:$0xff] }
 0x485   :  { %10122 = vmatpush1.bf16.msra.mxu0 %v12987_v23  ;;  %v13038_v23 = vcombine.high %v6009_v17, %v6013_v55  ;;  %v5287_v14 = vld [vmem:[#allocation8 + $0x138] sm:$0xff]  ;;  %v12305_v17 = vcombine.low %v5275_v3, %v5279_v4 }
 0x486   :  { %10368 = vmatpush1.bf16.msra.mxu1 %v12989_v42  ;;  %10123 = vmatprep.subr.bf16.mxu0 %v12996_v24  ;;  %v5250_v42 = vld [vmem:[#allocation8 + $0x10] sm:$0xff] }
 0x487   :  { %10369 = vmatprep.subr.bf16.mxu1 %v12998_v53  ;;  %v5254_v24 = vld [vmem:[#allocation8 + $0x30] sm:$0xff]  ;;  %v5251_v53 = vld [vmem:[#allocation8 + $0x18] sm:$0xff] }
 0x488   :  { %v12279_v33 = vcombine.low %v5250_v42, %v5254_v24 }
 0x489   :  { %10124 = vmatpush1.bf16.msra.mxu0 %v12995_v29  ;;  %v12280_v29 = vcombine.high %v5250_v42, %v5254_v24  ;;  %v5295_v42 = vld [vmem:[#allocation8 + $0x178] sm:$0xff] }
 0x48a   :  { %10370 = vmatpush1.bf16.msra.mxu1 %v12997_v16  ;;  %10125 = vmatprep.subr.bf16.mxu0 %v13004_v19  ;;  %v12282_v16 = vcombine.high %v5251_v53, %v5255_v10  ;;  %v5258_v19 = vld [vmem:[#allocation8 + $0x50] sm:$0xff] }
 0x48b   :  { %10371 = vmatprep.subr.bf16.mxu1 %v13006_v22  ;;  %v5262_v22 = vld [vmem:[#allocation8 + $0x70] sm:$0xff] }
 0x48c   :  { %v12287_v59 = vcombine.low %v5258_v19, %v5262_v22 }
 0x48d   :  { %10126 = vmatpush1.bf16.msra.mxu0 %v13003_v47  ;;  %v12281_v47 = vcombine.low %v5251_v53, %v5255_v10  ;;  %v12313_v53 = vcombine.low %v5283_v12, %v5287_v14 }
 0x48e   :  { %10372 = vmatpush1.bf16.msra.mxu1 %v13005_v49  ;;  %10127 = vmatprep.subr.bf16.mxu0 %v13012_v50  ;;  %v12288_v49 = vcombine.high %v5258_v19, %v5262_v22  ;;  %v5270_v50 = vld [vmem:[#allocation8 + $0xb0] sm:$0xff] }
 0x48f   :  { %10373 = vmatprep.subr.bf16.mxu1 %v13014_v30  ;;  %v12290_v30 = vcombine.high %v5259_v35, %v5263_v26  ;;  %v12295_v6 = vcombine.low %v5266_v45, %v5270_v50  ;;  %v5306_v26 = vld [vmem:[#allocation8 + $0x1d0] sm:$0xff] }
 0x491   :  { %10128 = vmatpush1.bf16.msra.mxu0 %v13011_v62  ;;  %v12296_v62 = vcombine.high %v5266_v45, %v5270_v50  ;;  %v5311_v45 = vld [vmem:[#allocation8 + $0x1f8] sm:$0xff] }
 0x492   :  { %10374 = vmatpush1.bf16.msra.mxu1 %v13013_v0  ;;  %10129 = vmatprep.subr.bf16.mxu0 %v13020_v1  ;;  %v12298_v0 = vcombine.high %v5267_v57, %v5271_v58  ;;  %v5274_v1 = vld [vmem:[#allocation8 + $0xd0] sm:$0xff] }
 0x493   :  { %10375 = vmatprep.subr.bf16.mxu1 %v13022_v2  ;;  %v5278_v2 = vld [vmem:[#allocation8 + $0xf0] sm:$0xff] }
 0x495   :  { %10130 = vmatpush1.bf16.msra.mxu0 %v13019_v52  ;;  %v12304_v52 = vcombine.high %v5274_v1, %v5278_v2 }
 0x496   :  { %10376 = vmatpush1.bf16.msra.mxu1 %v13021_v34  ;;  %10131 = vmatprep.subr.bf16.mxu0 %v13028_v9  ;;  %v12306_v34 = vcombine.high %v5275_v3, %v5279_v4  ;;  %v5282_v9 = vld [vmem:[#allocation8 + $0x110] sm:$0xff] }
 0x497   :  { %10377 = vmatprep.subr.bf16.mxu1 %v13030_v11  ;;  %v5286_v11 = vld [vmem:[#allocation8 + $0x130] sm:$0xff] }
 0x498   :  { %v12312_v55 = vcombine.high %v5282_v9, %v5286_v11  ;;  %v12311_v24 = vcombine.low %v5282_v9, %v5286_v11 }
 0x499   :  { %10132 = vmatpush1.bf16.msra.mxu0 %v13027_v5  ;;  %v12314_v5 = vcombine.high %v5283_v12, %v5287_v14 }
 0x49a   :  { %10378 = vmatpush1.bf16.msra.mxu1 %v13029_v20  ;;  %10133 = vmatprep.subr.bf16.mxu0 %v13036_v63  ;;  %v5290_v20 = vld [vmem:[#allocation8 + $0x150] sm:$0xff] }
 0x49b   :  { %10379 = vmatprep.subr.bf16.mxu1 %v13038_v23  ;;  %v5294_v63 = vld [vmem:[#allocation8 + $0x170] sm:$0xff]  ;;  %v5291_v23 = vld [vmem:[#allocation8 + $0x158] sm:$0xff] }
 0x49c   :  { %v12320_v10 = vcombine.high %v5290_v20, %v5294_v63  ;;  %v12319_v19 = vcombine.low %v5290_v20, %v5294_v63  ;;  %v12321_v22 = vcombine.low %v5291_v23, %v5295_v42 }
 0x49d   :  { %10134 = vmatpush1.bf16.msra.mxu0 %v13035_v13  ;;  %v12322_v13 = vcombine.high %v5291_v23, %v5295_v42 }
 0x49e   :  { %10380 = vmatpush1.bf16.msra.mxu1 %v13037_v54  ;;  %10390 = vmatprep.subr.bf16.mxu0 %v12280_v29  ;;  %v5302_v54 = vld [vmem:[#allocation8 + $0x1b0] sm:$0xff]  ;;  %v5299_v29 = vld [vmem:[#allocation8 + $0x198] sm:$0xff] }
 0x49f   :  { %10636 = vmatprep.subr.bf16.mxu1 %v12282_v16  ;;  %v5303_v16 = vld [vmem:[#allocation8 + $0x1b8] sm:$0xff]  ;;  %v12327_v50 = vcombine.low %v5298_v27, %v5302_v54 }
 0x4a0   :  { %10136 = vmatmul.mubr.bf16.vlgmr.msra.gmra.mrb[12].mxu0 %v14988_v46  ;;  %v12330_v35 = vcombine.high %v5299_v29, %v5303_v16 }
 0x4a1   :  { %10382 = vmatmul.mubr.bf16.vlgmr.msra.gmra.mrb[12].mxu1 %v14988_v46  ;;  %10391 = vmatpush1.bf16.msra.mxu0 %v12279_v33  ;;  %v12328_v33 = vcombine.high %v5298_v27, %v5302_v54 }
 0x4a2   :  { %10422 = vmatprep.mubr.bf16.mxu0 %v14882_v18  ;;  %10637 = vmatpush1.bf16.msra.mxu1 %v12281_v47  ;;  %v5310_v47 = vld [vmem:[#allocation8 + $0x1f0] sm:$0xff] }
 0x4a3   :  { %10668 = vmatprep.mubr.bf16.mxu1 %v14882_v18  ;;  %10392 = vmatprep.subr.bf16.mxu0 %v12288_v49  ;;  %v12303_v18 = vcombine.low %v5274_v1, %v5278_v2  ;;  %v5307_v49 = vld [vmem:[#allocation8 + $0x1d8] sm:$0xff]  ;;  %v12336_v57 = vcombine.high %v5306_v26, %v5310_v47  ;;  %v12335_v1 = vcombine.low %v5306_v26, %v5310_v47 }
 0x4a4   :  { %10638 = vmatprep.subr.bf16.mxu1 %v12290_v30  ;;  %v12329_v30 = vcombine.low %v5299_v29, %v5303_v16  ;;  %v12338_v58 = vcombine.high %v5307_v49, %v5311_v45  ;;  %v12337_v2 = vcombine.low %v5307_v49, %v5311_v45 }
 0x4a5   :  { %10393 = vmatpush1.bf16.msra.mxu0 %v12287_v59  ;;  %v5314_v59 = vld [vmem:[#allocation8 + $0x210] sm:$0xff] }
 0x4a6   :  { %10639 = vmatpush1.bf16.msra.mxu1 %v12289_v61  ;;  %10394 = vmatprep.subr.bf16.mxu0 %v12296_v62  ;;  %v5318_v61 = vld [vmem:[#allocation8 + $0x230] sm:$0xff]  ;;  %v5315_v62 = vld [vmem:[#allocation8 + $0x218] sm:$0xff] }
 0x4a7   :  { %10640 = vmatprep.subr.bf16.mxu1 %v12298_v0  ;;  %v5319_v0 = vld [vmem:[#allocation8 + $0x238] sm:$0xff]  ;;  %v12344_v3 = vcombine.high %v5314_v59, %v5318_v61  ;;  %v12343_v9 = vcombine.low %v5314_v59, %v5318_v61 }
 0x4a8   :  { %v12346_v4 = vcombine.high %v5315_v62, %v5319_v0  ;;  %v12345_v11 = vcombine.low %v5315_v62, %v5319_v0 }
 0x4a9   :  { %10395 = vmatpush1.bf16.msra.mxu0 %v12295_v6  ;;  %v5322_v6 = vld [vmem:[#allocation8 + $0x250] sm:$0xff] }
 0x4aa   :  { %10641 = vmatpush1.bf16.msra.mxu1 %v12297_v8  ;;  %10396 = vmatprep.subr.bf16.mxu0 %v12304_v52  ;;  %v5326_v8 = vld [vmem:[#allocation8 + $0x270] sm:$0xff]  ;;  %v5323_v52 = vld [vmem:[#allocation8 + $0x258] sm:$0xff] }
 0x4ab   :  { %10642 = vmatprep.subr.bf16.mxu1 %v12306_v34  ;;  %v5327_v34 = vld [vmem:[#allocation8 + $0x278] sm:$0xff]  ;;  %v12352_v12 = vcombine.high %v5322_v6, %v5326_v8  ;;  %v12351_v20 = vcombine.low %v5322_v6, %v5326_v8 }
 0x4ac   :  { %v12354_v14 = vcombine.high %v5323_v52, %v5327_v34  ;;  %v12353_v63 = vcombine.low %v5323_v52, %v5327_v34 }
 0x4ad   :  { %10397 = vmatpush1.bf16.msra.mxu0 %v12303_v18  ;;  %v5330_v18 = vld [vmem:[#allocation8 + $0x290] sm:$0xff] }
 0x4ae   :  { %10643 = vmatpush1.bf16.msra.mxu1 %v12305_v17  ;;  %10398 = vmatprep.subr.bf16.mxu0 %v12312_v55  ;;  %v5334_v17 = vld [vmem:[#allocation8 + $0x2b0] sm:$0xff]  ;;  %v5331_v55 = vld [vmem:[#allocation8 + $0x298] sm:$0xff] }
 0x4af   :  { %10644 = vmatprep.subr.bf16.mxu1 %v12314_v5  ;;  %v5335_v5 = vld [vmem:[#allocation8 + $0x2b8] sm:$0xff]  ;;  %v12360_v23 = vcombine.high %v5330_v18, %v5334_v17  ;;  %v12359_v27 = vcombine.low %v5330_v18, %v5334_v17 }
 0x4b0   :  { %v12362_v42 = vcombine.high %v5331_v55, %v5335_v5  ;;  %v12361_v54 = vcombine.low %v5331_v55, %v5335_v5 }
 0x4b1   :  { %10399 = vmatpush1.bf16.msra.mxu0 %v12311_v24  ;;  %v5338_v24 = vld [vmem:[#allocation8 + $0x2d0] sm:$0xff] }
 0x4b2   :  { %10645 = vmatpush1.bf16.msra.mxu1 %v12313_v53  ;;  %10400 = vmatprep.subr.bf16.mxu0 %v12320_v10  ;;  %v5342_v53 = vld [vmem:[#allocation8 + $0x2f0] sm:$0xff]  ;;  %v5339_v10 = vld [vmem:[#allocation8 + $0x2d8] sm:$0xff] }
 0x4b3   :  { %10646 = vmatprep.subr.bf16.mxu1 %v12322_v13  ;;  %v5343_v13 = vld [vmem:[#allocation8 + $0x2f8] sm:$0xff]  ;;  %v12368_v29 = vcombine.high %v5338_v24, %v5342_v53  ;;  %v12367_v26 = vcombine.low %v5338_v24, %v5342_v53 }
 0x4b4   :  { %v12370_v16 = vcombine.high %v5339_v10, %v5343_v13  ;;  %v12369_v47 = vcombine.low %v5339_v10, %v5343_v13 }
 0x4b5   :  { %10401 = vmatpush1.bf16.msra.mxu0 %v12319_v19  ;;  %v5346_v19 = vld [vmem:[#allocation8 + $0x310] sm:$0xff] }
 0x4b6   :  { %10647 = vmatpush1.bf16.msra.mxu1 %v12321_v22  ;;  %10402 = vmatprep.subr.bf16.mxu0 %v12328_v33  ;;  %v5350_v22 = vld [vmem:[#allocation8 + $0x330] sm:$0xff]  ;;  %v5347_v33 = vld [vmem:[#allocation8 + $0x318] sm:$0xff] }
 0x4b7   :  { %10648 = vmatprep.subr.bf16.mxu1 %v12330_v35  ;;  %v5351_v35 = vld [vmem:[#allocation8 + $0x338] sm:$0xff]  ;;  %v12376_v49 = vcombine.high %v5346_v19, %v5350_v22  ;;  %v12375_v59 = vcombine.low %v5346_v19, %v5350_v22 }
 0x4b8   :  { %v12378_v45 = vcombine.high %v5347_v33, %v5351_v35  ;;  %v12377_v61 = vcombine.low %v5347_v33, %v5351_v35  ;;  %v5391_v19 = vld [vmem:[#allocation8 + $0x478] sm:$0xff]  ;;  %v5394_v35 = vld [vmem:[#allocation8 + $0x490] sm:$0xff] }
 0x4b9   :  { %10403 = vmatpush1.bf16.msra.mxu0 %v12327_v50  ;;  %v5354_v50 = vld [vmem:[#allocation8 + $0x350] sm:$0xff] }
 0x4ba   :  { %10649 = vmatpush1.bf16.msra.mxu1 %v12329_v30  ;;  %10404 = vmatprep.subr.bf16.mxu0 %v12336_v57  ;;  %v5358_v30 = vld [vmem:[#allocation8 + $0x370] sm:$0xff]  ;;  %v5355_v57 = vld [vmem:[#allocation8 + $0x358] sm:$0xff] }
 0x4bb   :  { %10650 = vmatprep.subr.bf16.mxu1 %v12338_v58  ;;  %v5359_v58 = vld [vmem:[#allocation8 + $0x378] sm:$0xff]  ;;  %v12384_v62 = vcombine.high %v5354_v50, %v5358_v30  ;;  %v12383_v6 = vcombine.low %v5354_v50, %v5358_v30 }
 0x4bc   :  { %v12386_v0 = vcombine.high %v5355_v57, %v5359_v58  ;;  %v12385_v8 = vcombine.low %v5355_v57, %v5359_v58 }
 0x4bd   :  { %10405 = vmatpush1.bf16.msra.mxu0 %v12335_v1  ;;  %v5362_v1 = vld [vmem:[#allocation8 + $0x390] sm:$0xff] }
 0x4be   :  { %10651 = vmatpush1.bf16.msra.mxu1 %v12337_v2  ;;  %10406 = vmatprep.subr.bf16.mxu0 %v12344_v3  ;;  %v5366_v2 = vld [vmem:[#allocation8 + $0x3b0] sm:$0xff]  ;;  %v5363_v3 = vld [vmem:[#allocation8 + $0x398] sm:$0xff] }
 0x4bf   :  { %10652 = vmatprep.subr.bf16.mxu1 %v12346_v4  ;;  %v5367_v4 = vld [vmem:[#allocation8 + $0x3b8] sm:$0xff]  ;;  %v12392_v52 = vcombine.high %v5362_v1, %v5366_v2  ;;  %v12391_v18 = vcombine.low %v5362_v1, %v5366_v2 }
 0x4c0   :  { %v12394_v34 = vcombine.high %v5363_v3, %v5367_v4  ;;  %v12393_v17 = vcombine.low %v5363_v3, %v5367_v4  ;;  %v5410_v4 = vld [vmem:[#allocation8 + $0x510] sm:$0xff] }
 0x4c1   :  { %10407 = vmatpush1.bf16.msra.mxu0 %v12343_v9  ;;  %v5370_v9 = vld [vmem:[#allocation8 + $0x3d0] sm:$0xff] }
 0x4c2   :  { %10653 = vmatpush1.bf16.msra.mxu1 %v12345_v11  ;;  %10408 = vmatprep.subr.bf16.mxu0 %v12352_v12  ;;  %v5374_v11 = vld [vmem:[#allocation8 + $0x3f0] sm:$0xff]  ;;  %v5371_v12 = vld [vmem:[#allocation8 + $0x3d8] sm:$0xff] }
 0x4c3   :  { %10654 = vmatprep.subr.bf16.mxu1 %v12354_v14  ;;  %v5375_v14 = vld [vmem:[#allocation8 + $0x3f8] sm:$0xff]  ;;  %v12400_v55 = vcombine.high %v5370_v9, %v5374_v11  ;;  %v12399_v24 = vcombine.low %v5370_v9, %v5374_v11 }
 0x4c4   :  { %v12402_v5 = vcombine.high %v5371_v12, %v5375_v14  ;;  %v12401_v53 = vcombine.low %v5371_v12, %v5375_v14  ;;  %v5418_v12 = vld [vmem:[#allocation8 + $0x550] sm:$0xff] }
 0x4c5   :  { %10409 = vmatpush1.bf16.msra.mxu0 %v12351_v20  ;;  %v5378_v20 = vld [vmem:[#allocation8 + $0x410] sm:$0xff] }
 0x4c6   :  { %10655 = vmatpush1.bf16.msra.mxu1 %v12353_v63  ;;  %10410 = vmatprep.subr.bf16.mxu0 %v12360_v23  ;;  %v5382_v63 = vld [vmem:[#allocation8 + $0x430] sm:$0xff]  ;;  %v5379_v23 = vld [vmem:[#allocation8 + $0x418] sm:$0xff] }
 0x4c7   :  { %10656 = vmatprep.subr.bf16.mxu1 %v12362_v42  ;;  %v5383_v42 = vld [vmem:[#allocation8 + $0x438] sm:$0xff]  ;;  %v12408_v10 = vcombine.high %v5378_v20, %v5382_v63  ;;  %v5422_v14 = vld [vmem:[#allocation8 + $0x570] sm:$0xff] }
 0x4c8   :  { %v12410_v13 = vcombine.high %v5379_v23, %v5383_v42  ;;  %v12409_v22 = vcombine.low %v5379_v23, %v5383_v42  ;;  %v5426_v23 = vld [vmem:[#allocation8 + $0x590] sm:$0xff] }
 0x4c9   :  { %10411 = vmatpush1.bf16.msra.mxu0 %v12359_v27  ;;  %v5386_v27 = vld [vmem:[#allocation8 + $0x450] sm:$0xff] }
 0x4ca   :  { %10657 = vmatpush1.bf16.msra.mxu1 %v12361_v54  ;;  %10412 = vmatprep.subr.bf16.mxu0 %v12368_v29  ;;  %v5390_v54 = vld [vmem:[#allocation8 + $0x470] sm:$0xff]  ;;  %v12407_v29 = vcombine.low %v5378_v20, %v5382_v63  ;;  %v12448_v20 = vcombine.high %v5418_v12, %v5422_v14 }
 0x4cb   :  { %10658 = vmatprep.subr.bf16.mxu1 %v12370_v16  ;;  %v5387_v16 = vld [vmem:[#allocation8 + $0x458] sm:$0xff]  ;;  %v12416_v33 = vcombine.high %v5386_v27, %v5390_v54  ;;  %v12415_v50 = vcombine.low %v5386_v27, %v5390_v54  ;;  %v5430_v42 = vld [vmem:[#allocation8 + $0x5b0] sm:$0xff] }
 0x4cc   :  { %v12417_v30 = vcombine.low %v5387_v16, %v5391_v19  ;;  %v12456_v27 = vcombine.high %v5426_v23, %v5430_v42 }
 0x4cd   :  { %10413 = vmatpush1.bf16.msra.mxu0 %v12367_v26  ;;  %v5398_v26 = vld [vmem:[#allocation8 + $0x4b0] sm:$0xff] }
 0x4ce   :  { %10659 = vmatpush1.bf16.msra.mxu1 %v12369_v47  ;;  %10414 = vmatprep.subr.bf16.mxu0 %v12376_v49  ;;  %v12418_v47 = vcombine.high %v5387_v16, %v5391_v19  ;;  %v5395_v49 = vld [vmem:[#allocation8 + $0x498] sm:$0xff]  ;;  %v12424_v57 = vcombine.high %v5394_v35, %v5398_v26  ;;  %v12423_v1 = vcombine.low %v5394_v35, %v5398_v26  ;;  %v5438_v16 = vld [vmem:[#allocation8 + $0x5f0] sm:$0xff] }
 0x4cf   :  { %10660 = vmatprep.subr.bf16.mxu1 %v12378_v45  ;;  %v5399_v45 = vld [vmem:[#allocation8 + $0x4b8] sm:$0xff] }
 0x4d0   :  { %v12426_v58 = vcombine.high %v5395_v49, %v5399_v45  ;;  %v5435_v19 = vld [vmem:[#allocation8 + $0x5d8] sm:$0xff] }
 0x4d1   :  { %10415 = vmatpush1.bf16.msra.mxu0 %v12375_v59  ;;  %v5402_v59 = vld [vmem:[#allocation8 + $0x4d0] sm:$0xff] }
 0x4d2   :  { %10661 = vmatpush1.bf16.msra.mxu1 %v12377_v61  ;;  %10416 = vmatprep.subr.bf16.mxu0 %v12384_v62  ;;  %v5406_v61 = vld [vmem:[#allocation8 + $0x4f0] sm:$0xff]  ;;  %v5403_v62 = vld [vmem:[#allocation8 + $0x4d8] sm:$0xff] }
 0x4d3   :  { %10662 = vmatprep.subr.bf16.mxu1 %v12386_v0  ;;  %v5407_v0 = vld [vmem:[#allocation8 + $0x4f8] sm:$0xff]  ;;  %v12432_v2 = vcombine.high %v5402_v59, %v5406_v61 }
 0x4d4   :  { %v12434_v3 = vcombine.high %v5403_v62, %v5407_v0 }
 0x4d5   :  { %10417 = vmatpush1.bf16.msra.mxu0 %v12383_v6  ;;  %v5414_v6 = vld [vmem:[#allocation8 + $0x530] sm:$0xff] }
 0x4d6   :  { %10663 = vmatpush1.bf16.msra.mxu1 %v12385_v8  ;;  %10418 = vmatprep.subr.bf16.mxu0 %v12392_v52  ;;  %v5411_v8 = vld [vmem:[#allocation8 + $0x518] sm:$0xff]  ;;  %v12440_v9 = vcombine.high %v5410_v4, %v5414_v6 }
 0x4d7   :  { %10664 = vmatprep.subr.bf16.mxu1 %v12394_v34  ;;  %v5415_v52 = vld [vmem:[#allocation8 + $0x538] sm:$0xff]  ;;  %v12433_v34 = vcombine.low %v5403_v62, %v5407_v0  ;;  %v5450_v62 = vld [vmem:[#allocation8 + $0x650] sm:$0xff] }
 0x4d8   :  { %v12442_v11 = vcombine.high %v5411_v8, %v5415_v52  ;;  %v5454_v0 = vld [vmem:[#allocation8 + $0x670] sm:$0xff] }
 0x4d9   :  { %10419 = vmatpush1.bf16.msra.mxu0 %v12391_v18  ;;  %v5419_v18 = vld [vmem:[#allocation8 + $0x558] sm:$0xff] }
 0x4da   :  { %10665 = vmatpush1.bf16.msra.mxu1 %v12393_v17  ;;  %10420 = vmatprep.subr.bf16.mxu0 %v12400_v55  ;;  %v5423_v17 = vld [vmem:[#allocation8 + $0x578] sm:$0xff]  ;;  %v12439_v55 = vcombine.low %v5410_v4, %v5414_v6  ;;  %v12480_v4 = vcombine.high %v5450_v62, %v5454_v0 }
 0x4db   :  { %10666 = vmatprep.subr.bf16.mxu1 %v12402_v5  ;;  %v12441_v5 = vcombine.low %v5411_v8, %v5415_v52  ;;  %v12450_v63 = vcombine.high %v5419_v18, %v5423_v17  ;;  %v5458_v8 = vld [vmem:[#allocation8 + $0x690] sm:$0xff] }
 0x4dc   :  { %v5462_v52 = vld [vmem:[#allocation8 + $0x6b0] sm:$0xff] }
 0x4dd   :  { %10421 = vmatpush1.bf16.msra.mxu0 %v12399_v24  ;;  %v5427_v24 = vld [vmem:[#allocation8 + $0x598] sm:$0xff] }
 0x4de   :  { %10667 = vmatpush1.bf16.msra.mxu1 %v12401_v53  ;;  %10431 = vmatprep.subr.bf16.mxu0 %v12408_v10  ;;  %v5431_v53 = vld [vmem:[#allocation8 + $0x5b8] sm:$0xff]  ;;  %v12447_v10 = vcombine.low %v5418_v12, %v5422_v14  ;;  %v12488_v12 = vcombine.high %v5458_v8, %v5462_v52 }
 0x4df   :  { %10677 = vmatprep.subr.bf16.mxu1 %v12410_v13  ;;  %v12449_v13 = vcombine.low %v5419_v18, %v5423_v17  ;;  %v12458_v54 = vcombine.high %v5427_v24, %v5431_v53  ;;  %v12457_v35 = vcombine.low %v5427_v24, %v5431_v53  ;;  %v5466_v18 = vld [vmem:[#allocation8 + $0x6d0] sm:$0xff] }
 0x4e0   :  { %10423 = vmatmul.mubr.bf16.vlgmr.msra.gmra.mrb[16].mxu0 %v14898_v56  ;;  %v5470_v17 = vld [vmem:[#allocation8 + $0x6f0] sm:$0xff] }
 0x4e1   :  { %10669 = vmatmul.mubr.bf16.vlgmr.msra.gmra.mrb[16].mxu1 %v14898_v56  ;;  %10432 = vmatpush1.bf16.msra.mxu0 %v12407_v29  ;;  %v12425_v56 = vcombine.low %v5395_v49, %v5399_v45  ;;  %v5434_v29 = vld [vmem:[#allocation8 + $0x5d0] sm:$0xff] }
 0x4e2   :  { %10463 = vmatprep.mubr.bf16.mxu0 %v14900_v60  ;;  %10678 = vmatpush1.bf16.msra.mxu1 %v12409_v22  ;;  %v5439_v22 = vld [vmem:[#allocation8 + $0x5f8] sm:$0xff]  ;;  %v12464_v26 = vcombine.high %v5434_v29, %v5438_v16  ;;  %v5442_v49 = vld [vmem:[#allocation8 + $0x610] sm:$0xff] }
 0x4e3   :  { %10709 = vmatprep.mubr.bf16.mxu1 %v14900_v60  ;;  %10433 = vmatprep.subr.bf16.mxu0 %v12416_v33  ;;  %v12431_v60 = vcombine.low %v5402_v59, %v5406_v61  ;;  %v12455_v33 = vcombine.low %v5426_v23, %v5430_v42  ;;  %v5446_v45 = vld [vmem:[#allocation8 + $0x630] sm:$0xff]  ;;  %v12496_v23 = vcombine.high %v5466_v18, %v5470_v17 }
 0x4e4   :  { %10679 = vmatprep.subr.bf16.mxu1 %v12418_v47  ;;  %v12466_v47 = vcombine.high %v5435_v19, %v5439_v22  ;;  %v12472_v59 = vcombine.high %v5442_v49, %v5446_v45  ;;  %v5474_v24 = vld [vmem:[#allocation8 + $0x710] sm:$0xff] }
 0x4e5   :  { %10434 = vmatpush1.bf16.msra.mxu0 %v12415_v50  ;;  %v5443_v50 = vld [vmem:[#allocation8 + $0x618] sm:$0xff]  ;;  %v5478_v53 = vld [vmem:[#allocation8 + $0x730] sm:$0xff] }
 0x4e6   :  { %10680 = vmatpush1.bf16.msra.mxu1 %v12417_v30  ;;  %10435 = vmatprep.subr.bf16.mxu0 %v12424_v57  ;;  %v5447_v30 = vld [vmem:[#allocation8 + $0x638] sm:$0xff]  ;;  %v12463_v57 = vcombine.low %v5434_v29, %v5438_v16  ;;  %v12504_v29 = vcombine.high %v5474_v24, %v5478_v53 }
 0x4e7   :  { %10681 = vmatprep.subr.bf16.mxu1 %v12426_v58  ;;  %v12465_v58 = vcombine.low %v5435_v19, %v5439_v22  ;;  %v12474_v61 = vcombine.high %v5443_v50, %v5447_v30  ;;  %v5482_v19 = vld [vmem:[#allocation8 + $0x750] sm:$0xff] }
 0x4e8   :  { %v5486_v22 = vld [vmem:[#allocation8 + $0x770] sm:$0xff] }
 0x4e9   :  { %10436 = vmatpush1.bf16.msra.mxu0 %v12423_v1  ;;  %v5451_v1 = vld [vmem:[#allocation8 + $0x658] sm:$0xff] }
 0x4ea   :  { %10682 = vmatpush1.bf16.msra.mxu1 %v12425_v56  ;;  %10437 = vmatprep.subr.bf16.mxu0 %v12432_v2  ;;  %v5455_v56 = vld [vmem:[#allocation8 + $0x678] sm:$0xff]  ;;  %v12471_v2 = vcombine.low %v5442_v49, %v5446_v45  ;;  %v12512_v49 = vcombine.high %v5482_v19, %v5486_v22 }
 0x4eb   :  { %10683 = vmatprep.subr.bf16.mxu1 %v12434_v3  ;;  %v12473_v3 = vcombine.low %v5443_v50, %v5447_v30  ;;  %v12482_v6 = vcombine.high %v5451_v1, %v5455_v56  ;;  %v5490_v50 = vld [vmem:[#allocation8 + $0x790] sm:$0xff] }
 0x4ec   :  { %v5494_v30 = vld [vmem:[#allocation8 + $0x7b0] sm:$0xff] }
 0x4ed   :  { %10438 = vmatpush1.bf16.msra.mxu0 %v12431_v60  ;;  %v5459_v60 = vld [vmem:[#allocation8 + $0x698] sm:$0xff] }
 0x4ee   :  { %10684 = vmatpush1.bf16.msra.mxu1 %v12433_v34  ;;  %10439 = vmatprep.subr.bf16.mxu0 %v12440_v9  ;;  %v5463_v34 = vld [vmem:[#allocation8 + $0x6b8] sm:$0xff]  ;;  %v12479_v9 = vcombine.low %v5450_v62, %v5454_v0  ;;  %v12520_v62 = vcombine.high %v5490_v50, %v5494_v30 }
 0x4ef   :  { %10685 = vmatprep.subr.bf16.mxu1 %v12442_v11  ;;  %v12481_v11 = vcombine.low %v5451_v1, %v5455_v56  ;;  %v12490_v14 = vcombine.high %v5459_v60, %v5463_v34  ;;  %v5498_v1 = vld [vmem:[#allocation8 + $0x7d0] sm:$0xff] }
 0x4f0   :  { %v5502_v56 = vld [vmem:[#allocation8 + $0x7f0] sm:$0xff] }
 0x4f1   :  { %10440 = vmatpush1.bf16.msra.mxu0 %v12439_v55  ;;  %v5467_v55 = vld [vmem:[#allocation8 + $0x6d8] sm:$0xff] }
 0x4f2   :  { %10686 = vmatpush1.bf16.msra.mxu1 %v12441_v5  ;;  %10441 = vmatprep.subr.bf16.mxu0 %v12448_v20  ;;  %v5471_v5 = vld [vmem:[#allocation8 + $0x6f8] sm:$0xff]  ;;  %v12487_v20 = vcombine.low %v5458_v8, %v5462_v52  ;;  %v12528_v8 = vcombine.high %v5498_v1, %v5502_v56 }
 0x4f3   :  { %10687 = vmatprep.subr.bf16.mxu1 %v12450_v63  ;;  %v12489_v63 = vcombine.low %v5459_v60, %v5463_v34  ;;  %v12498_v42 = vcombine.high %v5467_v55, %v5471_v5  ;;  %v5506_v60 = vld [vmem:[#allocation8 + $0x810] sm:$0xff] }
 0x4f4   :  { %v5510_v34 = vld [vmem:[#allocation8 + $0x830] sm:$0xff] }
 0x4f5   :  { %10442 = vmatpush1.bf16.msra.mxu0 %v12447_v10  ;;  %v5475_v10 = vld [vmem:[#allocation8 + $0x718] sm:$0xff] }
 0x4f6   :  { %10688 = vmatpush1.bf16.msra.mxu1 %v12449_v13  ;;  %10443 = vmatprep.subr.bf16.mxu0 %v12456_v27  ;;  %v5479_v13 = vld [vmem:[#allocation8 + $0x738] sm:$0xff]  ;;  %v12495_v27 = vcombine.low %v5466_v18, %v5470_v17  ;;  %v12536_v18 = vcombine.high %v5506_v60, %v5510_v34 }
 0x4f7   :  { %10689 = vmatprep.subr.bf16.mxu1 %v12458_v54  ;;  %v12497_v54 = vcombine.low %v5467_v55, %v5471_v5  ;;  %v12506_v16 = vcombine.high %v5475_v10, %v5479_v13  ;;  %v5514_v55 = vld [vmem:[#allocation8 + $0x850] sm:$0xff] }
 0x4f8   :  { %v5518_v5 = vld [vmem:[#allocation8 + $0x870] sm:$0xff] }
 0x4f9   :  { %10444 = vmatpush1.bf16.msra.mxu0 %v12455_v33  ;;  %v5483_v33 = vld [vmem:[#allocation8 + $0x758] sm:$0xff] }
 0x4fa   :  { %10690 = vmatpush1.bf16.msra.mxu1 %v12457_v35  ;;  %10445 = vmatprep.subr.bf16.mxu0 %v12464_v26  ;;  %v5487_v35 = vld [vmem:[#allocation8 + $0x778] sm:$0xff]  ;;  %v12503_v26 = vcombine.low %v5474_v24, %v5478_v53  ;;  %v12544_v24 = vcombine.high %v5514_v55, %v5518_v5  ;;  %v5522_v53 = vld [vmem:[#allocation8 + $0x890] sm:$0xff] }
 0x4fb   :  { %10691 = vmatprep.subr.bf16.mxu1 %v12466_v47  ;;  %v12505_v47 = vcombine.low %v5475_v10, %v5479_v13  ;;  %v12514_v45 = vcombine.high %v5483_v33, %v5487_v35  ;;  %v5526_v10 = vld [vmem:[#allocation8 + $0x8b0] sm:$0xff] }
 0x4fd   :  { %10446 = vmatpush1.bf16.msra.mxu0 %v12463_v57  ;;  %v5491_v57 = vld [vmem:[#allocation8 + $0x798] sm:$0xff] }
 0x4fe   :  { %10692 = vmatpush1.bf16.msra.mxu1 %v12465_v58  ;;  %10447 = vmatprep.subr.bf16.mxu0 %v12472_v59  ;;  %v5495_v58 = vld [vmem:[#allocation8 + $0x7b8] sm:$0xff]  ;;  %v12511_v59 = vcombine.low %v5482_v19, %v5486_v22  ;;  %v12552_v19 = vcombine.high %v5522_v53, %v5526_v10 }
 0x4ff   :  { %10693 = vmatprep.subr.bf16.mxu1 %v12474_v61  ;;  %v12513_v61 = vcombine.low %v5483_v33, %v5487_v35  ;;  %v12522_v0 = vcombine.high %v5491_v57, %v5495_v58  ;;  %v5530_v33 = vld [vmem:[#allocation8 + $0x8d0] sm:$0xff] }
 0x500   :  { %v5534_v35 = vld [vmem:[#allocation8 + $0x8f0] sm:$0xff] }
 0x501   :  { %10448 = vmatpush1.bf16.msra.mxu0 %v12471_v2  ;;  %v5499_v2 = vld [vmem:[#allocation8 + $0x7d8] sm:$0xff] }
 0x502   :  { %10694 = vmatpush1.bf16.msra.mxu1 %v12473_v3  ;;  %10449 = vmatprep.subr.bf16.mxu0 %v12480_v4  ;;  %v5503_v3 = vld [vmem:[#allocation8 + $0x7f8] sm:$0xff]  ;;  %v12519_v4 = vcombine.low %v5490_v50, %v5494_v30  ;;  %v5538_v30 = vld [vmem:[#allocation8 + $0x910] sm:$0xff] }
 0x503   :  { %10695 = vmatprep.subr.bf16.mxu1 %v12482_v6  ;;  %v12521_v6 = vcombine.low %v5491_v57, %v5495_v58  ;;  %v12530_v52 = vcombine.high %v5499_v2, %v5503_v3  ;;  %v5542_v57 = vld [vmem:[#allocation8 + $0x930] sm:$0xff]  ;;  %v5539_v58 = vld [vmem:[#allocation8 + $0x918] sm:$0xff] }
 0x505   :  { %10450 = vmatpush1.bf16.msra.mxu0 %v12479_v9  ;;  %v5507_v9 = vld [vmem:[#allocation8 + $0x818] sm:$0xff] }
 0x506   :  { %10696 = vmatpush1.bf16.msra.mxu1 %v12481_v11  ;;  %10451 = vmatprep.subr.bf16.mxu0 %v12488_v12  ;;  %v5511_v11 = vld [vmem:[#allocation8 + $0x838] sm:$0xff]  ;;  %v12527_v12 = vcombine.low %v5498_v1, %v5502_v56  ;;  %v5546_v1 = vld [vmem:[#allocation8 + $0x950] sm:$0xff] }
 0x507   :  { %10697 = vmatprep.subr.bf16.mxu1 %v12490_v14  ;;  %v12529_v14 = vcombine.low %v5499_v2, %v5503_v3  ;;  %v12538_v17 = vcombine.high %v5507_v9, %v5511_v11  ;;  %v5550_v56 = vld [vmem:[#allocation8 + $0x970] sm:$0xff]  ;;  %v5547_v2 = vld [vmem:[#allocation8 + $0x958] sm:$0xff] }
 0x508   :  { %v5551_v3 = vld [vmem:[#allocation8 + $0x978] sm:$0xff] }
 0x509   :  { %10452 = vmatpush1.bf16.msra.mxu0 %v12487_v20  ;;  %v12535_v20 = vcombine.low %v5506_v60, %v5510_v34  ;;  %v5554_v60 = vld [vmem:[#allocation8 + $0x990] sm:$0xff] }
 0x50a   :  { %10698 = vmatpush1.bf16.msra.mxu1 %v12489_v63  ;;  %10453 = vmatprep.subr.bf16.mxu0 %v12496_v23  ;;  %v5515_v63 = vld [vmem:[#allocation8 + $0x858] sm:$0xff]  ;;  %v5558_v34 = vld [vmem:[#allocation8 + $0x9b0] sm:$0xff] }
 0x50b   :  { %10699 = vmatprep.subr.bf16.mxu1 %v12498_v42  ;;  %v5519_v23 = vld [vmem:[#allocation8 + $0x878] sm:$0xff]  ;;  %v12537_v42 = vcombine.low %v5507_v9, %v5511_v11 }
 0x50c   :  { %v12546_v13 = vcombine.high %v5515_v63, %v5519_v23  ;;  %v5555_v9 = vld [vmem:[#allocation8 + $0x998] sm:$0xff] }
 0x50d   :  { %10454 = vmatpush1.bf16.msra.mxu0 %v12495_v27  ;;  %v5523_v27 = vld [vmem:[#allocation8 + $0x898] sm:$0xff] }
 0x50e   :  { %10700 = vmatpush1.bf16.msra.mxu1 %v12497_v54  ;;  %10455 = vmatprep.subr.bf16.mxu0 %v12504_v29  ;;  %v5527_v54 = vld [vmem:[#allocation8 + $0x8b8] sm:$0xff]  ;;  %v12543_v29 = vcombine.low %v5514_v55, %v5518_v5  ;;  %v5562_v55 = vld [vmem:[#allocation8 + $0x9d0] sm:$0xff] }
 0x50f   :  { %10701 = vmatprep.subr.bf16.mxu1 %v12506_v16  ;;  %v12545_v16 = vcombine.low %v5515_v63, %v5519_v23  ;;  %v12554_v22 = vcombine.high %v5523_v27, %v5527_v54  ;;  %v5559_v11 = vld [vmem:[#allocation8 + $0x9b8] sm:$0xff]  ;;  %v5566_v5 = vld [vmem:[#allocation8 + $0x9f0] sm:$0xff]  ;;  %v12583_v23 = vcombine.low %v5554_v60, %v5558_v34 }
 0x510   :  { %v5567_v63 = vld [vmem:[#allocation8 + $0x9f8] sm:$0xff] }
 0x511   :  { %10456 = vmatpush1.bf16.msra.mxu0 %v12503_v26  ;;  %v5531_v26 = vld [vmem:[#allocation8 + $0x8d8] sm:$0xff] }
 0x512   :  { %10702 = vmatpush1.bf16.msra.mxu1 %v12505_v47  ;;  %10457 = vmatprep.subr.bf16.mxu0 %v12512_v49  ;;  %v5535_v47 = vld [vmem:[#allocation8 + $0x8f8] sm:$0xff]  ;;  %v12551_v49 = vcombine.low %v5522_v53, %v5526_v10  ;;  %v5570_v10 = vld [vmem:[#allocation8 + $0xa10] sm:$0xff] }
 0x513   :  { %10703 = vmatprep.subr.bf16.mxu1 %v12514_v45  ;;  %v12560_v45 = vcombine.high %v5530_v33, %v5534_v35  ;;  %v12562_v50 = vcombine.high %v5531_v26, %v5535_v47 }
 0x515   :  { %10458 = vmatpush1.bf16.msra.mxu0 %v12511_v59  ;;  %v5543_v59 = vld [vmem:[#allocation8 + $0x938] sm:$0xff] }
 0x516   :  { %10704 = vmatpush1.bf16.msra.mxu1 %v12513_v61  ;;  %10459 = vmatprep.subr.bf16.mxu0 %v12520_v62  ;;  %v12561_v61 = vcombine.low %v5531_v26, %v5535_v47  ;;  %v12568_v62 = vcombine.high %v5538_v30, %v5542_v57  ;;  %v5579_v26 = vld [vmem:[#allocation8 + $0xa58] sm:$0xff] }
 0x517   :  { %10705 = vmatprep.subr.bf16.mxu1 %v12522_v0  ;;  %v12570_v0 = vcombine.high %v5539_v58, %v5543_v59  ;;  %v5583_v47 = vld [vmem:[#allocation8 + $0xa78] sm:$0xff] }
 0x519   :  { %10460 = vmatpush1.bf16.msra.mxu0 %v12519_v4  ;;  %v12567_v4 = vcombine.low %v5538_v30, %v5542_v57  ;;  %v5586_v30 = vld [vmem:[#allocation8 + $0xa90] sm:$0xff] }
 0x51a   :  { %10706 = vmatpush1.bf16.msra.mxu1 %v12521_v6  ;;  %10461 = vmatprep.subr.bf16.mxu0 %v12528_v8  ;;  %v12569_v6 = vcombine.low %v5539_v58, %v5543_v59  ;;  %v12576_v8 = vcombine.high %v5546_v1, %v5550_v56  ;;  %v5590_v57 = vld [vmem:[#allocation8 + $0xab0] sm:$0xff]  ;;  %v5587_v58 = vld [vmem:[#allocation8 + $0xa98] sm:$0xff] }
 0x51b   :  { %10707 = vmatprep.subr.bf16.mxu1 %v12530_v52  ;;  %v12578_v52 = vcombine.high %v5547_v2, %v5551_v3  ;;  %v5591_v59 = vld [vmem:[#allocation8 + $0xab8] sm:$0xff] }
 0x51d   :  { %10462 = vmatpush1.bf16.msra.mxu0 %v12527_v12  ;;  %v12575_v12 = vcombine.low %v5546_v1, %v5550_v56  ;;  %v5594_v1 = vld [vmem:[#allocation8 + $0xad0] sm:$0xff] }
 0x51e   :  { %10708 = vmatpush1.bf16.msra.mxu1 %v12529_v14  ;;  %10472 = vmatprep.subr.bf16.mxu0 %v12536_v18  ;;  %v12577_v14 = vcombine.low %v5547_v2, %v5551_v3  ;;  %v12584_v18 = vcombine.high %v5554_v60, %v5558_v34  ;;  %v5598_v56 = vld [vmem:[#allocation8 + $0xaf0] sm:$0xff]  ;;  %v5595_v2 = vld [vmem:[#allocation8 + $0xad8] sm:$0xff] }
 0x51f   :  { %10718 = vmatprep.subr.bf16.mxu1 %v12538_v17  ;;  %v12586_v17 = vcombine.high %v5555_v9, %v5559_v11  ;;  %v5599_v3 = vld [vmem:[#allocation8 + $0xaf8] sm:$0xff]  ;;  %v5602_v60 = vld [vmem:[#allocation8 + $0xb10] sm:$0xff] }
 0x520   :  { %10464 = vmatmul.mubr.bf16.vlgmr.msra.gmra.mrb[16].mxu0 %v14917_v28  ;;  %v5606_v34 = vld [vmem:[#allocation8 + $0xb30] sm:$0xff] }
 0x521   :  { %10710 = vmatmul.mubr.bf16.vlgmr.msra.gmra.mrb[16].mxu1 %v14917_v28  ;;  %10473 = vmatpush1.bf16.msra.mxu0 %v12535_v20  ;;  %v12553_v28 = vcombine.low %v5523_v27, %v5527_v54  ;;  %v5563_v20 = vld [vmem:[#allocation8 + $0x9d8] sm:$0xff] }
 0x522   :  { %10504 = vmatprep.mubr.bf16.mxu0 %v14919_v15  ;;  %10719 = vmatpush1.bf16.msra.mxu1 %v12537_v42  ;;  %v12585_v42 = vcombine.low %v5555_v9, %v5559_v11  ;;  %v12594_v53 = vcombine.high %v5563_v20, %v5567_v63  ;;  %v5571_v27 = vld [vmem:[#allocation8 + $0xa18] sm:$0xff] }
 0x523   :  { %10750 = vmatprep.mubr.bf16.mxu1 %v14919_v15  ;;  %10474 = vmatprep.subr.bf16.mxu0 %v12544_v24  ;;  %v12559_v15 = vcombine.low %v5530_v33, %v5534_v35  ;;  %v12592_v24 = vcombine.high %v5562_v55, %v5566_v5  ;;  %v5575_v54 = vld [vmem:[#allocation8 + $0xa38] sm:$0xff]  ;;  %v5578_v33 = vld [vmem:[#allocation8 + $0xa50] sm:$0xff] }
 0x524   :  { %10720 = vmatprep.subr.bf16.mxu1 %v12546_v13  ;;  %v5574_v13 = vld [vmem:[#allocation8 + $0xa30] sm:$0xff]  ;;  %v5603_v9 = vld [vmem:[#allocation8 + $0xb18] sm:$0xff] }
 0x525   :  { %10475 = vmatpush1.bf16.msra.mxu0 %v12543_v29  ;;  %v12591_v29 = vcombine.low %v5562_v55, %v5566_v5  ;;  %v5582_v35 = vld [vmem:[#allocation8 + $0xa70] sm:$0xff]  ;;  %v5607_v11 = vld [vmem:[#allocation8 + $0xb38] sm:$0xff] }
 0x526   :  { %10721 = vmatpush1.bf16.msra.mxu1 %v12545_v16  ;;  %10476 = vmatprep.subr.bf16.mxu0 %v12552_v19  ;;  %v12593_v16 = vcombine.low %v5563_v20, %v5567_v63  ;;  %v12600_v19 = vcombine.high %v5570_v10, %v5574_v13  ;;  %v5610_v55 = vld [vmem:[#allocation8 + $0xb50] sm:$0xff]  ;;  %v5611_v20 = vld [vmem:[#allocation8 + $0xb58] sm:$0xff] }
 0x527   :  { %10722 = vmatprep.subr.bf16.mxu1 %v12554_v22  ;;  %v12602_v22 = vcombine.high %v5571_v27, %v5575_v54  ;;  %v5614_v5 = vld [vmem:[#allocation8 + $0xb70] sm:$0xff]  ;;  %v5615_v63 = vld [vmem:[#allocation8 + $0xb78] sm:$0xff] }
 0x529   :  { %10477 = vmatpush1.bf16.msra.mxu0 %v12551_v49  ;;  %v12599_v49 = vcombine.low %v5570_v10, %v5574_v13  ;;  %v5618_v10 = vld [vmem:[#allocation8 + $0xb90] sm:$0xff] }
 0x52a   :  { %10723 = vmatpush1.bf16.msra.mxu1 %v12553_v28  ;;  %10478 = vmatprep.subr.bf16.mxu0 %v12560_v45  ;;  %v12601_v28 = vcombine.low %v5571_v27, %v5575_v54  ;;  %v12608_v45 = vcombine.high %v5578_v33, %v5582_v35  ;;  %v5622_v13 = vld [vmem:[#allocation8 + $0xbb0] sm:$0xff]  ;;  %v5619_v27 = vld [vmem:[#allocation8 + $0xb98] sm:$0xff] }
 0x52b   :  { %10724 = vmatprep.subr.bf16.mxu1 %v12562_v50  ;;  %v12610_v50 = vcombine.high %v5579_v26, %v5583_v47  ;;  %v5623_v54 = vld [vmem:[#allocation8 + $0xbb8] sm:$0xff] }
 0x52d   :  { %10479 = vmatpush1.bf16.msra.mxu0 %v12559_v15  ;;  %v12607_v15 = vcombine.low %v5578_v33, %v5582_v35  ;;  %v5626_v33 = vld [vmem:[#allocation8 + $0xbd0] sm:$0xff] }
 0x52e   :  { %10725 = vmatpush1.bf16.msra.mxu1 %v12561_v61  ;;  %10480 = vmatprep.subr.bf16.mxu0 %v12568_v62  ;;  %v12609_v61 = vcombine.low %v5579_v26, %v5583_v47  ;;  %v12616_v62 = vcombine.high %v5586_v30, %v5590_v57  ;;  %v5630_v35 = vld [vmem:[#allocation8 + $0xbf0] sm:$0xff]  ;;  %v5627_v26 = vld [vmem:[#allocation8 + $0xbd8] sm:$0xff] }
 0x52f   :  { %10726 = vmatprep.subr.bf16.mxu1 %v12570_v0  ;;  %v12618_v0 = vcombine.high %v5587_v58, %v5591_v59  ;;  %v5631_v47 = vld [vmem:[#allocation8 + $0xbf8] sm:$0xff] }
 0x531   :  { %10481 = vmatpush1.bf16.msra.mxu0 %v12567_v4  ;;  %v12615_v4 = vcombine.low %v5586_v30, %v5590_v57  ;;  %v5634_v30 = vld [vmem:[#allocation8 + $0xc10] sm:$0xff] }
 0x532   :  { %10727 = vmatpush1.bf16.msra.mxu1 %v12569_v6  ;;  %10482 = vmatprep.subr.bf16.mxu0 %v12576_v8  ;;  %v12617_v6 = vcombine.low %v5587_v58, %v5591_v59  ;;  %v12624_v8 = vcombine.high %v5594_v1, %v5598_v56  ;;  %v5638_v57 = vld [vmem:[#allocation8 + $0xc30] sm:$0xff]  ;;  %v5635_v58 = vld [vmem:[#allocation8 + $0xc18] sm:$0xff] }
 0x533   :  { %10728 = vmatprep.subr.bf16.mxu1 %v12578_v52  ;;  %v12626_v52 = vcombine.high %v5595_v2, %v5599_v3  ;;  %v5639_v59 = vld [vmem:[#allocation8 + $0xc38] sm:$0xff] }
 0x535   :  { %10483 = vmatpush1.bf16.msra.mxu0 %v12575_v12  ;;  %v12623_v12 = vcombine.low %v5594_v1, %v5598_v56  ;;  %v5642_v1 = vld [vmem:[#allocation8 + $0xc50] sm:$0xff] }
 0x536   :  { %10729 = vmatpush1.bf16.msra.mxu1 %v12577_v14  ;;  %10484 = vmatprep.subr.bf16.mxu0 %v12584_v18  ;;  %v12625_v14 = vcombine.low %v5595_v2, %v5599_v3  ;;  %v12632_v18 = vcombine.high %v5602_v60, %v5606_v34  ;;  %v5646_v56 = vld [vmem:[#allocation8 + $0xc70] sm:$0xff]  ;;  %v12663_v2 = vcombine.low %v5634_v30, %v5638_v57  ;;  %v5643_v3 = vld [vmem:[#allocation8 + $0xc58] sm:$0xff] }
 0x537   :  { %10730 = vmatprep.subr.bf16.mxu1 %v12586_v17  ;;  %v12634_v17 = vcombine.high %v5603_v9, %v5607_v11 }
 0x539   :  { %10485 = vmatpush1.bf16.msra.mxu0 %v12583_v23  ;;  %v12631_v23 = vcombine.low %v5602_v60, %v5606_v34  ;;  %v5654_v60 = vld [vmem:[#allocation8 + $0xcb0] sm:$0xff] }
 0x53a   :  { %10731 = vmatpush1.bf16.msra.mxu1 %v12585_v42  ;;  %10486 = vmatprep.subr.bf16.mxu0 %v12592_v24  ;;  %v12633_v42 = vcombine.low %v5603_v9, %v5607_v11  ;;  %v12640_v24 = vcombine.high %v5610_v55, %v5614_v5  ;;  %v5651_v9 = vld [vmem:[#allocation8 + $0xc98] sm:$0xff] }
 0x53b   :  { %10732 = vmatprep.subr.bf16.mxu1 %v12594_v53  ;;  %v12642_v53 = vcombine.high %v5611_v20, %v5615_v63  ;;  %v5655_v11 = vld [vmem:[#allocation8 + $0xcb8] sm:$0xff] }
 0x53d   :  { %10487 = vmatpush1.bf16.msra.mxu0 %v12591_v29  ;;  %v12639_v29 = vcombine.low %v5610_v55, %v5614_v5  ;;  %v5658_v55 = vld [vmem:[#allocation8 + $0xcd0] sm:$0xff] }
 0x53e   :  { %10733 = vmatpush1.bf16.msra.mxu1 %v12593_v16  ;;  %10488 = vmatprep.subr.bf16.mxu0 %v12600_v19  ;;  %v12641_v16 = vcombine.low %v5611_v20, %v5615_v63  ;;  %v12648_v19 = vcombine.high %v5618_v10, %v5622_v13  ;;  %v5662_v5 = vld [vmem:[#allocation8 + $0xcf0] sm:$0xff]  ;;  %v5659_v20 = vld [vmem:[#allocation8 + $0xcd8] sm:$0xff] }
 0x53f   :  { %10734 = vmatprep.subr.bf16.mxu1 %v12602_v22  ;;  %v12650_v22 = vcombine.high %v5619_v27, %v5623_v54  ;;  %v5663_v63 = vld [vmem:[#allocation8 + $0xcf8] sm:$0xff] }
 0x541   :  { %10489 = vmatpush1.bf16.msra.mxu0 %v12599_v49  ;;  %v12647_v49 = vcombine.low %v5618_v10, %v5622_v13  ;;  %v5670_v10 = vld [vmem:[#allocation8 + $0xd30] sm:$0xff]  ;;  %v5667_v13 = vld [vmem:[#allocation8 + $0xd18] sm:$0xff] }
 0x542   :  { %10735 = vmatpush1.bf16.msra.mxu1 %v12601_v28  ;;  %10490 = vmatprep.subr.bf16.mxu0 %v12608_v45  ;;  %v12649_v28 = vcombine.low %v5619_v27, %v5623_v54  ;;  %v12656_v45 = vcombine.high %v5626_v33, %v5630_v35  ;;  %v5671_v27 = vld [vmem:[#allocation8 + $0xd38] sm:$0xff]  ;;  %v12689_v54 = vcombine.low %v5659_v20, %v5663_v63 }
 0x543   :  { %10736 = vmatprep.subr.bf16.mxu1 %v12610_v50  ;;  %v12658_v50 = vcombine.high %v5627_v26, %v5631_v47 }
 0x545   :  { %10491 = vmatpush1.bf16.msra.mxu0 %v12607_v15  ;;  %v12655_v15 = vcombine.low %v5626_v33, %v5630_v35  ;;  %v5675_v33 = vld [vmem:[#allocation8 + $0xd58] sm:$0xff] }
 0x546   :  { %10737 = vmatpush1.bf16.msra.mxu1 %v12609_v61  ;;  %10492 = vmatprep.subr.bf16.mxu0 %v12616_v62  ;;  %v12657_v61 = vcombine.low %v5627_v26, %v5631_v47  ;;  %v12664_v62 = vcombine.high %v5634_v30, %v5638_v57  ;;  %v5679_v35 = vld [vmem:[#allocation8 + $0xd78] sm:$0xff]  ;;  %v12697_v47 = vcombine.low %v5667_v13, %v5671_v27 }
 0x547   :  { %10738 = vmatprep.subr.bf16.mxu1 %v12618_v0  ;;  %v12666_v0 = vcombine.high %v5635_v58, %v5639_v59  ;;  %v5683_v30 = vld [vmem:[#allocation8 + $0xd98] sm:$0xff] }
 0x548   :  { %v5687_v57 = vld [vmem:[#allocation8 + $0xdb8] sm:$0xff] }
 0x549   :  { %10493 = vmatpush1.bf16.msra.mxu0 %v12615_v4  ;;  %v5647_v4 = vld [vmem:[#allocation8 + $0xc78] sm:$0xff] }
 0x54a   :  { %10739 = vmatpush1.bf16.msra.mxu1 %v12617_v6  ;;  %10494 = vmatprep.subr.bf16.mxu0 %v12624_v8  ;;  %v12665_v6 = vcombine.low %v5635_v58, %v5639_v59  ;;  %v12672_v8 = vcombine.high %v5642_v1, %v5646_v56  ;;  %v12674_v34 = vcombine.high %v5643_v3, %v5647_v4 }
 0x54b   :  { %10740 = vmatprep.subr.bf16.mxu1 %v12626_v52  ;;  %v5650_v52 = vld [vmem:[#allocation8 + $0xc90] sm:$0xff]  ;;  %v12705_v59 = vcombine.low %v5675_v33, %v5679_v35 }
 0x54d   :  { %10495 = vmatpush1.bf16.msra.mxu0 %v12623_v12  ;;  %v12671_v12 = vcombine.low %v5642_v1, %v5646_v56  ;;  %v5694_v1 = vld [vmem:[#allocation8 + $0xdf0] sm:$0xff] }
 0x54e   :  { %10741 = vmatpush1.bf16.msra.mxu1 %v12625_v14  ;;  %10496 = vmatprep.subr.bf16.mxu0 %v12632_v18  ;;  %v12673_v14 = vcombine.low %v5643_v3, %v5647_v4  ;;  %v12680_v18 = vcombine.high %v5650_v52, %v5654_v60  ;;  %v5691_v3 = vld [vmem:[#allocation8 + $0xdd8] sm:$0xff] }
 0x54f   :  { %10742 = vmatprep.subr.bf16.mxu1 %v12634_v17  ;;  %v12682_v17 = vcombine.high %v5651_v9, %v5655_v11  ;;  %v5695_v4 = vld [vmem:[#allocation8 + $0xdf8] sm:$0xff] }
 0x551   :  { %10497 = vmatpush1.bf16.msra.mxu0 %v12631_v23  ;;  %v12679_v23 = vcombine.low %v5650_v52, %v5654_v60 }
 0x552   :  { %10743 = vmatpush1.bf16.msra.mxu1 %v12633_v42  ;;  %10498 = vmatprep.subr.bf16.mxu0 %v12640_v24  ;;  %v12688_v42 = vcombine.high %v5658_v55, %v5662_v5  ;;  %v12690_v24 = vcombine.high %v5659_v20, %v5663_v63  ;;  %v12721_v63 = vcombine.low %v5691_v3, %v5695_v4 }
 0x553   :  { %10744 = vmatprep.subr.bf16.mxu1 %v12642_v53  ;;  %v5666_v53 = vld [vmem:[#allocation8 + $0xd10] sm:$0xff] }
 0x554   :  { %v12695_v26 = vcombine.low %v5666_v53, %v5670_v10 }
 0x555   :  { %10499 = vmatpush1.bf16.msra.mxu0 %v12639_v29  ;;  %v12696_v29 = vcombine.high %v5666_v53, %v5670_v10  ;;  %v5707_v53 = vld [vmem:[#allocation8 + $0xe58] sm:$0xff] }
 0x556   :  { %10745 = vmatpush1.bf16.msra.mxu1 %v12641_v16  ;;  %10500 = vmatprep.subr.bf16.mxu0 %v12648_v19  ;;  %v12698_v16 = vcombine.high %v5667_v13, %v5671_v27  ;;  %v5674_v19 = vld [vmem:[#allocation8 + $0xd50] sm:$0xff]  ;;  %v5711_v10 = vld [vmem:[#allocation8 + $0xe78] sm:$0xff] }
 0x557   :  { %10746 = vmatprep.subr.bf16.mxu1 %v12650_v22  ;;  %v5678_v22 = vld [vmem:[#allocation8 + $0xd70] sm:$0xff] }
 0x558   :  { %v12703_v58 = vcombine.low %v5674_v19, %v5678_v22 }
 0x559   :  { %10501 = vmatpush1.bf16.msra.mxu0 %v12647_v49  ;;  %v12704_v49 = vcombine.high %v5674_v19, %v5678_v22  ;;  %v5715_v19 = vld [vmem:[#allocation8 + $0xe98] sm:$0xff] }
 0x55a   :  { %10747 = vmatpush1.bf16.msra.mxu1 %v12649_v28  ;;  %10502 = vmatprep.subr.bf16.mxu0 %v12656_v45  ;;  %v12706_v28 = vcombine.high %v5675_v33, %v5679_v35  ;;  %v5682_v45 = vld [vmem:[#allocation8 + $0xd90] sm:$0xff]  ;;  %v5719_v22 = vld [vmem:[#allocation8 + $0xeb8] sm:$0xff]  ;;  %v12737_v35 = vcombine.low %v5707_v53, %v5711_v10 }
 0x55b   :  { %10748 = vmatprep.subr.bf16.mxu1 %v12658_v50  ;;  %v5686_v50 = vld [vmem:[#allocation8 + $0xdb0] sm:$0xff] }
 0x55c   :  { %v12711_v52 = vcombine.low %v5682_v45, %v5686_v50 }
 0x55d   :  { %10503 = vmatpush1.bf16.msra.mxu0 %v12655_v15  ;;  %v12712_v15 = vcombine.high %v5682_v45, %v5686_v50  ;;  %v5723_v45 = vld [vmem:[#allocation8 + $0xed8] sm:$0xff] }
 0x55e   :  { %10749 = vmatpush1.bf16.msra.mxu1 %v12657_v61  ;;  %10513 = vmatprep.subr.bf16.mxu0 %v12664_v62  ;;  %v12714_v62 = vcombine.high %v5683_v30, %v5687_v57  ;;  %v5727_v50 = vld [vmem:[#allocation8 + $0xef8] sm:$0xff] }
 0x55f   :  { %10759 = vmatprep.subr.bf16.mxu1 %v12666_v0  ;;  %v5690_v0 = vld [vmem:[#allocation8 + $0xdd0] sm:$0xff] }
 0x560   :  { %10505 = vmatmul.mubr.bf16.vlgmr.msra.gmra.mrb[16].mxu0 %v14937_v43  ;;  %v12719_v20 = vcombine.low %v5690_v0, %v5694_v1 }
 0x561   :  { %10751 = vmatmul.mubr.bf16.vlgmr.msra.gmra.mrb[16].mxu1 %v14937_v43  ;;  %10514 = vmatpush1.bf16.msra.mxu0 %v12663_v2  ;;  %v12681_v43 = vcombine.low %v5651_v9, %v5655_v11  ;;  %v12713_v9 = vcombine.low %v5683_v30, %v5687_v57  ;;  %v12720_v11 = vcombine.high %v5690_v0, %v5694_v1  ;;  %v5731_v0 = vld [vmem:[#allocation8 + $0xf18] sm:$0xff] }
 0x562   :  { %10545 = vmatprep.mubr.bf16.mxu0 %v14939_v21  ;;  %10760 = vmatpush1.bf16.msra.mxu1 %v12665_v6  ;;  %v12745_v57 = vcombine.low %v5715_v19, %v5719_v22  ;;  %v5735_v1 = vld [vmem:[#allocation8 + $0xf38] sm:$0xff] }
 0x563   :  { %10791 = vmatprep.mubr.bf16.mxu1 %v14939_v21  ;;  %10515 = vmatprep.subr.bf16.mxu0 %v12672_v8  ;;  %v12687_v21 = vcombine.low %v5658_v55, %v5662_v5  ;;  %v5699_v55 = vld [vmem:[#allocation8 + $0xe18] sm:$0xff] }
 0x564   :  { %10761 = vmatprep.subr.bf16.mxu1 %v12674_v34  ;;  %v5703_v5 = vld [vmem:[#allocation8 + $0xe38] sm:$0xff] }
 0x565   :  { %10516 = vmatpush1.bf16.msra.mxu0 %v12671_v12  ;;  %v12729_v27 = vcombine.low %v5699_v55, %v5703_v5 }
 0x566   :  { %10762 = vmatpush1.bf16.msra.mxu1 %v12673_v14  ;;  %10517 = vmatprep.subr.bf16.mxu0 %v12680_v18  ;;  %v12722_v14 = vcombine.high %v5691_v3, %v5695_v4  ;;  %v5698_v18 = vld [vmem:[#allocation8 + $0xe10] sm:$0xff]  ;;  %v12753_v4 = vcombine.low %v5723_v45, %v5727_v50 }
 0x567   :  { %10763 = vmatprep.subr.bf16.mxu1 %v12682_v17  ;;  %v5702_v17 = vld [vmem:[#allocation8 + $0xe30] sm:$0xff] }
 0x568   :  { %v12727_v13 = vcombine.low %v5698_v18, %v5702_v17 }
 0x569   :  { %10518 = vmatpush1.bf16.msra.mxu0 %v12679_v23  ;;  %v12728_v23 = vcombine.high %v5698_v18, %v5702_v17 }
 0x56a   :  { %10764 = vmatpush1.bf16.msra.mxu1 %v12681_v43  ;;  %10519 = vmatprep.subr.bf16.mxu0 %v12688_v42  ;;  %v12730_v43 = vcombine.high %v5699_v55, %v5703_v5  ;;  %v5706_v42 = vld [vmem:[#allocation8 + $0xe50] sm:$0xff] }
 0x56b   :  { %10765 = vmatprep.subr.bf16.mxu1 %v12690_v24  ;;  %v5710_v24 = vld [vmem:[#allocation8 + $0xe70] sm:$0xff] }
 0x56c   :  { %v12735_v33 = vcombine.low %v5706_v42, %v5710_v24  ;;  %v5746_v55 = vld [vmem:[#allocation8 + $0xf90] sm:$0xff] }
 0x56d   :  { %10520 = vmatpush1.bf16.msra.mxu0 %v12687_v21  ;;  %v12736_v21 = vcombine.high %v5706_v42, %v5710_v24  ;;  %v5750_v5 = vld [vmem:[#allocation8 + $0xfb0] sm:$0xff] }
 0x56e   :  { %10766 = vmatpush1.bf16.msra.mxu1 %v12689_v54  ;;  %10521 = vmatprep.subr.bf16.mxu0 %v12696_v29  ;;  %v12738_v54 = vcombine.high %v5707_v53, %v5711_v10  ;;  %v5714_v29 = vld [vmem:[#allocation8 + $0xe90] sm:$0xff]  ;;  %v12776_v42 = vcombine.high %v5746_v55, %v5750_v5 }
 0x56f   :  { %10767 = vmatprep.subr.bf16.mxu1 %v12698_v16  ;;  %v5718_v16 = vld [vmem:[#allocation8 + $0xeb0] sm:$0xff] }
 0x570   :  { %v12743_v30 = vcombine.low %v5714_v29, %v5718_v16  ;;  %v5754_v53 = vld [vmem:[#allocation8 + $0xfd0] sm:$0xff] }
 0x571   :  { %10522 = vmatpush1.bf16.msra.mxu0 %v12695_v26  ;;  %v12744_v26 = vcombine.high %v5714_v29, %v5718_v16  ;;  %v5758_v10 = vld [vmem:[#allocation8 + $0xff0] sm:$0xff] }
 0x572   :  { %10768 = vmatpush1.bf16.msra.mxu1 %v12697_v47  ;;  %10523 = vmatprep.subr.bf16.mxu0 %v12704_v49  ;;  %v12746_v47 = vcombine.high %v5715_v19, %v5719_v22  ;;  %v5722_v49 = vld [vmem:[#allocation8 + $0xed0] sm:$0xff]  ;;  %v12784_v29 = vcombine.high %v5754_v53, %v5758_v10 }
 0x573   :  { %v15006_v61 = vpop.f32.mrb[12].mxu0  ;;  %10769 = vmatprep.subr.bf16.mxu1 %v12706_v28  ;;  %v5726_v28 = vld [vmem:[#allocation8 + $0xef0] sm:$0xff] }
 0x574   :  { %v15008_v56 = vpop.f32.mrb[12].mxu1  ;;  %v15010_v2 = vpop.f32.mrb[13].mxu0  ;;  %v12751_v3 = vcombine.low %v5722_v49, %v5726_v28  ;;  %v5762_v19 = vld [vmem:[#allocation8 + $0x1010] sm:$0xff] }
 0x575   :  { %v15012_v6 = vpop.f32.mrb[13].mxu1  ;;  %v10141_v8 = vpop.f32.mrb[14].mxu0  ;;  %10524 = vmatpush1.bf16.msra.mxu0 %v12703_v58  ;;  %v12752_v58 = vcombine.high %v5722_v49, %v5726_v28  ;;  %v5766_v22 = vld [vmem:[#allocation8 + $0x1030] sm:$0xff] }
 0x576   :  { %v10387_v60 = vpop.f32.mrb[14].mxu1  ;;  %10770 = vmatpush1.bf16.msra.mxu1 %v12705_v59  ;;  %v10142_v34 = vpop.f32.mrb[15].mxu0  ;;  %10525 = vmatprep.subr.bf16.mxu0 %v12712_v15  ;;  %v12754_v59 = vcombine.high %v5723_v45, %v5727_v50  ;;  %v5730_v15 = vld [vmem:[#allocation8 + $0xf10] sm:$0xff]  ;;  %v12792_v49 = vcombine.high %v5762_v19, %v5766_v22 }
 0x577   :  { %v10388_v12 = vpop.f32.mrb[15].mxu1  ;;  %10771 = vmatprep.subr.bf16.mxu1 %v12714_v62  ;;  %v5734_v62 = vld [vmem:[#allocation8 + $0xf30] sm:$0xff] }
 0x578   :  { %v12760_v8 = vcombine.high %v5730_v15, %v5734_v62  ;;  %v5738_v60 = vld [vmem:[#allocation8 + $0xf50] sm:$0xff]  ;;  %v12759_v12 = vcombine.low %v5730_v15, %v5734_v62 }
 0x579   :  { %10526 = vmatpush1.bf16.msra.mxu0 %v12711_v52  ;;  %v12762_v52 = vcombine.high %v5731_v0, %v5735_v1  ;;  %v5742_v34 = vld [vmem:[#allocation8 + $0xf70] sm:$0xff] }
 0x57a   :  { %10772 = vmatpush1.bf16.msra.mxu1 %v12713_v9  ;;  %10527 = vmatprep.subr.bf16.mxu0 %v12720_v11  ;;  %v5739_v9 = vld [vmem:[#allocation8 + $0xf58] sm:$0xff]  ;;  %v12768_v18 = vcombine.high %v5738_v60, %v5742_v34  ;;  %v5770_v45 = vld [vmem:[#allocation8 + $0x1050] sm:$0xff] }
 0x57b   :  { %10773 = vmatprep.subr.bf16.mxu1 %v12722_v14  ;;  %v5743_v11 = vld [vmem:[#allocation8 + $0xf78] sm:$0xff]  ;;  %v12761_v14 = vcombine.low %v5731_v0, %v5735_v1  ;;  %v5774_v50 = vld [vmem:[#allocation8 + $0x1070] sm:$0xff] }
 0x57c   :  { %v12770_v17 = vcombine.high %v5739_v9, %v5743_v11  ;;  %v12800_v15 = vcombine.high %v5770_v45, %v5774_v50  ;;  %v5778_v62 = vld [vmem:[#allocation8 + $0x1090] sm:$0xff] }
 0x57d   :  { %10528 = vmatpush1.bf16.msra.mxu0 %v12719_v20  ;;  %v5747_v20 = vld [vmem:[#allocation8 + $0xf98] sm:$0xff]  ;;  %v5782_v0 = vld [vmem:[#allocation8 + $0x10b0] sm:$0xff] }
 0x57e   :  { %10774 = vmatpush1.bf16.msra.mxu1 %v12721_v63  ;;  %10529 = vmatprep.subr.bf16.mxu0 %v12728_v23  ;;  %v5751_v63 = vld [vmem:[#allocation8 + $0xfb8] sm:$0xff]  ;;  %v12767_v23 = vcombine.low %v5738_v60, %v5742_v34  ;;  %v12808_v60 = vcombine.high %v5778_v62, %v5782_v0 }
 0x57f   :  { %10775 = vmatprep.subr.bf16.mxu1 %v12730_v43  ;;  %v12769_v43 = vcombine.low %v5739_v9, %v5743_v11  ;;  %v12778_v24 = vcombine.high %v5747_v20, %v5751_v63  ;;  %v5786_v9 = vld [vmem:[#allocation8 + $0x10d0] sm:$0xff] }
 0x580   :  { %v5790_v11 = vld [vmem:[#allocation8 + $0x10f0] sm:$0xff] }
 0x581   :  { %10530 = vmatpush1.bf16.msra.mxu0 %v12727_v13  ;;  %v5755_v13 = vld [vmem:[#allocation8 + $0xfd8] sm:$0xff] }
 0x582   :  { %10776 = vmatpush1.bf16.msra.mxu1 %v12729_v27  ;;  %10531 = vmatprep.subr.bf16.mxu0 %v12736_v21  ;;  %v5759_v27 = vld [vmem:[#allocation8 + $0xff8] sm:$0xff]  ;;  %v12775_v21 = vcombine.low %v5746_v55, %v5750_v5  ;;  %v5794_v5 = vld [vmem:[#allocation8 + $0x1110] sm:$0xff] }
 0x583   :  { %10777 = vmatprep.subr.bf16.mxu1 %v12738_v54  ;;  %v12777_v54 = vcombine.low %v5747_v20, %v5751_v63  ;;  %v12786_v16 = vcombine.high %v5755_v13, %v5759_v27  ;;  %v5798_v20 = vld [vmem:[#allocation8 + $0x1130] sm:$0xff]  ;;  %v5795_v63 = vld [vmem:[#allocation8 + $0x1118] sm:$0xff] }
 0x585   :  { %10532 = vmatpush1.bf16.msra.mxu0 %v12735_v33  ;;  %v5763_v33 = vld [vmem:[#allocation8 + $0x1018] sm:$0xff] }
 0x586   :  { %10778 = vmatpush1.bf16.msra.mxu1 %v12737_v35  ;;  %10533 = vmatprep.subr.bf16.mxu0 %v12744_v26  ;;  %v5767_v35 = vld [vmem:[#allocation8 + $0x1038] sm:$0xff]  ;;  %v12783_v26 = vcombine.low %v5754_v53, %v5758_v10  ;;  %v5802_v53 = vld [vmem:[#allocation8 + $0x1150] sm:$0xff] }
 0x587   :  { %10779 = vmatprep.subr.bf16.mxu1 %v12746_v47  ;;  %v12785_v47 = vcombine.low %v5755_v13, %v5759_v27  ;;  %v12794_v28 = vcombine.high %v5763_v33, %v5767_v35  ;;  %v5806_v10 = vld [vmem:[#allocation8 + $0x1170] sm:$0xff]  ;;  %v5803_v13 = vld [vmem:[#allocation8 + $0x1158] sm:$0xff] }
 0x588   :  { %v5807_v27 = vld [vmem:[#allocation8 + $0x1178] sm:$0xff] }
 0x589   :  { %10534 = vmatpush1.bf16.msra.mxu0 %v12743_v30  ;;  %v12791_v30 = vcombine.low %v5762_v19, %v5766_v22  ;;  %v5810_v19 = vld [vmem:[#allocation8 + $0x1190] sm:$0xff] }
 0x58a   :  { %10780 = vmatpush1.bf16.msra.mxu1 %v12745_v57  ;;  %10535 = vmatprep.subr.bf16.mxu0 %v12752_v58  ;;  %v5771_v57 = vld [vmem:[#allocation8 + $0x1058] sm:$0xff]  ;;  %v5814_v22 = vld [vmem:[#allocation8 + $0x11b0] sm:$0xff] }
 0x58b   :  { %10781 = vmatprep.subr.bf16.mxu1 %v12754_v59  ;;  %v5775_v58 = vld [vmem:[#allocation8 + $0x1078] sm:$0xff]  ;;  %v12793_v59 = vcombine.low %v5763_v33, %v5767_v35 }
 0x58c   :  { %v12802_v1 = vcombine.high %v5771_v57, %v5775_v58  ;;  %v5811_v33 = vld [vmem:[#allocation8 + $0x1198] sm:$0xff] }
 0x58d   :  { %10536 = vmatpush1.bf16.msra.mxu0 %v12751_v3  ;;  %v5779_v3 = vld [vmem:[#allocation8 + $0x1098] sm:$0xff] }
 0x58e   :  { %10782 = vmatpush1.bf16.msra.mxu1 %v12753_v4  ;;  %10537 = vmatprep.subr.bf16.mxu0 %v12760_v8  ;;  %v5783_v4 = vld [vmem:[#allocation8 + $0x10b8] sm:$0xff]  ;;  %v12799_v8 = vcombine.low %v5770_v45, %v5774_v50  ;;  %v5818_v45 = vld [vmem:[#allocation8 + $0x11d0] sm:$0xff] }
 0x58f   :  { %10783 = vmatprep.subr.bf16.mxu1 %v12762_v52  ;;  %v12801_v52 = vcombine.low %v5771_v57, %v5775_v58  ;;  %v12810_v34 = vcombine.high %v5779_v3, %v5783_v4  ;;  %v5815_v35 = vld [vmem:[#allocation8 + $0x11b8] sm:$0xff]  ;;  %v5822_v50 = vld [vmem:[#allocation8 + $0x11f0] sm:$0xff]  ;;  %v12839_v58 = vcombine.low %v5810_v19, %v5814_v22 }
 0x590   :  { %v5823_v57 = vld [vmem:[#allocation8 + $0x11f8] sm:$0xff] }
 0x591   :  { %10538 = vmatpush1.bf16.msra.mxu0 %v12759_v12  ;;  %v5787_v12 = vld [vmem:[#allocation8 + $0x10d8] sm:$0xff] }
 0x592   :  { %10784 = vmatpush1.bf16.msra.mxu1 %v12761_v14  ;;  %10539 = vmatprep.subr.bf16.mxu0 %v12768_v18  ;;  %v5791_v14 = vld [vmem:[#allocation8 + $0x10f8] sm:$0xff]  ;;  %v12807_v18 = vcombine.low %v5778_v62, %v5782_v0  ;;  %v5826_v0 = vld [vmem:[#allocation8 + $0x1210] sm:$0xff] }
 0x593   :  { %10785 = vmatprep.subr.bf16.mxu1 %v12770_v17  ;;  %v12816_v17 = vcombine.high %v5786_v9, %v5790_v11  ;;  %v12818_v55 = vcombine.high %v5787_v12, %v5791_v14 }
 0x595   :  { %10540 = vmatpush1.bf16.msra.mxu0 %v12767_v23  ;;  %v5799_v23 = vld [vmem:[#allocation8 + $0x1138] sm:$0xff] }
 0x596   :  { %10786 = vmatpush1.bf16.msra.mxu1 %v12769_v43  ;;  %10541 = vmatprep.subr.bf16.mxu0 %v12776_v42  ;;  %v12817_v43 = vcombine.low %v5787_v12, %v5791_v14  ;;  %v12824_v42 = vcombine.high %v5794_v5, %v5798_v20  ;;  %v5835_v12 = vld [vmem:[#allocation8 + $0x1258] sm:$0xff] }
 0x597   :  { %10787 = vmatprep.subr.bf16.mxu1 %v12778_v24  ;;  %v12826_v24 = vcombine.high %v5795_v63, %v5799_v23  ;;  %v5839_v14 = vld [vmem:[#allocation8 + $0x1278] sm:$0xff] }
 0x599   :  { %10542 = vmatpush1.bf16.msra.mxu0 %v12775_v21  ;;  %v12823_v21 = vcombine.low %v5794_v5, %v5798_v20  ;;  %v5842_v5 = vld [vmem:[#allocation8 + $0x1290] sm:$0xff] }
 0x59a   :  { %10788 = vmatpush1.bf16.msra.mxu1 %v12777_v54  ;;  %10543 = vmatprep.subr.bf16.mxu0 %v12784_v29  ;;  %v12825_v54 = vcombine.low %v5795_v63, %v5799_v23  ;;  %v12832_v29 = vcombine.high %v5802_v53, %v5806_v10  ;;  %v5846_v20 = vld [vmem:[#allocation8 + $0x12b0] sm:$0xff]  ;;  %v5843_v63 = vld [vmem:[#allocation8 + $0x1298] sm:$0xff] }
 0x59b   :  { %10789 = vmatprep.subr.bf16.mxu1 %v12786_v16  ;;  %v12834_v16 = vcombine.high %v5803_v13, %v5807_v27  ;;  %v5847_v23 = vld [vmem:[#allocation8 + $0x12b8] sm:$0xff] }
 0x59d   :  { %10544 = vmatpush1.bf16.msra.mxu0 %v12783_v26  ;;  %v12831_v26 = vcombine.low %v5802_v53, %v5806_v10  ;;  %v5850_v53 = vld [vmem:[#allocation8 + $0x12d0] sm:$0xff] }
 0x59e   :  { %10790 = vmatpush1.bf16.msra.mxu1 %v12785_v47  ;;  %10554 = vmatprep.subr.bf16.mxu0 %v12792_v49  ;;  %v12833_v47 = vcombine.low %v5803_v13, %v5807_v27  ;;  %v12840_v49 = vcombine.high %v5810_v19, %v5814_v22  ;;  %v5854_v10 = vld [vmem:[#allocation8 + $0x12f0] sm:$0xff]  ;;  %v5851_v13 = vld [vmem:[#allocation8 + $0x12d8] sm:$0xff] }
 0x59f   :  { %10800 = vmatprep.subr.bf16.mxu1 %v12794_v28  ;;  %v12842_v28 = vcombine.high %v5811_v33, %v5815_v35  ;;  %v5855_v27 = vld [vmem:[#allocation8 + $0x12f8] sm:$0xff]  ;;  %v5858_v19 = vld [vmem:[#allocation8 + $0x1310] sm:$0xff] }
 0x5a0   :  { %10546 = vmatmul.mubr.bf16.vlgmr.msra.gmra.mrb[16].mxu0 %v14967_v32  ;;  %v5862_v22 = vld [vmem:[#allocation8 + $0x1330] sm:$0xff] }
 0x5a1   :  { %10792 = vmatmul.mubr.bf16.vlgmr.msra.gmra.mrb[16].mxu1 %v14967_v32  ;;  %10555 = vmatpush1.bf16.msra.mxu0 %v12791_v30  ;;  %v12809_v32 = vcombine.low %v5779_v3, %v5783_v4  ;;  %v5819_v30 = vld [vmem:[#allocation8 + $0x11d8] sm:$0xff] }
 0x5a2   :  { %10586 = vmatprep.mubr.bf16.mxu0 %v14969_v37  ;;  %10801 = vmatpush1.bf16.msra.mxu1 %v12793_v59  ;;  %v12841_v59 = vcombine.low %v5811_v33, %v5815_v35  ;;  %v12850_v62 = vcombine.high %v5819_v30, %v5823_v57  ;;  %v5827_v3 = vld [vmem:[#allocation8 + $0x1218] sm:$0xff] }
 0x5a3   :  { %10832 = vmatprep.mubr.bf16.mxu1 %v14969_v37  ;;  %10556 = vmatprep.subr.bf16.mxu0 %v12800_v15  ;;  %v12815_v37 = vcombine.low %v5786_v9, %v5790_v11  ;;  %v12848_v15 = vcombine.high %v5818_v45, %v5822_v50  ;;  %v5831_v4 = vld [vmem:[#allocation8 + $0x1238] sm:$0xff]  ;;  %v5834_v9 = vld [vmem:[#allocation8 + $0x1250] sm:$0xff] }
 0x5a4   :  { %10802 = vmatprep.subr.bf16.mxu1 %v12802_v1  ;;  %v5830_v1 = vld [vmem:[#allocation8 + $0x1230] sm:$0xff]  ;;  %v5859_v33 = vld [vmem:[#allocation8 + $0x1318] sm:$0xff] }
 0x5a5   :  { %10557 = vmatpush1.bf16.msra.mxu0 %v12799_v8  ;;  %v12847_v8 = vcombine.low %v5818_v45, %v5822_v50  ;;  %v5838_v11 = vld [vmem:[#allocation8 + $0x1270] sm:$0xff]  ;;  %v5863_v35 = vld [vmem:[#allocation8 + $0x1338] sm:$0xff] }
 0x5a6   :  { %10803 = vmatpush1.bf16.msra.mxu1 %v12801_v52  ;;  %10558 = vmatprep.subr.bf16.mxu0 %v12808_v60  ;;  %v12849_v52 = vcombine.low %v5819_v30, %v5823_v57  ;;  %v12856_v60 = vcombine.high %v5826_v0, %v5830_v1  ;;  %v5866_v45 = vld [vmem:[#allocation8 + $0x1350] sm:$0xff]  ;;  %v5867_v30 = vld [vmem:[#allocation8 + $0x1358] sm:$0xff] }
 0x5a7   :  { %10804 = vmatprep.subr.bf16.mxu1 %v12810_v34  ;;  %v12858_v34 = vcombine.high %v5827_v3, %v5831_v4  ;;  %v5870_v50 = vld [vmem:[#allocation8 + $0x1370] sm:$0xff]  ;;  %v5871_v57 = vld [vmem:[#allocation8 + $0x1378] sm:$0xff] }
 0x5a9   :  { %10559 = vmatpush1.bf16.msra.mxu0 %v12807_v18  ;;  %v12855_v18 = vcombine.low %v5826_v0, %v5830_v1  ;;  %v5874_v0 = vld [vmem:[#allocation8 + $0x1390] sm:$0xff] }
 0x5aa   :  { %10805 = vmatpush1.bf16.msra.mxu1 %v12809_v32  ;;  %10560 = vmatprep.subr.bf16.mxu0 %v12816_v17  ;;  %v12857_v32 = vcombine.low %v5827_v3, %v5831_v4  ;;  %v12864_v17 = vcombine.high %v5834_v9, %v5838_v11  ;;  %v5878_v1 = vld [vmem:[#allocation8 + $0x13b0] sm:$0xff]  ;;  %v5875_v3 = vld [vmem:[#allocation8 + $0x1398] sm:$0xff] }
 0x5ab   :  { %10806 = vmatprep.subr.bf16.mxu1 %v12818_v55  ;;  %v12866_v55 = vcombine.high %v5835_v12, %v5839_v14  ;;  %v5879_v4 = vld [vmem:[#allocation8 + $0x13b8] sm:$0xff] }
 0x5ad   :  { %10561 = vmatpush1.bf16.msra.mxu0 %v12815_v37  ;;  %v12863_v37 = vcombine.low %v5834_v9, %v5838_v11  ;;  %v5882_v9 = vld [vmem:[#allocation8 + $0x13d0] sm:$0xff] }
 0x5ae   :  { %10807 = vmatpush1.bf16.msra.mxu1 %v12817_v43  ;;  %10562 = vmatprep.subr.bf16.mxu0 %v12824_v42  ;;  %v12865_v43 = vcombine.low %v5835_v12, %v5839_v14  ;;  %v12872_v42 = vcombine.high %v5842_v5, %v5846_v20  ;;  %v5886_v11 = vld [vmem:[#allocation8 + $0x13f0] sm:$0xff]  ;;  %v5883_v12 = vld [vmem:[#allocation8 + $0x13d8] sm:$0xff] }
 0x5af   :  { %10808 = vmatprep.subr.bf16.mxu1 %v12826_v24  ;;  %v12874_v24 = vcombine.high %v5843_v63, %v5847_v23  ;;  %v5887_v14 = vld [vmem:[#allocation8 + $0x13f8] sm:$0xff] }
 0x5b1   :  { %10563 = vmatpush1.bf16.msra.mxu0 %v12823_v21  ;;  %v12871_v21 = vcombine.low %v5842_v5, %v5846_v20  ;;  %v5890_v5 = vld [vmem:[#allocation8 + $0x1410] sm:$0xff] }
 0x5b2   :  { %10809 = vmatpush1.bf16.msra.mxu1 %v12825_v54  ;;  %10564 = vmatprep.subr.bf16.mxu0 %v12832_v29  ;;  %v12873_v54 = vcombine.low %v5843_v63, %v5847_v23  ;;  %v12880_v29 = vcombine.high %v5850_v53, %v5854_v10  ;;  %v5894_v20 = vld [vmem:[#allocation8 + $0x1430] sm:$0xff]  ;;  %v5891_v63 = vld [vmem:[#allocation8 + $0x1418] sm:$0xff] }
 0x5b3   :  { %10810 = vmatprep.subr.bf16.mxu1 %v12834_v16  ;;  %v12882_v16 = vcombine.high %v5851_v13, %v5855_v27  ;;  %v5895_v23 = vld [vmem:[#allocation8 + $0x1438] sm:$0xff] }
 0x5b5   :  { %10565 = vmatpush1.bf16.msra.mxu0 %v12831_v26  ;;  %v12879_v26 = vcombine.low %v5850_v53, %v5854_v10  ;;  %v5898_v53 = vld [vmem:[#allocation8 + $0x1450] sm:$0xff] }
 0x5b6   :  { %10811 = vmatpush1.bf16.msra.mxu1 %v12833_v47  ;;  %10566 = vmatprep.subr.bf16.mxu0 %v12840_v49  ;;  %v12881_v47 = vcombine.low %v5851_v13, %v5855_v27  ;;  %v12888_v49 = vcombine.high %v5858_v19, %v5862_v22  ;;  %v5902_v10 = vld [vmem:[#allocation8 + $0x1470] sm:$0xff]  ;;  %v12919_v13 = vcombine.low %v5890_v5, %v5894_v20  ;;  %v5899_v27 = vld [vmem:[#allocation8 + $0x1458] sm:$0xff] }
 0x5b7   :  { %10812 = vmatprep.subr.bf16.mxu1 %v12842_v28  ;;  %v12890_v28 = vcombine.high %v5859_v33, %v5863_v35 }
 0x5b9   :  { %10567 = vmatpush1.bf16.msra.mxu0 %v12839_v58  ;;  %v12887_v58 = vcombine.low %v5858_v19, %v5862_v22  ;;  %v5910_v19 = vld [vmem:[#allocation8 + $0x14b0] sm:$0xff] }
 0x5ba   :  { %10813 = vmatpush1.bf16.msra.mxu1 %v12841_v59  ;;  %10568 = vmatprep.subr.bf16.mxu0 %v12848_v15  ;;  %v12889_v59 = vcombine.low %v5859_v33, %v5863_v35  ;;  %v12896_v15 = vcombine.high %v5866_v45, %v5870_v50  ;;  %v5907_v33 = vld [vmem:[#allocation8 + $0x1498] sm:$0xff] }
 0x5bb   :  { %10814 = vmatprep.subr.bf16.mxu1 %v12850_v62  ;;  %v12898_v62 = vcombine.high %v5867_v30, %v5871_v57  ;;  %v5911_v35 = vld [vmem:[#allocation8 + $0x14b8] sm:$0xff] }
 0x5bd   :  { %10569 = vmatpush1.bf16.msra.mxu0 %v12847_v8  ;;  %v12895_v8 = vcombine.low %v5866_v45, %v5870_v50  ;;  %v5914_v45 = vld [vmem:[#allocation8 + $0x14d0] sm:$0xff] }
 0x5be   :  { %10815 = vmatpush1.bf16.msra.mxu1 %v12849_v52  ;;  %10570 = vmatprep.subr.bf16.mxu0 %v12856_v60  ;;  %v12897_v52 = vcombine.low %v5867_v30, %v5871_v57  ;;  %v12904_v60 = vcombine.high %v5874_v0, %v5878_v1  ;;  %v5918_v50 = vld [vmem:[#allocation8 + $0x14f0] sm:$0xff]  ;;  %v5915_v30 = vld [vmem:[#allocation8 + $0x14d8] sm:$0xff] }
 0x5bf   :  { %10816 = vmatprep.subr.bf16.mxu1 %v12858_v34  ;;  %v12906_v34 = vcombine.high %v5875_v3, %v5879_v4  ;;  %v5919_v57 = vld [vmem:[#allocation8 + $0x14f8] sm:$0xff] }
 0x5c1   :  { %10571 = vmatpush1.bf16.msra.mxu0 %v12855_v18  ;;  %v12903_v18 = vcombine.low %v5874_v0, %v5878_v1  ;;  %v5926_v0 = vld [vmem:[#allocation8 + $0x1530] sm:$0xff]  ;;  %v5923_v1 = vld [vmem:[#allocation8 + $0x1518] sm:$0xff] }
 0x5c2   :  { %10817 = vmatpush1.bf16.msra.mxu1 %v12857_v32  ;;  %10572 = vmatprep.subr.bf16.mxu0 %v12864_v17  ;;  %v12905_v32 = vcombine.low %v5875_v3, %v5879_v4  ;;  %v12912_v17 = vcombine.high %v5882_v9, %v5886_v11  ;;  %v5927_v3 = vld [vmem:[#allocation8 + $0x1538] sm:$0xff]  ;;  %v12945_v4 = vcombine.low %v5915_v30, %v5919_v57 }
 0x5c3   :  { %10818 = vmatprep.subr.bf16.mxu1 %v12866_v55  ;;  %v12914_v55 = vcombine.high %v5883_v12, %v5887_v14 }
 0x5c5   :  { %10573 = vmatpush1.bf16.msra.mxu0 %v12863_v37  ;;  %v12911_v37 = vcombine.low %v5882_v9, %v5886_v11  ;;  %v5931_v9 = vld [vmem:[#allocation8 + $0x1558] sm:$0xff] }
 0x5c6   :  { %10819 = vmatpush1.bf16.msra.mxu1 %v12865_v43  ;;  %10574 = vmatprep.subr.bf16.mxu0 %v12872_v42  ;;  %v12913_v43 = vcombine.low %v5883_v12, %v5887_v14  ;;  %v12920_v42 = vcombine.high %v5890_v5, %v5894_v20  ;;  %v5935_v11 = vld [vmem:[#allocation8 + $0x1578] sm:$0xff]  ;;  %v12953_v14 = vcombine.low %v5923_v1, %v5927_v3 }
 0x5c7   :  { %10820 = vmatprep.subr.bf16.mxu1 %v12874_v24  ;;  %v12922_v24 = vcombine.high %v5891_v63, %v5895_v23  ;;  %v5939_v5 = vld [vmem:[#allocation8 + $0x1598] sm:$0xff] }
 0x5c8   :  { %v5943_v20 = vld [vmem:[#allocation8 + $0x15b8] sm:$0xff] }
 0x5c9   :  { %10575 = vmatpush1.bf16.msra.mxu0 %v12871_v21  ;;  %v5903_v21 = vld [vmem:[#allocation8 + $0x1478] sm:$0xff] }
 0x5ca   :  { %10821 = vmatpush1.bf16.msra.mxu1 %v12873_v54  ;;  %10576 = vmatprep.subr.bf16.mxu0 %v12880_v29  ;;  %v12921_v54 = vcombine.low %v5891_v63, %v5895_v23  ;;  %v12928_v29 = vcombine.high %v5898_v53, %v5902_v10  ;;  %v12930_v22 = vcombine.high %v5899_v27, %v5903_v21 }
 0x5cb   :  { %10822 = vmatprep.subr.bf16.mxu1 %v12882_v16  ;;  %v5906_v16 = vld [vmem:[#allocation8 + $0x1490] sm:$0xff]  ;;  %v12961_v23 = vcombine.low %v5931_v9, %v5935_v11 }
 0x5cd   :  { %10577 = vmatpush1.bf16.msra.mxu0 %v12879_v26  ;;  %v12927_v26 = vcombine.low %v5898_v53, %v5902_v10  ;;  %v5947_v53 = vld [vmem:[#allocation8 + $0x15d8] sm:$0xff] }
 0x5ce   :  { %10823 = vmatpush1.bf16.msra.mxu1 %v12881_v47  ;;  %10578 = vmatprep.subr.bf16.mxu0 %v12888_v49  ;;  %v12929_v47 = vcombine.low %v5899_v27, %v5903_v21  ;;  %v12936_v49 = vcombine.high %v5906_v16, %v5910_v19  ;;  %v5951_v10 = vld [vmem:[#allocation8 + $0x15f8] sm:$0xff]  ;;  %v12969_v27 = vcombine.low %v5939_v5, %v5943_v20 }
 0x5cf   :  { %10824 = vmatprep.subr.bf16.mxu1 %v12890_v28  ;;  %v12938_v28 = vcombine.high %v5907_v33, %v5911_v35 }
 0x5d1   :  { %10579 = vmatpush1.bf16.msra.mxu0 %v12887_v58  ;;  %v12935_v58 = vcombine.low %v5906_v16, %v5910_v19  ;;  %v5958_v16 = vld [vmem:[#allocation8 + $0x1630] sm:$0xff]  ;;  %v5955_v19 = vld [vmem:[#allocation8 + $0x1618] sm:$0xff] }
 0x5d2   :  { %10825 = vmatpush1.bf16.msra.mxu1 %v12889_v59  ;;  %10580 = vmatprep.subr.bf16.mxu0 %v12896_v15  ;;  %v12944_v59 = vcombine.high %v5914_v45, %v5918_v50  ;;  %v12946_v15 = vcombine.high %v5915_v30, %v5919_v57 }
 0x5d3   :  { %10826 = vmatprep.subr.bf16.mxu1 %v12898_v62  ;;  %v5922_v62 = vld [vmem:[#allocation8 + $0x1510] sm:$0xff] }
 0x5d4   :  { %v12951_v12 = vcombine.low %v5922_v62, %v5926_v0 }
 0x5d5   :  { %10581 = vmatpush1.bf16.msra.mxu0 %v12895_v8  ;;  %v12952_v8 = vcombine.high %v5922_v62, %v5926_v0  ;;  %v5971_v62 = vld [vmem:[#allocation8 + $0x1698] sm:$0xff] }
 0x5d6   :  { %10827 = vmatpush1.bf16.msra.mxu1 %v12897_v52  ;;  %10582 = vmatprep.subr.bf16.mxu0 %v12904_v60  ;;  %v12954_v52 = vcombine.high %v5923_v1, %v5927_v3  ;;  %v5930_v60 = vld [vmem:[#allocation8 + $0x1550] sm:$0xff]  ;;  %v5975_v0 = vld [vmem:[#allocation8 + $0x16b8] sm:$0xff] }
 0x5d7   :  { %10828 = vmatprep.subr.bf16.mxu1 %v12906_v34  ;;  %v5934_v34 = vld [vmem:[#allocation8 + $0x1570] sm:$0xff] }
 0x5d8   :  { %v12959_v63 = vcombine.low %v5930_v60, %v5934_v34 }
 0x5d9   :  { %10583 = vmatpush1.bf16.msra.mxu0 %v12903_v18  ;;  %v12960_v18 = vcombine.high %v5930_v60, %v5934_v34  ;;  %v5979_v60 = vld [vmem:[#allocation8 + $0x16d8] sm:$0xff] }
 0x5da   :  { %10829 = vmatpush1.bf16.msra.mxu1 %v12905_v32  ;;  %10584 = vmatprep.subr.bf16.mxu0 %v12912_v17  ;;  %v12962_v32 = vcombine.high %v5931_v9, %v5935_v11  ;;  %v5938_v17 = vld [vmem:[#allocation8 + $0x1590] sm:$0xff]  ;;  %v5983_v34 = vld [vmem:[#allocation8 + $0x16f8] sm:$0xff]  ;;  %v13001_v11 = vcombine.low %v5971_v62, %v5975_v0 }
 0x5db   :  { %10830 = vmatprep.subr.bf16.mxu1 %v12914_v55  ;;  %v5942_v55 = vld [vmem:[#allocation8 + $0x15b0] sm:$0xff] }
 0x5dd   :  { %10585 = vmatpush1.bf16.msra.mxu0 %v12911_v37  ;;  %v12968_v37 = vcombine.high %v5938_v17, %v5942_v55 }
 0x5de   :  { %10831 = vmatpush1.bf16.msra.mxu1 %v12913_v43  ;;  %10595 = vmatprep.subr.bf16.mxu0 %v12920_v42  ;;  %v12970_v43 = vcombine.high %v5939_v5, %v5943_v20  ;;  %v5946_v42 = vld [vmem:[#allocation8 + $0x15d0] sm:$0xff]  ;;  %v13009_v20 = vcombine.low %v5979_v60, %v5983_v34 }
 0x5df   :  { %10841 = vmatprep.subr.bf16.mxu1 %v12922_v24  ;;  %v5950_v24 = vld [vmem:[#allocation8 + $0x15f0] sm:$0xff] }
 0x5e0   :  { %10587 = vmatmul.mubr.bf16.vlgmr.msra.gmra.mrb[16].mxu0 %v14979_v41  ;;  %v12976_v21 = vcombine.high %v5946_v42, %v5950_v24 }
 0x5e1   :  { %10833 = vmatmul.mubr.bf16.vlgmr.msra.gmra.mrb[16].mxu1 %v14979_v41  ;;  %10596 = vmatpush1.bf16.msra.mxu0 %v12919_v13  ;;  %v12937_v41 = vcombine.low %v5907_v33, %v5911_v35  ;;  %v12967_v13 = vcombine.low %v5938_v17, %v5942_v55  ;;  %v12975_v33 = vcombine.low %v5946_v42, %v5950_v24  ;;  %v5987_v17 = vld [vmem:[#allocation8 + $0x1718] sm:$0xff] }
 0x5e2   :  { %10627 = vmatprep.mubr.bf16.mxu0 %v14981_v51  ;;  %10842 = vmatpush1.bf16.msra.mxu1 %v12921_v54  ;;  %v12978_v54 = vcombine.high %v5947_v53, %v5951_v10  ;;  %v12977_v35 = vcombine.low %v5947_v53, %v5951_v10  ;;  %v5991_v55 = vld [vmem:[#allocation8 + $0x1738] sm:$0xff] }
 0x5e3   :  { %10873 = vmatprep.mubr.bf16.mxu1 %v14981_v51  ;;  %10597 = vmatprep.subr.bf16.mxu0 %v12928_v29  ;;  %v12943_v51 = vcombine.low %v5914_v45, %v5918_v50  ;;  %v5954_v29 = vld [vmem:[#allocation8 + $0x1610] sm:$0xff]  ;;  %v5963_v45 = vld [vmem:[#allocation8 + $0x1658] sm:$0xff]  ;;  %v13017_v10 = vcombine.low %v5987_v17, %v5991_v55 }
 0x5e4   :  { %10843 = vmatprep.subr.bf16.mxu1 %v12930_v22  ;;  %v5959_v22 = vld [vmem:[#allocation8 + $0x1638] sm:$0xff]  ;;  %v12983_v30 = vcombine.low %v5954_v29, %v5958_v16 }
 0x5e5   :  { %10598 = vmatpush1.bf16.msra.mxu0 %v12927_v26  ;;  %v12984_v26 = vcombine.high %v5954_v29, %v5958_v16  ;;  %v5967_v50 = vld [vmem:[#allocation8 + $0x1678] sm:$0xff]  ;;  %v12985_v57 = vcombine.low %v5955_v19, %v5959_v22 }
 0x5e6   :  { %10844 = vmatpush1.bf16.msra.mxu1 %v12929_v47  ;;  %10599 = vmatprep.subr.bf16.mxu0 %v12936_v49  ;;  %v12986_v47 = vcombine.high %v5955_v19, %v5959_v22  ;;  %v5962_v49 = vld [vmem:[#allocation8 + $0x1650] sm:$0xff]  ;;  %v12993_v3 = vcombine.low %v5963_v45, %v5967_v50  ;;  %v5995_v42 = vld [vmem:[#allocation8 + $0x1758] sm:$0xff]  ;;  %v15022_v19 = vld [vmem:[#allocation10] sm:$0xff] }
 0x5e7   :  { %10845 = vmatprep.subr.bf16.mxu1 %v12938_v28  ;;  %v5966_v28 = vld [vmem:[#allocation8 + $0x1670] sm:$0xff]  ;;  %v5999_v24 = vld [vmem:[#allocation8 + $0x1778] sm:$0xff] }
 0x5e8   :  { %v12991_v1 = vcombine.low %v5962_v49, %v5966_v28  ;;  %v6003_v29 = vld [vmem:[#allocation8 + $0x1798] sm:$0xff] }
 0x5e9   :  { %10600 = vmatpush1.bf16.msra.mxu0 %v12935_v58  ;;  %v12992_v58 = vcombine.high %v5962_v49, %v5966_v28  ;;  %v6007_v16 = vld [vmem:[#allocation8 + $0x17b8] sm:$0xff]  ;;  %v6014_v49 = vld [vmem:[#allocation8 + $0x17f0] sm:$0xff]  ;;  %v6025_v28 = vrot.slane %v15022_v19, %v14867_v40 }
 0x5ea   :  { %10846 = vmatpush1.bf16.msra.mxu1 %v12937_v41  ;;  %10601 = vmatprep.subr.bf16.mxu0 %v12944_v59  ;;  %v12994_v41 = vcombine.high %v5963_v45, %v5967_v50  ;;  %v5970_v59 = vld [vmem:[#allocation8 + $0x1690] sm:$0xff]  ;;  %v6011_v45 = vld [vmem:[#allocation8 + $0x17d8] sm:$0xff] }
 0x5eb   :  { %10847 = vmatprep.subr.bf16.mxu1 %v12946_v15  ;;  %v5974_v15 = vld [vmem:[#allocation8 + $0x16b0] sm:$0xff]  ;;  %v6015_v50 = vld [vmem:[#allocation8 + $0x17f8] sm:$0xff] }
 0x5ec   :  { %v12999_v9 = vcombine.low %v5970_v59, %v5974_v15  ;;  %v13041_v40 = vcombine.low %v6011_v45, %v6015_v50 }
 0x5ed   :  { %10602 = vmatpush1.bf16.msra.mxu0 %v12943_v51  ;;  %v13000_v51 = vcombine.high %v5970_v59, %v5974_v15  ;;  %v13042_v59 = vcombine.high %v6011_v45, %v6015_v50  ;;  %v13209_v15 = vadd.f32 %v15010_v2, %v6025_v28  ;;  %v14433_v45 = vld [vmem:[#allocation11 + $0x180] sm:$0xff]   ;;  %v14434_v50 = vld [vmem:[#allocation11 + $0x148] sm:$0xff]  }
 0x5ee   :  { %10848 = vmatpush1.bf16.msra.mxu1 %v12945_v4  ;;  %10603 = vmatprep.subr.bf16.mxu0 %v12952_v8  ;;  %v13002_v4 = vcombine.high %v5971_v62, %v5975_v0  ;;  %v5978_v8 = vld [vmem:[#allocation8 + $0x16d0] sm:$0xff] }
 0x5ef   :  { %10849 = vmatprep.subr.bf16.mxu1 %v12954_v52  ;;  %v5982_v52 = vld [vmem:[#allocation8 + $0x16f0] sm:$0xff] }
 0x5f0   :  { %v13007_v5 = vcombine.low %v5978_v8, %v5982_v52 }
 0x5f1   :  { %10604 = vmatpush1.bf16.msra.mxu0 %v12951_v12  ;;  %v13008_v12 = vcombine.high %v5978_v8, %v5982_v52  ;;  %v14401_v8 = vld [vmem:[#allocation11 + $0x80] sm:$0xff]   ;;  %v14402_v52 = vld [vmem:[#allocation11 + $0x48] sm:$0xff]  }
 0x5f2   :  { %10850 = vmatpush1.bf16.msra.mxu1 %v12953_v14  ;;  %10605 = vmatprep.subr.bf16.mxu0 %v12960_v18  ;;  %v13010_v14 = vcombine.high %v5979_v60, %v5983_v34  ;;  %v5986_v18 = vld [vmem:[#allocation8 + $0x1710] sm:$0xff] }
 0x5f3   :  { %10851 = vmatprep.subr.bf16.mxu1 %v12962_v32  ;;  %v5990_v32 = vld [vmem:[#allocation8 + $0x1730] sm:$0xff] }
 0x5f4   :  { %v13015_v53 = vcombine.low %v5986_v18, %v5990_v32  ;;  %v14404_v34 = vld [vmem:[#allocation11 + $0x8] sm:$0xff]  }
 0x5f5   :  { %10606 = vmatpush1.bf16.msra.mxu0 %v12959_v63  ;;  %v13016_v63 = vcombine.high %v5986_v18, %v5990_v32  ;;  %v14409_v18 = vld [vmem:[#allocation11 + $0x90] sm:$0xff]   ;;  %v14410_v32 = vld [vmem:[#allocation11 + $0x58] sm:$0xff]  }
 0x5f6   :  { %10852 = vmatpush1.bf16.msra.mxu1 %v12961_v23  ;;  %10607 = vmatprep.subr.bf16.mxu0 %v12968_v37  ;;  %v13018_v23 = vcombine.high %v5987_v17, %v5991_v55  ;;  %v5994_v37 = vld [vmem:[#allocation8 + $0x1750] sm:$0xff]  ;;  %v14411_v17 = vld [vmem:[#allocation11 + $0xd8] sm:$0xff]  }
 0x5f7   :  { %10853 = vmatprep.subr.bf16.mxu1 %v12970_v43  ;;  %v5998_v43 = vld [vmem:[#allocation8 + $0x1770] sm:$0xff]  ;;  %v14413_v55 = vld [vmem:[#allocation11 + $0x98] sm:$0xff]  }
 0x5f8   :  { %v13023_v22 = vcombine.low %v5994_v37, %v5998_v43 }
 0x5f9   :  { %10608 = vmatpush1.bf16.msra.mxu0 %v12967_v13  ;;  %v13024_v13 = vcombine.high %v5994_v37, %v5998_v43  ;;  %v14418_v37 = vld [vmem:[#allocation11 + $0x68] sm:$0xff]  }
 0x5fa   :  { %10854 = vmatpush1.bf16.msra.mxu1 %v12969_v27  ;;  %10609 = vmatprep.subr.bf16.mxu0 %v12976_v21  ;;  %v13026_v27 = vcombine.high %v5995_v42, %v5999_v24  ;;  %v6002_v21 = vld [vmem:[#allocation8 + $0x1790] sm:$0xff] }
 0x5fb   :  { %10855 = vmatprep.subr.bf16.mxu1 %v12978_v54  ;;  %v6006_v54 = vld [vmem:[#allocation8 + $0x17b0] sm:$0xff] }
 0x5fc   :  { %v14419_v43 = vld [vmem:[#allocation11 + $0xe8] sm:$0xff]  }
 0x5fd   :  { %10610 = vmatpush1.bf16.msra.mxu0 %v12975_v33  ;;  %v13025_v33 = vcombine.low %v5995_v42, %v5999_v24  ;;  %v14420_v42 = vld [vmem:[#allocation11 + $0x28] sm:$0xff]   ;;  %v6021_v24 = vrot.slane %v15022_v19, %v14887_v7  ;;  %v14427_v7 = vld [vmem:[#allocation11 + $0xf8] sm:$0xff]  }
 0x5fe   :  { %10856 = vmatpush1.bf16.msra.mxu1 %v12977_v35  ;;  %10611 = vmatprep.subr.bf16.mxu0 %v12984_v26  ;;  %v13032_v35 = vcombine.high %v6002_v21, %v6006_v54  ;;  %v13034_v26 = vcombine.high %v6003_v29, %v6007_v16 }
 0x5ff   :  { %10857 = vmatprep.subr.bf16.mxu1 %v12986_v47  ;;  %v6010_v47 = vld [vmem:[#allocation8 + $0x17d0] sm:$0xff] }
 0x600   :  { %v13039_v0 = vcombine.low %v6010_v47, %v6014_v49 }
 0x601   :  { %10612 = vmatpush1.bf16.msra.mxu0 %v12983_v30  ;;  %v6033_v30 = vrot.slane %v15022_v19, %v14890_v48  ;;  %v14399_v48 = vld [vmem:[#allocation11 + $0xc0] sm:$0xff]  }
 0x602   :  { %10858 = vmatpush1.bf16.msra.mxu1 %v12985_v57  ;;  %10613 = vmatprep.subr.bf16.mxu0 %v12992_v58  ;;  %v13031_v57 = vcombine.low %v6002_v21, %v6006_v54  ;;  %v13033_v58 = vcombine.low %v6003_v29, %v6007_v16  ;;  %v14424_v21 = vld [vmem:[#allocation11 + $0x30] sm:$0xff]   ;;  %v13208_v54 = vadd.f32 %v15006_v61, %v6021_v24  ;;  %v14426_v16 = vld [vmem:[#allocation11 + $0x78] sm:$0xff]   ;;  %v14432_v61 = vld [vmem:[#allocation11 + $0x100] sm:$0xff]  }
 0x603   :  { %10859 = vmatprep.subr.bf16.mxu1 %v12994_v41  ;;  %v13040_v41 = vcombine.high %v6010_v47, %v6014_v49  ;;  %v13211_v62 = vadd.f32 %v15012_v6, %v6033_v30  ;;  %v14403_v6 = vld [vmem:[#allocation11 + $0xc8] sm:$0xff]   ;;  %v14425_v29 = vld [vmem:[#allocation11 + $0xb0] sm:$0xff]   ;;  %v14431_v49 = vld [vmem:[#allocation11 + $0x1c0] sm:$0xff]  }
 0x604   :  { %v14435_v30 = vld [vmem:[#allocation11 + $0x1c8] sm:$0xff]  }
 0x605   :  { %10614 = vmatpush1.bf16.msra.mxu0 %v12991_v1  ;;  %v14398_v1 = vld [vmem:[#allocation11 + $0x40] sm:$0xff]  }
 0x606   :  { %10860 = vmatpush1.bf16.msra.mxu1 %v12993_v3  ;;  %10615 = vmatprep.subr.bf16.mxu0 %v13000_v51  ;;  %v10883_v3 = vmax.f32 %v13209_v15, 0.0  ;;  %v10885_v51 = vmax.f32 %v13211_v62, 0.0  ;;  %v14440_v15 = vld [vmem:[#allocation11 + $0x110] sm:$0xff]  }
 0x607   :  { %10861 = vmatprep.subr.bf16.mxu1 %v13002_v4  ;;  %v14400_v4 = vld [vmem:[#allocation11] sm:$0xff]   ;;  %v14441_v62 = vld [vmem:[#allocation11 + $0x190] sm:$0xff]  }
 0x608   :  { %v10891_v2 = vpack.c.bf16 %v10883_v3, %v10883_v3  ;;  %v10893_v60 = vpack.c.bf16 %v10885_v51, %v10885_v51  ;;  %v14446_v3 = vld [vmem:[#allocation11 + $0x160] sm:$0xff]  }
 0x609   :  { %10616 = vmatpush1.bf16.msra.mxu0 %v12999_v9  ;;  %v14405_v9 = vld [vmem:[#allocation11 + $0x88] sm:$0xff]   ;;  %v14447_v51 = vld [vmem:[#allocation11 + $0x1e0] sm:$0xff]  }
 0x60a   :  { %10862 = vmatpush1.bf16.msra.mxu1 %v13001_v11  ;;  %10617 = vmatprep.subr.bf16.mxu0 %v13008_v12  ;;  %v14406_v11 = vld [vmem:[#allocation11 + $0x50] sm:$0xff]  }
 0x60b   :  { %10863 = vmatprep.subr.bf16.mxu1 %v13010_v14  ;;  %v14407_v12 = vld [vmem:[#allocation11 + $0xd0] sm:$0xff]  }
 0x60c   :  { %v14408_v14 = vld [vmem:[#allocation11 + $0x10] sm:$0xff]  }
 0x60d   :  { %10618 = vmatpush1.bf16.msra.mxu0 %v13007_v5  ;;  %v14414_v5 = vld [vmem:[#allocation11 + $0x60] sm:$0xff]  }
 0x60e   :  { %10864 = vmatpush1.bf16.msra.mxu1 %v13009_v20  ;;  %10619 = vmatprep.subr.bf16.mxu0 %v13016_v63  ;;  %v14415_v20 = vld [vmem:[#allocation11 + $0xe0] sm:$0xff]  }
 0x60f   :  { %10865 = vmatprep.subr.bf16.mxu1 %v13018_v23  ;;  %v14416_v63 = vld [vmem:[#allocation11 + $0x20] sm:$0xff]  }
 0x610   :  { %v14417_v23 = vld [vmem:[#allocation11 + $0xa0] sm:$0xff]  }
 0x611   :  { %10620 = vmatpush1.bf16.msra.mxu0 %v13015_v53  ;;  %v14421_v53 = vld [vmem:[#allocation11 + $0xa8] sm:$0xff]  }
 0x612   :  { %10866 = vmatpush1.bf16.msra.mxu1 %v13017_v10  ;;  %10621 = vmatprep.subr.bf16.mxu0 %v13024_v13  ;;  %v14422_v10 = vld [vmem:[#allocation11 + $0x70] sm:$0xff]   ;;  %v6029_v13 = vrot.slane %v15022_v19, %v14907_v39  ;;  %v14429_v39 = vld [vmem:[#allocation11 + $0xb8] sm:$0xff]  }
 0x613   :  { %10867 = vmatprep.subr.bf16.mxu1 %v13026_v27  ;;  %v14423_v27 = vld [vmem:[#allocation11 + $0xf0] sm:$0xff]  }
 0x615   :  { %10622 = vmatpush1.bf16.msra.mxu0 %v13023_v22  ;;  %v13210_v22 = vadd.f32 %v15008_v56, %v6029_v13 }
 0x616   :  { %10868 = vmatpush1.bf16.msra.mxu1 %v13025_v33  ;;  %10623 = vmatprep.subr.bf16.mxu0 %v13032_v35  ;;  %v14428_v33 = vld [vmem:[#allocation11 + $0x38] sm:$0xff]   ;;  %v10882_v35 = vmax.f32 %v13208_v54, 0.0 }
 0x617   :  { %10869 = vmatprep.subr.bf16.mxu1 %v13034_v26  ;;  %v14430_v26 = vld [vmem:[#allocation11 + $0x140] sm:$0xff]   ;;  %v10884_v47 = vmax.f32 %v13210_v22, 0.0 }
 0x618   :  { %v10890_v28 = vpack.c.bf16 %v10882_v35, %v10882_v35 }
 0x619   :  { %10624 = vmatpush1.bf16.msra.mxu0 %v13031_v57  ;;  %v10892_v56 = vpack.c.bf16 %v10884_v47, %v10884_v47  ;;  %v14436_v57 = vld [vmem:[#allocation11 + $0x108] sm:$0xff]  }
 0x61a   :  { %10870 = vmatpush1.bf16.msra.mxu1 %v13033_v58  ;;  %10625 = vmatprep.subr.bf16.mxu0 %v13040_v41  ;;  %v14437_v58 = vld [vmem:[#allocation11 + $0x188] sm:$0xff]   ;;  %v14438_v41 = vld [vmem:[#allocation11 + $0x150] sm:$0xff]  }
 0x61b   :  { %10871 = vmatprep.subr.bf16.mxu1 %v13042_v59  ;;  %v14439_v59 = vld [vmem:[#allocation11 + $0x1d0] sm:$0xff]  }
 0x61d   :  { %10626 = vmatpush1.bf16.msra.mxu0 %v13039_v0  ;;  %v14442_v0 = vld [vmem:[#allocation11 + $0x158] sm:$0xff]  }
 0x61e   :  { %10872 = vmatpush1.bf16.msra.mxu1 %v13041_v40  ;;  %13108 = vmatprep.subr.bf16.mxu0 %v14398_v1  ;;  %v14443_v40 = vld [vmem:[#allocation11 + $0x1d8] sm:$0xff]  }
 0x61f   :  { %13130 = vmatprep.subr.bf16.mxu1 %v14399_v48  ;;  %v14444_v1 = vld [vmem:[#allocation11 + $0x118] sm:$0xff]  }
 0x620   :  { %10628 = vmatmul.mubr.bf16.vlgmr.msra.gmra.mrb[16].mxu0 %v14988_v46  ;;  %v14445_v48 = vld [vmem:[#allocation11 + $0x198] sm:$0xff]  }
 0x621   :  { %10874 = vmatmul.mubr.bf16.vlgmr.msra.gmra.mrb[16].mxu1 %v14988_v46  ;;  %13109 = vmatpush3.bf16.msra.mxu0 %v14400_v4  ;;  %v14412_v46 = vld [vmem:[#allocation11 + $0x18] sm:$0xff]   ;;  %v14448_v4 = vld [vmem:[#allocation11 + $0x120] sm:$0xff]  }
 0x622   :  { %11449 = vmatprep.mubr.bf16.mxu0 %v10891_v2  ;;  %13131 = vmatpush3.bf16.msra.mxu1 %v14401_v8  ;;  %v14449_v8 = vld [vmem:[#allocation11 + $0x1a0] sm:$0xff]   ;;  %v14451_v2 = vld [vmem:[#allocation11 + $0x1e8] sm:$0xff]  }
 0x623   :  { %11489 = vmatprep.mubr.bf16.mxu1 %v10893_v60  ;;  %13110 = vmatprep.subr.bf16.mxu0 %v14402_v52  ;;  %v14450_v52 = vld [vmem:[#allocation11 + $0x168] sm:$0xff]  }
 0x624   :  { %13132 = vmatprep.subr.bf16.mxu1 %v14403_v6  ;;  %v14452_v6 = vld [vmem:[#allocation11 + $0x128] sm:$0xff]  }
 0x625   :  { %13111 = vmatpush3.bf16.msra.mxu0 %v14404_v34  ;;  %v14453_v60 = vld [vmem:[#allocation11 + $0x1a8] sm:$0xff]   ;;  %v14454_v34 = vld [vmem:[#allocation11 + $0x170] sm:$0xff]  }
 0x626   :  { %13133 = vmatpush3.bf16.msra.mxu1 %v14405_v9  ;;  %13112 = vmatprep.subr.bf16.mxu0 %v14406_v11  ;;  %v14455_v9 = vld [vmem:[#allocation11 + $0x1f0] sm:$0xff]  }
 0x627   :  { %13134 = vmatprep.subr.bf16.mxu1 %v14407_v12  ;;  %v14456_v11 = vld [vmem:[#allocation11 + $0x130] sm:$0xff]  }
 0x628   :  { %v14457_v12 = vld [vmem:[#allocation11 + $0x1b0] sm:$0xff]  }
 0x629   :  { %13113 = vmatpush3.bf16.msra.mxu0 %v14408_v14  ;;  %v14458_v14 = vld [vmem:[#allocation11 + $0x178] sm:$0xff]  }
 0x62a   :  { %13135 = vmatpush3.bf16.msra.mxu1 %v14409_v18  ;;  %13114 = vmatprep.subr.bf16.mxu0 %v14410_v32  ;;  %v14459_v18 = vld [vmem:[#allocation11 + $0x1f8] sm:$0xff]  }
 0x62b   :  { %13136 = vmatprep.subr.bf16.mxu1 %v14411_v17  ;;  %v14460_v32 = vld [vmem:[#allocation11 + $0x138] sm:$0xff]  }
 0x62c   :  { %v14461_v17 = vld [vmem:[#allocation11 + $0x1b8] sm:$0xff]  }
 0x62d   :  { %13115 = vmatpush3.bf16.msra.mxu0 %v14412_v46  ;;  %v6037_v46 = vrot.slane %v15022_v19, %v813_v25 }
 0x62e   :  { %13137 = vmatpush3.bf16.msra.mxu1 %v14413_v55  ;;  %13116 = vmatprep.subr.bf16.mxu0 %v14414_v5  ;;  %v6045_v55 = vrot.slane %v15022_v19, %v821_v38  ;;  %v6041_v5 = vrot.slane %v15022_v19, %v817_v44 }
 0x62f   :  { %13138 = vmatprep.subr.bf16.mxu1 %v14415_v20  ;;  %v6049_v20 = vrot.slane %v15022_v19, %v825_v31 }
 0x631   :  { %13117 = vmatpush3.bf16.msra.mxu0 %v14416_v63 }
 0x632   :  { %13139 = vmatpush3.bf16.msra.mxu1 %v14417_v23  ;;  %13118 = vmatprep.subr.bf16.mxu0 %v14418_v37 }
 0x633   :  { %13140 = vmatprep.subr.bf16.mxu1 %v14419_v43 }
 0x635   :  { %13119 = vmatpush3.bf16.msra.mxu0 %v14420_v42 }
 0x636   :  { %13141 = vmatpush3.bf16.msra.mxu1 %v14421_v53  ;;  %13120 = vmatprep.subr.bf16.mxu0 %v14422_v10 }
 0x637   :  { %13142 = vmatprep.subr.bf16.mxu1 %v14423_v27 }
 0x639   :  { %13121 = vmatpush3.bf16.msra.mxu0 %v14424_v21 }
 0x63a   :  { %13143 = vmatpush3.bf16.msra.mxu1 %v14425_v29  ;;  %13122 = vmatprep.subr.bf16.mxu0 %v14426_v16 }
 0x63b   :  { %13144 = vmatprep.subr.bf16.mxu1 %v14427_v7 }
 0x63d   :  { %13123 = vmatpush3.bf16.msra.mxu0 %v14428_v33  ;;  %v13043_v33 = vld [vmem:[#allocation13] ss:$0 sm:$0xff] }
 0x63e   :  { %13145 = vmatpush3.bf16.msra.mxu1 %v14429_v39  ;;  %13152 = vmatprep.subr.bf16.mxu0 %v14430_v26 }
 0x63f   :  { %13174 = vmatprep.subr.bf16.mxu1 %v14431_v49 }
 0x640   :  { %11450 = vmatmul.mubr.bf16.vlgmr.msra.gmra.mrb[20].mxu0 %v10890_v28 }
 0x641   :  { %11490 = vmatmul.mubr.bf16.vlgmr.msra.gmra.mrb[20].mxu1 %v10892_v56  ;;  %13153 = vmatpush3.bf16.msra.mxu0 %v14432_v61 }
 0x642   :  { %13175 = vmatpush3.bf16.msra.mxu1 %v14433_v45  ;;  %13154 = vmatprep.subr.bf16.mxu0 %v14434_v50 }
 0x643   :  { %13176 = vmatprep.subr.bf16.mxu1 %v14435_v30 }
 0x645   :  { %13155 = vmatpush3.bf16.msra.mxu0 %v14436_v57 }
 0x646   :  { %13177 = vmatpush3.bf16.msra.mxu1 %v14437_v58  ;;  %13156 = vmatprep.subr.bf16.mxu0 %v14438_v41 }
 0x647   :  { %13178 = vmatprep.subr.bf16.mxu1 %v14439_v59 }
 0x649   :  { %13157 = vmatpush3.bf16.msra.mxu0 %v14440_v15 }
 0x64a   :  { %13179 = vmatpush3.bf16.msra.mxu1 %v14441_v62  ;;  %13158 = vmatprep.subr.bf16.mxu0 %v14442_v0 }
 0x64b   :  { %13180 = vmatprep.subr.bf16.mxu1 %v14443_v40 }
 0x64d   :  { %13159 = vmatpush3.bf16.msra.mxu0 %v14444_v1 }
 0x64e   :  { %13181 = vmatpush3.bf16.msra.mxu1 %v14445_v48  ;;  %13160 = vmatprep.subr.bf16.mxu0 %v14446_v3 }
 0x64f   :  { %13182 = vmatprep.subr.bf16.mxu1 %v14447_v51 }
 0x651   :  { %13161 = vmatpush3.bf16.msra.mxu0 %v14448_v4 }
 0x652   :  { %13183 = vmatpush3.bf16.msra.mxu1 %v14449_v8  ;;  %13162 = vmatprep.subr.bf16.mxu0 %v14450_v52 }
 0x653   :  { %13184 = vmatprep.subr.bf16.mxu1 %v14451_v2 }
 0x655   :  { %13163 = vmatpush3.bf16.msra.mxu0 %v14452_v6 }
 0x656   :  { %13185 = vmatpush3.bf16.msra.mxu1 %v14453_v60  ;;  %13164 = vmatprep.subr.bf16.mxu0 %v14454_v34 }
 0x657   :  { %13186 = vmatprep.subr.bf16.mxu1 %v14455_v9 }
 0x659   :  { %13165 = vmatpush3.bf16.msra.mxu0 %v14456_v11 }
 0x65a   :  { %13187 = vmatpush3.bf16.msra.mxu1 %v14457_v12  ;;  %13166 = vmatprep.subr.bf16.mxu0 %v14458_v14 }
 0x65b   :  { %13188 = vmatprep.subr.bf16.mxu1 %v14459_v18 }
 0x65d   :  { %13167 = vmatpush3.bf16.msra.mxu0 %v14460_v32 }
 0x65e   :  { %13189 = vmatpush3.bf16.msra.mxu1 %v14461_v17 }
 0x6f3   :  { %v10629_v63 = vpop.f32.mrb[16].mxu0 }
 0x6f4   :  { %v13212_v23 = vadd.f32 %v10629_v63, %v6037_v46  ;;  %v10875_v37 = vpop.f32.mrb[16].mxu1  ;;  %v10631_v43 = vpop.f32.mrb[17].mxu0 }
 0x6f5   :  { %v13214_v42 = vadd.f32 %v10875_v37, %v6045_v55  ;;  %v13213_v24 = vadd.f32 %v10631_v43, %v6041_v5  ;;  %v10877_v53 = vpop.f32.mrb[17].mxu1  ;;  %v10633_v25 = vpop.f32.mrb[18].mxu0 }
 0x6f6   :  { %v10886_v10 = vmax.f32 %v13212_v23, 0.0  ;;  %v13215_v13 = vadd.f32 %v10877_v53, %v6049_v20  ;;  %v10879_v27 = vpop.f32.mrb[18].mxu1  ;;  %v10634_v38 = vpop.f32.mrb[19].mxu0 }
 0x6f7   :  { %v10888_v21 = vmax.f32 %v13214_v42, 0.0  ;;  %v10887_v54 = vmax.f32 %v13213_v24, 0.0  ;;  %v10880_v29 = vpop.f32.mrb[19].mxu1 }
 0x6f8   :  { %v10889_v44 = vmax.f32 %v13215_v13, 0.0  ;;  %v10894_v36 = vpack.c.bf16 %v10886_v10, %v10886_v10 }
 0x6f9   :  { %v10895_v16 = vpack.c.bf16 %v10887_v54, %v10887_v54  ;;  %v10896_v31 = vpack.c.bf16 %v10888_v21, %v10888_v21 }
 0x6fa   :  { %v10897_v22 = vpack.c.bf16 %v10889_v44, %v10889_v44 }
 0x6fb   :  { %11529 = vmatprep.mubr.bf16.mxu0 %v10895_v16 }
 0x6fc   :  { %11569 = vmatprep.mubr.bf16.mxu1 %v10897_v22  ;;  %11530 = vmatmul.mubr.bf16.vlgmr.msra.gmra.mrb[24].mxu0 %v10894_v36 }
 0x6fd   :  { %11570 = vmatmul.mubr.bf16.vlgmr.msra.gmra.mrb[24].mxu1 %v10896_v31 }
 0x713   :  { %v13124_v19 = vpop.f32.mrb[20].mxu0 }
 0x714   :  { %v13146_v7 = vpop.f32.mrb[20].mxu1  ;;  %v13125_v35 = vpop.f32.mrb[21].mxu0 }
 0x715   :  { %v13126_v39 = vadd.f32 %v13125_v35, %v13124_v19  ;;  %v13147_v26 = vpop.f32.mrb[21].mxu1  ;;  %v13127_v47 = vpop.f32.mrb[22].mxu0 }
 0x716   :  { %v13148_v49 = vadd.f32 %v13147_v26, %v13146_v7  ;;  %v13149_v61 = vpop.f32.mrb[22].mxu1  ;;  %v13128_v28 = vpop.f32.mrb[23].mxu0 }
 0x717   :  { %v11452_v45 = vadd.f32 %v13126_v39, %v13043_v33  ;;  %v13150_v50 = vpop.f32.mrb[23].mxu1 }
 0x719   :  { %v11492_v56 = vadd.f32 %v13148_v49, %v11452_v45 }
 0x7cf   :  { %v13168_v30 = vpop.f32.mrb[24].mxu0 }
 0x7d0   :  { %v13190_v57 = vpop.f32.mrb[24].mxu1  ;;  %v13169_v58 = vpop.f32.mrb[25].mxu0 }
 0x7d1   :  { %v13170_v41 = vadd.f32 %v13169_v58, %v13168_v30  ;;  %v13191_v59 = vpop.f32.mrb[25].mxu1  ;;  %v13171_v15 = vpop.f32.mrb[26].mxu0 }
 0x7d2   :  { %v13192_v62 = vadd.f32 %v13191_v59, %v13190_v57  ;;  %v13193_v0 = vpop.f32.mrb[26].mxu1  ;;  %v13172_v40 = vpop.f32.mrb[27].mxu0 }
 0x7d3   :  { %v11532_v1 = vadd.f32 %v13170_v41, %v11492_v56  ;;  %v13194_v48 = vpop.f32.mrb[27].mxu1 }
 0x7d5   :  { %v11572_v3 = vadd.f32 %v13192_v62, %v11532_v1 }
 0x7d7   :  { %11577 = vst [vmem:[#allocation14] sm:$0xff] %v11572_v3 }
 0x7d8   :  { %14630 = shalt.err (!%p14627_p4)
}
 0x7d9   :  { %s14631_s15 = scalar_lea.hbm %s15069_s7, 128 }
 0x7da   :  { %p14632_p5 = scmp.ne.s32.totalorder %s15069_s7, %s14631_s15  ;;  %p14635_p6 = scmp.lt.u32.totalorder %s14631_s15, %s15069_s7 }
 0x7dc   :  { %p14637_p7 = pnand %p14635_p6, %p14632_p5 }
 0x7de   :  { %14640 = shalt.err (!%p14637_p7)
}
 0x7df   :  { %11587 = dma.vmem_to_hbm [thread:$0]  %s11585_s13, 128, %s15069_s7, [#allocation4]  }
 0x7e0   :  { %14649 = dma.done.wait [#allocation4], 128  }
 0x7e1   :  { %14650 = vsyncadd [#allocation4], 4294967168 }
 0x7e2   :  { %11591 = vsyncpa [#allocation3], 1 }
 0x7e3   :  { %11592 = vsyncpa [#allocation6], 1 }
 0x7e4   :  { %11593 = vsyncpa [#allocation9], 1 }
 0x7e5   :  { %11594 = vsyncpa [#allocation12], 1 }
 0x7e6   :  { %11595 = vsyncpa [#allocation4], 1 }

</bundles_post_ra>
